<compile_context>
chip_gen: v7x
topology: tpu7x:2x2x1
jax: 0.10.0
libtpu: 0.0.40
codegen_flags: <defaults>
</compile_context>

<pallas_src>
import jax
import jax.numpy as jnp
import numpy as np
from jax import lax
from jax.experimental import pallas as pl
from jax.experimental.pallas import tpu as pltpu

H_IN = W_IN = 28            # required by fc1 = Linear(64*12*12, 128)
K = 3                       # conv kernel size
C1_OUT, C2_OUT = 32, 64
H1 = H_IN - K + 1           # 26  (conv1 output height / width)
W1P = 32                    # conv1 output width padded to 32 (8-aligned sublane dim)
H2 = H1 - K + 1             # 24  (conv2 output)
HP = H2 // 2                # 12  (after 2x2 max-pool, stride 2)
KC2 = K * K * C1_OUT        # 288 (conv2 im2col contraction)
FEAT = C2_OUT * HP * HP     # 9216
HIDDEN = 128
BBLK_MAX = 8                # images per conv grid step (fits v7x 64 MiB VMEM; v5e/v6e could take 16)
VMEM_LIMIT = 48 * 1024 * 1024


# ---------------------------------------------------------------------------
# Kernel 1: conv1 + ReLU + conv2 + ReLU + 2x2 max-pool, Bblk images per grid step.
# conv1: one im2col matmul (K = 9*C).  conv2: one im2col matmul (K = 288).
# ---------------------------------------------------------------------------
def _conv_pool_kernel(x_ref, w1_ref, b1_ref, w2_ref, b2_ref, out_ref,
                      h1_ref, col2_ref, h2_ref, rm_ref):
    # x_ref  : (Bblk, 26, 32, 9C)   host-side im2col patches (tap-major, channel fastest)
    # w1_ref : (9C, 32)   b1_ref: (1, 32)
    # w2_ref : (288, 64)  b2_ref: (1, 64)
    # out_ref: (Bblk, 12, 12, 64)
    # scratch: h1 (Bblk,26,32,32), col2 (Bblk,24,24,288), h2 (Bblk,24,24,64), rm (Bblk,12,24,64)
    bblk = x_ref.shape[0]
    kc1 = x_ref.shape[3]
    m1 = bblk * H1 * W1P
    m2 = bblk * H2 * H2

    # ---- conv1 + bias + ReLU: single matmul, single write of h1 (no RMW passes) ----
    # Columns 26..31 of h1 hold relu(b1) garbage (zero-padded patches) and are never read.
    d1 = jnp.dot(x_ref[...].reshape(m1, kc1), w1_ref[...],
                 preferred_element_type=jnp.float32)
    h1_ref[...] = jnp.maximum(d1.reshape(bblk, H1, W1P, C1_OUT) + b1_ref[...], 0.0)

    # ---- conv2 + bias + ReLU: build im2col buffer (9 shifted copies), one K=288 matmul ----
    for ky in range(K):
        for kx in range(K):
            t = ky * K + kx
            col2_ref[:, :, :, t * C1_OUT:(t + 1) * C1_OUT] = \
                h1_ref[:, ky:ky + H2, kx:kx + H2, :]
    d2 = jnp.dot(col2_ref[...].reshape(m2, KC2), w2_ref[...],
                 preferred_element_type=jnp.float32)
    h2_ref[...] = jnp.maximum(d2.reshape(bblk, H2, H2, C2_OUT) + b2_ref[...], 0.0)

    # ---- 2x2 max-pool, stride 2: strided ref reads (rows, then columns) ----
    rm_ref[...] = jnp.maximum(h2_ref[:, pl.ds(0, HP, stride=2), :, :],
                              h2_ref[:, pl.ds(1, HP, stride=2), :, :])
    out_ref[...] = jnp.maximum(rm_ref[:, :, pl.ds(0, HP, stride=2), :],
                               rm_ref[:, :, pl.ds(1, HP, stride=2), :])


def conv_pool(x_col, w1, b1, w2, b2, bblk):
    b_pad = x_col.shape[0]
    kc1 = x_col.shape[3]
    return pl.pallas_call(
        _conv_pool_kernel,
        out_shape=jax.ShapeDtypeStruct((b_pad, HP, HP, C2_OUT), jnp.float32),
        grid_spec=pltpu.PrefetchScalarGridSpec(
            num_scalar_prefetch=0,
            grid=(b_pad // bblk,),
            in_specs=[
                pl.BlockSpec((bblk, H1, W1P, kc1), lambda i: (i, 0, 0, 0)),
                pl.BlockSpec((kc1, C1_OUT), lambda i: (0, 0)),
                pl.BlockSpec((1, C1_OUT), lambda i: (0, 0)),
                pl.BlockSpec((KC2, C2_OUT), lambda i: (0, 0)),
                pl.BlockSpec((1, C2_OUT), lambda i: (0, 0)),
            ],
            out_specs=pl.BlockSpec((bblk, HP, HP, C2_OUT), lambda i: (i, 0, 0, 0)),
            scratch_shapes=[
                pltpu.VMEM((bblk, H1, W1P, C1_OUT), jnp.float32),   # h1
                pltpu.VMEM((bblk, H2, H2, KC2), jnp.float32),       # conv2 im2col buffer
                pltpu.VMEM((bblk, H2, H2, C2_OUT), jnp.float32),    # h2
                pltpu.VMEM((bblk, HP, H2, C2_OUT), jnp.float32),    # row-max intermediate
            ],
        ),
        compiler_params=pltpu.CompilerParams(
            dimension_semantics=("parallel",),
            vmem_limit_bytes=VMEM_LIMIT),
    )(x_col, w1, b1, w2, b2)


# ---------------------------------------------------------------------------
# Kernel 2: fc1 + ReLU + (dropout as identity) + fc2
# Tiled over (batch, contraction); f32 VMEM accumulator; lane-dense fc2 output.
# ---------------------------------------------------------------------------
def _mlp_kernel(f_ref, w1_ref, b1_ref, w2_ref, b2_ref, out_ref, acc_ref):
    k = pl.program_id(1)

    @pl.when(k == 0)
    def _():
        acc_ref[...] = jnp.zeros_like(acc_ref)

    acc_ref[...] += jnp.dot(f_ref[...], w1_ref[...],
                            preferred_element_type=jnp.float32)

    @pl.when(k == pl.num_programs(1) - 1)
    def _():
        h = jnp.maximum(acc_ref[...] + b1_ref[...], 0.0)
        # TODO(synk): nn.Dropout(p=0.5) is treated as identity (eval mode); training-mode
        # would use pltpu.prng_seed + pltpu.prng_random_bits.
        out_ref[...] = (jnp.dot(h, w2_ref[...], preferred_element_type=jnp.float32)
                        + b2_ref[...])


def mlp(f, w1, b1, w2, b2, *, tk=4608, bm_max=128):
    b, feat = f.shape
    ncp = w2.shape[1]
    assert feat % tk == 0
    bm = b if b <= bm_max else bm_max
    b_pad = ((b + bm - 1) // bm) * bm
    if b_pad != b:
        f = jnp.pad(f, ((0, b_pad - b), (0, 0)))
    out = pl.pallas_call(
        _mlp_kernel,
        out_shape=jax.ShapeDtypeStruct((b_pad, ncp), jnp.float32),
        grid_spec=pltpu.PrefetchScalarGridSpec(
            num_scalar_prefetch=0,
            grid=(b_pad // bm, feat // tk),
            in_specs=[
                pl.BlockSpec((bm, tk), lambda i, k: (i, k)),
                pl.BlockSpec((tk, HIDDEN), lambda i, k: (k, 0)),
                pl.BlockSpec((1, HIDDEN), lambda i, k: (0, 0)),
                pl.BlockSpec((HIDDEN, ncp), lambda i, k: (0, 0)),
                pl.BlockSpec((1, ncp), lambda i, k: (0, 0)),
            ],
            out_specs=pl.BlockSpec((bm, ncp), lambda i, k: (i, 0)),
            scratch_shapes=[pltpu.VMEM((bm, HIDDEN), jnp.float32)],
        ),
        compiler_params=pltpu.CompilerParams(
            dimension_semantics=("parallel", "arbitrary"),
            vmem_limit_bytes=VMEM_LIMIT),
    )(f, w1, b1, w2, b2)
    return out[:b]


# ---------------------------------------------------------------------------
# Forward pass (wrapper: conv1 im2col + layout prep; flatten between kernels is free)
# ---------------------------------------------------------------------------
def torch_cnn_forward(x_nchw, p):
    b = x_nchw.shape[0]
    c = x_nchw.shape[1]
    nc = p["fc2_w"].shape[0]
    ncp = -(-nc // 128) * 128                                    # lane-dense final output
    kc1 = K * K * c

    # Host-side im2col for conv1 (input is tiny): tap-major, channel fastest.
    # Width padded 26 -> 32 so all in-kernel sublane collapses are 8-aligned.
    x_nhwc = jnp.transpose(x_nchw, (0, 2, 3, 1))
    pats = [x_nhwc[:, ky:ky + H1, kx:kx + H1, :]
            for ky in range(K) for kx in range(K)]
    x_col = jnp.concatenate(pats, axis=-1)                       # (B, 26, 26, 9C)
    x_col = jnp.pad(x_col, ((0, 0), (0, 0), (0, W1P - H1), (0, 0)))

    # Bblk <= ceil(B/2) so the "parallel" batch grid has >= 2 steps (v7x dual-TC coverage).
    bblk = max(1, min(BBLK_MAX, -(-b // 2)))
    b_pad = ((b + bblk - 1) // bblk) * bblk
    if b_pad != b:
        x_col = jnp.pad(x_col, ((0, b_pad - b), (0, 0), (0, 0), (0, 0)))

    # conv weights flattened to im2col order: (ky, kx, c) rows.
    w1 = jnp.transpose(p["conv1_w"], (2, 3, 1, 0)).reshape(kc1, C1_OUT)
    w2 = jnp.transpose(p["conv2_w"], (2, 3, 1, 0)).reshape(KC2, C2_OUT)

    pooled = conv_pool(x_col, w1, p["conv1_b"][None, :],
                       w2, p["conv2_b"][None, :], bblk)          # (B_pad, 12, 12, 64)

    # Free flatten (row-major trailing collapse in HBM) in HWC order; fc1's weight rows are
    # permuted to match, so no transpose of the activations between the two kernels.
    feat = pooled[:b].reshape(b, FEAT)
    w_fc1 = (p["fc1_w"].reshape(HIDDEN, C2_OUT, HP, HP)
             .transpose(0, 2, 3, 1).reshape(HIDDEN, FEAT).T)     # (FEAT, 128), HWC row order
    b_fc1 = p["fc1_b"][None, :]

    # fc2 padded to a multiple of 128 output lanes (unmasked final stores); slice after.
    w_fc2 = jnp.zeros((HIDDEN, ncp), jnp.float32).at[:, :nc].set(p["fc2_w"].T)
    b_fc2 = jnp.zeros((1, ncp), jnp.float32).at[0, :nc].set(p["fc2_b"])

    out = mlp(feat, w_fc1, b_fc1, w_fc2, b_fc2)                  # (B, ncp)
    return out[:, :nc]


# ---------------------------------------------------------------------------
# Deterministic parameter init (PyTorch-layout shapes)
# ---------------------------------------------------------------------------
def init_params(key, num_channels, num_classes):
    ks = jax.random.split(key, 8)

    def u(k, shape, fan_in):
        bound = 1.0 / np.sqrt(fan_in)
        return jax.random.uniform(k, shape, jnp.float32, -bound, bound)

    return {
        "conv1_w": u(ks[0], (C1_OUT, num_channels, K, K), num_channels * K * K),
        "conv1_b": u(ks[1], (C1_OUT,), num_channels * K * K),
        "conv2_w": u(ks[2], (C2_OUT, C1_OUT, K, K), C1_OUT * K * K),
        "conv2_b": u(ks[3], (C2_OUT,), C1_OUT * K * K),
        "fc1_w": u(ks[4], (HIDDEN, FEAT), FEAT),
        "fc1_b": u(ks[5], (HIDDEN,), FEAT),
        "fc2_w": u(ks[6], (num_classes, HIDDEN), HIDDEN),
        "fc2_b": u(ks[7], (num_classes,), HIDDEN),
    }


# ---------------------------------------------------------------------------
# Pure-JAX reference (mirrors the PyTorch forward exactly)
# ---------------------------------------------------------------------------
def reference_forward(x, p):
    dn = ("NCHW", "OIHW", "NCHW")
    y = lax.conv_general_dilated(x, p["conv1_w"], (1, 1), "VALID", dimension_numbers=dn)
    y = jax.nn.relu(y + p["conv1_b"][None, :, None, None])
    y = lax.conv_general_dilated(y, p["conv2_w"], (1, 1), "VALID", dimension_numbers=dn)
    y = jax.nn.relu(y + p["conv2_b"][None, :, None, None])
    y = lax.reduce_window(y, -jnp.inf, lax.max, (1, 1, 2, 2), (1, 1, 2, 2), "VALID")
    y = y.reshape(y.shape[0], -1)
    y = jax.nn.relu(y @ p["fc1_w"].T + p["fc1_b"])
    return y @ p["fc2_w"].T + p["fc2_b"]


if __name__ == "__main__":
    batch, num_channels, num_classes = 2, 3, 10
    key = jax.random.PRNGKey(0)
    kx, kp = jax.random.split(key)
    x = jax.random.normal(kx, (batch, num_channels, H_IN, W_IN), jnp.float32)
    params = init_params(kp, num_channels, num_classes)

    out = jax.block_until_ready(jax.jit(torch_cnn_forward)(x, params))
    assert out.shape == (batch, num_classes) and out.dtype == jnp.float32

    ref = reference_forward(x, params)
    np.testing.assert_allclose(np.asarray(out), np.asarray(ref), rtol=5e-3, atol=5e-3)

    print("KERNEL_OK")
</pallas_src>

<mosaic_0001>
module attributes {stable_mosaic.version = 11 : i64} {
  func.func @_conv_pool_kernel(%arg0: i32, %arg1: memref<1x26x32x27xf32, #tpu.memory_space<vmem>>, %arg2: memref<27x32xf32, #tpu.memory_space<vmem>>, %arg3: memref<1x32xf32, #tpu.memory_space<vmem>>, %arg4: memref<288x64xf32, #tpu.memory_space<vmem>>, %arg5: memref<1x64xf32, #tpu.memory_space<vmem>>, %arg6: memref<1x12x12x64xf32, #tpu.memory_space<vmem>>, %arg7: memref<1x26x32x32xf32, #tpu.memory_space<vmem>>, %arg8: memref<1x24x24x288xf32, #tpu.memory_space<vmem>>, %arg9: memref<1x24x24x64xf32, #tpu.memory_space<vmem>>, %arg10: memref<1x12x24x64xf32, #tpu.memory_space<vmem>>) attributes {dimension_semantics = [#tpu.dimension_semantics<parallel>], iteration_bounds = array<i64: 2>, scalar_prefetch = 0 : i64, scratch_operands = 4 : i64, tpu.core_type = #tpu.core_type<tc>, window_params = [{transform_indices = @transform_0, window_bounds = array<i64: 1, 26, 32, 27>}, {pipeline_mode = #tpu.pipeline_mode<synchronous>, transform_indices = @transform_1, window_bounds = array<i64: 27, 32>}, {pipeline_mode = #tpu.pipeline_mode<synchronous>, transform_indices = @transform_2, window_bounds = array<i64: 1, 32>}, {pipeline_mode = #tpu.pipeline_mode<synchronous>, transform_indices = @transform_3, window_bounds = array<i64: 288, 64>}, {pipeline_mode = #tpu.pipeline_mode<synchronous>, transform_indices = @transform_4, window_bounds = array<i64: 1, 64>}, {transform_indices = @transform_5, window_bounds = array<i64: 1, 12, 12, 64>}]} {
    %c0 = arith.constant 0 : index
    %c0_0 = arith.constant 0 : index
    %c0_1 = arith.constant 0 : index
    %c0_2 = arith.constant 0 : index
    %0 = vector.load %arg1[%c0, %c0_0, %c0_1, %c0_2] : memref<1x26x32x27xf32, #tpu.memory_space<vmem>>, vector<1x26x32x27xf32>
    %1 = vector.shape_cast %0 : vector<1x26x32x27xf32> to vector<832x27xf32>
    %c0_3 = arith.constant 0 : index
    %c0_4 = arith.constant 0 : index
    %2 = vector.load %arg2[%c0_3, %c0_4] : memref<27x32xf32, #tpu.memory_space<vmem>>, vector<27x32xf32>
    %cst = arith.constant dense<0.000000e+00> : vector<832x32xf32>
    %3 = tpu.matmul %1, %2, %cst {dimension_numbers = #tpu.dot_dimension_numbers<[1], [0], [0], [1], [0, 0, 1, 1], [], []>} : vector<832x27xf32>, vector<27x32xf32>, vector<832x32xf32> -> vector<832x32xf32>
    %4 = vector.shape_cast %3 : vector<832x32xf32> to vector<1x26x32x32xf32>
    %c0_5 = arith.constant 0 : index
    %c0_6 = arith.constant 0 : index
    %5 = vector.load %arg3[%c0_5, %c0_6] : memref<1x32xf32, #tpu.memory_space<vmem>>, vector<1x32xf32>
    %6 = vector.shape_cast %5 : vector<1x32xf32> to vector<1x1x1x32xf32>
    %7 = vector.broadcast %6 : vector<1x1x1x32xf32> to vector<1x26x32x32xf32>
    %8 = arith.addf %4, %7 : vector<1x26x32x32xf32>
    %cst_7 = arith.constant 0.000000e+00 : f32
    %9 = vector.broadcast %cst_7 : f32 to vector<1x26x32x32xf32>
    %10 = arith.maximumf %8, %9 : vector<1x26x32x32xf32>
    %c0_8 = arith.constant 0 : index
    %c0_9 = arith.constant 0 : index
    %c0_10 = arith.constant 0 : index
    %c0_11 = arith.constant 0 : index
    %11 = vector.load %arg7[%c0_8, %c0_9, %c0_10, %c0_11] : memref<1x26x32x32xf32, #tpu.memory_space<vmem>>, vector<1x26x32x32xf32>
    tpu.vector_store %arg7[%c0_8, %c0_9, %c0_10, %c0_11], %10 {strides = array<i32>} : memref<1x26x32x32xf32, #tpu.memory_space<vmem>>, vector<1x26x32x32xf32>,
    %c0_12 = arith.constant 0 : index
    %c0_13 = arith.constant 0 : index
    %c0_14 = arith.constant 0 : index
    %c0_15 = arith.constant 0 : index
    %12 = vector.load %arg7[%c0_12, %c0_13, %c0_14, %c0_15] : memref<1x26x32x32xf32, #tpu.memory_space<vmem>>, vector<1x24x24x32xf32>
    %c0_16 = arith.constant 0 : index
    %c0_17 = arith.constant 0 : index
    %c0_18 = arith.constant 0 : index
    %c0_19 = arith.constant 0 : index
    %13 = vector.load %arg8[%c0_16, %c0_17, %c0_18, %c0_19] : memref<1x24x24x288xf32, #tpu.memory_space<vmem>>, vector<1x24x24x32xf32>
    tpu.vector_store %arg8[%c0_16, %c0_17, %c0_18, %c0_19], %12 {strides = array<i32>} : memref<1x24x24x288xf32, #tpu.memory_space<vmem>>, vector<1x24x24x32xf32>,
    %c0_20 = arith.constant 0 : index
    %c0_21 = arith.constant 0 : index
    %c1 = arith.constant 1 : index
    %c0_22 = arith.constant 0 : index
    %14 = vector.load %arg7[%c0_20, %c0_21, %c1, %c0_22] : memref<1x26x32x32xf32, #tpu.memory_space<vmem>>, vector<1x24x24x32xf32>
    %c0_23 = arith.constant 0 : index
    %c0_24 = arith.constant 0 : index
    %c0_25 = arith.constant 0 : index
    %c32 = arith.constant 32 : index
    %15 = vector.load %arg8[%c0_23, %c0_24, %c0_25, %c32] : memref<1x24x24x288xf32, #tpu.memory_space<vmem>>, vector<1x24x24x32xf32>
    tpu.vector_store %arg8[%c0_23, %c0_24, %c0_25, %c32], %14 {strides = array<i32>} : memref<1x24x24x288xf32, #tpu.memory_space<vmem>>, vector<1x24x24x32xf32>,
    %c0_26 = arith.constant 0 : index
    %c0_27 = arith.constant 0 : index
    %c2 = arith.constant 2 : index
    %c0_28 = arith.constant 0 : index
    %16 = vector.load %arg7[%c0_26, %c0_27, %c2, %c0_28] : memref<1x26x32x32xf32, #tpu.memory_space<vmem>>, vector<1x24x24x32xf32>
    %c0_29 = arith.constant 0 : index
    %c0_30 = arith.constant 0 : index
    %c0_31 = arith.constant 0 : index
    %c64 = arith.constant 64 : index
    %17 = vector.load %arg8[%c0_29, %c0_30, %c0_31, %c64] : memref<1x24x24x288xf32, #tpu.memory_space<vmem>>, vector<1x24x24x32xf32>
    tpu.vector_store %arg8[%c0_29, %c0_30, %c0_31, %c64], %16 {strides = array<i32>} : memref<1x24x24x288xf32, #tpu.memory_space<vmem>>, vector<1x24x24x32xf32>,
    %c0_32 = arith.constant 0 : index
    %c1_33 = arith.constant 1 : index
    %c0_34 = arith.constant 0 : index
    %c0_35 = arith.constant 0 : index
    %18 = vector.load %arg7[%c0_32, %c1_33, %c0_34, %c0_35] : memref<1x26x32x32xf32, #tpu.memory_space<vmem>>, vector<1x24x24x32xf32>
    %c0_36 = arith.constant 0 : index
    %c0_37 = arith.constant 0 : index
    %c0_38 = arith.constant 0 : index
    %c96 = arith.constant 96 : index
    %19 = vector.load %arg8[%c0_36, %c0_37, %c0_38, %c96] : memref<1x24x24x288xf32, #tpu.memory_space<vmem>>, vector<1x24x24x32xf32>
    tpu.vector_store %arg8[%c0_36, %c0_37, %c0_38, %c96], %18 {strides = array<i32>} : memref<1x24x24x288xf32, #tpu.memory_space<vmem>>, vector<1x24x24x32xf32>,
    %c0_39 = arith.constant 0 : index
    %c1_40 = arith.constant 1 : index
    %c1_41 = arith.constant 1 : index
    %c0_42 = arith.constant 0 : index
    %20 = vector.load %arg7[%c0_39, %c1_40, %c1_41, %c0_42] : memref<1x26x32x32xf32, #tpu.memory_space<vmem>>, vector<1x24x24x32xf32>
    %c0_43 = arith.constant 0 : index
    %c0_44 = arith.constant 0 : index
    %c0_45 = arith.constant 0 : index
    %c128 = arith.constant 128 : index
    %21 = vector.load %arg8[%c0_43, %c0_44, %c0_45, %c128] : memref<1x24x24x288xf32, #tpu.memory_space<vmem>>, vector<1x24x24x32xf32>
    tpu.vector_store %arg8[%c0_43, %c0_44, %c0_45, %c128], %20 {strides = array<i32>} : memref<1x24x24x288xf32, #tpu.memory_space<vmem>>, vector<1x24x24x32xf32>,
    %c0_46 = arith.constant 0 : index
    %c1_47 = arith.constant 1 : index
    %c2_48 = arith.constant 2 : index
    %c0_49 = arith.constant 0 : index
    %22 = vector.load %arg7[%c0_46, %c1_47, %c2_48, %c0_49] : memref<1x26x32x32xf32, #tpu.memory_space<vmem>>, vector<1x24x24x32xf32>
    %c0_50 = arith.constant 0 : index
    %c0_51 = arith.constant 0 : index
    %c0_52 = arith.constant 0 : index
    %c160 = arith.constant 160 : index
    %23 = vector.load %arg8[%c0_50, %c0_51, %c0_52, %c160] : memref<1x24x24x288xf32, #tpu.memory_space<vmem>>, vector<1x24x24x32xf32>
    tpu.vector_store %arg8[%c0_50, %c0_51, %c0_52, %c160], %22 {strides = array<i32>} : memref<1x24x24x288xf32, #tpu.memory_space<vmem>>, vector<1x24x24x32xf32>,
    %c0_53 = arith.constant 0 : index
    %c2_54 = arith.constant 2 : index
    %c0_55 = arith.constant 0 : index
    %c0_56 = arith.constant 0 : index
    %24 = vector.load %arg7[%c0_53, %c2_54, %c0_55, %c0_56] : memref<1x26x32x32xf32, #tpu.memory_space<vmem>>, vector<1x24x24x32xf32>
    %c0_57 = arith.constant 0 : index
    %c0_58 = arith.constant 0 : index
    %c0_59 = arith.constant 0 : index
    %c192 = arith.constant 192 : index
    %25 = vector.load %arg8[%c0_57, %c0_58, %c0_59, %c192] : memref<1x24x24x288xf32, #tpu.memory_space<vmem>>, vector<1x24x24x32xf32>
    tpu.vector_store %arg8[%c0_57, %c0_58, %c0_59, %c192], %24 {strides = array<i32>} : memref<1x24x24x288xf32, #tpu.memory_space<vmem>>, vector<1x24x24x32xf32>,
    %c0_60 = arith.constant 0 : index
    %c2_61 = arith.constant 2 : index
    %c1_62 = arith.constant 1 : index
    %c0_63 = arith.constant 0 : index
    %26 = vector.load %arg7[%c0_60, %c2_61, %c1_62, %c0_63] : memref<1x26x32x32xf32, #tpu.memory_space<vmem>>, vector<1x24x24x32xf32>
    %c0_64 = arith.constant 0 : index
    %c0_65 = arith.constant 0 : index
    %c0_66 = arith.constant 0 : index
    %c224 = arith.constant 224 : index
    %27 = vector.load %arg8[%c0_64, %c0_65, %c0_66, %c224] : memref<1x24x24x288xf32, #tpu.memory_space<vmem>>, vector<1x24x24x32xf32>
    tpu.vector_store %arg8[%c0_64, %c0_65, %c0_66, %c224], %26 {strides = array<i32>} : memref<1x24x24x288xf32, #tpu.memory_space<vmem>>, vector<1x24x24x32xf32>,
    %c0_67 = arith.constant 0 : index
    %c2_68 = arith.constant 2 : index
    %c2_69 = arith.constant 2 : index
    %c0_70 = arith.constant 0 : index
    %28 = vector.load %arg7[%c0_67, %c2_68, %c2_69, %c0_70] : memref<1x26x32x32xf32, #tpu.memory_space<vmem>>, vector<1x24x24x32xf32>
    %c0_71 = arith.constant 0 : index
    %c0_72 = arith.constant 0 : index
    %c0_73 = arith.constant 0 : index
    %c256 = arith.constant 256 : index
    %29 = vector.load %arg8[%c0_71, %c0_72, %c0_73, %c256] : memref<1x24x24x288xf32, #tpu.memory_space<vmem>>, vector<1x24x24x32xf32>
    tpu.vector_store %arg8[%c0_71, %c0_72, %c0_73, %c256], %28 {strides = array<i32>} : memref<1x24x24x288xf32, #tpu.memory_space<vmem>>, vector<1x24x24x32xf32>,
    %c0_74 = arith.constant 0 : index
    %c0_75 = arith.constant 0 : index
    %c0_76 = arith.constant 0 : index
    %c0_77 = arith.constant 0 : index
    %30 = vector.load %arg8[%c0_74, %c0_75, %c0_76, %c0_77] : memref<1x24x24x288xf32, #tpu.memory_space<vmem>>, vector<1x24x24x288xf32>
    %31 = vector.shape_cast %30 : vector<1x24x24x288xf32> to vector<576x288xf32>
    %c0_78 = arith.constant 0 : index
    %c0_79 = arith.constant 0 : index
    %32 = vector.load %arg4[%c0_78, %c0_79] : memref<288x64xf32, #tpu.memory_space<vmem>>, vector<288x64xf32>
    %cst_80 = arith.constant dense<0.000000e+00> : vector<576x64xf32>
    %33 = tpu.matmul %31, %32, %cst_80 {dimension_numbers = #tpu.dot_dimension_numbers<[1], [0], [0], [1], [0, 0, 1, 1], [], []>} : vector<576x288xf32>, vector<288x64xf32>, vector<576x64xf32> -> vector<576x64xf32>
    %34 = vector.shape_cast %33 : vector<576x64xf32> to vector<1x24x24x64xf32>
    %c0_81 = arith.constant 0 : index
    %c0_82 = arith.constant 0 : index
    %35 = vector.load %arg5[%c0_81, %c0_82] : memref<1x64xf32, #tpu.memory_space<vmem>>, vector<1x64xf32>
    %36 = vector.shape_cast %35 : vector<1x64xf32> to vector<1x1x1x64xf32>
    %37 = vector.broadcast %36 : vector<1x1x1x64xf32> to vector<1x24x24x64xf32>
    %38 = arith.addf %34, %37 : vector<1x24x24x64xf32>
    %cst_83 = arith.constant 0.000000e+00 : f32
    %39 = vector.broadcast %cst_83 : f32 to vector<1x24x24x64xf32>
    %40 = arith.maximumf %38, %39 : vector<1x24x24x64xf32>
    %c0_84 = arith.constant 0 : index
    %c0_85 = arith.constant 0 : index
    %c0_86 = arith.constant 0 : index
    %c0_87 = arith.constant 0 : index
    %41 = vector.load %arg9[%c0_84, %c0_85, %c0_86, %c0_87] : memref<1x24x24x64xf32, #tpu.memory_space<vmem>>, vector<1x24x24x64xf32>
    tpu.vector_store %arg9[%c0_84, %c0_85, %c0_86, %c0_87], %40 {strides = array<i32>} : memref<1x24x24x64xf32, #tpu.memory_space<vmem>>, vector<1x24x24x64xf32>,
    %c0_88 = arith.constant 0 : index
    %c0_89 = arith.constant 0 : index
    %c0_90 = arith.constant 0 : index
    %c0_91 = arith.constant 0 : index
    %42 = tpu.strided_load %arg9[%c0_88, %c0_89, %c0_90, %c0_91] {strides = array<i32: 1, 2, 1, 1>} : memref<1x24x24x64xf32, #tpu.memory_space<vmem>>, vector<1x12x24x64xf32>
    %c0_92 = arith.constant 0 : index
    %c1_93 = arith.constant 1 : index
    %c0_94 = arith.constant 0 : index
    %c0_95 = arith.constant 0 : index
    %43 = tpu.strided_load %arg9[%c0_92, %c1_93, %c0_94, %c0_95] {strides = array<i32: 1, 2, 1, 1>} : memref<1x24x24x64xf32, #tpu.memory_space<vmem>>, vector<1x12x24x64xf32>
    %44 = arith.maximumf %42, %43 : vector<1x12x24x64xf32>
    %c0_96 = arith.constant 0 : index
    %c0_97 = arith.constant 0 : index
    %c0_98 = arith.constant 0 : index
    %c0_99 = arith.constant 0 : index
    %45 = vector.load %arg10[%c0_96, %c0_97, %c0_98, %c0_99] : memref<1x12x24x64xf32, #tpu.memory_space<vmem>>, vector<1x12x24x64xf32>
    tpu.vector_store %arg10[%c0_96, %c0_97, %c0_98, %c0_99], %44 {strides = array<i32>} : memref<1x12x24x64xf32, #tpu.memory_space<vmem>>, vector<1x12x24x64xf32>,
    %c0_100 = arith.constant 0 : index
    %c0_101 = arith.constant 0 : index
    %c0_102 = arith.constant 0 : index
    %c0_103 = arith.constant 0 : index
    %46 = tpu.strided_load %arg10[%c0_100, %c0_101, %c0_102, %c0_103] {strides = array<i32: 1, 1, 2, 1>} : memref<1x12x24x64xf32, #tpu.memory_space<vmem>>, vector<1x12x12x64xf32>
    %c0_104 = arith.constant 0 : index
    %c0_105 = arith.constant 0 : index
    %c1_106 = arith.constant 1 : index
    %c0_107 = arith.constant 0 : index
    %47 = tpu.strided_load %arg10[%c0_104, %c0_105, %c1_106, %c0_107] {strides = array<i32: 1, 1, 2, 1>} : memref<1x12x24x64xf32, #tpu.memory_space<vmem>>, vector<1x12x12x64xf32>
    %48 = arith.maximumf %46, %47 : vector<1x12x12x64xf32>
    %c0_108 = arith.constant 0 : index
    %c0_109 = arith.constant 0 : index
    %c0_110 = arith.constant 0 : index
    %c0_111 = arith.constant 0 : index
    %49 = vector.load %arg6[%c0_108, %c0_109, %c0_110, %c0_111] : memref<1x12x12x64xf32, #tpu.memory_space<vmem>>, vector<1x12x12x64xf32>
    tpu.vector_store %arg6[%c0_108, %c0_109, %c0_110, %c0_111], %48 {strides = array<i32>} : memref<1x12x12x64xf32, #tpu.memory_space<vmem>>, vector<1x12x12x64xf32>,
    return
  }
  func.func @transform_0(%arg0: i32) -> (i32, i32, i32, i32) {
    %c0_i32 = arith.constant 0 : i32
    %c0_i32_0 = arith.constant 0 : i32
    %c0_i32_1 = arith.constant 0 : i32
    %c0_i32_2 = arith.constant 0 : i32
    return %arg0, %c0_i32, %c0_i32_0, %c0_i32_1 : i32, i32, i32, i32
  }
  func.func @transform_1(%arg0: i32) -> (i32, i32) {
    %c0_i32 = arith.constant 0 : i32
    %c0_i32_0 = arith.constant 0 : i32
    %c0_i32_1 = arith.constant 0 : i32
    return %c0_i32, %c0_i32_0 : i32, i32
  }
  func.func @transform_2(%arg0: i32) -> (i32, i32) {
    %c0_i32 = arith.constant 0 : i32
    %c0_i32_0 = arith.constant 0 : i32
    %c0_i32_1 = arith.constant 0 : i32
    return %c0_i32, %c0_i32_0 : i32, i32
  }
  func.func @transform_3(%arg0: i32) -> (i32, i32) {
    %c0_i32 = arith.constant 0 : i32
    %c0_i32_0 = arith.constant 0 : i32
    %c0_i32_1 = arith.constant 0 : i32
    return %c0_i32, %c0_i32_0 : i32, i32
  }
  func.func @transform_4(%arg0: i32) -> (i32, i32) {
    %c0_i32 = arith.constant 0 : i32
    %c0_i32_0 = arith.constant 0 : i32
    %c0_i32_1 = arith.constant 0 : i32
    return %c0_i32, %c0_i32_0 : i32, i32
  }
  func.func @transform_5(%arg0: i32) -> (i32, i32, i32, i32) {
    %c0_i32 = arith.constant 0 : i32
    %c0_i32_0 = arith.constant 0 : i32
    %c0_i32_1 = arith.constant 0 : i32
    %c0_i32_2 = arith.constant 0 : i32
    return %arg0, %c0_i32, %c0_i32_0, %c0_i32_1 : i32, i32, i32, i32
  }
}

module attributes {stable_mosaic.version = 11 : i64} {
  func.func @_mlp_kernel(%arg0: i32, %arg1: i32, %arg2: memref<2x4608xf32, #tpu.memory_space<vmem>>, %arg3: memref<4608x128xf32, #tpu.memory_space<vmem>>, %arg4: memref<1x128xf32, #tpu.memory_space<vmem>>, %arg5: memref<128x128xf32, #tpu.memory_space<vmem>>, %arg6: memref<1x128xf32, #tpu.memory_space<vmem>>, %arg7: memref<2x128xf32, #tpu.memory_space<vmem>>, %arg8: memref<2x128xf32, #tpu.memory_space<vmem>>) attributes {dimension_semantics = [#tpu.dimension_semantics<parallel>, #tpu.dimension_semantics<arbitrary>], iteration_bounds = array<i64: 1, 2>, scalar_prefetch = 0 : i64, scratch_operands = 1 : i64, tpu.core_type = #tpu.core_type<tc>, window_params = [{transform_indices = @transform_0, window_bounds = array<i64: 2, 4608>}, {transform_indices = @transform_1, window_bounds = array<i64: 4608, 128>}, {pipeline_mode = #tpu.pipeline_mode<synchronous>, transform_indices = @transform_2, window_bounds = array<i64: 1, 128>}, {pipeline_mode = #tpu.pipeline_mode<synchronous>, transform_indices = @transform_3, window_bounds = array<i64: 128, 128>}, {pipeline_mode = #tpu.pipeline_mode<synchronous>, transform_indices = @transform_4, window_bounds = array<i64: 1, 128>}, {transform_indices = @transform_5, window_bounds = array<i64: 2, 128>}]} {
    %c0_i32 = arith.constant 0 : i32
    %0 = arith.cmpi eq, %arg1, %c0_i32 : i32
    %1 = arith.extui %0 : i1 to i32
    %c0_i32_0 = arith.constant 0 : i32
    %2 = arith.cmpi ne, %1, %c0_i32_0 : i32
    scf.if %2 {
      %cst_9 = arith.constant 0.000000e+00 : f32
      %12 = vector.broadcast %cst_9 : f32 to vector<2x128xf32>
      %c0_10 = arith.constant 0 : index
      %c0_11 = arith.constant 0 : index
      %13 = vector.load %arg8[%c0_10, %c0_11] : memref<2x128xf32, #tpu.memory_space<vmem>>, vector<2x128xf32>
      tpu.vector_store %arg8[%c0_10, %c0_11], %12 {strides = array<i32>} : memref<2x128xf32, #tpu.memory_space<vmem>>, vector<2x128xf32>,
    } else {
    }
    %c0 = arith.constant 0 : index
    %c0_1 = arith.constant 0 : index
    %3 = vector.load %arg8[%c0, %c0_1] : memref<2x128xf32, #tpu.memory_space<vmem>>, vector<2x128xf32>
    %c0_2 = arith.constant 0 : index
    %c0_3 = arith.constant 0 : index
    %4 = vector.load %arg2[%c0_2, %c0_3] : memref<2x4608xf32, #tpu.memory_space<vmem>>, vector<2x4608xf32>
    %c0_4 = arith.constant 0 : index
    %c0_5 = arith.constant 0 : index
    %5 = vector.load %arg3[%c0_4, %c0_5] : memref<4608x128xf32, #tpu.memory_space<vmem>>, vector<4608x128xf32>
    %cst = arith.constant dense<0.000000e+00> : vector<2x128xf32>
    %6 = tpu.matmul %4, %5, %cst {dimension_numbers = #tpu.dot_dimension_numbers<[1], [0], [0], [1], [0, 0, 1, 1], [], []>} : vector<2x4608xf32>, vector<4608x128xf32>, vector<2x128xf32> -> vector<2x128xf32>
    %7 = arith.addf %3, %6 : vector<2x128xf32>
    %c0_6 = arith.constant 0 : index
    %c0_7 = arith.constant 0 : index
    %8 = vector.load %arg8[%c0_6, %c0_7] : memref<2x128xf32, #tpu.memory_space<vmem>>, vector<2x128xf32>
    tpu.vector_store %arg8[%c0_6, %c0_7], %7 {strides = array<i32>} : memref<2x128xf32, #tpu.memory_space<vmem>>, vector<2x128xf32>,
    %c1_i32 = arith.constant 1 : i32
    %9 = arith.cmpi eq, %arg1, %c1_i32 : i32
    %10 = arith.extui %9 : i1 to i32
    %c0_i32_8 = arith.constant 0 : i32
    %11 = arith.cmpi ne, %10, %c0_i32_8 : i32
    scf.if %11 {
      %c0_9 = arith.constant 0 : index
      %c0_10 = arith.constant 0 : index
      %12 = vector.load %arg8[%c0_9, %c0_10] : memref<2x128xf32, #tpu.memory_space<vmem>>, vector<2x128xf32>
      %c0_11 = arith.constant 0 : index
      %c0_12 = arith.constant 0 : index
      %13 = vector.load %arg4[%c0_11, %c0_12] : memref<1x128xf32, #tpu.memory_space<vmem>>, vector<1x128xf32>
      %14 = vector.broadcast %13 : vector<1x128xf32> to vector<2x128xf32>
      %15 = arith.addf %12, %14 : vector<2x128xf32>
      %cst_13 = arith.constant 0.000000e+00 : f32
      %16 = vector.broadcast %cst_13 : f32 to vector<2x128xf32>
      %17 = arith.maximumf %15, %16 : vector<2x128xf32>
      %c0_14 = arith.constant 0 : index
      %c0_15 = arith.constant 0 : index
      %18 = vector.load %arg5[%c0_14, %c0_15] : memref<128x128xf32, #tpu.memory_space<vmem>>, vector<128x128xf32>
      %cst_16 = arith.constant dense<0.000000e+00> : vector<2x128xf32>
      %19 = tpu.matmul %17, %18, %cst_16 {dimension_numbers = #tpu.dot_dimension_numbers<[1], [0], [0], [1], [0, 0, 1, 1], [], []>} : vector<2x128xf32>, vector<128x128xf32>, vector<2x128xf32> -> vector<2x128xf32>
      %c0_17 = arith.constant 0 : index
      %c0_18 = arith.constant 0 : index
      %20 = vector.load %arg6[%c0_17, %c0_18] : memref<1x128xf32, #tpu.memory_space<vmem>>, vector<1x128xf32>
      %21 = vector.broadcast %20 : vector<1x128xf32> to vector<2x128xf32>
      %22 = arith.addf %19, %21 : vector<2x128xf32>
      %c0_19 = arith.constant 0 : index
      %c0_20 = arith.constant 0 : index
      %23 = vector.load %arg7[%c0_19, %c0_20] : memref<2x128xf32, #tpu.memory_space<vmem>>, vector<2x128xf32>
      tpu.vector_store %arg7[%c0_19, %c0_20], %22 {strides = array<i32>} : memref<2x128xf32, #tpu.memory_space<vmem>>, vector<2x128xf32>,
    } else {
    }
    return
  }
  func.func @transform_0(%arg0: i32, %arg1: i32) -> (i32, i32) {
    %c0_i32 = arith.constant 0 : i32
    return %arg0, %arg1 : i32, i32
  }
  func.func @transform_1(%arg0: i32, %arg1: i32) -> (i32, i32) {
    %c0_i32 = arith.constant 0 : i32
    %c0_i32_0 = arith.constant 0 : i32
    return %arg1, %c0_i32 : i32, i32
  }
  func.func @transform_2(%arg0: i32, %arg1: i32) -> (i32, i32) {
    %c0_i32 = arith.constant 0 : i32
    %c0_i32_0 = arith.constant 0 : i32
    %c0_i32_1 = arith.constant 0 : i32
    return %c0_i32, %c0_i32_0 : i32, i32
  }
  func.func @transform_3(%arg0: i32, %arg1: i32) -> (i32, i32) {
    %c0_i32 = arith.constant 0 : i32
    %c0_i32_0 = arith.constant 0 : i32
    %c0_i32_1 = arith.constant 0 : i32
    return %c0_i32, %c0_i32_0 : i32, i32
  }
  func.func @transform_4(%arg0: i32, %arg1: i32) -> (i32, i32) {
    %c0_i32 = arith.constant 0 : i32
    %c0_i32_0 = arith.constant 0 : i32
    %c0_i32_1 = arith.constant 0 : i32
    return %c0_i32, %c0_i32_0 : i32, i32
  }
  func.func @transform_5(%arg0: i32, %arg1: i32) -> (i32, i32) {
    %c0_i32 = arith.constant 0 : i32
    %c0_i32_0 = arith.constant 0 : i32
    return %arg0, %c0_i32 : i32, i32
  }
}

</mosaic_0001>

<bundles_post_ra>
// kernel: torch_cnn_forward.3
= control target key start
LH: loop header
LB: loop body
LE: loop exit
PB: predicated region body
PF: predicated region fallthrough
CT: control target
= control target key end

     0   :  { %10 = vsyncpa [#allocation4], 0  ;;  %s3933_s18 = smov 0   ;;  %s3935_s19 = smov 0   ;;  %s4747_s0 = inlined_call_operand.vmem [shape: f32[2,9216], index: 0, kind: input, shape index: {}]   ;;  %s4748_s1 = inlined_call_operand.vmem [shape: f32[9216,128], index: 1, kind: input, shape index: {}]   ;;  %s4749_s2 = inlined_call_operand.vmem [shape: f32[1,128], index: 2, kind: input, shape index: {}]   ;;  %s4750_s3 = inlined_call_operand.vmem [shape: f32[128,128], index: 3, kind: input, shape index: {}]   ;;  %s4751_s4 = inlined_call_operand.vmem [shape: f32[1,128], index: 4, kind: input, shape index: {}]   ;;  %s4752_s5 = inlined_call_operand.hbm [shape: f32[2,128], index: 5, kind: output, shape index: {}]  }
   0x1   :  { %s3937_s20 = smov 0  }
   0x2 LB: > { %s2502_s21 = sadd.s32 4294967295, %s3895_s20   ;;  %s25_s22 = sadd.s32 1, %s3891_s19  ;;  %s3895_s20 = sphi %s3937_s20, %s16_s20   ;;  %s3891_s19 = sphi %s3935_s19, %s4755_s19   ;;  %s3887_s18 = sphi %s3933_s18, %s4754_s18  }
   0x3   : > { %p26_p0 = scmp.ge.s32.totalorder %s25_s22, 2  ;;  %p2505_p1 = scmp.ge.s32.totalorder %s3895_s20, 1 }
   0x4   : > { %p218_p2 = scmp.lt.s32.totalorder %s3895_s20, 3 }
   0x5   : > { %s4757_s22 = smov (%p26_p0, %s25_s22), 0 }
   0x6   : > { %p219_p3 = pnand %p2505_p1, %p218_p2 }
   0x7   : > { %s250_s23 = smul.u32 (!%p219_p3), 36, %s3887_s18  ;;  %p2508_p6 = scmp.ne.s32.totalorder (!%p219_p3), %s3887_s18, 0 }
   0x8   : > { %222 = sbr.rel (%p219_p3) target bundleno = 790 (0x316), region = 40 }
   0x9   : > { %s260_s24 = smul.u32 (!%p219_p3), 576, %s3887_s18  ;;  %p253_p4 = scmp.lt.s32.totalorder (!%p219_p3), %s250_s23, 71 }
   0xb   : > { %p261_p5 = scmp.lt.s32.totalorder (!%p219_p3), %s260_s24, 1151 }
   0xf   : > { %s4759_s23 = smov (!%p253_p4, %s250_s23), 71  ;;  %s4761_s24 = smov (!%p261_p5, %s260_s24), 1151 }
  0x10   : > { %s2506_s25 = sshll.u32 %s4759_s23, 1  ;;  %s2507_s29 = sshll.u32 %s4761_s24, 3  ;;  %v3897_v0 = vmov (!%p2508_p6), 0.0  }
  0x11   : > { %s3959_s28 = scalar_lea.vmem %s4747_s0, %s2506_s25  ;;  %s3964_s7 = scalar_lea.vmem %s4748_s1, %s2507_s29  ;;  %270 = vst [vmem:[#allocation2] sm:$0x3] (!%p2508_p6), %v3897_v0 }
  0x12   : > { %269 = sbr.rel (%p2508_p6) target bundleno = 25 (0x19), region = 44 }
  0x19 PF: > { %v297_v1 = vld [vmem:[%s3964_s7 + $0x80] sm:$0xff]  ;;  %v298_v2 = vld [vmem:[%s3964_s7 + $0x88] sm:$0xff]  ;;  %v299_v12 = vld [vmem:[%s3964_s7 + $0x90] sm:$0xff]  ;;  %v3898_v48 = vmov 1983009808   ;;  %v870_v50 = vlaneseq  ;;  %p2509_p7 = scmp.ne.s32.totalorder %s3887_s18, 1 }
  0x1a   : > { %v329_v3 = vld [vmem:[%s3964_s7 + $0x180] sm:$0xff]  ;;  %v3198_v4 = vpack.c.bf16 %v298_v2, %v297_v1  ;;  %v330_v5 = vld [vmem:[%s3964_s7 + $0x188] sm:$0xff]  ;;  %v300_v14 = vld [vmem:[%s3964_s7 + $0x98] sm:$0xff]  ;;  %v868_v49 = vunpack.c.l.s4 %v3898_v48  ;;  %vm3900_vm0 = vmmov (!%p2509_p7), 0  }
  0x1b   : > { %v281_v6 = vld [vmem:[%s3964_s7] sm:$0xff]  ;;  %v282_v7 = vld [vmem:[%s3964_s7 + $0x8] sm:$0xff]  ;;  %v3230_v8 = vpack.c.bf16 %v330_v5, %v329_v3  ;;  %v331_v15 = vld [vmem:[%s3964_s7 + $0x190] sm:$0xff]  ;;  %v3202_v17 = vpack.c.bf16 %v300_v14, %v299_v12  ;;  %v871_v1 = vshrl.u32 %v870_v50, 7 }
  0x1c   : > { %v3200_v9 = vpack.c.bf16 %v282_v7, %v281_v6  ;;  %v313_v10 = vld [vmem:[%s3964_s7 + $0x100] sm:$0xff]  ;;  %v314_v11 = vld [vmem:[%s3964_s7 + $0x108] sm:$0xff]  ;;  %3199 = vmatprep.subr.bf16.mxu0 %v3198_v4  ;;  %v332_v16 = vld [vmem:[%s3964_s7 + $0x198] sm:$0xff]  ;;  %v869_v0 = vunpack.c.0.s8 %v868_v49 }
  0x1d   : > { %v3232_v13 = vpack.c.bf16 %v314_v11, %v313_v10  ;;  %3231 = vmatprep.subr.bf16.mxu1 %v3230_v8  ;;  %v3234_v18 = vpack.c.bf16 %v332_v16, %v331_v15  ;;  %v283_v19 = vld [vmem:[%s3964_s7 + $0x10] sm:$0xff]  ;;  %v284_v20 = vld [vmem:[%s3964_s7 + $0x18] sm:$0xff]  ;;  %v301_v24 = vld [vmem:[%s3964_s7 + $0xa0] sm:$0xff] }
  0x1e   : > { %3201 = vmatpush3.bf16.msra.mxu0 %v3200_v9  ;;  %v315_v21 = vld [vmem:[%s3964_s7 + $0x110] sm:$0xff]  ;;  %v3204_v22 = vpack.c.bf16 %v284_v20, %v283_v19  ;;  %v316_v23 = vld [vmem:[%s3964_s7 + $0x118] sm:$0xff]  ;;  %v302_v25 = vld [vmem:[%s3964_s7 + $0xa8] sm:$0xff]  ;;  %v4017_v14 = vsub.s32 %v869_v0, %v871_v1 }
  0x1f   : > { %3233 = vmatpush3.bf16.msra.mxu1 %v3232_v13  ;;  %3203 = vmatprep.subr.bf16.mxu0 %v3202_v17  ;;  %v3236_v26 = vpack.c.bf16 %v316_v23, %v315_v21  ;;  %v3206_v27 = vpack.c.bf16 %v302_v25, %v301_v24  ;;  %v333_v28 = vld [vmem:[%s3964_s7 + $0x1a0] sm:$0xff]  ;;  %v334_v29 = vld [vmem:[%s3964_s7 + $0x1a8] sm:$0xff]  ;;  %v303_v36 = vld [vmem:[%s3964_s7 + $0xb0] sm:$0xff] }
  0x20   : > { %3235 = vmatprep.subr.bf16.mxu1 %v3234_v18  ;;  %v285_v30 = vld [vmem:[%s3964_s7 + $0x20] sm:$0xff]  ;;  %v3238_v31 = vpack.c.bf16 %v334_v29, %v333_v28  ;;  %v286_v32 = vld [vmem:[%s3964_s7 + $0x28] sm:$0xff]  ;;  %v304_v37 = vld [vmem:[%s3964_s7 + $0xb8] sm:$0xff] }
  0x21   : > { %v317_v33 = vld [vmem:[%s3964_s7 + $0x120] sm:$0xff]  ;;  %v318_v34 = vld [vmem:[%s3964_s7 + $0x128] sm:$0xff]  ;;  %v3208_v35 = vpack.c.bf16 %v286_v32, %v285_v30  ;;  %v335_v38 = vld [vmem:[%s3964_s7 + $0x1b0] sm:$0xff]  ;;  %v3210_v40 = vpack.c.bf16 %v304_v37, %v303_v36 }
  0x22   : > { %3205 = vmatpush3.bf16.msra.mxu0 %v3204_v22  ;;  %v3240_v39 = vpack.c.bf16 %v318_v34, %v317_v33  ;;  %v336_v41 = vld [vmem:[%s3964_s7 + $0x1b8] sm:$0xff]  ;;  %v287_v42 = vld [vmem:[%s3964_s7 + $0x30] sm:$0xff]  ;;  %v305_v47 = vld [vmem:[%s3964_s7 + $0xc0] sm:$0xff] }
  0x23   : > { %3237 = vmatpush3.bf16.msra.mxu1 %v3236_v26  ;;  %3207 = vmatprep.subr.bf16.mxu0 %v3206_v27  ;;  %v288_v43 = vld [vmem:[%s3964_s7 + $0x38] sm:$0xff]  ;;  %v3242_v44 = vpack.c.bf16 %v336_v41, %v335_v38  ;;  %v319_v45 = vld [vmem:[%s3964_s7 + $0x130] sm:$0xff]  ;;  %v306_v51 = vld [vmem:[%s3964_s7 + $0xc8] sm:$0xff] }
  0x24   : > { %3239 = vmatprep.subr.bf16.mxu1 %v3238_v31  ;;  %v320_v46 = vld [vmem:[%s3964_s7 + $0x138] sm:$0xff]  ;;  %v337_v52 = vld [vmem:[%s3964_s7 + $0x1c0] sm:$0xff]  ;;  %v338_v53 = vld [vmem:[%s3964_s7 + $0x1c8] sm:$0xff]  ;;  %v3212_v54 = vpack.c.bf16 %v288_v43, %v287_v42  ;;  %v3214_v56 = vpack.c.bf16 %v306_v51, %v305_v47 }
  0x25   : > { %v3244_v55 = vpack.c.bf16 %v320_v46, %v319_v45  ;;  %v289_v57 = vld [vmem:[%s3964_s7 + $0x40] sm:$0xff]  ;;  %v290_v58 = vld [vmem:[%s3964_s7 + $0x48] sm:$0xff]  ;;  %v3246_v60 = vpack.c.bf16 %v338_v53, %v337_v52  ;;  %v307_v62 = vld [vmem:[%s3964_s7 + $0xd0] sm:$0xff] }
  0x26   : > { %3209 = vmatpush3.bf16.msra.mxu0 %v3208_v35  ;;  %v321_v59 = vld [vmem:[%s3964_s7 + $0x140] sm:$0xff]  ;;  %v322_v61 = vld [vmem:[%s3964_s7 + $0x148] sm:$0xff]  ;;  %v308_v63 = vld [vmem:[%s3964_s7 + $0xd8] sm:$0xff]  ;;  %v3216_v4 = vpack.c.bf16 %v290_v58, %v289_v57 }
  0x27   : > { %3241 = vmatpush3.bf16.msra.mxu1 %v3240_v39  ;;  %3211 = vmatprep.subr.bf16.mxu0 %v3210_v40  ;;  %v339_v2 = vld [vmem:[%s3964_s7 + $0x1d0] sm:$0xff]  ;;  %v340_v3 = vld [vmem:[%s3964_s7 + $0x1d8] sm:$0xff]  ;;  %v3248_v5 = vpack.c.bf16 %v322_v61, %v321_v59  ;;  %v3218_v6 = vpack.c.bf16 %v308_v63, %v307_v62  ;;  %v309_v12 = vld [vmem:[%s3964_s7 + $0xe0] sm:$0xff] }
  0x28   : > { %3243 = vmatprep.subr.bf16.mxu1 %v3242_v44  ;;  %v291_v7 = vld [vmem:[%s3964_s7 + $0x50] sm:$0xff]  ;;  %v292_v8 = vld [vmem:[%s3964_s7 + $0x58] sm:$0xff]  ;;  %v3250_v10 = vpack.c.bf16 %v340_v3, %v339_v2  ;;  %v310_v13 = vld [vmem:[%s3964_s7 + $0xe8] sm:$0xff] }
  0x29   : > { %v323_v9 = vld [vmem:[%s3964_s7 + $0x150] sm:$0xff]  ;;  %v324_v11 = vld [vmem:[%s3964_s7 + $0x158] sm:$0xff]  ;;  %v341_v15 = vld [vmem:[%s3964_s7 + $0x1e0] sm:$0xff]  ;;  %v3220_v17 = vpack.c.bf16 %v292_v8, %v291_v7  ;;  %v3222_v20 = vpack.c.bf16 %v310_v13, %v309_v12 }
  0x2a   : > { %3213 = vmatpush3.bf16.msra.mxu0 %v3212_v54  ;;  %v342_v16 = vld [vmem:[%s3964_s7 + $0x1e8] sm:$0xff]  ;;  %v293_v18 = vld [vmem:[%s3964_s7 + $0x60] sm:$0xff]  ;;  %v3252_v19 = vpack.c.bf16 %v324_v11, %v323_v9  ;;  %v311_v26 = vld [vmem:[%s3964_s7 + $0xf0] sm:$0xff] }
  0x2b   : > { %3245 = vmatpush3.bf16.msra.mxu1 %v3244_v55  ;;  %3215 = vmatprep.subr.bf16.mxu0 %v3214_v56  ;;  %v294_v21 = vld [vmem:[%s3964_s7 + $0x68] sm:$0xff]  ;;  %v325_v22 = vld [vmem:[%s3964_s7 + $0x160] sm:$0xff]  ;;  %v3254_v24 = vpack.c.bf16 %v342_v16, %v341_v15  ;;  %v312_v27 = vld [vmem:[%s3964_s7 + $0xf8] sm:$0xff] }
  0x2c   : > { %3247 = vmatprep.subr.bf16.mxu1 %v3246_v60  ;;  %v272_v23 = vld [vmem:[%s3959_s28] sm:$0xff]  ;;  %v326_v25 = vld [vmem:[%s3964_s7 + $0x168] sm:$0xff]  ;;  %v343_v30 = vld [vmem:[%s3964_s7 + $0x1f0] sm:$0xff]  ;;  %v3224_v32 = vpack.c.bf16 %v294_v21, %v293_v18  ;;  %v3226_v36 = vpack.c.bf16 %v312_v27, %v311_v26 }
  0x2d   : > { %v873_v28 = vrot.slane %v272_v23, %v4017_v14  ;;  %v866_v29 = vcombine.high %v272_v23, %v272_v23  ;;  %v344_v31 = vld [vmem:[%s3964_s7 + $0x1f8] sm:$0xff]  ;;  %v3256_v35 = vpack.c.bf16 %v326_v25, %v325_v22  ;;  %v295_v37 = vld [vmem:[%s3964_s7 + $0x70] sm:$0xff]  ;;  %v361_v43 = vld [vmem:[%s3964_s7 + $0x280] sm:$0xff] }
  0x2e   : > { %3217 = vmatpush3.bf16.msra.mxu0 %v3216_v4  ;;  %v296_v38 = vld [vmem:[%s3964_s7 + $0x78] sm:$0xff]  ;;  %v327_v39 = vld [vmem:[%s3964_s7 + $0x170] sm:$0xff]  ;;  %v3258_v40 = vpack.c.bf16 %v344_v31, %v343_v30  ;;  %v362_v44 = vld [vmem:[%s3964_s7 + $0x288] sm:$0xff] }
  0x2f   : > { %3249 = vmatpush3.bf16.msra.mxu1 %v3248_v5  ;;  %3219 = vmatprep.subr.bf16.mxu0 %v3218_v6  ;;  %v881_v33 = vcombine.high %v873_v28, %v873_v28  ;;  %v880_v34 = vrot.slane %v866_v29, %v4017_v14  ;;  %v328_v41 = vld [vmem:[%s3964_s7 + $0x178] sm:$0xff]  ;;  %v393_v45 = vld [vmem:[%s3964_s7 + $0x380] sm:$0xff]  ;;  %v394_v46 = vld [vmem:[%s3964_s7 + $0x388] sm:$0xff]  ;;  %v3228_v47 = vpack.c.bf16 %v296_v38, %v295_v37 }
  0x30   : > { %3251 = vmatprep.subr.bf16.mxu1 %v3250_v10  ;;  %v3260_v48 = vpack.c.bf16 %v328_v41, %v327_v39  ;;  %v3262_v49 = vpack.c.bf16 %v362_v44, %v361_v43  ;;  %v345_v50 = vld [vmem:[%s3964_s7 + $0x200] sm:$0xff]  ;;  %v346_v51 = vld [vmem:[%s3964_s7 + $0x208] sm:$0xff]  ;;  %v3294_v53 = vpack.c.bf16 %v394_v46, %v393_v45  ;;  %v363_v55 = vld [vmem:[%s3964_s7 + $0x290] sm:$0xff] }
  0x31   : > { %1119 = vmatprep.mubr.f32.mxu0 %v881_v33  ;;  %v882_v42 = vcombine.high %v880_v34, %v880_v34  ;;  %v377_v52 = vld [vmem:[%s3964_s7 + $0x300] sm:$0xff]  ;;  %v378_v54 = vld [vmem:[%s3964_s7 + $0x308] sm:$0xff]  ;;  %v364_v56 = vld [vmem:[%s3964_s7 + $0x298] sm:$0xff]  ;;  %v3264_v59 = vpack.c.bf16 %v346_v51, %v345_v50 }
  0x32   : > { %3221 = vmatpush3.bf16.msra.mxu0 %v3220_v17  ;;  %v395_v57 = vld [vmem:[%s3964_s7 + $0x390] sm:$0xff]  ;;  %v396_v58 = vld [vmem:[%s3964_s7 + $0x398] sm:$0xff]  ;;  %v3296_v60 = vpack.c.bf16 %v378_v54, %v377_v52  ;;  %v3266_v61 = vpack.c.bf16 %v364_v56, %v363_v55  ;;  %v365_v3 = vld [vmem:[%s3964_s7 + $0x2a0] sm:$0xff] }
  0x33   : > { %3253 = vmatpush3.bf16.msra.mxu1 %v3252_v19  ;;  %3223 = vmatprep.subr.bf16.mxu0 %v3222_v20  ;;  %v347_v62 = vld [vmem:[%s3964_s7 + $0x210] sm:$0xff]  ;;  %v348_v63 = vld [vmem:[%s3964_s7 + $0x218] sm:$0xff]  ;;  %v3298_v1 = vpack.c.bf16 %v396_v58, %v395_v57  ;;  %v366_v4 = vld [vmem:[%s3964_s7 + $0x2a8] sm:$0xff] }
  0x34   : > { %3255 = vmatprep.subr.bf16.mxu1 %v3254_v24  ;;  %1189 = vmatprep.mubr.f32.mxu1 %v882_v42  ;;  %v379_v0 = vld [vmem:[%s3964_s7 + $0x310] sm:$0xff]  ;;  %v380_v2 = vld [vmem:[%s3964_s7 + $0x318] sm:$0xff]  ;;  %v397_v5 = vld [vmem:[%s3964_s7 + $0x3a0] sm:$0xff]  ;;  %v3268_v7 = vpack.c.bf16 %v348_v63, %v347_v62  ;;  %v3270_v9 = vpack.c.bf16 %v366_v4, %v365_v3 }
  0x35   : > { %v398_v6 = vld [vmem:[%s3964_s7 + $0x3a8] sm:$0xff]  ;;  %v3300_v8 = vpack.c.bf16 %v380_v2, %v379_v0  ;;  %v349_v10 = vld [vmem:[%s3964_s7 + $0x220] sm:$0xff]  ;;  %v367_v16 = vld [vmem:[%s3964_s7 + $0x2b0] sm:$0xff] }
  0x36   : > { %3225 = vmatpush3.bf16.msra.mxu0 %v3224_v32  ;;  %v350_v11 = vld [vmem:[%s3964_s7 + $0x228] sm:$0xff]  ;;  %v381_v12 = vld [vmem:[%s3964_s7 + $0x320] sm:$0xff]  ;;  %v3302_v13 = vpack.c.bf16 %v398_v6, %v397_v5  ;;  %v368_v17 = vld [vmem:[%s3964_s7 + $0x2b8] sm:$0xff] }
  0x37   : > { %3257 = vmatpush3.bf16.msra.mxu1 %v3256_v35  ;;  %3227 = vmatprep.subr.bf16.mxu0 %v3226_v36  ;;  %v382_v15 = vld [vmem:[%s3964_s7 + $0x328] sm:$0xff]  ;;  %v399_v18 = vld [vmem:[%s3964_s7 + $0x3b0] sm:$0xff]  ;;  %v400_v19 = vld [vmem:[%s3964_s7 + $0x3b8] sm:$0xff]  ;;  %v3272_v20 = vpack.c.bf16 %v350_v11, %v349_v10  ;;  %v3274_v22 = vpack.c.bf16 %v368_v17, %v367_v16 }
  0x38   : > { %3259 = vmatprep.subr.bf16.mxu1 %v3258_v40  ;;  %v3304_v21 = vpack.c.bf16 %v382_v15, %v381_v12  ;;  %v351_v23 = vld [vmem:[%s3964_s7 + $0x230] sm:$0xff]  ;;  %v352_v24 = vld [vmem:[%s3964_s7 + $0x238] sm:$0xff]  ;;  %v3306_v26 = vpack.c.bf16 %v400_v19, %v399_v18  ;;  %v370_v29 = vld [vmem:[%s3964_s7 + $0x2c8] sm:$0xff] }
  0x39   : > { %v383_v25 = vld [vmem:[%s3964_s7 + $0x330] sm:$0xff]  ;;  %v384_v27 = vld [vmem:[%s3964_s7 + $0x338] sm:$0xff]  ;;  %v401_v30 = vld [vmem:[%s3964_s7 + $0x3c0] sm:$0xff]  ;;  %v3276_v33 = vpack.c.bf16 %v352_v24, %v351_v23 }
  0x3a   : > { %3229 = vmatpush3.bf16.msra.mxu0 %v3228_v47  ;;  %v402_v31 = vld [vmem:[%s3964_s7 + $0x3c8] sm:$0xff]  ;;  %v3308_v36 = vpack.c.bf16 %v384_v27, %v383_v25  ;;  %v353_v38 = vld [vmem:[%s3964_s7 + $0x240] sm:$0xff]  ;;  %v371_v43 = vld [vmem:[%s3964_s7 + $0x2d0] sm:$0xff] }
  0x3b   : > { %3261 = vmatpush3.bf16.msra.mxu1 %v3260_v48  ;;  %3263 = vmatprep.subr.bf16.mxu0 %v3262_v49  ;;  %v273_v32 = vld [vmem:[%s3959_s28 + $0x8] sm:$0xff]  ;;  %v385_v40 = vld [vmem:[%s3964_s7 + $0x340] sm:$0xff]  ;;  %v3310_v41 = vpack.c.bf16 %v402_v31, %v401_v30  ;;  %v372_v44 = vld [vmem:[%s3964_s7 + $0x2d8] sm:$0xff] }
  0x3c   : > { %3295 = vmatprep.subr.bf16.mxu1 %v3294_v53  ;;  %v883_v35 = vcombine.high %v273_v32, %v273_v32  ;;  %v354_v39 = vld [vmem:[%s3964_s7 + $0x248] sm:$0xff]  ;;  %v403_v47 = vld [vmem:[%s3964_s7 + $0x3d0] sm:$0xff]  ;;  %v404_v48 = vld [vmem:[%s3964_s7 + $0x3d8] sm:$0xff]  ;;  %v3282_v52 = vpack.c.bf16 %v372_v44, %v371_v43 }
  0x3d   : > { %1120 = vmatmul.mubr.f32.vlgmr.msra.gmra.mrb[0].mxu0 %v873_v28  ;;  %v369_v28 = vld [vmem:[%s3964_s7 + $0x2c0] sm:$0xff]  ;;  %v386_v42 = vld [vmem:[%s3964_s7 + $0x348] sm:$0xff]  ;;  %v3280_v49 = vpack.c.bf16 %v354_v39, %v353_v38  ;;  %v355_v53 = vld [vmem:[%s3964_s7 + $0x250] sm:$0xff]  ;;  %v3314_v56 = vpack.c.bf16 %v404_v48, %v403_v47 }
  0x3e   : > { %1190 = vmatmul.mubr.f32.vlgmr.msra.gmra.mrb[0].mxu1 %v880_v34  ;;  %3265 = vmatpush3.bf16.msra.mxu0 %v3264_v59  ;;  %v4074_v34 = vrot.slane %v273_v32, %v4017_v14  ;;  %v3278_v37 = vpack.c.bf16 %v370_v29, %v369_v28  ;;  %v4085_v46 = vrot.slane %v883_v35, %v4017_v14  ;;  %v356_v54 = vld [vmem:[%s3964_s7 + $0x258] sm:$0xff]  ;;  %v387_v55 = vld [vmem:[%s3964_s7 + $0x350] sm:$0xff]  ;;  %v373_v58 = vld [vmem:[%s3964_s7 + $0x2e0] sm:$0xff] }
  0x3f   : > { %3297 = vmatpush3.bf16.msra.mxu1 %v3296_v60  ;;  %3267 = vmatprep.subr.bf16.mxu0 %v3266_v61  ;;  %v3312_v51 = vpack.c.bf16 %v386_v42, %v385_v40  ;;  %v388_v57 = vld [vmem:[%s3964_s7 + $0x358] sm:$0xff]  ;;  %v374_v59 = vld [vmem:[%s3964_s7 + $0x2e8] sm:$0xff]  ;;  %v405_v60 = vld [vmem:[%s3964_s7 + $0x3e0] sm:$0xff]  ;;  %v3284_v62 = vpack.c.bf16 %v356_v54, %v355_v53 }
  0x40   : > { %3299 = vmatprep.subr.bf16.mxu1 %v3298_v1  ;;  %v898_v45 = vcombine.high %v4074_v34, %v4074_v34  ;;  %v899_v50 = vcombine.high %v4085_v46, %v4085_v46  ;;  %v406_v61 = vld [vmem:[%s3964_s7 + $0x3e8] sm:$0xff]  ;;  %v3316_v63 = vpack.c.bf16 %v388_v57, %v387_v55  ;;  %v3286_v0 = vpack.c.bf16 %v374_v59, %v373_v58  ;;  %v357_v1 = vld [vmem:[%s3964_s7 + $0x260] sm:$0xff]  ;;  %v375_v6 = vld [vmem:[%s3964_s7 + $0x2f0] sm:$0xff] }
  0x41   : > { %v358_v2 = vld [vmem:[%s3964_s7 + $0x268] sm:$0xff]  ;;  %v389_v3 = vld [vmem:[%s3964_s7 + $0x360] sm:$0xff]  ;;  %v3318_v4 = vpack.c.bf16 %v406_v61, %v405_v60  ;;  %v360_v15 = vld [vmem:[%s3964_s7 + $0x278] sm:$0xff] }
  0x42   : > { %3269 = vmatpush3.bf16.msra.mxu0 %v3268_v7  ;;  %1259 = vmatprep.mubr.f32.mxu0 %v898_v45  ;;  %v390_v5 = vld [vmem:[%s3964_s7 + $0x368] sm:$0xff]  ;;  %v376_v7 = vld [vmem:[%s3964_s7 + $0x2f8] sm:$0xff]  ;;  %v3288_v10 = vpack.c.bf16 %v358_v2, %v357_v1  ;;  %v391_v16 = vld [vmem:[%s3964_s7 + $0x370] sm:$0xff] }
  0x43   : > { %3301 = vmatpush3.bf16.msra.mxu1 %v3300_v8  ;;  %3271 = vmatprep.subr.bf16.mxu0 %v3270_v9  ;;  %v407_v8 = vld [vmem:[%s3964_s7 + $0x3f0] sm:$0xff]  ;;  %v408_v9 = vld [vmem:[%s3964_s7 + $0x3f8] sm:$0xff]  ;;  %v3320_v11 = vpack.c.bf16 %v390_v5, %v389_v3  ;;  %v3290_v12 = vpack.c.bf16 %v376_v7, %v375_v6  ;;  %v425_v19 = vld [vmem:[%s3964_s7 + $0x480] sm:$0xff] }
  0x44   : > { %3303 = vmatprep.subr.bf16.mxu1 %v3302_v13  ;;  %1329 = vmatprep.mubr.f32.mxu1 %v899_v50  ;;  %v359_v13 = vld [vmem:[%s3964_s7 + $0x270] sm:$0xff]  ;;  %v3322_v17 = vpack.c.bf16 %v408_v9, %v407_v8  ;;  %v392_v18 = vld [vmem:[%s3964_s7 + $0x378] sm:$0xff]  ;;  %v409_v24 = vld [vmem:[%s3964_s7 + $0x400] sm:$0xff] }
  0x45   : > { %v3292_v23 = vpack.c.bf16 %v360_v15, %v359_v13  ;;  %v3324_v25 = vpack.c.bf16 %v392_v18, %v391_v16  ;;  %v410_v27 = vld [vmem:[%s3964_s7 + $0x408] sm:$0xff]  ;;  %v441_v28 = vld [vmem:[%s3964_s7 + $0x500] sm:$0xff]  ;;  %v427_v31 = vld [vmem:[%s3964_s7 + $0x490] sm:$0xff] }
  0x46   : > { %3273 = vmatpush3.bf16.msra.mxu0 %v3272_v20  ;;  %v426_v20 = vld [vmem:[%s3964_s7 + $0x488] sm:$0xff]  ;;  %v428_v32 = vld [vmem:[%s3964_s7 + $0x498] sm:$0xff]  ;;  %v274_v38 = vld [vmem:[%s3959_s28 + $0x10] sm:$0xff] }
  0x47   : > { %3305 = vmatpush3.bf16.msra.mxu1 %v3304_v21  ;;  %3275 = vmatprep.subr.bf16.mxu0 %v3274_v22  ;;  %v457_v21 = vld [vmem:[%s3964_s7 + $0x580] sm:$0xff]  ;;  %v458_v22 = vld [vmem:[%s3964_s7 + $0x588] sm:$0xff]  ;;  %v460_v35 = vld [vmem:[%s3964_s7 + $0x598] sm:$0xff]  ;;  %v3330_v39 = vpack.c.bf16 %v428_v32, %v427_v31  ;;  %v4128_v43 = vrot.slane %v274_v38, %v4017_v14  ;;  %v900_v44 = vcombine.high %v274_v38, %v274_v38 }
  0x48   : > { %3307 = vmatprep.subr.bf16.mxu1 %v3306_v26  ;;  %v3326_v26 = vpack.c.bf16 %v426_v20, %v425_v19  ;;  %v442_v29 = vld [vmem:[%s3964_s7 + $0x508] sm:$0xff]  ;;  %v3358_v30 = vpack.c.bf16 %v458_v22, %v457_v21  ;;  %v411_v40 = vld [vmem:[%s3964_s7 + $0x410] sm:$0xff]  ;;  %v444_v47 = vld [vmem:[%s3964_s7 + $0x518] sm:$0xff] }
  0x49   : > { %v443_v42 = vld [vmem:[%s3964_s7 + $0x510] sm:$0xff]  ;;  %v429_v48 = vld [vmem:[%s3964_s7 + $0x4a0] sm:$0xff]  ;;  %v4139_v53 = vrot.slane %v900_v44, %v4017_v14  ;;  %v414_v57 = vld [vmem:[%s3964_s7 + $0x428] sm:$0xff] }
  0x4a   : > { %3277 = vmatpush3.bf16.msra.mxu0 %v3276_v33  ;;  %v459_v33 = vld [vmem:[%s3964_s7 + $0x590] sm:$0xff]  ;;  %v461_v50 = vld [vmem:[%s3964_s7 + $0x5a0] sm:$0xff]  ;;  %v446_v61 = vld [vmem:[%s3964_s7 + $0x528] sm:$0xff] }
  0x4b   : > { %3309 = vmatpush3.bf16.msra.mxu1 %v3308_v36  ;;  %3279 = vmatprep.subr.bf16.mxu0 %v3278_v37  ;;  %v3328_v36 = vpack.c.bf16 %v410_v27, %v409_v24  ;;  %v3360_v37 = vpack.c.bf16 %v442_v29, %v441_v28  ;;  %v3362_v45 = vpack.c.bf16 %v460_v35, %v459_v33  ;;  %v445_v58 = vld [vmem:[%s3964_s7 + $0x520] sm:$0xff]  ;;  %v416_v5 = vld [vmem:[%s3964_s7 + $0x438] sm:$0xff]  ;;  %v447_v6 = vld [vmem:[%s3964_s7 + $0x530] sm:$0xff] }
  0x4c   : > { %3311 = vmatprep.subr.bf16.mxu1 %v3310_v41  ;;  %v412_v41 = vld [vmem:[%s3964_s7 + $0x418] sm:$0xff]  ;;  %v916_v59 = vcombine.high %v4139_v53, %v4139_v53  ;;  %v3368_v2 = vpack.c.bf16 %v446_v61, %v445_v58  ;;  %v433_v9 = vld [vmem:[%s3964_s7 + $0x4c0] sm:$0xff]  ;;  %v418_v18 = vld [vmem:[%s3964_s7 + $0x448] sm:$0xff] }
  0x4d   : > { %v3332_v54 = vpack.c.bf16 %v412_v41, %v411_v40  ;;  %v448_v8 = vld [vmem:[%s3964_s7 + $0x538] sm:$0xff]  ;;  %v449_v19 = vld [vmem:[%s3964_s7 + $0x540] sm:$0xff]  ;;  %v450_v21 = vld [vmem:[%s3964_s7 + $0x548] sm:$0xff] }
  0x4e   : > { %3281 = vmatpush3.bf16.msra.mxu0 %v3280_v49  ;;  %v430_v49 = vld [vmem:[%s3964_s7 + $0x4a8] sm:$0xff]  ;;  %v3372_v15 = vpack.c.bf16 %v448_v8, %v447_v6  ;;  %v435_v22 = vld [vmem:[%s3964_s7 + $0x4d0] sm:$0xff]  ;;  %v3376_v27 = vpack.c.bf16 %v450_v21, %v449_v19  ;;  %v452_v33 = vld [vmem:[%s3964_s7 + $0x558] sm:$0xff] }
  0x4f   : > { %3313 = vmatpush3.bf16.msra.mxu1 %v3312_v51  ;;  %3283 = vmatprep.subr.bf16.mxu0 %v3282_v52  ;;  %v462_v51 = vld [vmem:[%s3964_s7 + $0x5a8] sm:$0xff]  ;;  %v915_v52 = vcombine.high %v4128_v43, %v4128_v43  ;;  %v3334_v55 = vpack.c.bf16 %v430_v49, %v429_v48  ;;  %v467_v24 = vld [vmem:[%s3964_s7 + $0x5d0] sm:$0xff]  ;;  %v437_v35 = vld [vmem:[%s3964_s7 + $0x4e0] sm:$0xff] }
  0x50   : > { %3315 = vmatprep.subr.bf16.mxu1 %v3314_v56  ;;  %v413_v56 = vld [vmem:[%s3964_s7 + $0x420] sm:$0xff]  ;;  %v3366_v60 = vpack.c.bf16 %v462_v51, %v461_v50  ;;  %v419_v29 = vld [vmem:[%s3964_s7 + $0x450] sm:$0xff]  ;;  %v470_v38 = vld [vmem:[%s3964_s7 + $0x5e8] sm:$0xff] }
  0x51   : > { %v3336_v1 = vpack.c.bf16 %v414_v57, %v413_v56  ;;  %v451_v31 = vld [vmem:[%s3964_s7 + $0x550] sm:$0xff]  ;;  %v422_v44 = vld [vmem:[%s3964_s7 + $0x468] sm:$0xff]  ;;  %v440_v50 = vld [vmem:[%s3964_s7 + $0x4f8] sm:$0xff] }
  0x52   : > { %3285 = vmatpush3.bf16.msra.mxu0 %v3284_v62  ;;  %v432_v62 = vld [vmem:[%s3964_s7 + $0x4b8] sm:$0xff]  ;;  %v3380_v40 = vpack.c.bf16 %v452_v33, %v451_v31  ;;  %v454_v48 = vld [vmem:[%s3964_s7 + $0x568] sm:$0xff]  ;;  %v439_v49 = vld [vmem:[%s3964_s7 + $0x4f0] sm:$0xff] }
  0x53   : > { %3317 = vmatpush3.bf16.msra.mxu1 %v3316_v63  ;;  %3287 = vmatprep.subr.bf16.mxu0 %v3286_v0  ;;  %v463_v63 = vld [vmem:[%s3964_s7 + $0x5b0] sm:$0xff]  ;;  %v464_v0 = vld [vmem:[%s3964_s7 + $0x5b8] sm:$0xff]  ;;  %v3354_v56 = vpack.c.bf16 %v440_v50, %v439_v49  ;;  %v474_v6 = vld [vmem:[%s3964_s7 + $0x608] sm:$0xff] }
  0x54   : > { %3319 = vmatprep.subr.bf16.mxu1 %v3318_v4  ;;  %v415_v4 = vld [vmem:[%s3964_s7 + $0x430] sm:$0xff]  ;;  %v3370_v7 = vpack.c.bf16 %v464_v0, %v463_v63  ;;  %v424_v58 = vld [vmem:[%s3964_s7 + $0x478] sm:$0xff]  ;;  %v521_v63 = vld [vmem:[%s3964_s7 + $0x780] sm:$0xff] }
  0x55   : > { %v3340_v13 = vpack.c.bf16 %v416_v5, %v415_v4  ;;  %v471_v51 = vld [vmem:[%s3964_s7 + $0x5f0] sm:$0xff]  ;;  %v456_v61 = vld [vmem:[%s3964_s7 + $0x578] sm:$0xff]  ;;  %v522_v0 = vld [vmem:[%s3964_s7 + $0x788] sm:$0xff] }
  0x56   : > { %3289 = vmatpush3.bf16.msra.mxu0 %v3288_v10  ;;  %v434_v10 = vld [vmem:[%s3964_s7 + $0x4c8] sm:$0xff]  ;;  %v423_v57 = vld [vmem:[%s3964_s7 + $0x470] sm:$0xff]  ;;  %v473_v5 = vld [vmem:[%s3964_s7 + $0x600] sm:$0xff]  ;;  %v3422_v8 = vpack.c.bf16 %v522_v0, %v521_v63 }
  0x57   : > { %3321 = vmatpush3.bf16.msra.mxu1 %v3320_v11  ;;  %3291 = vmatprep.subr.bf16.mxu0 %v3290_v12  ;;  %v465_v11 = vld [vmem:[%s3964_s7 + $0x5c0] sm:$0xff]  ;;  %v466_v12 = vld [vmem:[%s3964_s7 + $0x5c8] sm:$0xff]  ;;  %v3342_v16 = vpack.c.bf16 %v434_v10, %v433_v9  ;;  %v491_v10 = vld [vmem:[%s3964_s7 + $0x690] sm:$0xff] }
  0x58   : > { %3323 = vmatprep.subr.bf16.mxu1 %v3322_v17  ;;  %v417_v17 = vld [vmem:[%s3964_s7 + $0x440] sm:$0xff]  ;;  %v3374_v20 = vpack.c.bf16 %v466_v12, %v465_v11  ;;  %v506_v9 = vld [vmem:[%s3964_s7 + $0x708] sm:$0xff]  ;;  %v492_v11 = vld [vmem:[%s3964_s7 + $0x698] sm:$0xff] }
  0x59   : > { %v3394_v19 = vpack.c.bf16 %v492_v11, %v491_v10  ;;  %v476_v21 = vld [vmem:[%s3964_s7 + $0x618] sm:$0xff]  ;;  %v511_v49 = vld [vmem:[%s3964_s7 + $0x730] sm:$0xff]  ;;  %v501_v11 = vld [vmem:[%s3964_s7 + $0x6e0] sm:$0xff] }
  0x5a   : > { %3293 = vmatpush3.bf16.msra.mxu0 %v3292_v23  ;;  %v436_v23 = vld [vmem:[%s3964_s7 + $0x4d8] sm:$0xff]  ;;  %v499_v63 = vld [vmem:[%s3964_s7 + $0x6d0] sm:$0xff] }
  0x5b   : > { %3325 = vmatpush3.bf16.msra.mxu1 %v3324_v25  ;;  %3327 = vmatprep.subr.bf16.mxu0 %v3326_v26  ;;  %v468_v25 = vld [vmem:[%s3964_s7 + $0x5d8] sm:$0xff]  ;;  %v3344_v26 = vpack.c.bf16 %v418_v18, %v417_v17  ;;  %v3346_v28 = vpack.c.bf16 %v436_v23, %v435_v22  ;;  %v3392_v17 = vpack.c.bf16 %v474_v6, %v473_v5  ;;  %v507_v22 = vld [vmem:[%s3964_s7 + $0x710] sm:$0xff] }
  0x5c   : > { %3359 = vmatprep.subr.bf16.mxu1 %v3358_v30  ;;  %v420_v30 = vld [vmem:[%s3964_s7 + $0x458] sm:$0xff]  ;;  %v3378_v32 = vpack.c.bf16 %v468_v25, %v467_v24  ;;  %v493_v25 = vld [vmem:[%s3964_s7 + $0x6a0] sm:$0xff]  ;;  %v483_v6 = vld [vmem:[%s3964_s7 + $0x650] sm:$0xff] }
  0x5d   : > { %1260 = vmatmul.mubr.f32.vlgmr.msra.gmra.mrb[2].mxu0 %v4074_v34  ;;  %v3364_v34 = vpack.c.bf16 %v444_v47, %v443_v42  ;;  %v421_v42 = vld [vmem:[%s3964_s7 + $0x460] sm:$0xff]  ;;  %v508_v24 = vld [vmem:[%s3964_s7 + $0x718] sm:$0xff] }
  0x5e   : > { %3329 = vmatpush3.bf16.msra.mxu0 %v3328_v36  ;;  %1330 = vmatmul.mubr.f32.vlgmr.msra.gmra.mrb[2].mxu1 %v4085_v46  ;;  %v431_v46 = vld [vmem:[%s3964_s7 + $0x4b0] sm:$0xff]  ;;  %v438_v36 = vld [vmem:[%s3964_s7 + $0x4e8] sm:$0xff]  ;;  %v500_v0 = vld [vmem:[%s3964_s7 + $0x6d8] sm:$0xff] }
  0x5f   : > { %3361 = vmatpush3.bf16.msra.mxu1 %v3360_v37  ;;  %3331 = vmatprep.subr.bf16.mxu0 %v3330_v39  ;;  %v3338_v3 = vpack.c.bf16 %v432_v62, %v431_v46  ;;  %v469_v37 = vld [vmem:[%s3964_s7 + $0x5e0] sm:$0xff]  ;;  %v3348_v39 = vpack.c.bf16 %v420_v30, %v419_v29  ;;  %v3350_v41 = vpack.c.bf16 %v438_v36, %v437_v35  ;;  %v490_v62 = vld [vmem:[%s3964_s7 + $0x688] sm:$0xff]  ;;  %v516_v10 = vld [vmem:[%s3964_s7 + $0x758] sm:$0xff] }
  0x60   : > { %3363 = vmatprep.subr.bf16.mxu1 %v3362_v45  ;;  %1399 = vmatprep.mubr.f32.mxu0 %v915_v52  ;;  %v453_v45 = vld [vmem:[%s3964_s7 + $0x560] sm:$0xff]  ;;  %v3382_v47 = vpack.c.bf16 %v470_v38, %v469_v37  ;;  %v472_v52 = vld [vmem:[%s3964_s7 + $0x5f8] sm:$0xff]  ;;  %v526_v29 = vld [vmem:[%s3964_s7 + $0x7a8] sm:$0xff]  ;;  %v3410_v5 = vpack.c.bf16 %v500_v0, %v499_v63 }
  0x61   : > { %1469 = vmatprep.mubr.f32.mxu1 %v916_v59  ;;  %v455_v59 = vld [vmem:[%s3964_s7 + $0x570] sm:$0xff]  ;;  %v489_v46 = vld [vmem:[%s3964_s7 + $0x680] sm:$0xff]  ;;  %v510_v38 = vld [vmem:[%s3964_s7 + $0x728] sm:$0xff] }
  0x62   : > { %3333 = vmatpush3.bf16.msra.mxu0 %v3332_v54  ;;  %v3352_v54 = vpack.c.bf16 %v422_v44, %v421_v42  ;;  %v3390_v4 = vpack.c.bf16 %v490_v62, %v489_v46  ;;  %v477_v35 = vld [vmem:[%s3964_s7 + $0x620] sm:$0xff]  ;;  %v514_v62 = vld [vmem:[%s3964_s7 + $0x748] sm:$0xff]  ;;  %v571_v63 = vld [vmem:[%s3964_s7 + $0x910] sm:$0xff] }
  0x63   : > { %3365 = vmatpush3.bf16.msra.mxu1 %v3364_v34  ;;  %3335 = vmatprep.subr.bf16.mxu0 %v3334_v55  ;;  %v275_v34 = vld [vmem:[%s3959_s28 + $0x18] sm:$0xff]  ;;  %v3384_v55 = vpack.c.bf16 %v454_v48, %v453_v45  ;;  %v509_v36 = vld [vmem:[%s3964_s7 + $0x720] sm:$0xff] }
  0x64   : > { %3367 = vmatprep.subr.bf16.mxu1 %v3366_v60  ;;  %v3386_v60 = vpack.c.bf16 %v472_v52, %v471_v51  ;;  %v4200_v12 = vrot.slane %v275_v34, %v4017_v14  ;;  %v3432_v44 = vpack.c.bf16 %v510_v38, %v509_v36  ;;  %v480_v48 = vld [vmem:[%s3964_s7 + $0x638] sm:$0xff]  ;;  %v497_v52 = vld [vmem:[%s3964_s7 + $0x6c0] sm:$0xff]  ;;  %v519_v36 = vld [vmem:[%s3964_s7 + $0x770] sm:$0xff] }
  0x65   : > { %v512_v51 = vld [vmem:[%s3964_s7 + $0x738] sm:$0xff] }
  0x66   : > { %3337 = vmatpush3.bf16.msra.mxu0 %v3336_v1  ;;  %v917_v1 = vcombine.high %v275_v34, %v275_v34  ;;  %v529_v34 = vld [vmem:[%s3964_s7 + $0x7c0] sm:$0xff]  ;;  %v520_v38 = vld [vmem:[%s3964_s7 + $0x778] sm:$0xff] }
  0x67   : > { %3369 = vmatpush3.bf16.msra.mxu1 %v3368_v2  ;;  %3339 = vmatprep.subr.bf16.mxu0 %v3338_v3  ;;  %v3356_v2 = vpack.c.bf16 %v424_v58, %v423_v57  ;;  %v3388_v3 = vpack.c.bf16 %v456_v61, %v455_v59  ;;  %v3436_v57 = vpack.c.bf16 %v512_v51, %v511_v49  ;;  %v481_v59 = vld [vmem:[%s3964_s7 + $0x640] sm:$0xff]  ;;  %v538_v49 = vld [vmem:[%s3964_s7 + $0x808] sm:$0xff] }
  0x68   : > { %3371 = vmatprep.subr.bf16.mxu1 %v3370_v7  ;;  %v505_v7 = vld [vmem:[%s3964_s7 + $0x700] sm:$0xff] }
  0x69   : > { %v3424_v18 = vpack.c.bf16 %v506_v9, %v505_v7  ;;  %v513_v61 = vld [vmem:[%s3964_s7 + $0x740] sm:$0xff]  ;;  %v484_v7 = vld [vmem:[%s3964_s7 + $0x658] sm:$0xff] }
  0x6a   : > { %3341 = vmatpush3.bf16.msra.mxu0 %v3340_v13  ;;  %v523_v13 = vld [vmem:[%s3964_s7 + $0x790] sm:$0xff] }
  0x6b   : > { %3373 = vmatpush3.bf16.msra.mxu1 %v3372_v15  ;;  %3343 = vmatprep.subr.bf16.mxu0 %v3342_v16  ;;  %v524_v15 = vld [vmem:[%s3964_s7 + $0x798] sm:$0xff]  ;;  %v4205_v16 = vrot.slane %v917_v1, %v4017_v14  ;;  %v531_v1 = vld [vmem:[%s3964_s7 + $0x7d0] sm:$0xff] }
  0x6c   : > { %3375 = vmatprep.subr.bf16.mxu1 %v3374_v20  ;;  %v475_v20 = vld [vmem:[%s3964_s7 + $0x610] sm:$0xff]  ;;  %v3426_v23 = vpack.c.bf16 %v524_v15, %v523_v13  ;;  %v502_v13 = vld [vmem:[%s3964_s7 + $0x6e8] sm:$0xff]  ;;  %v533_v15 = vld [vmem:[%s3964_s7 + $0x7e0] sm:$0xff] }
  0x6d   : > { %v933_v30 = vcombine.high %v4205_v16, %v4205_v16  ;;  %v3396_v31 = vpack.c.bf16 %v476_v21, %v475_v20  ;;  %v3414_v20 = vpack.c.bf16 %v502_v13, %v501_v11  ;;  %v485_v21 = vld [vmem:[%s3964_s7 + $0x660] sm:$0xff] }
  0x6e   : > { %3345 = vmatpush3.bf16.msra.mxu0 %v3344_v26  ;;  %v494_v26 = vld [vmem:[%s3964_s7 + $0x6a8] sm:$0xff]  ;;  %v541_v11 = vld [vmem:[%s3964_s7 + $0x820] sm:$0xff] }
  0x6f   : > { %3377 = vmatpush3.bf16.msra.mxu1 %v3376_v27  ;;  %3347 = vmatprep.subr.bf16.mxu0 %v3346_v28  ;;  %v932_v27 = vcombine.high %v4200_v12, %v4200_v12  ;;  %v525_v28 = vld [vmem:[%s3964_s7 + $0x7a0] sm:$0xff]  ;;  %v3398_v33 = vpack.c.bf16 %v494_v26, %v493_v25  ;;  %v518_v25 = vld [vmem:[%s3964_s7 + $0x768] sm:$0xff]  ;;  %v503_v26 = vld [vmem:[%s3964_s7 + $0x6f0] sm:$0xff] }
  0x70   : > { %3379 = vmatprep.subr.bf16.mxu1 %v3378_v32  ;;  %v3428_v32 = vpack.c.bf16 %v508_v24, %v507_v22  ;;  %v3430_v37 = vpack.c.bf16 %v526_v29, %v525_v28  ;;  %v486_v22 = vld [vmem:[%s3964_s7 + $0x668] sm:$0xff]  ;;  %v535_v28 = vld [vmem:[%s3964_s7 + $0x7f0] sm:$0xff]  ;;  %v536_v29 = vld [vmem:[%s3964_s7 + $0x7f8] sm:$0xff] }
  0x71   : > { %v573_v13 = vld [vmem:[%s3964_s7 + $0x920] sm:$0xff] }
  0x72   : > { %3349 = vmatpush3.bf16.msra.mxu0 %v3348_v39  ;;  %v495_v39 = vld [vmem:[%s3964_s7 + $0x6b0] sm:$0xff] }
  0x73   : > { %3381 = vmatpush3.bf16.msra.mxu1 %v3380_v40  ;;  %3351 = vmatprep.subr.bf16.mxu0 %v3350_v41  ;;  %v496_v40 = vld [vmem:[%s3964_s7 + $0x6b8] sm:$0xff] }
  0x74   : > { %3383 = vmatprep.subr.bf16.mxu1 %v3382_v47  ;;  %v528_v41 = vld [vmem:[%s3964_s7 + $0x7b8] sm:$0xff]  ;;  %v3402_v45 = vpack.c.bf16 %v496_v40, %v495_v39  ;;  %v479_v47 = vld [vmem:[%s3964_s7 + $0x630] sm:$0xff]  ;;  %v553_v39 = vld [vmem:[%s3964_s7 + $0x880] sm:$0xff] }
  0x75   : > { %v554_v40 = vld [vmem:[%s3964_s7 + $0x888] sm:$0xff] }
  0x76   : > { %3353 = vmatpush3.bf16.msra.mxu0 %v3352_v54  ;;  %v498_v54 = vld [vmem:[%s3964_s7 + $0x6c8] sm:$0xff] }
  0x77   : > { %3385 = vmatpush3.bf16.msra.mxu1 %v3384_v55  ;;  %3355 = vmatprep.subr.bf16.mxu0 %v3354_v56  ;;  %v530_v55 = vld [vmem:[%s3964_s7 + $0x7c8] sm:$0xff]  ;;  %v3404_v56 = vpack.c.bf16 %v480_v48, %v479_v47  ;;  %v3406_v58 = vpack.c.bf16 %v498_v54, %v497_v52  ;;  %v3454_v47 = vpack.c.bf16 %v554_v40, %v553_v39  ;;  %v537_v48 = vld [vmem:[%s3964_s7 + $0x800] sm:$0xff]  ;;  %v555_v54 = vld [vmem:[%s3964_s7 + $0x890] sm:$0xff] }
  0x78   : > { %3387 = vmatprep.subr.bf16.mxu1 %v3386_v60  ;;  %v482_v60 = vld [vmem:[%s3964_s7 + $0x648] sm:$0xff]  ;;  %v3438_v46 = vpack.c.bf16 %v530_v55, %v529_v34  ;;  %v556_v34 = vld [vmem:[%s3964_s7 + $0x898] sm:$0xff] }
  0x79   : > { %v570_v52 = vld [vmem:[%s3964_s7 + $0x908] sm:$0xff] }
  0x7a   : > { %3357 = vmatpush3.bf16.msra.mxu0 %v3356_v2  ;;  %v532_v2 = vld [vmem:[%s3964_s7 + $0x7d8] sm:$0xff]  ;;  %v578_v40 = vld [vmem:[%s3964_s7 + $0x948] sm:$0xff] }
  0x7b   : > { %3389 = vmatpush3.bf16.msra.mxu1 %v3388_v3  ;;  %3391 = vmatprep.subr.bf16.mxu0 %v3390_v4  ;;  %v3408_v3 = vpack.c.bf16 %v482_v60, %v481_v59  ;;  %v3440_v4 = vpack.c.bf16 %v514_v62, %v513_v61  ;;  %v3442_v9 = vpack.c.bf16 %v532_v2, %v531_v1  ;;  %v540_v62 = vld [vmem:[%s3964_s7 + $0x818] sm:$0xff]  ;;  %v557_v2 = vld [vmem:[%s3964_s7 + $0x8a0] sm:$0xff] }
  0x7c   : > { %3423 = vmatprep.subr.bf16.mxu1 %v3422_v8  ;;  %v515_v8 = vld [vmem:[%s3964_s7 + $0x750] sm:$0xff]  ;;  %v3456_v59 = vpack.c.bf16 %v538_v49, %v537_v48  ;;  %v3458_v61 = vpack.c.bf16 %v556_v34, %v555_v54  ;;  %v572_v1 = vld [vmem:[%s3964_s7 + $0x918] sm:$0xff]  ;;  %v565_v34 = vld [vmem:[%s3964_s7 + $0x8e0] sm:$0xff] }
  0x7d   : > { %1400 = vmatmul.mubr.f32.vlgmr.msra.gmra.mrb[4].mxu0 %v4128_v43  ;;  %v478_v43 = vld [vmem:[%s3964_s7 + $0x628] sm:$0xff]  ;;  %v547_v49 = vld [vmem:[%s3964_s7 + $0x850] sm:$0xff]  ;;  %v580_v54 = vld [vmem:[%s3964_s7 + $0x958] sm:$0xff] }
  0x7e   : > { %3393 = vmatpush3.bf16.msra.mxu0 %v3392_v17  ;;  %1470 = vmatmul.mubr.f32.vlgmr.msra.gmra.mrb[4].mxu1 %v4139_v53  ;;  %v527_v53 = vld [vmem:[%s3964_s7 + $0x7b0] sm:$0xff]  ;;  %v3400_v42 = vpack.c.bf16 %v478_v43, %v477_v35  ;;  %v534_v17 = vld [vmem:[%s3964_s7 + $0x7e8] sm:$0xff]  ;;  %v488_v43 = vld [vmem:[%s3964_s7 + $0x678] sm:$0xff] }
  0x7f   : > { %3425 = vmatpush3.bf16.msra.mxu1 %v3424_v18  ;;  %3395 = vmatprep.subr.bf16.mxu0 %v3394_v19  ;;  %v3434_v50 = vpack.c.bf16 %v528_v41, %v527_v53  ;;  %v3412_v18 = vpack.c.bf16 %v484_v7, %v483_v6  ;;  %v3444_v19 = vpack.c.bf16 %v516_v10, %v515_v8  ;;  %v487_v35 = vld [vmem:[%s3964_s7 + $0x670] sm:$0xff]  ;;  %v585_v53 = vld [vmem:[%s3964_s7 + $0x980] sm:$0xff]  ;;  %v586_v41 = vld [vmem:[%s3964_s7 + $0x988] sm:$0xff] }
  0x80   : > { %3427 = vmatprep.subr.bf16.mxu1 %v3426_v23  ;;  %1539 = vmatprep.mubr.f32.mxu0 %v932_v27  ;;  %v517_v23 = vld [vmem:[%s3964_s7 + $0x760] sm:$0xff]  ;;  %v3446_v24 = vpack.c.bf16 %v534_v17, %v533_v15  ;;  %v504_v27 = vld [vmem:[%s3964_s7 + $0x6f8] sm:$0xff]  ;;  %v3486_v51 = vpack.c.bf16 %v586_v41, %v585_v53  ;;  %v590_v6 = vld [vmem:[%s3964_s7 + $0x9a8] sm:$0xff] }
  0x81   : > { %1609 = vmatprep.mubr.f32.mxu1 %v933_v30  ;;  %v3416_v30 = vpack.c.bf16 %v486_v22, %v485_v21  ;;  %v574_v17 = vld [vmem:[%s3964_s7 + $0x928] sm:$0xff]  ;;  %v563_v53 = vld [vmem:[%s3964_s7 + $0x8d0] sm:$0xff]  ;;  %v564_v41 = vld [vmem:[%s3964_s7 + $0x8d8] sm:$0xff] }
  0x82   : > { %3397 = vmatpush3.bf16.msra.mxu0 %v3396_v31  ;;  %v276_v31 = vld [vmem:[%s3959_s28 + $0x20] sm:$0xff]  ;;  %v3496_v22 = vpack.c.bf16 %v574_v17, %v573_v13  ;;  %v3474_v48 = vpack.c.bf16 %v564_v41, %v563_v53  ;;  %v583_v13 = vld [vmem:[%s3964_s7 + $0x970] sm:$0xff]  ;;  %v584_v17 = vld [vmem:[%s3964_s7 + $0x978] sm:$0xff] }
  0x83   : > { %3429 = vmatpush3.bf16.msra.mxu1 %v3428_v32  ;;  %3399 = vmatprep.subr.bf16.mxu0 %v3398_v33  ;;  %v3448_v32 = vpack.c.bf16 %v518_v25, %v517_v23  ;;  %v3418_v33 = vpack.c.bf16 %v504_v27, %v503_v26  ;;  %v4277_v55 = vrot.slane %v276_v31, %v4017_v14  ;;  %v544_v25 = vld [vmem:[%s3964_s7 + $0x838] sm:$0xff]  ;;  %v575_v26 = vld [vmem:[%s3964_s7 + $0x930] sm:$0xff] }
  0x84   : > { %3431 = vmatprep.subr.bf16.mxu1 %v3430_v37  ;;  %v3450_v37 = vpack.c.bf16 %v536_v29, %v535_v28  ;;  %v576_v28 = vld [vmem:[%s3964_s7 + $0x938] sm:$0xff]  ;;  %v561_v29 = vld [vmem:[%s3964_s7 + $0x8c0] sm:$0xff]  ;;  %v635_v53 = vld [vmem:[%s3964_s7 + $0xb10] sm:$0xff] }
  0x86   : > { %3401 = vmatpush3.bf16.msra.mxu0 %v3400_v42  ;;  %v934_v42 = vcombine.high %v276_v31, %v276_v31  ;;  %v593_v31 = vld [vmem:[%s3964_s7 + $0x9c0] sm:$0xff] }
  0x87   : > { %3433 = vmatpush3.bf16.msra.mxu1 %v3432_v44  ;;  %3403 = vmatprep.subr.bf16.mxu0 %v3402_v45  ;;  %v3420_v44 = vpack.c.bf16 %v488_v43, %v487_v35  ;;  %v3452_v45 = vpack.c.bf16 %v520_v38, %v519_v36  ;;  %v3500_v35 = vpack.c.bf16 %v576_v28, %v575_v26  ;;  %v545_v36 = vld [vmem:[%s3964_s7 + $0x840] sm:$0xff]  ;;  %v602_v26 = vld [vmem:[%s3964_s7 + $0xa08] sm:$0xff] }
  0x88   : > { %3435 = vmatprep.subr.bf16.mxu1 %v3434_v50  ;;  %v569_v50 = vld [vmem:[%s3964_s7 + $0x900] sm:$0xff] }
  0x89   : > { %v3488_v60 = vpack.c.bf16 %v570_v52, %v569_v50  ;;  %v577_v38 = vld [vmem:[%s3964_s7 + $0x940] sm:$0xff]  ;;  %v548_v50 = vld [vmem:[%s3964_s7 + $0x858] sm:$0xff] }
  0x8a   : > { %3405 = vmatpush3.bf16.msra.mxu0 %v3404_v56  ;;  %v587_v56 = vld [vmem:[%s3964_s7 + $0x990] sm:$0xff] }
  0x8b   : > { %3437 = vmatpush3.bf16.msra.mxu1 %v3436_v57  ;;  %3407 = vmatprep.subr.bf16.mxu0 %v3406_v58  ;;  %v588_v57 = vld [vmem:[%s3964_s7 + $0x998] sm:$0xff]  ;;  %v4282_v58 = vrot.slane %v934_v42, %v4017_v14  ;;  %v595_v42 = vld [vmem:[%s3964_s7 + $0x9d0] sm:$0xff] }
  0x8c   : > { %3439 = vmatprep.subr.bf16.mxu1 %v3438_v46  ;;  %v539_v46 = vld [vmem:[%s3964_s7 + $0x810] sm:$0xff]  ;;  %v3490_v0 = vpack.c.bf16 %v588_v57, %v587_v56  ;;  %v566_v56 = vld [vmem:[%s3964_s7 + $0x8e8] sm:$0xff]  ;;  %v597_v57 = vld [vmem:[%s3964_s7 + $0x9e0] sm:$0xff] }
  0x8d   : > { %v950_v7 = vcombine.high %v4282_v58, %v4282_v58  ;;  %v3460_v8 = vpack.c.bf16 %v540_v62, %v539_v46  ;;  %v3478_v46 = vpack.c.bf16 %v566_v56, %v565_v34  ;;  %v549_v62 = vld [vmem:[%s3964_s7 + $0x860] sm:$0xff] }
  0x8e   : > { %3409 = vmatpush3.bf16.msra.mxu0 %v3408_v3  ;;  %v558_v3 = vld [vmem:[%s3964_s7 + $0x8a8] sm:$0xff]  ;;  %v605_v34 = vld [vmem:[%s3964_s7 + $0xa20] sm:$0xff] }
  0x8f   : > { %3441 = vmatpush3.bf16.msra.mxu1 %v3440_v4  ;;  %3411 = vmatprep.subr.bf16.mxu0 %v3410_v5  ;;  %v949_v4 = vcombine.high %v4277_v55, %v4277_v55  ;;  %v589_v5 = vld [vmem:[%s3964_s7 + $0x9a0] sm:$0xff]  ;;  %v3462_v10 = vpack.c.bf16 %v558_v3, %v557_v2  ;;  %v582_v2 = vld [vmem:[%s3964_s7 + $0x968] sm:$0xff]  ;;  %v567_v3 = vld [vmem:[%s3964_s7 + $0x8f0] sm:$0xff] }
  0x90   : > { %3443 = vmatprep.subr.bf16.mxu1 %v3442_v9  ;;  %v3492_v9 = vpack.c.bf16 %v572_v1, %v571_v63  ;;  %v3494_v15 = vpack.c.bf16 %v590_v6, %v589_v5  ;;  %v550_v63 = vld [vmem:[%s3964_s7 + $0x868] sm:$0xff]  ;;  %v599_v5 = vld [vmem:[%s3964_s7 + $0x9f0] sm:$0xff]  ;;  %v600_v6 = vld [vmem:[%s3964_s7 + $0x9f8] sm:$0xff] }
  0x91   : > { %v637_v56 = vld [vmem:[%s3964_s7 + $0xb20] sm:$0xff] }
  0x92   : > { %3413 = vmatpush3.bf16.msra.mxu0 %v3412_v18  ;;  %v559_v18 = vld [vmem:[%s3964_s7 + $0x8b0] sm:$0xff] }
  0x93   : > { %3445 = vmatpush3.bf16.msra.mxu1 %v3444_v19  ;;  %3415 = vmatprep.subr.bf16.mxu0 %v3414_v20  ;;  %v560_v19 = vld [vmem:[%s3964_s7 + $0x8b8] sm:$0xff] }
  0x94   : > { %3447 = vmatprep.subr.bf16.mxu1 %v3446_v24  ;;  %v592_v20 = vld [vmem:[%s3964_s7 + $0x9b8] sm:$0xff]  ;;  %v3466_v23 = vpack.c.bf16 %v560_v19, %v559_v18  ;;  %v543_v24 = vld [vmem:[%s3964_s7 + $0x830] sm:$0xff]  ;;  %v617_v18 = vld [vmem:[%s3964_s7 + $0xa80] sm:$0xff] }
  0x95   : > { %v618_v19 = vld [vmem:[%s3964_s7 + $0xa88] sm:$0xff] }
  0x96   : > { %3417 = vmatpush3.bf16.msra.mxu0 %v3416_v30  ;;  %v562_v30 = vld [vmem:[%s3964_s7 + $0x8c8] sm:$0xff] }
  0x97   : > { %3449 = vmatpush3.bf16.msra.mxu1 %v3448_v32  ;;  %3419 = vmatprep.subr.bf16.mxu0 %v3418_v33  ;;  %v594_v32 = vld [vmem:[%s3964_s7 + $0x9c8] sm:$0xff]  ;;  %v3468_v33 = vpack.c.bf16 %v544_v25, %v543_v24  ;;  %v3470_v43 = vpack.c.bf16 %v562_v30, %v561_v29  ;;  %v3518_v24 = vpack.c.bf16 %v618_v19, %v617_v18  ;;  %v601_v25 = vld [vmem:[%s3964_s7 + $0xa00] sm:$0xff]  ;;  %v619_v30 = vld [vmem:[%s3964_s7 + $0xa90] sm:$0xff] }
  0x98   : > { %3451 = vmatprep.subr.bf16.mxu1 %v3450_v37  ;;  %v546_v37 = vld [vmem:[%s3964_s7 + $0x848] sm:$0xff]  ;;  %v3502_v39 = vpack.c.bf16 %v594_v32, %v593_v31  ;;  %v620_v31 = vld [vmem:[%s3964_s7 + $0xa98] sm:$0xff] }
  0x99   : > { %v634_v29 = vld [vmem:[%s3964_s7 + $0xb08] sm:$0xff] }
  0x9a   : > { %3421 = vmatpush3.bf16.msra.mxu0 %v3420_v44  ;;  %v596_v44 = vld [vmem:[%s3964_s7 + $0x9d8] sm:$0xff]  ;;  %v642_v19 = vld [vmem:[%s3964_s7 + $0xb48] sm:$0xff] }
  0x9b   : > { %3453 = vmatpush3.bf16.msra.mxu1 %v3452_v45  ;;  %3455 = vmatprep.subr.bf16.mxu0 %v3454_v47  ;;  %v3472_v45 = vpack.c.bf16 %v546_v37, %v545_v36  ;;  %v3504_v47 = vpack.c.bf16 %v578_v40, %v577_v38  ;;  %v3506_v52 = vpack.c.bf16 %v596_v44, %v595_v42  ;;  %v604_v40 = vld [vmem:[%s3964_s7 + $0xa18] sm:$0xff]  ;;  %v621_v44 = vld [vmem:[%s3964_s7 + $0xaa0] sm:$0xff] }
  0x9c   : > { %3487 = vmatprep.subr.bf16.mxu1 %v3486_v51  ;;  %v579_v51 = vld [vmem:[%s3964_s7 + $0x950] sm:$0xff]  ;;  %v3520_v36 = vpack.c.bf16 %v602_v26, %v601_v25  ;;  %v3522_v38 = vpack.c.bf16 %v620_v31, %v619_v30  ;;  %v636_v42 = vld [vmem:[%s3964_s7 + $0xb18] sm:$0xff]  ;;  %v629_v31 = vld [vmem:[%s3964_s7 + $0xae0] sm:$0xff] }
  0x9d   : > { %1540 = vmatmul.mubr.f32.vlgmr.msra.gmra.mrb[6].mxu0 %v4200_v12  ;;  %v542_v12 = vld [vmem:[%s3964_s7 + $0x828] sm:$0xff]  ;;  %v611_v26 = vld [vmem:[%s3964_s7 + $0xa50] sm:$0xff]  ;;  %v644_v30 = vld [vmem:[%s3964_s7 + $0xb58] sm:$0xff] }
  0x9e   : > { %3457 = vmatpush3.bf16.msra.mxu0 %v3456_v59  ;;  %1610 = vmatmul.mubr.f32.vlgmr.msra.gmra.mrb[6].mxu1 %v4205_v16  ;;  %v591_v16 = vld [vmem:[%s3964_s7 + $0x9b0] sm:$0xff]  ;;  %v3464_v21 = vpack.c.bf16 %v542_v12, %v541_v11  ;;  %v598_v59 = vld [vmem:[%s3964_s7 + $0x9e8] sm:$0xff]  ;;  %v552_v12 = vld [vmem:[%s3964_s7 + $0x878] sm:$0xff] }
  0x9f   : > { %3489 = vmatpush3.bf16.msra.mxu1 %v3488_v60  ;;  %3459 = vmatprep.subr.bf16.mxu0 %v3458_v61  ;;  %v3498_v27 = vpack.c.bf16 %v592_v20, %v591_v16  ;;  %v3476_v60 = vpack.c.bf16 %v548_v50, %v547_v49  ;;  %v3508_v61 = vpack.c.bf16 %v580_v54, %v579_v51  ;;  %v551_v11 = vld [vmem:[%s3964_s7 + $0x870] sm:$0xff]  ;;  %v649_v16 = vld [vmem:[%s3964_s7 + $0xb80] sm:$0xff]  ;;  %v650_v20 = vld [vmem:[%s3964_s7 + $0xb88] sm:$0xff] }
  0xa0   : > { %3491 = vmatprep.subr.bf16.mxu1 %v3490_v0  ;;  %1679 = vmatprep.mubr.f32.mxu0 %v949_v4  ;;  %v581_v0 = vld [vmem:[%s3964_s7 + $0x960] sm:$0xff]  ;;  %v3510_v1 = vpack.c.bf16 %v598_v59, %v597_v57  ;;  %v568_v4 = vld [vmem:[%s3964_s7 + $0x8f8] sm:$0xff]  ;;  %v3550_v28 = vpack.c.bf16 %v650_v20, %v649_v16  ;;  %v654_v49 = vld [vmem:[%s3964_s7 + $0xba8] sm:$0xff] }
  0xa1   : > { %1749 = vmatprep.mubr.f32.mxu1 %v950_v7  ;;  %v3480_v7 = vpack.c.bf16 %v550_v63, %v549_v62  ;;  %v638_v59 = vld [vmem:[%s3964_s7 + $0xb28] sm:$0xff]  ;;  %v627_v16 = vld [vmem:[%s3964_s7 + $0xad0] sm:$0xff]  ;;  %v628_v20 = vld [vmem:[%s3964_s7 + $0xad8] sm:$0xff] }
  0xa2   : > { %3461 = vmatpush3.bf16.msra.mxu0 %v3460_v8  ;;  %v277_v8 = vld [vmem:[%s3959_s28 + $0x28] sm:$0xff]  ;;  %v3560_v63 = vpack.c.bf16 %v638_v59, %v637_v56  ;;  %v3538_v25 = vpack.c.bf16 %v628_v20, %v627_v16  ;;  %v647_v56 = vld [vmem:[%s3964_s7 + $0xb70] sm:$0xff]  ;;  %v648_v59 = vld [vmem:[%s3964_s7 + $0xb78] sm:$0xff] }
  0xa3   : > { %3493 = vmatpush3.bf16.msra.mxu1 %v3492_v9  ;;  %3463 = vmatprep.subr.bf16.mxu0 %v3462_v10  ;;  %v3512_v9 = vpack.c.bf16 %v582_v2, %v581_v0  ;;  %v3482_v10 = vpack.c.bf16 %v568_v4, %v567_v3  ;;  %v4354_v32 = vrot.slane %v277_v8, %v4017_v14  ;;  %v608_v2 = vld [vmem:[%s3964_s7 + $0xa38] sm:$0xff]  ;;  %v639_v3 = vld [vmem:[%s3964_s7 + $0xb30] sm:$0xff] }
  0xa4   : > { %3495 = vmatprep.subr.bf16.mxu1 %v3494_v15  ;;  %v3514_v15 = vpack.c.bf16 %v600_v6, %v599_v5  ;;  %v640_v5 = vld [vmem:[%s3964_s7 + $0xb38] sm:$0xff]  ;;  %v625_v6 = vld [vmem:[%s3964_s7 + $0xac0] sm:$0xff]  ;;  %v699_v16 = vld [vmem:[%s3964_s7 + $0xd10] sm:$0xff] }
  0xa6   : > { %3465 = vmatpush3.bf16.msra.mxu0 %v3464_v21  ;;  %v951_v21 = vcombine.high %v277_v8, %v277_v8  ;;  %v657_v8 = vld [vmem:[%s3964_s7 + $0xbc0] sm:$0xff] }
  0xa7   : > { %3497 = vmatpush3.bf16.msra.mxu1 %v3496_v22  ;;  %3467 = vmatprep.subr.bf16.mxu0 %v3466_v23  ;;  %v3484_v22 = vpack.c.bf16 %v552_v12, %v551_v11  ;;  %v3516_v23 = vpack.c.bf16 %v584_v17, %v583_v13  ;;  %v3564_v11 = vpack.c.bf16 %v640_v5, %v639_v3  ;;  %v609_v13 = vld [vmem:[%s3964_s7 + $0xa40] sm:$0xff]  ;;  %v666_v3 = vld [vmem:[%s3964_s7 + $0xc08] sm:$0xff] }
  0xa8   : > { %3499 = vmatprep.subr.bf16.mxu1 %v3498_v27  ;;  %v633_v27 = vld [vmem:[%s3964_s7 + $0xb00] sm:$0xff] }
  0xa9   : > { %v3552_v37 = vpack.c.bf16 %v634_v29, %v633_v27  ;;  %v641_v17 = vld [vmem:[%s3964_s7 + $0xb40] sm:$0xff]  ;;  %v612_v27 = vld [vmem:[%s3964_s7 + $0xa58] sm:$0xff] }
  0xaa   : > { %3469 = vmatpush3.bf16.msra.mxu0 %v3468_v33  ;;  %v651_v33 = vld [vmem:[%s3964_s7 + $0xb90] sm:$0xff] }
  0xab   : > { %3501 = vmatpush3.bf16.msra.mxu1 %v3500_v35  ;;  %3471 = vmatprep.subr.bf16.mxu0 %v3470_v43  ;;  %v652_v35 = vld [vmem:[%s3964_s7 + $0xb98] sm:$0xff]  ;;  %v4359_v43 = vrot.slane %v951_v21, %v4017_v14  ;;  %v659_v21 = vld [vmem:[%s3964_s7 + $0xbd0] sm:$0xff] }
  0xac   : > { %3503 = vmatprep.subr.bf16.mxu1 %v3502_v39  ;;  %v603_v39 = vld [vmem:[%s3964_s7 + $0xa10] sm:$0xff]  ;;  %v3554_v41 = vpack.c.bf16 %v652_v35, %v651_v33  ;;  %v630_v33 = vld [vmem:[%s3964_s7 + $0xae8] sm:$0xff]  ;;  %v661_v35 = vld [vmem:[%s3964_s7 + $0xbe0] sm:$0xff] }
  0xad   : > { %v967_v50 = vcombine.high %v4359_v43, %v4359_v43  ;;  %v3524_v51 = vpack.c.bf16 %v604_v40, %v603_v39  ;;  %v3542_v39 = vpack.c.bf16 %v630_v33, %v629_v31  ;;  %v613_v40 = vld [vmem:[%s3964_s7 + $0xa60] sm:$0xff] }
  0xae   : > { %3473 = vmatpush3.bf16.msra.mxu0 %v3472_v45  ;;  %v622_v45 = vld [vmem:[%s3964_s7 + $0xaa8] sm:$0xff]  ;;  %v669_v31 = vld [vmem:[%s3964_s7 + $0xc20] sm:$0xff] }
  0xaf   : > { %3505 = vmatpush3.bf16.msra.mxu1 %v3504_v47  ;;  %3475 = vmatprep.subr.bf16.mxu0 %v3474_v48  ;;  %v966_v47 = vcombine.high %v4354_v32, %v4354_v32  ;;  %v653_v48 = vld [vmem:[%s3964_s7 + $0xba0] sm:$0xff]  ;;  %v3526_v54 = vpack.c.bf16 %v622_v45, %v621_v44  ;;  %v646_v44 = vld [vmem:[%s3964_s7 + $0xb68] sm:$0xff]  ;;  %v631_v45 = vld [vmem:[%s3964_s7 + $0xaf0] sm:$0xff] }
  0xb0   : > { %3507 = vmatprep.subr.bf16.mxu1 %v3506_v52  ;;  %v3556_v52 = vpack.c.bf16 %v636_v42, %v635_v53  ;;  %v3558_v57 = vpack.c.bf16 %v654_v49, %v653_v48  ;;  %v614_v53 = vld [vmem:[%s3964_s7 + $0xa68] sm:$0xff]  ;;  %v663_v48 = vld [vmem:[%s3964_s7 + $0xbf0] sm:$0xff]  ;;  %v664_v49 = vld [vmem:[%s3964_s7 + $0xbf8] sm:$0xff] }
  0xb1   : > { %v701_v33 = vld [vmem:[%s3964_s7 + $0xd20] sm:$0xff] }
  0xb2   : > { %3477 = vmatpush3.bf16.msra.mxu0 %v3476_v60  ;;  %v623_v60 = vld [vmem:[%s3964_s7 + $0xab0] sm:$0xff] }
  0xb3   : > { %3509 = vmatpush3.bf16.msra.mxu1 %v3508_v61  ;;  %3479 = vmatprep.subr.bf16.mxu0 %v3478_v46  ;;  %v624_v61 = vld [vmem:[%s3964_s7 + $0xab8] sm:$0xff] }
  0xb4   : > { %3511 = vmatprep.subr.bf16.mxu1 %v3510_v1  ;;  %v656_v46 = vld [vmem:[%s3964_s7 + $0xbb8] sm:$0xff]  ;;  %v3530_v0 = vpack.c.bf16 %v624_v61, %v623_v60  ;;  %v607_v1 = vld [vmem:[%s3964_s7 + $0xa30] sm:$0xff]  ;;  %v681_v60 = vld [vmem:[%s3964_s7 + $0xc80] sm:$0xff] }
  0xb5   : > { %v682_v61 = vld [vmem:[%s3964_s7 + $0xc88] sm:$0xff] }
  0xb6   : > { %3481 = vmatpush3.bf16.msra.mxu0 %v3480_v7  ;;  %v626_v7 = vld [vmem:[%s3964_s7 + $0xac8] sm:$0xff] }
  0xb7   : > { %3513 = vmatpush3.bf16.msra.mxu1 %v3512_v9  ;;  %3483 = vmatprep.subr.bf16.mxu0 %v3482_v10  ;;  %v658_v9 = vld [vmem:[%s3964_s7 + $0xbc8] sm:$0xff]  ;;  %v3532_v10 = vpack.c.bf16 %v608_v2, %v607_v1  ;;  %v3534_v12 = vpack.c.bf16 %v626_v7, %v625_v6  ;;  %v3582_v1 = vpack.c.bf16 %v682_v61, %v681_v60  ;;  %v665_v2 = vld [vmem:[%s3964_s7 + $0xc00] sm:$0xff]  ;;  %v683_v7 = vld [vmem:[%s3964_s7 + $0xc90] sm:$0xff] }
  0xb8   : > { %3515 = vmatprep.subr.bf16.mxu1 %v3514_v15  ;;  %v610_v15 = vld [vmem:[%s3964_s7 + $0xa48] sm:$0xff]  ;;  %v3566_v18 = vpack.c.bf16 %v658_v9, %v657_v8  ;;  %v684_v8 = vld [vmem:[%s3964_s7 + $0xc98] sm:$0xff] }
  0xb9   : > { %v698_v6 = vld [vmem:[%s3964_s7 + $0xd08] sm:$0xff] }
  0xba   : > { %3485 = vmatpush3.bf16.msra.mxu0 %v3484_v22  ;;  %v660_v22 = vld [vmem:[%s3964_s7 + $0xbd8] sm:$0xff]  ;;  %v706_v61 = vld [vmem:[%s3964_s7 + $0xd48] sm:$0xff] }
  0xbb   : > { %3517 = vmatpush3.bf16.msra.mxu1 %v3516_v23  ;;  %3519 = vmatprep.subr.bf16.mxu0 %v3518_v24  ;;  %v3536_v23 = vpack.c.bf16 %v610_v15, %v609_v13  ;;  %v3568_v24 = vpack.c.bf16 %v642_v19, %v641_v17  ;;  %v3570_v29 = vpack.c.bf16 %v660_v22, %v659_v21  ;;  %v668_v19 = vld [vmem:[%s3964_s7 + $0xc18] sm:$0xff]  ;;  %v685_v22 = vld [vmem:[%s3964_s7 + $0xca0] sm:$0xff] }
  0xbc   : > { %3551 = vmatprep.subr.bf16.mxu1 %v3550_v28  ;;  %v643_v28 = vld [vmem:[%s3964_s7 + $0xb50] sm:$0xff]  ;;  %v3584_v13 = vpack.c.bf16 %v666_v3, %v665_v2  ;;  %v3586_v17 = vpack.c.bf16 %v684_v8, %v683_v7  ;;  %v700_v21 = vld [vmem:[%s3964_s7 + $0xd18] sm:$0xff]  ;;  %v693_v8 = vld [vmem:[%s3964_s7 + $0xce0] sm:$0xff] }
  0xbd   : > { %1680 = vmatmul.mubr.f32.vlgmr.msra.gmra.mrb[8].mxu0 %v4277_v55  ;;  %v606_v55 = vld [vmem:[%s3964_s7 + $0xa28] sm:$0xff]  ;;  %v675_v3 = vld [vmem:[%s3964_s7 + $0xc50] sm:$0xff]  ;;  %v708_v7 = vld [vmem:[%s3964_s7 + $0xd58] sm:$0xff] }
  0xbe   : > { %3521 = vmatpush3.bf16.msra.mxu0 %v3520_v36  ;;  %1750 = vmatmul.mubr.f32.vlgmr.msra.gmra.mrb[8].mxu1 %v4282_v58  ;;  %v655_v58 = vld [vmem:[%s3964_s7 + $0xbb0] sm:$0xff]  ;;  %v3528_v62 = vpack.c.bf16 %v606_v55, %v605_v34  ;;  %v662_v36 = vld [vmem:[%s3964_s7 + $0xbe8] sm:$0xff]  ;;  %v616_v55 = vld [vmem:[%s3964_s7 + $0xa78] sm:$0xff] }
  0xbf   : > { %3553 = vmatpush3.bf16.msra.mxu1 %v3552_v37  ;;  %3523 = vmatprep.subr.bf16.mxu0 %v3522_v38  ;;  %v3562_v4 = vpack.c.bf16 %v656_v46, %v655_v58  ;;  %v3540_v37 = vpack.c.bf16 %v612_v27, %v611_v26  ;;  %v3572_v38 = vpack.c.bf16 %v644_v30, %v643_v28  ;;  %v615_v34 = vld [vmem:[%s3964_s7 + $0xa70] sm:$0xff]  ;;  %v713_v58 = vld [vmem:[%s3964_s7 + $0xd80] sm:$0xff]  ;;  %v714_v46 = vld [vmem:[%s3964_s7 + $0xd88] sm:$0xff] }
  0xc0   : > { %3555 = vmatprep.subr.bf16.mxu1 %v3554_v41  ;;  %1819 = vmatprep.mubr.f32.mxu0 %v966_v47  ;;  %v645_v41 = vld [vmem:[%s3964_s7 + $0xb60] sm:$0xff]  ;;  %v3574_v42 = vpack.c.bf16 %v662_v36, %v661_v35  ;;  %v632_v47 = vld [vmem:[%s3964_s7 + $0xaf8] sm:$0xff]  ;;  %v3614_v5 = vpack.c.bf16 %v714_v46, %v713_v58  ;;  %v718_v26 = vld [vmem:[%s3964_s7 + $0xda8] sm:$0xff] }
  0xc1   : > { %1889 = vmatprep.mubr.f32.mxu1 %v967_v50  ;;  %v3544_v50 = vpack.c.bf16 %v614_v53, %v613_v40  ;;  %v702_v36 = vld [vmem:[%s3964_s7 + $0xd28] sm:$0xff]  ;;  %v691_v58 = vld [vmem:[%s3964_s7 + $0xcd0] sm:$0xff]  ;;  %v692_v46 = vld [vmem:[%s3964_s7 + $0xcd8] sm:$0xff] }
  0xc2   : > { %3525 = vmatpush3.bf16.msra.mxu0 %v3524_v51  ;;  %v278_v51 = vld [vmem:[%s3959_s28 + $0x30] sm:$0xff]  ;;  %v3624_v53 = vpack.c.bf16 %v702_v36, %v701_v33  ;;  %v3602_v2 = vpack.c.bf16 %v692_v46, %v691_v58  ;;  %v712_v36 = vld [vmem:[%s3964_s7 + $0xd78] sm:$0xff] }
  0xc3   : > { %3557 = vmatpush3.bf16.msra.mxu1 %v3556_v52  ;;  %3527 = vmatprep.subr.bf16.mxu0 %v3526_v54  ;;  %v3576_v52 = vpack.c.bf16 %v646_v44, %v645_v41  ;;  %v3546_v54 = vpack.c.bf16 %v632_v47, %v631_v45  ;;  %v4431_v9 = vrot.slane %v278_v51, %v4017_v14  ;;  %v672_v44 = vld [vmem:[%s3964_s7 + $0xc38] sm:$0xff]  ;;  %v703_v45 = vld [vmem:[%s3964_s7 + $0xd30] sm:$0xff] }
  0xc4   : > { %3559 = vmatprep.subr.bf16.mxu1 %v3558_v57  ;;  %v3578_v57 = vpack.c.bf16 %v664_v49, %v663_v48  ;;  %v704_v48 = vld [vmem:[%s3964_s7 + $0xd38] sm:$0xff]  ;;  %v689_v49 = vld [vmem:[%s3964_s7 + $0xcc0] sm:$0xff]  ;;  %v711_v33 = vld [vmem:[%s3964_s7 + $0xd70] sm:$0xff] }
  0xc5   : > { %v763_v58 = vld [vmem:[%s3964_s7 + $0xf10] sm:$0xff] }
  0xc6   : > { %3529 = vmatpush3.bf16.msra.mxu0 %v3528_v62  ;;  %v968_v62 = vcombine.high %v278_v51, %v278_v51  ;;  %v721_v51 = vld [vmem:[%s3964_s7 + $0xdc0] sm:$0xff] }
  0xc7   : > { %3561 = vmatpush3.bf16.msra.mxu1 %v3560_v63  ;;  %3531 = vmatprep.subr.bf16.mxu0 %v3530_v0  ;;  %v3548_v63 = vpack.c.bf16 %v616_v55, %v615_v34  ;;  %v3580_v0 = vpack.c.bf16 %v648_v59, %v647_v56  ;;  %v3628_v34 = vpack.c.bf16 %v704_v48, %v703_v45  ;;  %v673_v56 = vld [vmem:[%s3964_s7 + $0xc40] sm:$0xff]  ;;  %v730_v45 = vld [vmem:[%s3964_s7 + $0xe08] sm:$0xff] }
  0xc8   : > { %3563 = vmatprep.subr.bf16.mxu1 %v3562_v4  ;;  %v697_v4 = vld [vmem:[%s3964_s7 + $0xd00] sm:$0xff] }
  0xc9   : > { %v3616_v15 = vpack.c.bf16 %v698_v6, %v697_v4  ;;  %v705_v59 = vld [vmem:[%s3964_s7 + $0xd40] sm:$0xff]  ;;  %v676_v4 = vld [vmem:[%s3964_s7 + $0xc58] sm:$0xff] }
  0xca   : > { %3533 = vmatpush3.bf16.msra.mxu0 %v3532_v10  ;;  %v715_v10 = vld [vmem:[%s3964_s7 + $0xd90] sm:$0xff] }
  0xcb   : > { %3565 = vmatpush3.bf16.msra.mxu1 %v3564_v11  ;;  %3535 = vmatprep.subr.bf16.mxu0 %v3534_v12  ;;  %v716_v11 = vld [vmem:[%s3964_s7 + $0xd98] sm:$0xff]  ;;  %v4436_v12 = vrot.slane %v968_v62, %v4017_v14  ;;  %v723_v62 = vld [vmem:[%s3964_s7 + $0xdd0] sm:$0xff] }
  0xcc   : > { %3567 = vmatprep.subr.bf16.mxu1 %v3566_v18  ;;  %v667_v18 = vld [vmem:[%s3964_s7 + $0xc10] sm:$0xff]  ;;  %v3618_v20 = vpack.c.bf16 %v716_v11, %v715_v10  ;;  %v694_v10 = vld [vmem:[%s3964_s7 + $0xce8] sm:$0xff]  ;;  %v725_v11 = vld [vmem:[%s3964_s7 + $0xde0] sm:$0xff] }
  0xcd   : > { %v984_v27 = vcombine.high %v4436_v12, %v4436_v12  ;;  %v3588_v28 = vpack.c.bf16 %v668_v19, %v667_v18  ;;  %v3606_v18 = vpack.c.bf16 %v694_v10, %v693_v8  ;;  %v677_v19 = vld [vmem:[%s3964_s7 + $0xc60] sm:$0xff] }
  0xce   : > { %3537 = vmatpush3.bf16.msra.mxu0 %v3536_v23  ;;  %v686_v23 = vld [vmem:[%s3964_s7 + $0xca8] sm:$0xff]  ;;  %v733_v8 = vld [vmem:[%s3964_s7 + $0xe20] sm:$0xff] }
  0xcf   : > { %3569 = vmatpush3.bf16.msra.mxu1 %v3568_v24  ;;  %3539 = vmatprep.subr.bf16.mxu0 %v3538_v25  ;;  %v983_v24 = vcombine.high %v4431_v9, %v4431_v9  ;;  %v717_v25 = vld [vmem:[%s3964_s7 + $0xda0] sm:$0xff]  ;;  %v3590_v30 = vpack.c.bf16 %v686_v23, %v685_v22  ;;  %v710_v22 = vld [vmem:[%s3964_s7 + $0xd68] sm:$0xff]  ;;  %v695_v23 = vld [vmem:[%s3964_s7 + $0xcf0] sm:$0xff] }
  0xd0   : > { %3571 = vmatprep.subr.bf16.mxu1 %v3570_v29  ;;  %v3620_v29 = vpack.c.bf16 %v700_v21, %v699_v16  ;;  %v3622_v35 = vpack.c.bf16 %v718_v26, %v717_v25  ;;  %v678_v16 = vld [vmem:[%s3964_s7 + $0xc68] sm:$0xff]  ;;  %v727_v25 = vld [vmem:[%s3964_s7 + $0xdf0] sm:$0xff]  ;;  %v728_v26 = vld [vmem:[%s3964_s7 + $0xdf8] sm:$0xff] }
  0xd1   : > { %v765_v10 = vld [vmem:[%s3964_s7 + $0xf20] sm:$0xff] }
  0xd2   : > { %3541 = vmatpush3.bf16.msra.mxu0 %v3540_v37  ;;  %v687_v37 = vld [vmem:[%s3964_s7 + $0xcb0] sm:$0xff] }
  0xd3   : > { %3573 = vmatpush3.bf16.msra.mxu1 %v3572_v38  ;;  %3543 = vmatprep.subr.bf16.mxu0 %v3542_v39  ;;  %v688_v38 = vld [vmem:[%s3964_s7 + $0xcb8] sm:$0xff] }
  0xd4   : > { %3575 = vmatprep.subr.bf16.mxu1 %v3574_v42  ;;  %v720_v39 = vld [vmem:[%s3964_s7 + $0xdb8] sm:$0xff]  ;;  %v3594_v41 = vpack.c.bf16 %v688_v38, %v687_v37  ;;  %v671_v42 = vld [vmem:[%s3964_s7 + $0xc30] sm:$0xff]  ;;  %v745_v37 = vld [vmem:[%s3964_s7 + $0xe80] sm:$0xff] }
  0xd5   : > { %v746_v38 = vld [vmem:[%s3964_s7 + $0xe88] sm:$0xff] }
  0xd6   : > { %3545 = vmatpush3.bf16.msra.mxu0 %v3544_v50  ;;  %v690_v50 = vld [vmem:[%s3964_s7 + $0xcc8] sm:$0xff] }
  0xd7   : > { %3577 = vmatpush3.bf16.msra.mxu1 %v3576_v52  ;;  %3547 = vmatprep.subr.bf16.mxu0 %v3546_v54  ;;  %v722_v52 = vld [vmem:[%s3964_s7 + $0xdc8] sm:$0xff]  ;;  %v3596_v54 = vpack.c.bf16 %v672_v44, %v671_v42  ;;  %v3598_v55 = vpack.c.bf16 %v690_v50, %v689_v49  ;;  %v3646_v42 = vpack.c.bf16 %v746_v38, %v745_v37  ;;  %v729_v44 = vld [vmem:[%s3964_s7 + $0xe00] sm:$0xff]  ;;  %v747_v50 = vld [vmem:[%s3964_s7 + $0xe90] sm:$0xff] }
  0xd8   : > { %3579 = vmatprep.subr.bf16.mxu1 %v3578_v57  ;;  %v674_v57 = vld [vmem:[%s3964_s7 + $0xc48] sm:$0xff]  ;;  %v3630_v60 = vpack.c.bf16 %v722_v52, %v721_v51  ;;  %v748_v51 = vld [vmem:[%s3964_s7 + $0xe98] sm:$0xff] }
  0xd9   : > { %v762_v49 = vld [vmem:[%s3964_s7 + $0xf08] sm:$0xff] }
  0xda   : > { %3549 = vmatpush3.bf16.msra.mxu0 %v3548_v63  ;;  %v724_v63 = vld [vmem:[%s3964_s7 + $0xdd8] sm:$0xff]  ;;  %v770_v38 = vld [vmem:[%s3964_s7 + $0xf48] sm:$0xff] }
  0xdb   : > { %3581 = vmatpush3.bf16.msra.mxu1 %v3580_v0  ;;  %3583 = vmatprep.subr.bf16.mxu0 %v3582_v1  ;;  %v3600_v0 = vpack.c.bf16 %v674_v57, %v673_v56  ;;  %v3632_v1 = vpack.c.bf16 %v706_v61, %v705_v59  ;;  %v3634_v6 = vpack.c.bf16 %v724_v63, %v723_v62  ;;  %v732_v61 = vld [vmem:[%s3964_s7 + $0xe18] sm:$0xff]  ;;  %v749_v63 = vld [vmem:[%s3964_s7 + $0xea0] sm:$0xff] }
  0xdc   : > { %3615 = vmatprep.subr.bf16.mxu1 %v3614_v5  ;;  %v707_v5 = vld [vmem:[%s3964_s7 + $0xd50] sm:$0xff]  ;;  %v3648_v56 = vpack.c.bf16 %v730_v45, %v729_v44  ;;  %v3650_v59 = vpack.c.bf16 %v748_v51, %v747_v50  ;;  %v764_v62 = vld [vmem:[%s3964_s7 + $0xf18] sm:$0xff]  ;;  %v757_v51 = vld [vmem:[%s3964_s7 + $0xee0] sm:$0xff] }
  0xdd   : > { %1820 = vmatmul.mubr.f32.vlgmr.msra.gmra.mrb[10].mxu0 %v4354_v32  ;;  %v670_v32 = vld [vmem:[%s3964_s7 + $0xc28] sm:$0xff]  ;;  %v739_v45 = vld [vmem:[%s3964_s7 + $0xe50] sm:$0xff]  ;;  %v772_v50 = vld [vmem:[%s3964_s7 + $0xf58] sm:$0xff] }
  0xde   : > { %3585 = vmatpush3.bf16.msra.mxu0 %v3584_v13  ;;  %1890 = vmatmul.mubr.f32.vlgmr.msra.gmra.mrb[10].mxu1 %v4359_v43  ;;  %v719_v43 = vld [vmem:[%s3964_s7 + $0xdb0] sm:$0xff]  ;;  %v3592_v40 = vpack.c.bf16 %v670_v32, %v669_v31  ;;  %v726_v13 = vld [vmem:[%s3964_s7 + $0xde8] sm:$0xff]  ;;  %v680_v32 = vld [vmem:[%s3964_s7 + $0xc78] sm:$0xff] }
  0xdf   : > { %3617 = vmatpush3.bf16.msra.mxu1 %v3616_v15  ;;  %3587 = vmatprep.subr.bf16.mxu0 %v3586_v17  ;;  %v3626_v47 = vpack.c.bf16 %v720_v39, %v719_v43  ;;  %v3604_v15 = vpack.c.bf16 %v676_v4, %v675_v3  ;;  %v3636_v17 = vpack.c.bf16 %v708_v7, %v707_v5  ;;  %v679_v31 = vld [vmem:[%s3964_s7 + $0xc70] sm:$0xff]  ;;  %v777_v43 = vld [vmem:[%s3964_s7 + $0xf80] sm:$0xff]  ;;  %v778_v39 = vld [vmem:[%s3964_s7 + $0xf88] sm:$0xff] }
  0xe0   : > { %3619 = vmatprep.subr.bf16.mxu1 %v3618_v20  ;;  %1959 = vmatprep.mubr.f32.mxu0 %v983_v24  ;;  %v709_v20 = vld [vmem:[%s3964_s7 + $0xd60] sm:$0xff]  ;;  %v3638_v21 = vpack.c.bf16 %v726_v13, %v725_v11  ;;  %v696_v24 = vld [vmem:[%s3964_s7 + $0xcf8] sm:$0xff]  ;;  %v3678_v48 = vpack.c.bf16 %v778_v39, %v777_v43  ;;  %v782_v3 = vld [vmem:[%s3964_s7 + $0xfa8] sm:$0xff] }
  0xe1   : > { %2029 = vmatprep.mubr.f32.mxu1 %v984_v27  ;;  %v3608_v27 = vpack.c.bf16 %v678_v16, %v677_v19  ;;  %v766_v13 = vld [vmem:[%s3964_s7 + $0xf28] sm:$0xff]  ;;  %v755_v43 = vld [vmem:[%s3964_s7 + $0xed0] sm:$0xff]  ;;  %v756_v39 = vld [vmem:[%s3964_s7 + $0xed8] sm:$0xff] }
  0xe2   : > { %3589 = vmatpush3.bf16.msra.mxu0 %v3588_v28  ;;  %v279_v28 = vld [vmem:[%s3959_s28 + $0x38] sm:$0xff]  ;;  %v3688_v16 = vpack.c.bf16 %v766_v13, %v765_v10  ;;  %v3666_v44 = vpack.c.bf16 %v756_v39, %v755_v43  ;;  %v280_v10 = vld [vmem:[%s3959_s28 + $0x40] sm:$0xff] }
  0xe3   : > { %3621 = vmatpush3.bf16.msra.mxu1 %v3620_v29  ;;  %3591 = vmatprep.subr.bf16.mxu0 %v3590_v30  ;;  %v3640_v29 = vpack.c.bf16 %v710_v22, %v709_v20  ;;  %v3610_v30 = vpack.c.bf16 %v696_v24, %v695_v23  ;;  %v4508_v52 = vrot.slane %v279_v28, %v4017_v14  ;;  %v736_v22 = vld [vmem:[%s3964_s7 + $0xe38] sm:$0xff]  ;;  %v767_v23 = vld [vmem:[%s3964_s7 + $0xf30] sm:$0xff] }
  0xe4   : > { %3623 = vmatprep.subr.bf16.mxu1 %v3622_v35  ;;  %v3642_v35 = vpack.c.bf16 %v728_v26, %v727_v25  ;;  %v768_v25 = vld [vmem:[%s3964_s7 + $0xf38] sm:$0xff]  ;;  %v753_v26 = vld [vmem:[%s3964_s7 + $0xec0] sm:$0xff] }
  0xe5   : > { %v844_v43 = vld [vmem:[%s3964_s7 + $0x1198] sm:$0xff] }
  0xe6   : > { %3593 = vmatpush3.bf16.msra.mxu0 %v3592_v40  ;;  %v985_v40 = vcombine.high %v279_v28, %v279_v28  ;;  %v785_v28 = vld [vmem:[%s3964_s7 + $0xfc0] sm:$0xff] }
  0xe7   : > { %3625 = vmatpush3.bf16.msra.mxu1 %v3624_v53  ;;  %3595 = vmatprep.subr.bf16.mxu0 %v3594_v41  ;;  %v3612_v53 = vpack.c.bf16 %v680_v32, %v679_v31  ;;  %v3644_v41 = vpack.c.bf16 %v712_v36, %v711_v33  ;;  %v3692_v31 = vpack.c.bf16 %v768_v25, %v767_v23  ;;  %v737_v33 = vld [vmem:[%s3964_s7 + $0xe40] sm:$0xff] }
  0xe8   : > { %3627 = vmatprep.subr.bf16.mxu1 %v3626_v47  ;;  %v761_v47 = vld [vmem:[%s3964_s7 + $0xf00] sm:$0xff]  ;;  %v1002_v25 = vcombine.high %v280_v10, %v280_v10 }
  0xe9   : > { %v3680_v57 = vpack.c.bf16 %v762_v49, %v761_v47  ;;  %v769_v36 = vld [vmem:[%s3964_s7 + $0xf40] sm:$0xff]  ;;  %v740_v47 = vld [vmem:[%s3964_s7 + $0xe58] sm:$0xff] }
  0xea   : > { %3597 = vmatpush3.bf16.msra.mxu0 %v3596_v54  ;;  %v779_v54 = vld [vmem:[%s3964_s7 + $0xf90] sm:$0xff]  ;;  %v841_v23 = vld [vmem:[%s3964_s7 + $0x1180] sm:$0xff]  ;;  %v4592_v39 = vrot.slane %v1002_v25, %v4017_v14 }
  0xeb   : > { %3629 = vmatpush3.bf16.msra.mxu1 %v3628_v34  ;;  %3599 = vmatprep.subr.bf16.mxu0 %v3598_v55  ;;  %v780_v34 = vld [vmem:[%s3964_s7 + $0xf98] sm:$0xff]  ;;  %v4513_v55 = vrot.slane %v985_v40, %v4017_v14  ;;  %v787_v40 = vld [vmem:[%s3964_s7 + $0xfd0] sm:$0xff] }
  0xec   : > { %3631 = vmatprep.subr.bf16.mxu1 %v3630_v60  ;;  %v731_v60 = vld [vmem:[%s3964_s7 + $0xe10] sm:$0xff]  ;;  %v3682_v46 = vpack.c.bf16 %v780_v34, %v779_v54  ;;  %v758_v54 = vld [vmem:[%s3964_s7 + $0xee8] sm:$0xff]  ;;  %v789_v34 = vld [vmem:[%s3964_s7 + $0xfe0] sm:$0xff] }
  0xed   : > { %v1001_v4 = vcombine.high %v4513_v55, %v4513_v55  ;;  %v3652_v5 = vpack.c.bf16 %v732_v61, %v731_v60  ;;  %v3670_v60 = vpack.c.bf16 %v758_v54, %v757_v51  ;;  %v741_v61 = vld [vmem:[%s3964_s7 + $0xe60] sm:$0xff]  ;;  %v846_v54 = vld [vmem:[%s3964_s7 + $0x11a8] sm:$0xff]  ;;  %v851_v25 = vld [vmem:[%s3964_s7 + $0x11d0] sm:$0xff] }
  0xee   : > { %3601 = vmatpush3.bf16.msra.mxu0 %v3600_v0  ;;  %v750_v0 = vld [vmem:[%s3964_s7 + $0xea8] sm:$0xff]  ;;  %v845_v51 = vld [vmem:[%s3964_s7 + $0x11a0] sm:$0xff] }
  0xef   : > { %3633 = vmatpush3.bf16.msra.mxu1 %v3632_v1  ;;  %3603 = vmatprep.subr.bf16.mxu0 %v3602_v2  ;;  %v1000_v1 = vcombine.high %v4508_v52, %v4508_v52  ;;  %v781_v2 = vld [vmem:[%s3964_s7 + $0xfa0] sm:$0xff]  ;;  %v3654_v7 = vpack.c.bf16 %v750_v0, %v749_v63  ;;  %v774_v0 = vld [vmem:[%s3964_s7 + $0xf68] sm:$0xff] }
  0xf0   : > { %3635 = vmatprep.subr.bf16.mxu1 %v3634_v6  ;;  %v3684_v6 = vpack.c.bf16 %v764_v62, %v763_v58  ;;  %v3686_v11 = vpack.c.bf16 %v782_v3, %v781_v2  ;;  %v742_v58 = vld [vmem:[%s3964_s7 + $0xe68] sm:$0xff]  ;;  %v760_v2 = vld [vmem:[%s3964_s7 + $0xef8] sm:$0xff] }
  0xf2   : > { %3605 = vmatpush3.bf16.msra.mxu0 %v3604_v15  ;;  %v751_v15 = vld [vmem:[%s3964_s7 + $0xeb0] sm:$0xff] }
  0xf3   : > { %3637 = vmatpush3.bf16.msra.mxu1 %v3636_v17  ;;  %3607 = vmatprep.subr.bf16.mxu0 %v3606_v18  ;;  %v752_v17 = vld [vmem:[%s3964_s7 + $0xeb8] sm:$0xff] }
  0xf4   : > { %3639 = vmatprep.subr.bf16.mxu1 %v3638_v21  ;;  %v784_v18 = vld [vmem:[%s3964_s7 + $0xfb8] sm:$0xff]  ;;  %v3658_v20 = vpack.c.bf16 %v752_v17, %v751_v15  ;;  %v735_v21 = vld [vmem:[%s3964_s7 + $0xe30] sm:$0xff] }
  0xf5   : > { %v743_v17 = vld [vmem:[%s3964_s7 + $0xe70] sm:$0xff] }
  0xf6   : > { %3609 = vmatpush3.bf16.msra.mxu0 %v3608_v27  ;;  %v754_v27 = vld [vmem:[%s3964_s7 + $0xec8] sm:$0xff] }
  0xf7   : > { %3641 = vmatpush3.bf16.msra.mxu1 %v3640_v29  ;;  %3611 = vmatprep.subr.bf16.mxu0 %v3610_v30  ;;  %v786_v29 = vld [vmem:[%s3964_s7 + $0xfc8] sm:$0xff]  ;;  %v3660_v30 = vpack.c.bf16 %v736_v22, %v735_v21  ;;  %v3662_v32 = vpack.c.bf16 %v754_v27, %v753_v26 }
  0xf8   : > { %3643 = vmatprep.subr.bf16.mxu1 %v3642_v35  ;;  %v738_v35 = vld [vmem:[%s3964_s7 + $0xe48] sm:$0xff]  ;;  %v3694_v37 = vpack.c.bf16 %v786_v29, %v785_v28  ;;  %v793_v29 = vld [vmem:[%s3964_s7 + $0x1000] sm:$0xff] }
  0xf9   : > { %v810_v21 = vld [vmem:[%s3964_s7 + $0x1088] sm:$0xff] }
  0xfa   : > { %3613 = vmatpush3.bf16.msra.mxu0 %v3612_v53  ;;  %v788_v53 = vld [vmem:[%s3964_s7 + $0xfd8] sm:$0xff] }
  0xfb   : > { %3645 = vmatpush3.bf16.msra.mxu1 %v3644_v41  ;;  %3647 = vmatprep.subr.bf16.mxu0 %v3646_v42  ;;  %v3664_v41 = vpack.c.bf16 %v738_v35, %v737_v33  ;;  %v3696_v42 = vpack.c.bf16 %v770_v38, %v769_v36  ;;  %v3698_v49 = vpack.c.bf16 %v788_v53, %v787_v40  ;;  %v826_v33 = vld [vmem:[%s3964_s7 + $0x1108] sm:$0xff]  ;;  %v811_v35 = vld [vmem:[%s3964_s7 + $0x1090] sm:$0xff]  ;;  %v812_v36 = vld [vmem:[%s3964_s7 + $0x1098] sm:$0xff] }
  0xfc   : > { %3679 = vmatprep.subr.bf16.mxu1 %v3678_v48  ;;  %v771_v48 = vld [vmem:[%s3964_s7 + $0xf50] sm:$0xff] }
  0xfd   : > { %1960 = vmatmul.mubr.f32.vlgmr.msra.gmra.mrb[12].mxu0 %v4431_v9  ;;  %v734_v9 = vld [vmem:[%s3964_s7 + $0xe28] sm:$0xff]  ;;  %v843_v38 = vld [vmem:[%s3964_s7 + $0x1190] sm:$0xff] }
  0xfe   : > { %3649 = vmatpush3.bf16.msra.mxu0 %v3648_v56  ;;  %2030 = vmatmul.mubr.f32.vlgmr.msra.gmra.mrb[12].mxu1 %v4436_v12  ;;  %v783_v12 = vld [vmem:[%s3964_s7 + $0xfb0] sm:$0xff]  ;;  %v3656_v19 = vpack.c.bf16 %v734_v9, %v733_v8  ;;  %v790_v56 = vld [vmem:[%s3964_s7 + $0xfe8] sm:$0xff]  ;;  %v3672_v9 = vpack.c.bf16 %v742_v58, %v741_v61  ;;  %v829_v61 = vld [vmem:[%s3964_s7 + $0x1120] sm:$0xff]  ;;  %v3750_v58 = vpack.c.bf16 %v846_v54, %v845_v51 }
  0xff   : > { %3681 = vmatpush3.bf16.msra.mxu1 %v3680_v57  ;;  %3651 = vmatprep.subr.bf16.mxu0 %v3650_v59  ;;  %v3690_v24 = vpack.c.bf16 %v784_v18, %v783_v12  ;;  %v3668_v57 = vpack.c.bf16 %v740_v47, %v739_v45  ;;  %v3700_v59 = vpack.c.bf16 %v772_v50, %v771_v48  ;;  %v744_v12 = vld [vmem:[%s3964_s7 + $0xe78] sm:$0xff]  ;;  %v775_v18 = vld [vmem:[%s3964_s7 + $0xf70] sm:$0xff] }
 0x100   : > { %3683 = vmatprep.subr.bf16.mxu1 %v3682_v46  ;;  %2099 = vmatprep.mubr.f32.mxu0 %v1000_v1  ;;  %v773_v46 = vld [vmem:[%s3964_s7 + $0xf60] sm:$0xff]  ;;  %v3702_v63 = vpack.c.bf16 %v790_v56, %v789_v34  ;;  %v759_v1 = vld [vmem:[%s3964_s7 + $0xef0] sm:$0xff]  ;;  %v3676_v26 = vpack.c.bf16 %v744_v12, %v743_v17  ;;  %v3746_v47 = vpack.c.bf16 %v844_v43, %v843_v38  ;;  %v828_v48 = vld [vmem:[%s3964_s7 + $0x1118] sm:$0xff] }
 0x101   : > { %2169 = vmatprep.mubr.f32.mxu1 %v1001_v4  ;;  %v3704_v13 = vpack.c.bf16 %v774_v0, %v773_v46  ;;  %v3674_v15 = vpack.c.bf16 %v760_v2, %v759_v1  ;;  %v827_v45 = vld [vmem:[%s3964_s7 + $0x1110] sm:$0xff]  ;;  %v1018_v34 = vcombine.high %v4592_v39, %v4592_v39  ;;  %v830_v46 = vld [vmem:[%s3964_s7 + $0x1128] sm:$0xff]  ;;  %v848_v0 = vld [vmem:[%s3964_s7 + $0x11b8] sm:$0xff] }
 0x102   : > { %3653 = vmatpush3.bf16.msra.mxu0 %v3652_v5  ;;  %v791_v5 = vld [vmem:[%s3964_s7 + $0xff0] sm:$0xff]  ;;  %v3752_v2 = vpack.c.bf16 %v830_v46, %v829_v61  ;;  %v822_v38 = vld [vmem:[%s3964_s7 + $0x10e8] sm:$0xff]  ;;  %v853_v43 = vld [vmem:[%s3964_s7 + $0x11e0] sm:$0xff] }
 0x103   : > { %3685 = vmatpush3.bf16.msra.mxu1 %v3684_v6  ;;  %3655 = vmatprep.subr.bf16.mxu0 %v3654_v7  ;;  %v792_v6 = vld [vmem:[%s3964_s7 + $0xff8] sm:$0xff] }
 0x104   : > { %3687 = vmatprep.subr.bf16.mxu1 %v3686_v11  ;;  %v824_v51 = vld [vmem:[%s3964_s7 + $0x10f8] sm:$0xff] }
 0x106   : > { %3657 = vmatpush3.bf16.msra.mxu0 %v3656_v19  ;;  %v3706_v19 = vpack.c.bf16 %v792_v6, %v791_v5  ;;  %v800_v5 = vld [vmem:[%s3964_s7 + $0x1038] sm:$0xff]  ;;  %v831_v6 = vld [vmem:[%s3964_s7 + $0x1130] sm:$0xff] }
 0x107   : > { %3689 = vmatpush3.bf16.msra.mxu1 %v3688_v16  ;;  %3659 = vmatprep.subr.bf16.mxu0 %v3658_v20  ;;  %v776_v16 = vld [vmem:[%s3964_s7 + $0xf78] sm:$0xff]  ;;  %v809_v20 = vld [vmem:[%s3964_s7 + $0x1080] sm:$0xff] }
 0x108   : > { %3691 = vmatprep.subr.bf16.mxu1 %v3690_v24  ;;  %v842_v24 = vld [vmem:[%s3964_s7 + $0x1188] sm:$0xff]  ;;  %v3708_v27 = vpack.c.bf16 %v776_v16, %v775_v18  ;;  %v3710_v28 = vpack.c.bf16 %v810_v21, %v809_v20  ;;  %v801_v18 = vld [vmem:[%s3964_s7 + $0x1040] sm:$0xff] }
 0x109   : > { %v833_v16 = vld [vmem:[%s3964_s7 + $0x1140] sm:$0xff]  ;;  %v834_v21 = vld [vmem:[%s3964_s7 + $0x1148] sm:$0xff] }
 0x10a   : > { %3661 = vmatpush3.bf16.msra.mxu0 %v3660_v30  ;;  %v794_v30 = vld [vmem:[%s3964_s7 + $0x1008] sm:$0xff] }
 0x10b   : > { %3693 = vmatpush3.bf16.msra.mxu1 %v3692_v31  ;;  %3663 = vmatprep.subr.bf16.mxu0 %v3662_v32  ;;  %v825_v31 = vld [vmem:[%s3964_s7 + $0x1100] sm:$0xff]  ;;  %v3742_v32 = vpack.c.bf16 %v842_v24, %v841_v23  ;;  %v3712_v40 = vpack.c.bf16 %v794_v30, %v793_v29  ;;  %v819_v23 = vld [vmem:[%s3964_s7 + $0x10d0] sm:$0xff]  ;;  %v820_v24 = vld [vmem:[%s3964_s7 + $0x10d8] sm:$0xff] }
 0x10c   : > { %3695 = vmatprep.subr.bf16.mxu1 %v3694_v37  ;;  %v4587_v37 = vrot.slane %v280_v10, %v4017_v14  ;;  %v3744_v53 = vpack.c.bf16 %v826_v33, %v825_v31  ;;  %v814_v14 = vld [vmem:[%s3964_s7 + $0x10a8] sm:$0xff]  ;;  %v3730_v29 = vpack.c.bf16 %v820_v24, %v819_v23  ;;  %v803_v30 = vld [vmem:[%s3964_s7 + $0x1050] sm:$0xff]  ;;  %v804_v31 = vld [vmem:[%s3964_s7 + $0x1058] sm:$0xff] }
 0x10d   : > { %v818_v10 = vld [vmem:[%s3964_s7 + $0x10c8] sm:$0xff] }
 0x10e   : > { %3665 = vmatpush3.bf16.msra.mxu0 %v3664_v41  ;;  %v3714_v41 = vpack.c.bf16 %v812_v36, %v811_v35  ;;  %v1017_v50 = vcombine.high %v4587_v37, %v4587_v37  ;;  %v836_v35 = vld [vmem:[%s3964_s7 + $0x1158] sm:$0xff]  ;;  %v821_v36 = vld [vmem:[%s3964_s7 + $0x10e0] sm:$0xff] }
 0x10f   : > { %3697 = vmatpush3.bf16.msra.mxu1 %v3696_v42  ;;  %3667 = vmatprep.subr.bf16.mxu0 %v3666_v44  ;;  %v795_v42 = vld [vmem:[%s3964_s7 + $0x1010] sm:$0xff]  ;;  %v796_v44 = vld [vmem:[%s3964_s7 + $0x1018] sm:$0xff] }
 0x110   : > { %v2548_v62 = vpop.f32.mrb[0].mxu0  ;;  %3699 = vmatprep.subr.bf16.mxu1 %v3698_v49  ;;  %v813_v49 = vld [vmem:[%s3964_s7 + $0x10a0] sm:$0xff]  ;;  %v3716_v56 = vpack.c.bf16 %v796_v44, %v795_v42  ;;  %v3734_v42 = vpack.c.bf16 %v822_v38, %v821_v36 }
 0x111   : > { %v2583_v3 = vpop.f32.mrb[0].mxu1  ;;  %v2549_v4 = vpop.f32.mrb[1].mxu0  ;;  %v805_v44 = vld [vmem:[%s3964_s7 + $0x1060] sm:$0xff] }
 0x112   : > { %v2550_v7 = vadd.f32 %v2549_v4, %v2548_v62  ;;  %v2584_v8 = vpop.f32.mrb[1].mxu1  ;;  %3669 = vmatpush3.bf16.msra.mxu0 %v3668_v57  ;;  %v3748_v57 = vpack.c.bf16 %v828_v48, %v827_v45  ;;  %v815_v62 = vld [vmem:[%s3964_s7 + $0x10b0] sm:$0xff]  ;;  %v806_v45 = vld [vmem:[%s3964_s7 + $0x1068] sm:$0xff] }
 0x113   : > { %v2585_v11 = vadd.f32 %v2584_v8, %v2583_v3  ;;  %3701 = vmatpush3.bf16.msra.mxu1 %v3700_v59  ;;  %3671 = vmatprep.subr.bf16.mxu0 %v3670_v60  ;;  %v3718_v59 = vpack.c.bf16 %v814_v14, %v813_v49  ;;  %v797_v60 = vld [vmem:[%s3964_s7 + $0x1020] sm:$0xff]  ;;  %v799_v4 = vld [vmem:[%s3964_s7 + $0x1030] sm:$0xff]  ;;  %v832_v8 = vld [vmem:[%s3964_s7 + $0x1138] sm:$0xff] }
 0x114   : > { %3703 = vmatprep.subr.bf16.mxu1 %v3702_v63  ;;  %v816_v63 = vld [vmem:[%s3964_s7 + $0x10b8] sm:$0xff]  ;;  %v3756_v17 = vpack.c.bf16 %v832_v8, %v831_v6  ;;  %v838_v14 = vld [vmem:[%s3964_s7 + $0x1168] sm:$0xff] }
 0x115   : > { %v4576_v22 = vadd.f32 %v2585_v11, %v2550_v7  ;;  %v3722_v3 = vpack.c.bf16 %v816_v63, %v815_v62  ;;  %v849_v11 = vld [vmem:[%s3964_s7 + $0x11c0] sm:$0xff]  ;;  %v807_v62 = vld [vmem:[%s3964_s7 + $0x1070] sm:$0xff]  ;;  %v808_v63 = vld [vmem:[%s3964_s7 + $0x1078] sm:$0xff] }
 0x116   : > { %3673 = vmatpush3.bf16.msra.mxu0 %v3672_v9  ;;  %v817_v9 = vld [vmem:[%s3964_s7 + $0x10c0] sm:$0xff] }
 0x117   : > { %3705 = vmatpush3.bf16.msra.mxu1 %v3704_v13  ;;  %3675 = vmatprep.subr.bf16.mxu0 %v3674_v15  ;;  %v850_v13 = vld [vmem:[%s3964_s7 + $0x11c8] sm:$0xff]  ;;  %v3724_v15 = vpack.c.bf16 %v800_v5, %v799_v4  ;;  %v3726_v12 = vpack.c.bf16 %v818_v10, %v817_v9  ;;  %v3740_v4 = vpack.c.bf16 %v808_v63, %v807_v62  ;;  %v271_v62 = vld [vmem:[#allocation2] sm:$0x3] }
 0x118   : > { %3707 = vmatprep.subr.bf16.mxu1 %v3706_v19  ;;  %v802_v19 = vld [vmem:[%s3964_s7 + $0x1048] sm:$0xff]  ;;  %v3758_v20 = vpack.c.bf16 %v850_v13, %v849_v11 }
 0x11a   : > { %3677 = vmatpush3.bf16.msra.mxu0 %v3676_v26  ;;  %v852_v26 = vld [vmem:[%s3964_s7 + $0x11d8] sm:$0xff] }
 0x11b   : > { %3709 = vmatpush3.bf16.msra.mxu1 %v3708_v27  ;;  %3711 = vmatprep.subr.bf16.mxu0 %v3710_v28  ;;  %v3728_v27 = vpack.c.bf16 %v802_v19, %v801_v18  ;;  %v3760_v28 = vpack.c.bf16 %v834_v21, %v833_v16  ;;  %v3762_v33 = vpack.c.bf16 %v852_v26, %v851_v25 }
 0x11c   : > { %3743 = vmatprep.subr.bf16.mxu1 %v3742_v32  ;;  %v835_v32 = vld [vmem:[%s3964_s7 + $0x1150] sm:$0xff] }
 0x11d   : > { %2100 = vmatmul.mubr.f32.vlgmr.msra.gmra.mrb[14].mxu0 %v4508_v52  ;;  %v798_v52 = vld [vmem:[%s3964_s7 + $0x1028] sm:$0xff] }
 0x11e   : > { %3713 = vmatpush3.bf16.msra.mxu0 %v3712_v40  ;;  %2170 = vmatmul.mubr.f32.vlgmr.msra.gmra.mrb[14].mxu1 %v4513_v55  ;;  %v847_v55 = vld [vmem:[%s3964_s7 + $0x11b0] sm:$0xff]  ;;  %v3720_v1 = vpack.c.bf16 %v798_v52, %v797_v60  ;;  %v854_v40 = vld [vmem:[%s3964_s7 + $0x11e8] sm:$0xff]  ;;  %v3736_v52 = vpack.c.bf16 %v806_v45, %v805_v44 }
 0x11f   : > { %3745 = vmatpush3.bf16.msra.mxu1 %v3744_v53  ;;  %3715 = vmatprep.subr.bf16.mxu0 %v3714_v41  ;;  %v3754_v7 = vpack.c.bf16 %v848_v0, %v847_v55  ;;  %v3732_v53 = vpack.c.bf16 %v804_v31, %v803_v30  ;;  %v3764_v41 = vpack.c.bf16 %v836_v35, %v835_v32 }
 0x120   : > { %3747 = vmatprep.subr.bf16.mxu1 %v3746_v47  ;;  %2239 = vmatprep.mubr.f32.mxu0 %v1017_v50  ;;  %v837_v47 = vld [vmem:[%s3964_s7 + $0x1160] sm:$0xff]  ;;  %v3766_v49 = vpack.c.bf16 %v854_v40, %v853_v43  ;;  %v823_v50 = vld [vmem:[%s3964_s7 + $0x10f0] sm:$0xff] }
 0x121   : > { %2309 = vmatprep.mubr.f32.mxu1 %v1018_v34  ;;  %v3738_v46 = vpack.c.bf16 %v824_v51, %v823_v50 }
 0x122   : > { %3717 = vmatpush3.bf16.msra.mxu0 %v3716_v56  ;;  %v855_v56 = vld [vmem:[%s3964_s7 + $0x11f0] sm:$0xff] }
 0x123   : > { %3749 = vmatpush3.bf16.msra.mxu1 %v3748_v57  ;;  %3719 = vmatprep.subr.bf16.mxu0 %v3718_v59  ;;  %v856_v57 = vld [vmem:[%s3964_s7 + $0x11f8] sm:$0xff] }
 0x124   : > { %3751 = vmatprep.subr.bf16.mxu1 %v3750_v58  ;;  %v3768_v58 = vpack.c.bf16 %v838_v14, %v837_v47  ;;  %v3770_v0 = vpack.c.bf16 %v856_v57, %v855_v56 }
 0x126   : > { %3721 = vmatpush3.bf16.msra.mxu0 %v3720_v1  ;;  %v839_v1 = vld [vmem:[%s3964_s7 + $0x1170] sm:$0xff] }
 0x127   : > { %3753 = vmatpush3.bf16.msra.mxu1 %v3752_v2  ;;  %3723 = vmatprep.subr.bf16.mxu0 %v3722_v3  ;;  %v840_v2 = vld [vmem:[%s3964_s7 + $0x1178] sm:$0xff] }
 0x128   : > { %3755 = vmatprep.subr.bf16.mxu1 %v3754_v7  ;;  %v3772_v5 = vpack.c.bf16 %v840_v2, %v839_v1  ;;  %v2332_v1 = vld [vmem:[%s4750_s3 + $0x8] sm:$0xff] (!%p2509_p7)  ;;  %v2333_v2 = vld [vmem:[%s4750_s3 + $0x10] sm:$0xff] (!%p2509_p7) }
 0x12a   : > { %3725 = vmatpush3.bf16.msra.mxu0 %v3724_v15 }
 0x12b   : > { %3757 = vmatpush3.bf16.msra.mxu1 %v3756_v17  ;;  %3727 = vmatprep.subr.bf16.mxu0 %v3726_v12 }
 0x12c   : > { %3759 = vmatprep.subr.bf16.mxu1 %v3758_v20 }
 0x12e   : > { %3729 = vmatpush3.bf16.msra.mxu0 %v3728_v27 }
 0x12f   : > { %3761 = vmatpush3.bf16.msra.mxu1 %v3760_v28  ;;  %3731 = vmatprep.subr.bf16.mxu0 %v3730_v29 }
 0x130   : > { %v2618_v48 = vpop.f32.mrb[2].mxu0  ;;  %3763 = vmatprep.subr.bf16.mxu1 %v3762_v33 }
 0x131   : > { %v2619_v54 = vpop.f32.mrb[3].mxu0  ;;  %v2653_v34 = vpop.f32.mrb[2].mxu1 }
 0x132   : > { %v2620_v59 = vadd.f32 %v2619_v54, %v2618_v48  ;;  %3733 = vmatpush3.bf16.msra.mxu0 %v3732_v53  ;;  %v2654_v60 = vpop.f32.mrb[3].mxu1 }
 0x133   : > { %v2655_v61 = vadd.f32 %v2654_v60, %v2653_v34  ;;  %3765 = vmatpush3.bf16.msra.mxu1 %v3764_v41  ;;  %3735 = vmatprep.subr.bf16.mxu0 %v3734_v42 }
 0x134   : > { %v1262_v55 = vadd.f32 %v2620_v59, %v4576_v22  ;;  %3767 = vmatprep.subr.bf16.mxu1 %v3766_v49 }
 0x136   : > { %v1332_v3 = vadd.f32 %v2655_v61, %v1262_v55  ;;  %3737 = vmatpush3.bf16.msra.mxu0 %v3736_v52 }
 0x137   : > { %3769 = vmatpush3.bf16.msra.mxu1 %v3768_v58  ;;  %3739 = vmatprep.subr.bf16.mxu0 %v3738_v46 }
 0x138   : > { %3771 = vmatprep.subr.bf16.mxu1 %v3770_v0  ;;  %v2331_v0 = vld [vmem:[%s4750_s3] sm:$0xff] (!%p2509_p7) }
 0x13a   : > { %3741 = vmatpush3.bf16.msra.mxu0 %v3740_v4  ;;  %v3775_v4 = vpack.c.bf16 (!%p2509_p7), %v2332_v1, %v2331_v0 }
 0x13b   : > { %3773 = vmatpush3.bf16.msra.mxu1 %v3772_v5  ;;  %v2334_v5 = vld [vmem:[%s4750_s3 + $0x18] sm:$0xff] (!%p2509_p7) }
 0x13d   : > { %2240 = vmatmul.mubr.f32.vlgmr.msra.gmra.mrb[16].mxu0 %v4587_v37 }
 0x13e   : > { %2310 = vmatmul.mubr.f32.vlgmr.msra.gmra.mrb[16].mxu1 %v4592_v39 }
 0x150   : > { %v2688_v6 = vpop.f32.mrb[4].mxu0 }
 0x151   : > { %v2689_v7 = vpop.f32.mrb[5].mxu0  ;;  %v2723_v22 = vpop.f32.mrb[4].mxu1 }
 0x152   : > { %v2690_v8 = vadd.f32 %v2689_v7, %v2688_v6  ;;  %v2724_v9 = vpop.f32.mrb[5].mxu1  ;;  %v3901_v6 = vmov (!%p2509_p7), 0.0   ;;  %v3778_v7 = vpack.c.bf16 (!%p2509_p7), %v2334_v5, %v2333_v2 }
 0x153   : > { %v2725_v10 = vadd.f32 %v2724_v9, %v2723_v22  ;;  %3195 = vmatprep.mubr.msk.f32.mxu0 (!%p2509_p7), %vm3900_vm0, %v3901_v6  ;;  %v2335_v22 = vld [vmem:[%s4750_s3 + $0x20] sm:$0xff] (!%p2509_p7) }
 0x154   : > { %v1402_v11 = vadd.f32 %v2690_v8, %v1332_v3  ;;  %v3899_v3 = vmov (!%p2509_p7), 0.0|0.0   ;;  %v2336_v8 = vld [vmem:[%s4750_s3 + $0x28] sm:$0xff] (!%p2509_p7) }
 0x155   : > { %3774 = vmatprep.subr.bf16.mxu0 (!%p2509_p7), %v3899_v3  ;;  %v3781_v9 = vpack.c.bf16 (!%p2509_p7), %v2336_v8, %v2335_v22 }
 0x156   : > { %v1472_v13 = vadd.f32 %v2725_v10, %v1402_v11  ;;  %3776 = vmatpush3.bf16.msra.mxu0 (!%p2509_p7), %v3775_v4  ;;  %v2337_v10 = vld [vmem:[%s4750_s3 + $0x30] sm:$0xff] (!%p2509_p7)  ;;  %v2338_v11 = vld [vmem:[%s4750_s3 + $0x38] sm:$0xff] (!%p2509_p7) }
 0x157   : > { %3777 = vmatprep.subr.bf16.mxu0 (!%p2509_p7), %v3899_v3 }
 0x15a   : > { %3779 = vmatpush3.bf16.msra.mxu0 (!%p2509_p7), %v3778_v7 }
 0x15b   : > { %3780 = vmatprep.subr.bf16.mxu0 (!%p2509_p7), %v3899_v3 }
 0x15e   : > { %3782 = vmatpush3.bf16.msra.mxu0 (!%p2509_p7), %v3781_v9 }
 0x15f   : > { %3783 = vmatprep.subr.bf16.mxu0 (!%p2509_p7), %v3899_v3 }
 0x170   : > { %v2758_v15 = vpop.f32.mrb[6].mxu0 }
 0x171   : > { %v2759_v17 = vpop.f32.mrb[7].mxu0  ;;  %v2793_v12 = vpop.f32.mrb[6].mxu1 }
 0x172   : > { %v2760_v18 = vadd.f32 %v2759_v17, %v2758_v15  ;;  %v2794_v19 = vpop.f32.mrb[7].mxu1  ;;  %v2339_v15 = vld [vmem:[%s4750_s3 + $0x40] sm:$0xff] (!%p2509_p7)  ;;  %v2340_v17 = vld [vmem:[%s4750_s3 + $0x48] sm:$0xff] (!%p2509_p7) }
 0x173   : > { %v2795_v16 = vadd.f32 %v2794_v19, %v2793_v12  ;;  %v3787_v12 = vpack.c.bf16 (!%p2509_p7), %v2340_v17, %v2339_v15  ;;  %v2342_v19 = vld [vmem:[%s4750_s3 + $0x58] sm:$0xff] (!%p2509_p7) }
 0x174   : > { %v1542_v20 = vadd.f32 %v2760_v18, %v1472_v13  ;;  %v3784_v13 = vpack.c.bf16 (!%p2509_p7), %v2338_v11, %v2337_v10  ;;  %v2341_v18 = vld [vmem:[%s4750_s3 + $0x50] sm:$0xff] (!%p2509_p7) }
 0x176   : > { %v1612_v21 = vadd.f32 %v2795_v16, %v1542_v20  ;;  %3785 = vmatpush3.bf16.msra.mxu0 (!%p2509_p7), %v3784_v13  ;;  %v3790_v16 = vpack.c.bf16 (!%p2509_p7), %v2342_v19, %v2341_v18  ;;  %v2343_v20 = vld [vmem:[%s4750_s3 + $0x60] sm:$0xff] (!%p2509_p7) }
 0x177   : > { %3786 = vmatprep.subr.bf16.mxu0 (!%p2509_p7), %v3899_v3 }
 0x17a   : > { %3788 = vmatpush3.bf16.msra.mxu0 (!%p2509_p7), %v3787_v12 }
 0x17b   : > { %3789 = vmatprep.subr.bf16.mxu0 (!%p2509_p7), %v3899_v3 }
 0x17e   : > { %3791 = vmatpush3.bf16.msra.mxu0 (!%p2509_p7), %v3790_v16 }
 0x17f   : > { %3792 = vmatprep.subr.bf16.mxu0 (!%p2509_p7), %v3899_v3 }
 0x190   : > { %v2828_v23 = vpop.f32.mrb[8].mxu0 }
 0x191   : > { %v2829_v37 = vpop.f32.mrb[9].mxu0  ;;  %v2863_v24 = vpop.f32.mrb[8].mxu1 }
 0x192   : > { %v2830_v39 = vadd.f32 %v2829_v37, %v2828_v23  ;;  %v2864_v25 = vpop.f32.mrb[9].mxu1 }
 0x193   : > { %v2865_v26 = vadd.f32 %v2864_v25, %v2863_v24  ;;  %v2510_v24 = vld [vmem:[%s4749_s2] ss:$0 sm:$0xff] (!%p2509_p7)  ;;  %v2346_v25 = vld [vmem:[%s4750_s3 + $0x78] sm:$0xff] (!%p2509_p7) }
 0x194   : > { %v1682_v27 = vadd.f32 %v2830_v39, %v1612_v21  ;;  %v2344_v21 = vld [vmem:[%s4750_s3 + $0x68] sm:$0xff] (!%p2509_p7)  ;;  %v2345_v39 = vld [vmem:[%s4750_s3 + $0x70] sm:$0xff] (!%p2509_p7) }
 0x195   : > { %v3793_v23 = vpack.c.bf16 (!%p2509_p7), %v2344_v21, %v2343_v20 }
 0x196   : > { %v1752_v28 = vadd.f32 %v2865_v26, %v1682_v27  ;;  %v3796_v27 = vpack.c.bf16 (!%p2509_p7), %v2346_v25, %v2345_v39 }
 0x197   : > { %3794 = vmatpush3.bf16.msra.mxu0 (!%p2509_p7), %v3793_v23 }
 0x198   : > { %3795 = vmatprep.subr.bf16.mxu0 (!%p2509_p7), %v3899_v3 }
 0x19b   : > { %3797 = vmatpush3.bf16.msra.mxu0 (!%p2509_p7), %v3796_v27 }
 0x1b0   : > { %v2898_v29 = vpop.f32.mrb[10].mxu0 }
 0x1b1   : > { %v2899_v30 = vpop.f32.mrb[11].mxu0  ;;  %v2933_v31 = vpop.f32.mrb[10].mxu1 }
 0x1b2   : > { %v2900_v32 = vadd.f32 %v2899_v30, %v2898_v29  ;;  %v2934_v33 = vpop.f32.mrb[11].mxu1  ;;  %v2511_v29 = vld [vmem:[%s4751_s4] ss:$0 sm:$0xff] (!%p2509_p7) }
 0x1b3   : > { %v2935_v35 = vadd.f32 %v2934_v33, %v2933_v31 }
 0x1b4   : > { %v1822_v36 = vadd.f32 %v2900_v32, %v1752_v28 }
 0x1b6   : > { %v1892_v38 = vadd.f32 %v2935_v35, %v1822_v36 }
 0x1d0   : > { %v2968_v43 = vpop.f32.mrb[12].mxu0 }
 0x1d1   : > { %v2969_v40 = vpop.f32.mrb[13].mxu0  ;;  %v3003_v53 = vpop.f32.mrb[12].mxu1 }
 0x1d2   : > { %v2970_v41 = vadd.f32 %v2969_v40, %v2968_v43  ;;  %v3004_v42 = vpop.f32.mrb[13].mxu1 }
 0x1d3   : > { %v3005_v44 = vadd.f32 %v3004_v42, %v3003_v53 }
 0x1d4   : > { %v1962_v45 = vadd.f32 %v2970_v41, %v1892_v38 }
 0x1d6   : > { %v2032_v47 = vadd.f32 %v3005_v44, %v1962_v45 }
 0x1f0   : > { %v3038_v48 = vpop.f32.mrb[14].mxu0 }
 0x1f1   : > { %v3039_v49 = vpop.f32.mrb[15].mxu0  ;;  %v3073_v14 = vpop.f32.mrb[14].mxu1 }
 0x1f2   : > { %v3040_v50 = vadd.f32 %v3039_v49, %v3038_v48  ;;  %v3074_v51 = vpop.f32.mrb[15].mxu1 }
 0x1f3   : > { %v3075_v54 = vadd.f32 %v3074_v51, %v3073_v14 }
 0x1f4   : > { %v2102_v34 = vadd.f32 %v3040_v50, %v2032_v47 }
 0x1f6   : > { %v2172_v56 = vadd.f32 %v3075_v54, %v2102_v34 }
 0x210   : > { %v3108_v57 = vpop.f32.mrb[16].mxu0 }
 0x211   : > { %v3109_v59 = vpop.f32.mrb[17].mxu0  ;;  %v3143_v60 = vpop.f32.mrb[16].mxu1 }
 0x212   : > { %v3110_v52 = vadd.f32 %v3109_v59, %v3108_v57  ;;  %v3144_v61 = vpop.f32.mrb[17].mxu1 }
 0x213   : > { %v3145_v58 = vadd.f32 %v3144_v61, %v3143_v60 }
 0x214   : > { %v2242_v46 = vadd.f32 %v3110_v52, %v2172_v56  ;;  %2320 = sbr.rel (%p2509_p7) target bundleno = 765 (0x2fd), region = 48 }
 0x216   : > { %v2312_v63 = vadd.f32 %v3145_v58, %v2242_v46 }
 0x218   : > { %v2315_v55 = vadd.f32 %v2312_v63, %v271_v62 }
 0x21a   : > { %2316 = vst [vmem:[#allocation2] sm:$0x3] %v2315_v55 }
 0x221   : > { %v2321_v37 = vld [vmem:[#allocation2] sm:$0x3] }
 0x222   : > { %v2329_v26 = vadd.f32 %v2510_v24, %v2321_v37 }
 0x224   : > { %v2330_v28 = vmax.f32 %v2329_v26, 0.0 }
 0x226   : > { %3196 = vmatmul.mubr.f32.vlgmr.msra.gmra.mrb[0].mxu0 %v2330_v28 }
 0x2f9   : > { %v2420_v30 = vpop.f32.mrb[0].mxu0 }
 0x2fa   : > { %v2421_v31 = vadd.f32 %v2511_v29, %v2420_v30  ;;  %v3197_v32 = vpop.f32.mrb[1].mxu0 }
 0x2fc   : > { %2424 = vst [vmem:[#allocation3] sm:$0x3] %v2421_v31 }
 0x2fd PF: > { %p4712_p8 = scmp.eq.s32.totalorder %s2502_s21, 1  ;;  %s3902_s28 = smov [#allocation3]  }
 0x2fe   : > { %s2434_s29 = sshll.u32 %s3902_s28, 4  ;;  %s2435_s29 = int_to_ptr.vmem [resolvable:$true] %s2434_s29 }
 0x2ff   : > { %s3843_s30 = scalar_lea.vmem %s2435_s29, 32  ;;  %p3850_p12 = scmp.lt.s32.totalorder %s2435_s29, %s2435_s29 }
 0x300   : > { %p3844_p9 = scmp.ne.s32.totalorder %s2435_s29, %s3843_s30  ;;  %p3851_p13 = scmp.lt.s32.totalorder %s3843_s30, %s3843_s30 }
 0x302   : > { %p3845_p10 = pnand %p3844_p9, %p4712_p8  ;;  %p3852_p0 = por %p3851_p13, %p3850_p12 }
 0x304   : > { %p3846_p11 = pneg %p3845_p10 }
 0x306   : > { %p3853_p1 = pnand %p3852_p0, %p3846_p11 }
 0x308   : > { %3856 = shalt.err (!%p3853_p1)
}
 0x309   : > { %s3857_s21 = scalar_lea.hbm %s4752_s5, 32 }
 0x30a   : > { %p3858_p2 = scmp.ne.s32.totalorder %s4752_s5, %s3857_s21  ;;  %p3863_p5 = scmp.lt.u32.totalorder %s3857_s21, %s4752_s5 }
 0x30c   : > { %p3859_p3 = pnand %p3858_p2, %p4712_p8 }
 0x30e   : > { %p3860_p4 = pneg %p3859_p3 }
 0x310   : > { %p3865_p6 = pnand %p3863_p5, %p3860_p4 }
 0x312   : > { %3868 = shalt.err (!%p3865_p6)
}
 0x313   : > { %3799 = dma.vmem_to_hbm [thread:$0]  (%p4712_p8), %s2435_s29, 32, %s4752_s5, [#allocation4]  }
 0x314   : > { %3882 = dma.done.wait (%p4712_p8), [#allocation4], 32  }
 0x315   : > { %3884 = vsyncadd (%p4712_p8), [#allocation4], 4294967264 }
 0x316 PF: > { %s16_s20 = sadd.s32 1, %s3895_s20   ;;  %s4754_s18 = smov %s3891_s19 }
 0x317   : > { %p13_p7 = scmp.ge.s32.totalorder %s16_s20, 4   ;;  %s4755_s19 = smov %s4757_s22 }
 0x319   :  { %15 = sbr.rel (!%p13_p7) target bundleno = 2 (0x2), region = 79 }
 0x320   :  { %2447 = vsyncpa [#allocation4], 1 }
 0x321   :  { %2449 = vsyncpa [#allocation4 + $0x1], 1 }

// kernel: torch_cnn_forward.2
= control target key start
LH: loop header
LB: loop body
LE: loop exit
PB: predicated region body
PF: predicated region fallthrough
CT: control target
= control target key end

     0   :  { %s7255_s18 = smov 0   ;;  %s10084_s0 = inlined_call_operand.vmem [shape: f32[2,26,32,27], index: 0, kind: input, shape index: {}]   ;;  %s10085_s1 = inlined_call_operand.vmem [shape: f32[27,32], index: 1, kind: input, shape index: {}]   ;;  %s10086_s2 = inlined_call_operand.vmem [shape: f32[1,32], index: 2, kind: input, shape index: {}]   ;;  %s10087_s3 = inlined_call_operand.vmem [shape: f32[288,64], index: 3, kind: input, shape index: {}]   ;;  %s10088_s4 = inlined_call_operand.vmem [shape: f32[1,64], index: 4, kind: input, shape index: {}]   ;;  %s10089_s5 = inlined_call_operand.vmem [shape: f32[2,12,12,64], index: 5, kind: output, shape index: {}]  }
   0x1 LB: > { %s6470_s19 = sadd.s32 4294967295, %s7218_s18   ;;  %p6474_p0 = scmp.ge.s32.totalorder %s7218_s18, 1  ;;  %s7218_s18 = sphi %s7255_s18, %s15_s18  }
   0x2   : > { %p187_p1 = scmp.lt.s32.totalorder %s7218_s18, 3 }
   0x4   : > { %p188_p2 = pnand %p6474_p0, %p187_p1 }
   0x6   : > { %191 = sbr.rel (%p188_p2) target bundleno = 1482 (0x5ca), region = 40 }
   0xd   : > { %v329_v0 = vld [vmem:[%s10085_s1] sm:$0xff]  ;;  %v330_v1 = vld [vmem:[%s10085_s1 + $0x8] sm:$0xff]  ;;  %v331_v2 = vld [vmem:[%s10085_s1 + $0x10] sm:$0xff]  ;;  %vm646_vm0 = vcmask 1042432   ;;  %p215_p3 = scmp.lt.s32.totalorder %s6470_s19, 1  ;;  %vm7220_vm1 = vmmov 1  }
   0xe   : > { %v7122_v3 = vpack.c.bf16 %v330_v1, %v329_v0  ;;  %v332_v4 = vld [vmem:[%s10085_s1 + $0x18] sm:$0x7]  ;;  %vm7127_vm2 = vmpackc.low %vm646_vm0, %vm7220_vm1  ;;  %vm333_vm3 = vcmask 220160   ;;  %vm1450_vm4 = vcmask 261120   ;;  %s7222_s14 = smov 32   ;;  %s7223_s21 = smov 64  }
   0xf   : > { %v7126_v5 = vpack.c.bf16 %v332_v4, %v331_v2  ;;  %s10229_s19 = smov (!%p215_p3, %s6470_s19), 1  ;;  %s7224_s30 = smov 96   ;;  %vm2059_vm5 = vcmask 523520   ;;  %vm2492_vm6 = vcmask 785920   ;;  %vm2926_vm7 = vcmask 1048320  }
  0x10   : > { %7123 = vmatprep.subr.bf16.mxu0 %v7122_v3  ;;  %s7192_s28 = smul.u32 832, %s10229_s19  ;;  %vm6053_vm8 = vcmask 523264   ;;  %vm6391_vm9 = vcmask 519168  }
  0x11   : > { %7125 = vmatpush3.bf16.msra.mxu0 %v7122_v3 }
  0x12   : > { %7128 = vmatprep.subr.msk.bf16.mxu0 %vm7127_vm2, %v7126_v5  ;;  %s7281_s6 = scalar_lea.vmem %s10084_s0, %s7192_s28  ;;  %s7193_s28 = smul.u32 192, %s10229_s19 }
  0x13   : > { %v225_v6 = vld [vmem:[%s7281_s6] sm:$0xff]  ;;  %v226_v7 = vld [vmem:[%s7281_s6 + $0x8] sm:$0xff]  ;;  %v227_v8 = vld [vmem:[%s7281_s6 + $0x10] sm:$0xff] }
  0x14   : > { %6850 = vmatprep.mubr.msk.f32.mxu0 %vm333_vm3, %v225_v6  ;;  %v228_v9 = vld [vmem:[%s7281_s6 + $0x18] sm:$0xff]  ;;  %v229_v10 = vld [vmem:[%s7281_s6 + $0x20] sm:$0xff]  ;;  %v230_v11 = vld [vmem:[%s7281_s6 + $0x28] sm:$0xff]  ;;  %s9016_s7 = scalar_lea.vmem %s10089_s5, %s7193_s28 }
  0x15   : > { %7131 = vmatpush3.bf16.msk.msra.mxu0 %vm7127_vm2, %v7126_v5  ;;  %v231_v12 = vld [vmem:[%s7281_s6 + $0x30] sm:$0xff]  ;;  %v232_v13 = vld [vmem:[%s7281_s6 + $0x38] sm:$0xff]  ;;  %v233_v14 = vld [vmem:[%s7281_s6 + $0x40] sm:$0xff] }
  0x16   : > { %v234_v15 = vld [vmem:[%s7281_s6 + $0x48] sm:$0xff]  ;;  %v235_v16 = vld [vmem:[%s7281_s6 + $0x50] sm:$0xff]  ;;  %v236_v17 = vld [vmem:[%s7281_s6 + $0x58] sm:$0xff] }
  0x17   : > { %v237_v18 = vld [vmem:[%s7281_s6 + $0x60] sm:$0xff]  ;;  %v238_v19 = vld [vmem:[%s7281_s6 + $0x68] sm:$0xff]  ;;  %v239_v20 = vld [vmem:[%s7281_s6 + $0x70] sm:$0xff] }
  0x18   : > { %6851 = vmatmul.mubr.msk.f32.vlgmr.msra.gmra.mrb[0].mxu0 %vm333_vm3, %v226_v7  ;;  %v240_v21 = vld [vmem:[%s7281_s6 + $0x78] sm:$0xff]  ;;  %v241_v22 = vld [vmem:[%s7281_s6 + $0x80] sm:$0xff]  ;;  %v242_v23 = vld [vmem:[%s7281_s6 + $0x88] sm:$0xff] }
  0x19   : > { %6853 = vmatprep.mubr.msk.f32.mxu0 %vm333_vm3, %v227_v8  ;;  %v243_v24 = vld [vmem:[%s7281_s6 + $0x90] sm:$0xff]  ;;  %v244_v25 = vld [vmem:[%s7281_s6 + $0x98] sm:$0xff]  ;;  %v245_v26 = vld [vmem:[%s7281_s6 + $0xa0] sm:$0xff] }
  0x1a   : > { %v246_v27 = vld [vmem:[%s7281_s6 + $0xa8] sm:$0xff]  ;;  %v247_v28 = vld [vmem:[%s7281_s6 + $0xb0] sm:$0xff]  ;;  %v248_v29 = vld [vmem:[%s7281_s6 + $0xb8] sm:$0xff] }
  0x1b   : > { %v249_v30 = vld [vmem:[%s7281_s6 + $0xc0] sm:$0xff]  ;;  %v250_v31 = vld [vmem:[%s7281_s6 + $0xc8] sm:$0xff]  ;;  %v251_v32 = vld [vmem:[%s7281_s6 + $0xd0] sm:$0xff] }
  0x1c   : > { %6854 = vmatmul.mubr.msk.f32.gmra.mrb[2].mxu0 %vm333_vm3, %v228_v9  ;;  %v252_v33 = vld [vmem:[%s7281_s6 + $0xd8] sm:$0xff]  ;;  %v253_v34 = vld [vmem:[%s7281_s6 + $0xe0] sm:$0xff]  ;;  %v254_v35 = vld [vmem:[%s7281_s6 + $0xe8] sm:$0xff] }
  0x1d   : > { %6856 = vmatprep.mubr.msk.f32.mxu0 %vm333_vm3, %v229_v10  ;;  %v255_v36 = vld [vmem:[%s7281_s6 + $0xf0] sm:$0xff]  ;;  %v256_v37 = vld [vmem:[%s7281_s6 + $0xf8] sm:$0xff]  ;;  %v257_v38 = vld [vmem:[%s7281_s6 + $0x100] sm:$0xff] }
  0x1e   : > { %v258_v39 = vld [vmem:[%s7281_s6 + $0x108] sm:$0xff]  ;;  %v259_v40 = vld [vmem:[%s7281_s6 + $0x110] sm:$0xff]  ;;  %v260_v41 = vld [vmem:[%s7281_s6 + $0x118] sm:$0xff] }
  0x1f   : > { %v261_v42 = vld [vmem:[%s7281_s6 + $0x120] sm:$0xff]  ;;  %v262_v43 = vld [vmem:[%s7281_s6 + $0x128] sm:$0xff]  ;;  %v263_v44 = vld [vmem:[%s7281_s6 + $0x130] sm:$0xff] }
  0x20   : > { %6857 = vmatmul.mubr.msk.f32.gmra.mrb[4].mxu0 %vm333_vm3, %v230_v11  ;;  %v264_v45 = vld [vmem:[%s7281_s6 + $0x138] sm:$0xff]  ;;  %v265_v46 = vld [vmem:[%s7281_s6 + $0x140] sm:$0xff]  ;;  %v266_v47 = vld [vmem:[%s7281_s6 + $0x148] sm:$0xff] }
  0x21   : > { %6859 = vmatprep.mubr.msk.f32.mxu0 %vm333_vm3, %v231_v12  ;;  %v267_v48 = vld [vmem:[%s7281_s6 + $0x150] sm:$0xff]  ;;  %v268_v49 = vld [vmem:[%s7281_s6 + $0x158] sm:$0xff]  ;;  %v269_v50 = vld [vmem:[%s7281_s6 + $0x160] sm:$0xff] }
  0x22   : > { %v270_v51 = vld [vmem:[%s7281_s6 + $0x168] sm:$0xff]  ;;  %v271_v52 = vld [vmem:[%s7281_s6 + $0x170] sm:$0xff]  ;;  %v272_v53 = vld [vmem:[%s7281_s6 + $0x178] sm:$0xff] }
  0x23   : > { %v273_v54 = vld [vmem:[%s7281_s6 + $0x180] sm:$0xff]  ;;  %v274_v55 = vld [vmem:[%s7281_s6 + $0x188] sm:$0xff]  ;;  %v275_v56 = vld [vmem:[%s7281_s6 + $0x190] sm:$0xff] }
  0x24   : > { %6860 = vmatmul.mubr.msk.f32.gmra.mrb[6].mxu0 %vm333_vm3, %v232_v13  ;;  %v276_v57 = vld [vmem:[%s7281_s6 + $0x198] sm:$0xff]  ;;  %v277_v58 = vld [vmem:[%s7281_s6 + $0x1a0] sm:$0xff]  ;;  %v278_v59 = vld [vmem:[%s7281_s6 + $0x1a8] sm:$0xff] }
  0x25   : > { %6862 = vmatprep.mubr.msk.f32.mxu0 %vm333_vm3, %v233_v14  ;;  %v279_v60 = vld [vmem:[%s7281_s6 + $0x1b0] sm:$0xff]  ;;  %v280_v61 = vld [vmem:[%s7281_s6 + $0x1b8] sm:$0xff]  ;;  %v281_v62 = vld [vmem:[%s7281_s6 + $0x1c0] sm:$0xff] }
  0x26   : > { %v282_v63 = vld [vmem:[%s7281_s6 + $0x1c8] sm:$0xff]  ;;  %v283_v0 = vld [vmem:[%s7281_s6 + $0x1d0] sm:$0xff]  ;;  %v284_v1 = vld [vmem:[%s7281_s6 + $0x1d8] sm:$0xff] }
  0x27   : > { %v285_v2 = vld [vmem:[%s7281_s6 + $0x1e0] sm:$0xff]  ;;  %v286_v3 = vld [vmem:[%s7281_s6 + $0x1e8] sm:$0xff]  ;;  %v287_v4 = vld [vmem:[%s7281_s6 + $0x1f0] sm:$0xff] }
  0x28   : > { %6863 = vmatmul.mubr.msk.f32.gmra.mrb[8].mxu0 %vm333_vm3, %v234_v15  ;;  %v288_v5 = vld [vmem:[%s7281_s6 + $0x1f8] sm:$0xff]  ;;  %v289_v6 = vld [vmem:[%s7281_s6 + $0x200] sm:$0xff]  ;;  %v290_v7 = vld [vmem:[%s7281_s6 + $0x208] sm:$0xff] }
  0x29   : > { %6865 = vmatprep.mubr.msk.f32.mxu0 %vm333_vm3, %v235_v16  ;;  %v291_v8 = vld [vmem:[%s7281_s6 + $0x210] sm:$0xff]  ;;  %v292_v9 = vld [vmem:[%s7281_s6 + $0x218] sm:$0xff]  ;;  %v293_v10 = vld [vmem:[%s7281_s6 + $0x220] sm:$0xff] }
  0x2a   : > { %v4832_v11 = vld [vmem:[%s10087_s3 + $0x100] sm:$0xff]  ;;  %v4833_v12 = vld [vmem:[%s10087_s3 + $0x108] sm:$0xff]  ;;  %v295_v15 = vld [vmem:[%s7281_s6 + $0x230] sm:$0xff] }
  0x2b   : > { %v294_v13 = vld [vmem:[%s7281_s6 + $0x228] sm:$0xff]  ;;  %v7428_v14 = vpack.c.bf16 %v4833_v12, %v4832_v11  ;;  %v4834_v16 = vld [vmem:[%s10087_s3 + $0x110] sm:$0xff] }
  0x2c   : > { %6866 = vmatmul.mubr.msk.f32.gmra.mrb[10].mxu0 %vm333_vm3, %v236_v17  ;;  %v4835_v17 = vld [vmem:[%s10087_s3 + $0x118] sm:$0xff] }
  0x2d   : > { %6868 = vmatprep.mubr.msk.f32.mxu0 %vm333_vm3, %v237_v18  ;;  %7181 = vmatprep.subr.bf16.mxu0 %v7428_v14  ;;  %v296_v18 = vld [vmem:[%s7281_s6 + $0x238] sm:$0xff] }
  0x2e   : > { %7183 = vmatpush3.bf16.msra.mxu0 %v7428_v14 }
  0x30   : > { %6869 = vmatmul.mubr.msk.f32.gmra.mrb[12].mxu0 %vm333_vm3, %v238_v19  ;;  %v7442_v19 = vpack.c.bf16 %v4835_v17, %v4834_v16 }
  0x31   : > { %6871 = vmatprep.mubr.msk.f32.mxu0 %vm333_vm3, %v239_v20  ;;  %v297_v20 = vld [vmem:[%s7281_s6 + $0x240] sm:$0xff] }
  0x32   : > { %7185 = vmatprep.subr.bf16.mxu0 %v7442_v19 }
  0x33   : > { %7187 = vmatpush3.bf16.msra.mxu0 %v7442_v19 }
  0x34   : > { %6872 = vmatmul.mubr.msk.f32.gmra.mrb[14].mxu0 %vm333_vm3, %v240_v21  ;;  %v298_v21 = vld [vmem:[%s7281_s6 + $0x248] sm:$0xff] }
  0x35   : > { %6874 = vmatprep.mubr.msk.f32.mxu0 %vm333_vm3, %v241_v22  ;;  %v299_v22 = vld [vmem:[%s7281_s6 + $0x250] sm:$0xff] }
  0x38   : > { %6875 = vmatmul.mubr.msk.f32.gmra.mrb[16].mxu0 %vm333_vm3, %v242_v23  ;;  %v300_v23 = vld [vmem:[%s7281_s6 + $0x258] sm:$0xff] }
  0x39   : > { %6877 = vmatprep.mubr.msk.f32.mxu0 %vm333_vm3, %v243_v24  ;;  %v301_v24 = vld [vmem:[%s7281_s6 + $0x260] sm:$0xff] }
  0x3c   : > { %6878 = vmatmul.mubr.msk.f32.gmra.mrb[18].mxu0 %vm333_vm3, %v244_v25  ;;  %v302_v25 = vld [vmem:[%s7281_s6 + $0x268] sm:$0xff] }
  0x3d   : > { %6880 = vmatprep.mubr.msk.f32.mxu0 %vm333_vm3, %v245_v26  ;;  %v303_v26 = vld [vmem:[%s7281_s6 + $0x270] sm:$0xff] }
  0x40   : > { %6881 = vmatmul.mubr.msk.f32.gmra.mrb[20].mxu0 %vm333_vm3, %v246_v27  ;;  %v304_v27 = vld [vmem:[%s7281_s6 + $0x278] sm:$0xff] }
  0x41   : > { %6883 = vmatprep.mubr.msk.f32.mxu0 %vm333_vm3, %v247_v28  ;;  %v305_v28 = vld [vmem:[%s7281_s6 + $0x280] sm:$0xff] }
  0x44   : > { %6884 = vmatmul.mubr.msk.f32.gmra.mrb[22].mxu0 %vm333_vm3, %v248_v29  ;;  %v306_v29 = vld [vmem:[%s7281_s6 + $0x288] sm:$0xff] }
  0x45   : > { %6886 = vmatprep.mubr.msk.f32.mxu0 %vm333_vm3, %v249_v30  ;;  %v307_v30 = vld [vmem:[%s7281_s6 + $0x290] sm:$0xff] }
  0x48   : > { %6887 = vmatmul.mubr.msk.f32.gmra.mrb[24].mxu0 %vm333_vm3, %v250_v31  ;;  %v308_v31 = vld [vmem:[%s7281_s6 + $0x298] sm:$0xff] }
  0x49   : > { %6889 = vmatprep.mubr.msk.f32.mxu0 %vm333_vm3, %v251_v32  ;;  %v309_v32 = vld [vmem:[%s7281_s6 + $0x2a0] sm:$0xff] }
  0x4c   : > { %6890 = vmatmul.mubr.msk.f32.gmra.mrb[26].mxu0 %vm333_vm3, %v252_v33  ;;  %v310_v33 = vld [vmem:[%s7281_s6 + $0x2a8] sm:$0xff] }
  0x4d   : > { %6892 = vmatprep.mubr.msk.f32.mxu0 %vm333_vm3, %v253_v34  ;;  %v311_v34 = vld [vmem:[%s7281_s6 + $0x2b0] sm:$0xff] }
  0x50   : > { %6893 = vmatmul.mubr.msk.f32.gmra.mrb[28].mxu0 %vm333_vm3, %v254_v35  ;;  %v312_v35 = vld [vmem:[%s7281_s6 + $0x2b8] sm:$0xff] }
  0x51   : > { %6895 = vmatprep.mubr.msk.f32.mxu0 %vm333_vm3, %v255_v36  ;;  %v313_v36 = vld [vmem:[%s7281_s6 + $0x2c0] sm:$0xff] }
  0x54   : > { %6896 = vmatmul.mubr.msk.f32.gmra.mrb[30].mxu0 %vm333_vm3, %v256_v37  ;;  %v314_v37 = vld [vmem:[%s7281_s6 + $0x2c8] sm:$0xff] }
  0x55   : > { %6898 = vmatprep.mubr.msk.f32.mxu0 %vm333_vm3, %v257_v38  ;;  %v315_v38 = vld [vmem:[%s7281_s6 + $0x2d0] sm:$0xff] }
  0x58   : > { %6899 = vmatmul.mubr.msk.f32.gmra.mrb[32].mxu0 %vm333_vm3, %v258_v39  ;;  %v316_v39 = vld [vmem:[%s7281_s6 + $0x2d8] sm:$0xff] }
  0x59   : > { %6901 = vmatprep.mubr.msk.f32.mxu0 %vm333_vm3, %v259_v40  ;;  %v317_v40 = vld [vmem:[%s7281_s6 + $0x2e0] sm:$0xff] }
  0x5c   : > { %6902 = vmatmul.mubr.msk.f32.gmra.mrb[34].mxu0 %vm333_vm3, %v260_v41  ;;  %v318_v41 = vld [vmem:[%s7281_s6 + $0x2e8] sm:$0xff] }
  0x5d   : > { %6904 = vmatprep.mubr.msk.f32.mxu0 %vm333_vm3, %v261_v42  ;;  %v319_v42 = vld [vmem:[%s7281_s6 + $0x2f0] sm:$0xff] }
  0x60   : > { %6905 = vmatmul.mubr.msk.f32.gmra.mrb[36].mxu0 %vm333_vm3, %v262_v43  ;;  %v320_v43 = vld [vmem:[%s7281_s6 + $0x2f8] sm:$0xff] }
  0x61   : > { %6907 = vmatprep.mubr.msk.f32.mxu0 %vm333_vm3, %v263_v44  ;;  %v321_v44 = vld [vmem:[%s7281_s6 + $0x300] sm:$0xff] }
  0x64   : > { %6908 = vmatmul.mubr.msk.f32.gmra.mrb[38].mxu0 %vm333_vm3, %v264_v45  ;;  %v322_v45 = vld [vmem:[%s7281_s6 + $0x308] sm:$0xff] }
  0x65   : > { %6910 = vmatprep.mubr.msk.f32.mxu0 %vm333_vm3, %v265_v46  ;;  %v323_v46 = vld [vmem:[%s7281_s6 + $0x310] sm:$0xff] }
  0x68   : > { %6911 = vmatmul.mubr.msk.f32.gmra.mrb[40].mxu0 %vm333_vm3, %v266_v47  ;;  %v324_v47 = vld [vmem:[%s7281_s6 + $0x318] sm:$0xff] }
  0x69   : > { %6913 = vmatprep.mubr.msk.f32.mxu0 %vm333_vm3, %v267_v48  ;;  %v325_v48 = vld [vmem:[%s7281_s6 + $0x320] sm:$0xff] }
  0x6c   : > { %6914 = vmatmul.mubr.msk.f32.gmra.mrb[42].mxu0 %vm333_vm3, %v268_v49  ;;  %v326_v49 = vld [vmem:[%s7281_s6 + $0x328] sm:$0xff] }
  0x6d   : > { %6916 = vmatprep.mubr.msk.f32.mxu0 %vm333_vm3, %v269_v50  ;;  %v327_v50 = vld [vmem:[%s7281_s6 + $0x330] sm:$0xff] }
  0x70   : > { %6917 = vmatmul.mubr.msk.f32.gmra.mrb[44].mxu0 %vm333_vm3, %v270_v51  ;;  %v328_v51 = vld [vmem:[%s7281_s6 + $0x338] sm:$0xff] }
  0x71   : > { %6919 = vmatprep.mubr.msk.f32.mxu0 %vm333_vm3, %v271_v52  ;;  %v4800_v52 = vld [vmem:[%s10087_s3] sm:$0xff] }
  0x74   : > { %6920 = vmatmul.mubr.msk.f32.gmra.mrb[46].mxu0 %vm333_vm3, %v272_v53  ;;  %v4801_v53 = vld [vmem:[%s10087_s3 + $0x8] sm:$0xff] }
  0x75   : > { %6922 = vmatprep.mubr.msk.f32.mxu0 %vm333_vm3, %v273_v54  ;;  %v7221_v54 = vmov 0.0|0.0  }
  0x76   : > { %7132 = vmatprep.subr.bf16.mxu1 %v7221_v54 }
  0x78   : > { %6923 = vmatmul.mubr.msk.f32.gmra.mrb[48].mxu0 %vm333_vm3, %v274_v55  ;;  %v7133_v55 = vpack.c.bf16 %v4801_v53, %v4800_v52 }
  0x79   : > { %6925 = vmatprep.mubr.msk.f32.mxu0 %vm333_vm3, %v275_v56  ;;  %v7521_v56 = vld [vmem:[%s10086_s2] ss:$0 sm:$0xff] }
  0x7a   : > { %7134 = vmatpush1.bf16.msra.mxu1 %v7133_v55 }
  0x7b   : > { %7135 = vmatprep.subr.bf16.mxu1 %v7221_v54 }
  0x7c   : > { %6926 = vmatmul.mubr.msk.f32.gmra.mrb[50].mxu0 %vm333_vm3, %v276_v57  ;;  %v4802_v57 = vld [vmem:[%s10087_s3 + $0x10] sm:$0xff] }
  0x7d   : > { %6928 = vmatprep.mubr.msk.f32.mxu0 %vm333_vm3, %v277_v58  ;;  %v4803_v58 = vld [vmem:[%s10087_s3 + $0x18] sm:$0xff] }
  0x80   : > { %6929 = vmatmul.mubr.msk.f32.gmra.mrb[52].mxu0 %vm333_vm3, %v278_v59  ;;  %v7136_v59 = vpack.c.bf16 %v4803_v58, %v4802_v57 }
  0x81   : > { %6931 = vmatprep.mubr.msk.f32.mxu0 %vm333_vm3, %v279_v60 }
  0x82   : > { %7137 = vmatpush1.bf16.msra.mxu1 %v7136_v59 }
  0x83   : > { %7138 = vmatprep.subr.bf16.mxu1 %v7221_v54 }
  0x84   : > { %6932 = vmatmul.mubr.msk.f32.gmra.mrb[54].mxu0 %vm333_vm3, %v280_v61 }
  0x85   : > { %6934 = vmatprep.mubr.msk.f32.mxu0 %vm333_vm3, %v281_v62 }
  0x88   : > { %6935 = vmatmul.mubr.msk.f32.gmra.mrb[56].mxu0 %vm333_vm3, %v282_v63 }
  0x89   : > { %6937 = vmatprep.mubr.msk.f32.mxu0 %vm333_vm3, %v283_v0  ;;  %v4804_v0 = vld [vmem:[%s10087_s3 + $0x20] sm:$0xff] }
  0x8c   : > { %6938 = vmatmul.mubr.msk.f32.gmra.mrb[58].mxu0 %vm333_vm3, %v284_v1  ;;  %v4805_v1 = vld [vmem:[%s10087_s3 + $0x28] sm:$0xff] }
  0x8d   : > { %6940 = vmatprep.mubr.msk.f32.mxu0 %vm333_vm3, %v285_v2 }
  0x90   : > { %6941 = vmatmul.mubr.msk.f32.gmra.mrb[60].mxu0 %vm333_vm3, %v286_v3  ;;  %v7139_v3 = vpack.c.bf16 %v4805_v1, %v4804_v0 }
  0x91   : > { %6943 = vmatprep.mubr.msk.f32.mxu0 %vm333_vm3, %v287_v4 }
  0x92   : > { %7140 = vmatpush1.bf16.msra.mxu1 %v7139_v3 }
  0x93   : > { %7141 = vmatprep.subr.bf16.mxu1 %v7221_v54 }
  0x94   : > { %6944 = vmatmul.mubr.msk.f32.gmra.mrb[62].mxu0 %vm333_vm3, %v288_v5 }
  0x95   : > { %6946 = vmatprep.mubr.msk.f32.mxu0 %vm333_vm3, %v289_v6 }
  0x98   : > { %6947 = vmatmul.mubr.msk.f32.gmra.mrb[64].mxu0 %vm333_vm3, %v290_v7 }
  0x99   : > { %6949 = vmatprep.mubr.msk.f32.mxu0 %vm333_vm3, %v291_v8 }
  0x9c   : > { %6950 = vmatmul.mubr.msk.f32.gmra.mrb[66].mxu0 %vm333_vm3, %v292_v9  ;;  %v4806_v9 = vld [vmem:[%s10087_s3 + $0x30] sm:$0xff] }
  0x9d   : > { %6952 = vmatprep.mubr.msk.f32.mxu0 %vm333_vm3, %v293_v10  ;;  %v4807_v10 = vld [vmem:[%s10087_s3 + $0x38] sm:$0xff] }
  0x9e   : > { %v7142_v12 = vpack.c.bf16 %v4807_v10, %v4806_v9  ;;  %v4816_v9 = vld [vmem:[%s10087_s3 + $0x80] sm:$0xff] }
  0xa0   : > { %6953 = vmatmul.mubr.msk.f32.gmra.mrb[68].mxu0 %vm333_vm3, %v294_v13  ;;  %7143 = vmatpush1.bf16.msra.mxu1 %v7142_v12 }
  0xa1   : > { %6955 = vmatprep.mubr.msk.f32.mxu0 %vm333_vm3, %v295_v15  ;;  %7144 = vmatprep.subr.bf16.mxu1 %v7221_v54 }
  0xa4   : > { %6956 = vmatmul.mubr.msk.f32.gmra.mrb[70].mxu0 %vm333_vm3, %v296_v18 }
  0xa5   : > { %6958 = vmatprep.mubr.msk.f32.mxu0 %vm333_vm3, %v297_v20  ;;  %v4808_v20 = vld [vmem:[%s10087_s3 + $0x40] sm:$0xff] }
  0xa8   : > { %6959 = vmatmul.mubr.msk.f32.gmra.mrb[72].mxu0 %vm333_vm3, %v298_v21  ;;  %v4809_v21 = vld [vmem:[%s10087_s3 + $0x48] sm:$0xff] }
  0xa9   : > { %6961 = vmatprep.mubr.msk.f32.mxu0 %vm333_vm3, %v299_v22 }
  0xac   : > { %6962 = vmatmul.mubr.msk.f32.gmra.mrb[74].mxu0 %vm333_vm3, %v300_v23  ;;  %v7145_v23 = vpack.c.bf16 %v4809_v21, %v4808_v20 }
  0xad   : > { %6964 = vmatprep.mubr.msk.f32.mxu0 %vm333_vm3, %v301_v24 }
  0xae   : > { %7146 = vmatpush1.bf16.msra.mxu1 %v7145_v23 }
  0xaf   : > { %7147 = vmatprep.subr.bf16.mxu1 %v7221_v54 }
  0xb0   : > { %6965 = vmatmul.mubr.msk.f32.gmra.mrb[76].mxu0 %vm333_vm3, %v302_v25 }
  0xb1   : > { %6967 = vmatprep.mubr.msk.f32.mxu0 %vm333_vm3, %v303_v26 }
  0xb4   : > { %6968 = vmatmul.mubr.msk.f32.gmra.mrb[78].mxu0 %vm333_vm3, %v304_v27 }
  0xb5   : > { %6970 = vmatprep.mubr.msk.f32.mxu0 %vm333_vm3, %v305_v28 }
  0xb8   : > { %6971 = vmatmul.mubr.msk.f32.gmra.mrb[80].mxu0 %vm333_vm3, %v306_v29 }
  0xb9   : > { %6973 = vmatprep.mubr.msk.f32.mxu0 %vm333_vm3, %v307_v30 }
  0xbc   : > { %6974 = vmatmul.mubr.msk.f32.gmra.mrb[82].mxu0 %vm333_vm3, %v308_v31 }
  0xbd   : > { %6976 = vmatprep.mubr.msk.f32.mxu0 %vm333_vm3, %v309_v32  ;;  %v4810_v32 = vld [vmem:[%s10087_s3 + $0x50] sm:$0xff] }
  0xc0   : > { %6977 = vmatmul.mubr.msk.f32.gmra.mrb[84].mxu0 %vm333_vm3, %v310_v33  ;;  %v4811_v33 = vld [vmem:[%s10087_s3 + $0x58] sm:$0xff] }
  0xc1   : > { %6979 = vmatprep.mubr.msk.f32.mxu0 %vm333_vm3, %v311_v34 }
  0xc4   : > { %6980 = vmatmul.mubr.msk.f32.gmra.mrb[86].mxu0 %vm333_vm3, %v312_v35  ;;  %v7148_v35 = vpack.c.bf16 %v4811_v33, %v4810_v32 }
  0xc5   : > { %6982 = vmatprep.mubr.msk.f32.mxu0 %vm333_vm3, %v313_v36 }
  0xc6   : > { %7149 = vmatpush1.bf16.msra.mxu1 %v7148_v35 }
  0xc7   : > { %7150 = vmatprep.subr.bf16.mxu1 %v7221_v54 }
  0xc8   : > { %6983 = vmatmul.mubr.msk.f32.gmra.mrb[88].mxu0 %vm333_vm3, %v314_v37 }
  0xc9   : > { %6985 = vmatprep.mubr.msk.f32.mxu0 %vm333_vm3, %v315_v38 }
  0xcc   : > { %6986 = vmatmul.mubr.msk.f32.gmra.mrb[90].mxu0 %vm333_vm3, %v316_v39 }
  0xcd   : > { %6988 = vmatprep.mubr.msk.f32.mxu0 %vm333_vm3, %v317_v40 }
  0xd0   : > { %6989 = vmatmul.mubr.msk.f32.gmra.mrb[92].mxu0 %vm333_vm3, %v318_v41 }
  0xd1   : > { %6991 = vmatprep.mubr.msk.f32.mxu0 %vm333_vm3, %v319_v42 }
  0xd4   : > { %6992 = vmatmul.mubr.msk.f32.gmra.mrb[94].mxu0 %vm333_vm3, %v320_v43 }
  0xd5   : > { %6994 = vmatprep.mubr.msk.f32.mxu0 %vm333_vm3, %v321_v44  ;;  %v4812_v44 = vld [vmem:[%s10087_s3 + $0x60] sm:$0xff] }
  0xd8   : > { %6995 = vmatmul.mubr.msk.f32.gmra.mrb[96].mxu0 %vm333_vm3, %v322_v45 }
  0xd9   : > { %6997 = vmatprep.mubr.msk.f32.mxu0 %vm333_vm3, %v323_v46  ;;  %v4813_v46 = vld [vmem:[%s10087_s3 + $0x68] sm:$0xff] }
  0xdc   : > { %6998 = vmatmul.mubr.msk.f32.gmra.mrb[98].mxu0 %vm333_vm3, %v324_v47 }
  0xdd   : > { %7000 = vmatprep.mubr.msk.f32.mxu0 %vm333_vm3, %v325_v48 }
  0xe0   : > { %7001 = vmatmul.mubr.msk.f32.gmra.mrb[100].mxu0 %vm333_vm3, %v326_v49 }
  0xe1   : > { %7003 = vmatprep.mubr.msk.f32.mxu0 %vm333_vm3, %v327_v50 }
  0xe4   : > { %7004 = vmatmul.mubr.msk.f32.gmra.mrb[102].mxu0 %vm333_vm3, %v328_v51  ;;  %v7151_v51 = vpack.c.bf16 %v4813_v46, %v4812_v44 }
  0xe6   : > { %7152 = vmatpush1.bf16.msra.mxu1 %v7151_v51 }
  0xe7   : > { %7153 = vmatprep.subr.bf16.mxu1 %v7221_v54 }
  0xeb   : > { %v6852_v60 = vpop.f32.mrb[0].mxu0 }
  0xec   : > { %v1243_v61 = vadd.f32 %v6852_v60, %v7521_v56  ;;  %v716_v62 = vpop.f32.mrb[1].mxu0  ;;  %v4814_v60 = vld [vmem:[%s10087_s3 + $0x70] sm:$0xff] }
  0xed   : > { %v1242_v63 = vadd.f32 %v7521_v56, %v716_v62 }
  0xee   : > { %v1347_v2 = vmax.f32 %v1243_v61, 0.0  ;;  %v4815_v61 = vld [vmem:[%s10087_s3 + $0x78] sm:$0xff] }
  0xef   : > { %v1346_v4 = vmax.f32 %v1242_v63, 0.0  ;;  %v6855_v5 = vpop.f32.mrb[2].mxu0  ;;  %v7154_v63 = vpack.c.bf16 %v4815_v61, %v4814_v60 }
  0xf0   : > { %1452 = vst.msk [vmem:[#allocation2 + $0x8] sm:$0xff] %vm1450_vm4, %v1347_v2  ;;  %v1245_v6 = vadd.f32 %v6855_v5, %v7521_v56  ;;  %v726_v7 = vpop.f32.mrb[3].mxu0 }
  0xf1   : > { %1451 = vst.msk [vmem:[#allocation2] sm:$0xff] %vm1450_vm4, %v1346_v4  ;;  %v1244_v8 = vadd.f32 %v7521_v56, %v726_v7  ;;  %7155 = vmatpush1.bf16.msra.mxu1 %v7154_v63 }
  0xf2   : > { %v1349_v11 = vmax.f32 %v1245_v6, 0.0  ;;  %7156 = vmatprep.subr.bf16.mxu1 %v7221_v54 }
  0xf3   : > { %v1348_v13 = vmax.f32 %v1244_v8, 0.0  ;;  %v6858_v15 = vpop.f32.mrb[4].mxu0 }
  0xf4   : > { %1454 = vst.msk [vmem:[#allocation2 + $0x18] sm:$0xff] %vm1450_vm4, %v1349_v11  ;;  %v1247_v16 = vadd.f32 %v6858_v15, %v7521_v56  ;;  %v736_v17 = vpop.f32.mrb[5].mxu0  ;;  %v4817_v11 = vld [vmem:[%s10087_s3 + $0x88] sm:$0xff] }
  0xf5   : > { %1453 = vst.msk [vmem:[#allocation2 + $0x10] sm:$0xff] %vm1450_vm4, %v1348_v13  ;;  %v1246_v18 = vadd.f32 %v7521_v56, %v736_v17  ;;  %v7157_v17 = vpack.c.bf16 %v4817_v11, %v4816_v9 }
  0xf6   : > { %v1351_v22 = vmax.f32 %v1247_v16, 0.0 }
  0xf7   : > { %v1350_v24 = vmax.f32 %v1246_v18, 0.0  ;;  %v6861_v25 = vpop.f32.mrb[6].mxu0  ;;  %v1556_v26 = vld [vmem:[#allocation2 + $0x8] sm:$0xff]  ;;  %7158 = vmatpush1.bf16.msra.mxu1 %v7157_v17 }
  0xf8   : > { %1456 = vst.msk [vmem:[#allocation2 + $0x28] sm:$0xff] %vm1450_vm4, %v1351_v22  ;;  %v1249_v27 = vadd.f32 %v6861_v25, %v7521_v56  ;;  %v746_v28 = vpop.f32.mrb[7].mxu0  ;;  %v1699_v29 = vld [vmem:[#allocation2 + $0x1] sm:$0xff]  ;;  %1628 = vst.msk [vmem:[#allocation3 + $0x18] sm:$0xff] %vm1450_vm4, %v1556_v26  ;;  %v4818_v25 = vld [vmem:[%s10087_s3 + $0x90] sm:$0xff]  ;;  %7159 = vmatprep.subr.bf16.mxu1 %v7221_v54 }
  0xf9   : > { %v1555_v30 = vld [vmem:[#allocation2] sm:$0xff]  ;;  %1455 = vst.msk [vmem:[#allocation2 + $0x20] sm:$0xff] %vm1450_vm4, %v1350_v24  ;;  %v1248_v31 = vadd.f32 %v7521_v56, %v746_v28  ;;  %1843 = vrot.lane.b32.xlu0 %v1699_v29, %s7222_s14  ;;  %v4819_v26 = vld [vmem:[%s10087_s3 + $0x98] sm:$0xff] }
  0xfa   : > { %1627 = vst.msk [vmem:[#allocation3] sm:$0xff] %vm1450_vm4, %v1555_v30  ;;  %v1353_v34 = vmax.f32 %v1249_v27, 0.0  ;;  %v2132_v38 = vld [vmem:[#allocation2 + $0x2] sm:$0xff]  ;;  %v7160_v28 = vpack.c.bf16 %v4819_v26, %v4818_v25  ;;  %v4826_v26 = vld [vmem:[%s10087_s3 + $0xd0] sm:$0xff] }
  0xfb   : > { %v1352_v36 = vmax.f32 %v1248_v31, 0.0  ;;  %v6864_v37 = vpop.f32.mrb[8].mxu0 }
  0xfc   : > { %1458 = vst.msk [vmem:[#allocation2 + $0x38] sm:$0xff] %vm1450_vm4, %v1353_v34  ;;  %v1701_v39 = vld [vmem:[#allocation2 + $0x11] sm:$0xff]  ;;  %v1251_v40 = vadd.f32 %v6864_v37, %v7521_v56  ;;  %v756_v41 = vpop.f32.mrb[9].mxu0  ;;  %v1700_v52 = vld [vmem:[#allocation2 + $0x9] sm:$0xff]  ;;  %7161 = vmatpush1.bf16.msra.mxu1 %v7160_v28 }
  0xfd   : > { %1457 = vst.msk [vmem:[#allocation2 + $0x30] sm:$0xff] %vm1450_vm4, %v1352_v36  ;;  %2276 = vrot.lane.b32.xlu0 %v2132_v38, %s7223_s21  ;;  %1847 = vrot.lane.b32.xlu1 %v1701_v39, %s7222_s14  ;;  %v1250_v42 = vadd.f32 %v7521_v56, %v756_v41  ;;  %v1557_v43 = vld [vmem:[#allocation2 + $0x10] sm:$0xff]  ;;  %v4820_v39 = vld [vmem:[%s10087_s3 + $0xa0] sm:$0xff]  ;;  %v4821_v41 = vld [vmem:[%s10087_s3 + $0xa8] sm:$0xff] }
  0xfe   : > { %v1355_v45 = vmax.f32 %v1251_v40, 0.0  ;;  %1629 = vst.msk [vmem:[#allocation3 + $0x30] sm:$0xff] %vm1450_vm4, %v1557_v43  ;;  %v2133_v47 = vld [vmem:[#allocation2 + $0xa] sm:$0xff]  ;;  %v2134_v2 = vld [vmem:[#allocation2 + $0x12] sm:$0xff]  ;;  %7162 = vmatprep.subr.bf16.mxu1 %v7221_v54 }
  0xff   : > { %v2567_v48 = vld [vmem:[#allocation2 + $0x28] sm:$0xff]  ;;  %v1354_v49 = vmax.f32 %v1250_v42, 0.0  ;;  %v6867_v50 = vpop.f32.mrb[10].mxu0 }
 0x100   : > { %v1702_v53 = vld [vmem:[#allocation2 + $0x21] sm:$0xff]  ;;  %1460 = vst.msk [vmem:[#allocation2 + $0x48] sm:$0xff] %vm1450_vm4, %v1355_v45  ;;  %v1253_v55 = vadd.f32 %v6867_v50, %v7521_v56  ;;  %v766_v58 = vpop.f32.mrb[11].mxu0  ;;  %1631 = vst.msk [vmem:[#allocation3 + $0x60] sm:$0xff] %vm1450_vm4, %v2567_v48  ;;  %v7163_v45 = vpack.c.bf16 %v4821_v41, %v4820_v39 }
 0x101   : > { %v7591_v57 = vld [vmem:[#allocation2 + $0x20] sm:$0xff]  ;;  %2278 = vrot.lane.b32.xlu1 %v2133_v47, %s7223_s21  ;;  %1845 = vrot.lane.b32.xlu0 %v1700_v52, %s7222_s14  ;;  %1459 = vst.msk [vmem:[#allocation2 + $0x40] sm:$0xff] %vm1450_vm4, %v1354_v49  ;;  %v1252_v59 = vadd.f32 %v7521_v56, %v766_v58  ;;  %3071 = vst.msk [vmem:[#allocation3 + $0x8] sm:$0xff] %vm1450_vm4, %v1702_v53  ;;  %v4823_v58 = vld [vmem:[%s10087_s3 + $0xb8] sm:$0xff] }
 0x102   : > { %1630 = vst.msk [vmem:[#allocation3 + $0x48] sm:$0xff] %vm1450_vm4, %v7591_v57  ;;  %v1357_v62 = vmax.f32 %v1253_v55, 0.0  ;;  %v3143_v12 = vld [vmem:[#allocation2 + $0x22] sm:$0xff]  ;;  %v4822_v55 = vld [vmem:[%s10087_s3 + $0xb0] sm:$0xff]  ;;  %7164 = vmatpush1.bf16.msra.mxu1 %v7163_v45 }
 0x103   : > { %v1356_v0 = vmax.f32 %v1252_v59, 0.0  ;;  %v6870_v1 = vpop.f32.mrb[12].mxu0  ;;  %v7166_v59 = vpack.c.bf16 %v4823_v58, %v4822_v55  ;;  %7165 = vmatprep.subr.bf16.mxu1 %v7221_v54 }
 0x104   : > { %v1703_v3 = vld [vmem:[#allocation2 + $0x29] sm:$0xff]  ;;  %1462 = vst.msk [vmem:[#allocation2 + $0x58] sm:$0xff] %vm1450_vm4, %v1357_v62  ;;  %v7609_v4 = vld [vmem:[#allocation2 + $0x31] sm:$0xff]  ;;  %v1255_v5 = vadd.f32 %v6870_v1, %v7521_v56  ;;  %v776_v6 = vpop.f32.mrb[13].mxu0 }
 0x105   : > { %2280 = vrot.lane.b32.xlu0 %v2134_v2, %s7223_s21  ;;  %2712 = vrot.lane.b32.xlu1 %v2567_v48, %s7224_s30  ;;  %1461 = vst.msk [vmem:[#allocation2 + $0x50] sm:$0xff] %vm1450_vm4, %v1356_v0  ;;  %v7615_v7 = vld [vmem:[#allocation2 + $0x30] sm:$0xff]  ;;  %v1254_v8 = vadd.f32 %v7521_v56, %v776_v6  ;;  %3072 = vst.msk [vmem:[#allocation3 + $0x20] sm:$0xff] %vm1450_vm4, %v1703_v3 }
 0x106   : > { %3073 = vst.msk [vmem:[#allocation3 + $0x38] sm:$0xff] %vm1450_vm4, %v7609_v4  ;;  %v1359_v10 = vmax.f32 %v1255_v5, 0.0  ;;  %1632 = vst.msk [vmem:[#allocation3 + $0x78] sm:$0xff] %vm1450_vm4, %v7615_v7  ;;  %v2136_v42 = vld [vmem:[#allocation2 + $0x2a] sm:$0xff]  ;;  %7167 = vmatpush1.bf16.msra.mxu1 %v7166_v59 }
 0x107   : > { %v7629_v13 = vld [vmem:[#allocation2 + $0x48] sm:$0xff]  ;;  %v1358_v15 = vmax.f32 %v1254_v8, 0.0  ;;  %v6873_v16 = vpop.f32.mrb[14].mxu0  ;;  %7168 = vmatprep.subr.bf16.mxu1 %v7221_v54 }
 0x108   : > { %v7632_v18 = vld [vmem:[#allocation2 + $0x42] sm:$0xff]  ;;  %1464 = vst.msk [vmem:[#allocation2 + $0x68] sm:$0xff] %vm1450_vm4, %v1359_v10  ;;  %v1257_v22 = vadd.f32 %v6873_v16, %v7521_v56  ;;  %v786_v23 = vpop.f32.mrb[15].mxu0  ;;  %1634 = vst.msk [vmem:[#allocation3 + $0xa8] sm:$0xff] %vm1450_vm4, %v7629_v13  ;;  %v2137_v16 = vld [vmem:[#allocation2 + $0x32] sm:$0xff] }
 0x109   : > { %v7634_v20 = vld [vmem:[#allocation2 + $0x41] sm:$0xff]  ;;  %3287 = vrot.lane.b32.xlu0 %v3143_v12, %s7222_s14  ;;  %1849 = vrot.lane.b32.xlu1 %v1702_v53, %s7222_s14  ;;  %4512 = vst.msk [vmem:[#allocation3 + $0x10] sm:$0xff] %vm1450_vm4, %v7632_v18  ;;  %1463 = vst.msk [vmem:[#allocation2 + $0x60] sm:$0xff] %vm1450_vm4, %v1358_v15  ;;  %v1256_v24 = vadd.f32 %v7521_v56, %v786_v23 }
 0x10a   : > { %v7636_v21 = vld [vmem:[#allocation2 + $0x40] sm:$0xff]  ;;  %3074 = vst.msk [vmem:[#allocation3 + $0x50] sm:$0xff] %vm1450_vm4, %v7634_v20  ;;  %v1361_v27 = vmax.f32 %v1257_v22, 0.0  ;;  %v4825_v8 = vld [vmem:[%s10087_s3 + $0xc8] sm:$0xff] }
 0x10b   : > { %1633 = vst.msk [vmem:[#allocation3 + $0x90] sm:$0xff] %vm1450_vm4, %v7636_v21  ;;  %v1360_v29 = vmax.f32 %v1256_v24, 0.0  ;;  %v6876_v30 = vpop.f32.mrb[16].mxu0 }
 0x10c   : > { %v7659_v31 = vld [vmem:[#allocation2 + $0x4a] sm:$0xff]  ;;  %v7661_v32 = vld [vmem:[#allocation2 + $0x52] sm:$0xff]  ;;  %1466 = vst.msk [vmem:[#allocation2 + $0x78] sm:$0xff] %vm1450_vm4, %v1361_v27  ;;  %v1259_v34 = vadd.f32 %v6876_v30, %v7521_v56  ;;  %v796_v35 = vpop.f32.mrb[17].mxu0 }
 0x10d   : > { %v7663_v33 = vld [vmem:[#allocation2 + $0x51] sm:$0xff]  ;;  %2282 = vrot.lane.b32.xlu1 %v3143_v12, %s7223_s21  ;;  %1851 = vrot.lane.b32.xlu0 %v1703_v3, %s7222_s14  ;;  %4513 = vst.msk [vmem:[#allocation3 + $0x28] sm:$0xff] %vm1450_vm4, %v7659_v31  ;;  %4514 = vst.msk [vmem:[#allocation3 + $0x40] sm:$0xff] %vm1450_vm4, %v7661_v32  ;;  %v7673_v36 = vld [vmem:[#allocation2 + $0x49] sm:$0xff]  ;;  %v1258_v38 = vadd.f32 %v7521_v56, %v796_v35 }
 0x10e   : > { %1465 = vst.msk [vmem:[#allocation2 + $0x70] sm:$0xff] %vm1450_vm4, %v1360_v29  ;;  %v7676_v37 = vld [vmem:[#allocation2 + $0x50] sm:$0xff]  ;;  %3076 = vst.msk [vmem:[#allocation3 + $0x80] sm:$0xff] %vm1450_vm4, %v7663_v33  ;;  %v1363_v40 = vmax.f32 %v1259_v34, 0.0  ;;  %v4827_v27 = vld [vmem:[%s10087_s3 + $0xd8] sm:$0xff] }
 0x10f   : > { %1635 = vst.msk [vmem:[#allocation3 + $0xc0] sm:$0xff] %vm1450_vm4, %v7676_v37  ;;  %3075 = vst.msk [vmem:[#allocation3 + $0x68] sm:$0xff] %vm1450_vm4, %v7673_v36  ;;  %v1362_v43 = vmax.f32 %v1258_v38, 0.0  ;;  %v6879_v44 = vpop.f32.mrb[18].mxu0  ;;  %v1565_v46 = vld [vmem:[#allocation2 + $0x68] sm:$0xff]  ;;  %v7172_v29 = vpack.c.bf16 %v4827_v27, %v4826_v26 }
 0x110   : > { %v4586_v47 = vld [vmem:[#allocation3 + $0x10] sm:$0xff]  ;;  %v7692_v48 = vld [vmem:[#allocation2 + $0x62] sm:$0xff]  ;;  %1468 = vst.msk [vmem:[#allocation2 + $0x88] sm:$0xff] %vm1450_vm4, %v1363_v40  ;;  %v1261_v50 = vadd.f32 %v6879_v44, %v7521_v56  ;;  %v806_v51 = vpop.f32.mrb[19].mxu0  ;;  %1637 = vst.msk [vmem:[#allocation3 + $0xf0] sm:$0xff] %vm1450_vm4, %v1565_v46 }
 0x111   : > { %v7694_v49 = vld [vmem:[#allocation2 + $0x61] sm:$0xff]  ;;  %2710 = vrot.lane.b32.xlu1 %v7591_v57, %s7224_s30  ;;  %2284 = vrot.lane.b32.xlu0 %v2136_v42, %s7223_s21  ;;  %4515 = vst.msk [vmem:[#allocation3 + $0x58] sm:$0xff] %vm1450_vm4, %v7692_v48  ;;  %1467 = vst.msk [vmem:[#allocation2 + $0x80] sm:$0xff] %vm1450_vm4, %v1362_v43  ;;  %v1260_v53 = vadd.f32 %v7521_v56, %v806_v51 }
 0x112   : > { %v7704_v52 = vld [vmem:[#allocation2 + $0x60] sm:$0xff]  ;;  %3077 = vst.msk [vmem:[#allocation3 + $0x98] sm:$0xff] %vm1450_vm4, %v7694_v49  ;;  %7014 = vmatprep.mubr.msk.f32.mxu0 %vm1450_vm4, %v4586_v47  ;;  %v1365_v57 = vmax.f32 %v1261_v50, 0.0  ;;  %v4829_v46 = vld [vmem:[%s10087_s3 + $0xe8] sm:$0xff] }
 0x113   : > { %1636 = vst.msk [vmem:[#allocation3 + $0xd8] sm:$0xff] %vm1450_vm4, %v7704_v52  ;;  %v1364_v60 = vmax.f32 %v1260_v53, 0.0  ;;  %v6882_v61 = vpop.f32.mrb[20].mxu0 }
 0x114   : > { %v4589_v62 = vld [vmem:[#allocation3 + $0x28] sm:$0xff]  ;;  %1470 = vst.msk [vmem:[#allocation2 + $0x98] sm:$0xff] %vm1450_vm4, %v1365_v57  ;;  %v1263_v1 = vadd.f32 %v6882_v61, %v7521_v56  ;;  %v816_v2 = vpop.f32.mrb[21].mxu0  ;;  %v4592_v3 = vld [vmem:[#allocation3 + $0x40] sm:$0xff]  ;;  %v4830_v61 = vld [vmem:[%s10087_s3 + $0xf0] sm:$0xff] }
 0x115   : > { %v7720_v63 = vld [vmem:[#allocation2 + $0x6a] sm:$0xff]  ;;  %v7722_v0 = vld [vmem:[#allocation2 + $0x72] sm:$0xff]  ;;  %1853 = vrot.lane.b32.xlu1 %v7609_v4, %s7222_s14  ;;  %3289 = vrot.lane.b32.xlu0 %v2136_v42, %s7222_s14  ;;  %1469 = vst.msk [vmem:[#allocation2 + $0x90] sm:$0xff] %vm1450_vm4, %v1364_v60  ;;  %v1262_v5 = vadd.f32 %v7521_v56, %v816_v2  ;;  %v4824_v4 = vld [vmem:[%s10087_s3 + $0xc0] sm:$0xff] }
 0x116   : > { %4516 = vst.msk [vmem:[#allocation3 + $0x70] sm:$0xff] %vm1450_vm4, %v7720_v63  ;;  %4517 = vst.msk [vmem:[#allocation3 + $0x88] sm:$0xff] %vm1450_vm4, %v7722_v0  ;;  %7015 = vmatmul.mubr.msk.f32.vlgmr.msra.gmra.mrb[104].mxu0 %vm1450_vm4, %v4589_v62  ;;  %v1367_v6 = vmax.f32 %v1263_v1, 0.0  ;;  %v7169_v11 = vpack.c.bf16 %v4825_v8, %v4824_v4  ;;  %v1566_v12 = vld [vmem:[#allocation2 + $0x70] sm:$0xff]  ;;  %v4831_v62 = vld [vmem:[%s10087_s3 + $0xf8] sm:$0xff] }
 0x117   : > { %7017 = vmatprep.mubr.msk.f32.mxu0 %vm1450_vm4, %v4592_v3  ;;  %v1366_v9 = vmax.f32 %v1262_v5, 0.0  ;;  %v6885_v10 = vpop.f32.mrb[22].mxu0  ;;  %v3006_v15 = vld [vmem:[#allocation2 + $0x69] sm:$0xff]  ;;  %1638 = vst.msk [vmem:[#allocation3 + $0x108] sm:$0xff] %vm1450_vm4, %v1566_v12  ;;  %v3007_v30 = vld [vmem:[#allocation2 + $0x71] sm:$0xff]  ;;  %v7178_v3 = vpack.c.bf16 %v4831_v62, %v4830_v61 }
 0x118   : > { %v4595_v17 = vld [vmem:[#allocation3 + $0x58] sm:$0xff]  ;;  %v7744_v22 = vld [vmem:[#allocation2 + $0x82] sm:$0xff]  ;;  %1472 = vst.msk [vmem:[#allocation2 + $0xa8] sm:$0xff] %vm1450_vm4, %v1367_v6  ;;  %v1265_v23 = vadd.f32 %v6885_v10, %v7521_v56  ;;  %v826_v24 = vpop.f32.mrb[23].mxu0  ;;  %3078 = vst.msk [vmem:[#allocation3 + $0xb0] sm:$0xff] %vm1450_vm4, %v3006_v15  ;;  %7170 = vmatpush1.bf16.msra.mxu1 %v7169_v11 }
 0x119   : > { %2286 = vrot.lane.b32.xlu1 %v2137_v16, %s7223_s21  ;;  %3291 = vrot.lane.b32.xlu0 %v2137_v16, %s7222_s14  ;;  %4518 = vst.msk [vmem:[#allocation3 + $0xa0] sm:$0xff] %vm1450_vm4, %v7744_v22  ;;  %1471 = vst.msk [vmem:[#allocation2 + $0xa0] sm:$0xff] %vm1450_vm4, %v1366_v9  ;;  %v1264_v25 = vadd.f32 %v7521_v56, %v826_v24  ;;  %v1567_v34 = vld [vmem:[#allocation2 + $0x80] sm:$0xff]  ;;  %v1568_v39 = vld [vmem:[#allocation2 + $0x88] sm:$0xff] }
 0x11a   : > { %7018 = vmatmul.mubr.msk.f32.gmra.mrb[106].mxu0 %vm1450_vm4, %v4595_v17  ;;  %v1369_v28 = vmax.f32 %v1265_v23, 0.0  ;;  %v3008_v35 = vld [vmem:[#allocation2 + $0x81] sm:$0xff]  ;;  %7171 = vmatprep.subr.bf16.mxu1 %v7221_v54  ;;  %3079 = vst.msk [vmem:[#allocation3 + $0xc8] sm:$0xff] %vm1450_vm4, %v3007_v30  ;;  %1639 = vst.msk [vmem:[#allocation3 + $0x120] sm:$0xff] %vm1450_vm4, %v1567_v34 }
 0x11b   : > { %v1368_v38 = vmax.f32 %v1264_v25, 0.0  ;;  %3080 = vst.msk [vmem:[#allocation3 + $0xe0] sm:$0xff] %vm1450_vm4, %v3008_v35  ;;  %1640 = vst.msk [vmem:[#allocation3 + $0x138] sm:$0xff] %vm1450_vm4, %v1568_v39  ;;  %v6888_v44 = vpop.f32.mrb[24].mxu0 }
 0x11c   : > { %v7767_v42 = vld [vmem:[#allocation2 + $0x8a] sm:$0xff]  ;;  %1474 = vst.msk [vmem:[#allocation2 + $0xb8] sm:$0xff] %vm1450_vm4, %v1369_v28  ;;  %v7775_v43 = vld [vmem:[#allocation2 + $0x92] sm:$0xff]  ;;  %7173 = vmatpush1.bf16.msra.mxu1 %v7172_v29  ;;  %v1267_v45 = vadd.f32 %v6888_v44, %v7521_v56  ;;  %v836_v57 = vpop.f32.mrb[25].mxu0 }
 0x11d   : > { %v4598_v40 = vld [vmem:[#allocation3 + $0x70] sm:$0xff]  ;;  %v4601_v41 = vld [vmem:[#allocation3 + $0x88] sm:$0xff]  ;;  %2714 = vrot.lane.b32.xlu1 %v7615_v7, %s7224_s30  ;;  %1855 = vrot.lane.b32.xlu0 %v7634_v20, %s7222_s14  ;;  %4519 = vst.msk [vmem:[#allocation3 + $0xb8] sm:$0xff] %vm1450_vm4, %v7767_v42  ;;  %1473 = vst.msk [vmem:[#allocation2 + $0xb0] sm:$0xff] %vm1450_vm4, %v1368_v38  ;;  %v1266_v59 = vadd.f32 %v7521_v56, %v836_v57 }
 0x11e   : > { %7020 = vmatprep.mubr.msk.f32.mxu0 %vm1450_vm4, %v4598_v40  ;;  %4520 = vst.msk [vmem:[#allocation3 + $0xd0] sm:$0xff] %vm1450_vm4, %v7775_v43  ;;  %v4828_v7 = vld [vmem:[%s10087_s3 + $0xe0] sm:$0xff]  ;;  %7174 = vmatprep.subr.bf16.mxu1 %v7221_v54  ;;  %v1569_v50 = vld [vmem:[#allocation2 + $0x90] sm:$0xff]  ;;  %v1371_v58 = vmax.f32 %v1267_v45, 0.0 }
 0x11f   : > { %7021 = vmatmul.mubr.msk.f32.gmra.mrb[108].mxu0 %vm1450_vm4, %v4601_v41  ;;  %v7175_v47 = vpack.c.bf16 %v4829_v46, %v4828_v7  ;;  %v3009_v51 = vld [vmem:[#allocation2 + $0x89] sm:$0xff]  ;;  %1641 = vst.msk [vmem:[#allocation3 + $0x150] sm:$0xff] %vm1450_vm4, %v1569_v50  ;;  %v6891_v60 = vpop.f32.mrb[26].mxu0  ;;  %v3010_v5 = vld [vmem:[#allocation2 + $0x91] sm:$0xff]  ;;  %v1370_v8 = vmax.f32 %v1266_v59, 0.0 }
 0x120   : > { %v4604_v53 = vld [vmem:[#allocation3 + $0xa0] sm:$0xff]  ;;  %3081 = vst.msk [vmem:[#allocation3 + $0xf8] sm:$0xff] %vm1450_vm4, %v3009_v51  ;;  %1476 = vst.msk [vmem:[#allocation2 + $0xc8] sm:$0xff] %vm1450_vm4, %v1371_v58  ;;  %v1269_v1 = vadd.f32 %v6891_v60, %v7521_v56  ;;  %v846_v2 = vpop.f32.mrb[27].mxu0  ;;  %v1571_v10 = vld [vmem:[#allocation2 + $0xa8] sm:$0xff] }
 0x121   : > { %v7792_v55 = vld [vmem:[#allocation2 + $0xa2] sm:$0xff]  ;;  %3722 = vrot.lane.b32.xlu1 %v7629_v13, %s7223_s21  ;;  %2288 = vrot.lane.b32.xlu0 %v7632_v18, %s7223_s21  ;;  %v1268_v9 = vadd.f32 %v7521_v56, %v846_v2  ;;  %3082 = vst.msk [vmem:[#allocation3 + $0x110] sm:$0xff] %vm1450_vm4, %v3010_v5  ;;  %1643 = vst.msk [vmem:[#allocation3 + $0x180] sm:$0xff] %vm1450_vm4, %v1571_v10 }
 0x122   : > { %4521 = vst.msk [vmem:[#allocation3 + $0xe8] sm:$0xff] %vm1450_vm4, %v7792_v55  ;;  %7023 = vmatprep.mubr.msk.f32.mxu0 %vm1450_vm4, %v4604_v53  ;;  %7176 = vmatpush1.bf16.msra.mxu1 %v7175_v47  ;;  %v3011_v6 = vld [vmem:[#allocation2 + $0xa1] sm:$0xff]  ;;  %v1373_v16 = vmax.f32 %v1269_v1, 0.0  ;;  %1475 = vst.msk [vmem:[#allocation2 + $0xc0] sm:$0xff] %vm1450_vm4, %v1370_v8 }
 0x123   : > { %v1570_v4 = vld [vmem:[#allocation2 + $0xa0] sm:$0xff]  ;;  %7177 = vmatprep.subr.bf16.mxu1 %v7221_v54  ;;  %3083 = vst.msk [vmem:[#allocation3 + $0x128] sm:$0xff] %vm1450_vm4, %v3011_v6  ;;  %v1372_v17 = vmax.f32 %v1268_v9, 0.0  ;;  %v6894_v29 = vpop.f32.mrb[28].mxu0 }
 0x124   : > { %1642 = vst.msk [vmem:[#allocation3 + $0x168] sm:$0xff] %vm1450_vm4, %v1570_v4  ;;  %v4607_v11 = vld [vmem:[#allocation3 + $0xb8] sm:$0xff]  ;;  %v7817_v12 = vld [vmem:[#allocation2 + $0xaa] sm:$0xff]  ;;  %1478 = vst.msk [vmem:[#allocation2 + $0xd8] sm:$0xff] %vm1450_vm4, %v1373_v16  ;;  %v856_v30 = vpop.f32.mrb[29].mxu0 }
 0x125   : > { %v7819_v15 = vld [vmem:[#allocation2 + $0xb2] sm:$0xff]  ;;  %2718 = vrot.lane.b32.xlu1 %v7629_v13, %s7224_s30  ;;  %4152 = vrot.lane.b32.xlu0 %v7634_v20, %s7224_s30  ;;  %4522 = vst.msk [vmem:[#allocation3 + $0x100] sm:$0xff] %vm1450_vm4, %v7817_v12  ;;  %v3012_v13 = vld [vmem:[#allocation2 + $0xa9] sm:$0xff]  ;;  %1477 = vst.msk [vmem:[#allocation2 + $0xd0] sm:$0xff] %vm1450_vm4, %v1372_v17  ;;  %v1270_v34 = vadd.f32 %v7521_v56, %v856_v30 }
 0x126   : > { %4523 = vst.msk [vmem:[#allocation3 + $0x118] sm:$0xff] %vm1450_vm4, %v7819_v15  ;;  %v4610_v54 = vld [vmem:[#allocation3 + $0xd0] sm:$0xff]  ;;  %7024 = vmatmul.mubr.msk.f32.gmra.mrb[110].mxu0 %vm1450_vm4, %v4607_v11  ;;  %7179 = vmatpush1.bf16.msra.mxu1 %v7178_v3  ;;  %3084 = vst.msk [vmem:[#allocation3 + $0x140] sm:$0xff] %vm1450_vm4, %v3012_v13 }
 0x127   : > { %v1572_v23 = vld [vmem:[#allocation2 + $0xb0] sm:$0xff]  ;;  %7026 = vmatprep.mubr.msk.f32.mxu0 %vm1450_vm4, %v4610_v54  ;;  %7188 = vmatprep.subr.bf16.mxu1 %v7428_v14  ;;  %v6897_v35 = vpop.f32.mrb[30].mxu0  ;;  %v1574_v40 = vld [vmem:[#allocation2 + $0xc8] sm:$0xff]  ;;  %v1374_v46 = vmax.f32 %v1270_v34, 0.0 }
 0x128   : > { %1644 = vst.msk [vmem:[#allocation3 + $0x198] sm:$0xff] %vm1450_vm4, %v1572_v23  ;;  %v3013_v20 = vld [vmem:[#allocation2 + $0xb1] sm:$0xff]  ;;  %v1273_v44 = vadd.f32 %v6897_v35, %v7521_v56  ;;  %v866_v45 = vpop.f32.mrb[31].mxu0  ;;  %1646 = vst.msk [vmem:[#allocation3 + $0x1c8] sm:$0xff] %vm1450_vm4, %v1574_v40 }
 0x129   : > { %v4613_v24 = vld [vmem:[#allocation3 + $0xe8] sm:$0xff]  ;;  %3085 = vst.msk [vmem:[#allocation3 + $0x158] sm:$0xff] %vm1450_vm4, %v3013_v20  ;;  %3720 = vrot.lane.b32.xlu1 %v7636_v21, %s7223_s21  ;;  %3293 = vrot.lane.b32.xlu0 %v7632_v18, %s7222_s14  ;;  %v1573_v38 = vld [vmem:[#allocation2 + $0xc0] sm:$0xff]  ;;  %v1272_v47 = vadd.f32 %v7521_v56, %v866_v45  ;;  %1479 = vst.msk [vmem:[#allocation2 + $0xe0] sm:$0xff] %vm1450_vm4, %v1374_v46 }
 0x12a   : > { %7027 = vmatmul.mubr.msk.f32.gmra.mrb[112].mxu0 %vm1450_vm4, %v4613_v24  ;;  %v7844_v27 = vld [vmem:[#allocation2 + $0xc2] sm:$0xff]  ;;  %1645 = vst.msk [vmem:[#allocation3 + $0x1b0] sm:$0xff] %vm1450_vm4, %v1573_v38  ;;  %v1377_v51 = vmax.f32 %v1273_v44, 0.0 }
 0x12b   : > { %4524 = vst.msk [vmem:[#allocation3 + $0x130] sm:$0xff] %vm1450_vm4, %v7844_v27  ;;  %v3014_v39 = vld [vmem:[#allocation2 + $0xc1] sm:$0xff]  ;;  %v6900_v50 = vpop.f32.mrb[32].mxu0  ;;  %v1376_v57 = vmax.f32 %v1272_v47, 0.0 }
 0x12c   : > { %v4616_v25 = vld [vmem:[#allocation3 + $0x100] sm:$0xff]  ;;  %v7853_v28 = vld [vmem:[#allocation2 + $0xca] sm:$0xff]  ;;  %v7855_v18 = vld [vmem:[#allocation2 + $0xd2] sm:$0xff]  ;;  %3086 = vst.msk [vmem:[#allocation3 + $0x170] sm:$0xff] %vm1450_vm4, %v3014_v39  ;;  %v1275_v53 = vadd.f32 %v6900_v50, %v7521_v56  ;;  %v876_v58 = vpop.f32.mrb[33].mxu0 }
 0x12d   : > { %v4619_v26 = vld [vmem:[#allocation3 + $0x118] sm:$0xff]  ;;  %2716 = vrot.lane.b32.xlu1 %v7636_v21, %s7224_s30  ;;  %1859 = vrot.lane.b32.xlu0 %v7663_v33, %s7222_s14  ;;  %4525 = vst.msk [vmem:[#allocation3 + $0x148] sm:$0xff] %vm1450_vm4, %v7853_v28  ;;  %4526 = vst.msk [vmem:[#allocation3 + $0x160] sm:$0xff] %vm1450_vm4, %v7855_v18  ;;  %v1271_v21 = vadd.f32 %v6894_v29, %v7521_v56  ;;  %v3015_v7 = vld [vmem:[#allocation2 + $0xc9] sm:$0xff]  ;;  %v1274_v59 = vadd.f32 %v7521_v56, %v876_v58 }
 0x12e   : > { %7029 = vmatprep.mubr.msk.f32.mxu0 %vm1450_vm4, %v4616_v25  ;;  %3087 = vst.msk [vmem:[#allocation3 + $0x188] sm:$0xff] %vm1450_vm4, %v3015_v7  ;;  %1482 = vst.msk [vmem:[#allocation2 + $0xf8] sm:$0xff] %vm1450_vm4, %v1377_v51  ;;  %v1379_v61 = vmax.f32 %v1275_v53, 0.0  ;;  %v3580_v38 = vld [vmem:[#allocation2 + $0x68] sm:$0xff]  ;;  %v3016_v7 = vld [vmem:[#allocation2 + $0xd1] sm:$0xff] }
 0x12f   : > { %7030 = vmatmul.mubr.msk.f32.gmra.mrb[114].mxu0 %vm1450_vm4, %v4619_v26  ;;  %v1375_v41 = vmax.f32 %v1271_v21, 0.0  ;;  %v6903_v60 = vpop.f32.mrb[34].mxu0  ;;  %1481 = vst.msk [vmem:[#allocation2 + $0xf0] sm:$0xff] %vm1450_vm4, %v1376_v57  ;;  %v1378_v3 = vmax.f32 %v1274_v59, 0.0  ;;  %3088 = vst.msk [vmem:[#allocation3 + $0x1a0] sm:$0xff] %vm1450_vm4, %v3016_v7 }
 0x130   : > { %v1277_v62 = vadd.f32 %v6903_v60, %v7521_v56  ;;  %v886_v1 = vpop.f32.mrb[35].mxu0  ;;  %1484 = vst.msk [vmem:[#allocation2 + $0x108] sm:$0xff] %vm1450_vm4, %v1379_v61 }
 0x131   : > { %2292 = vrot.lane.b32.xlu0 %v7661_v32, %s7223_s21  ;;  %1857 = vrot.lane.b32.xlu1 %v7673_v36, %s7222_s14  ;;  %1480 = vst.msk [vmem:[#allocation2 + $0xe8] sm:$0xff] %vm1450_vm4, %v1375_v41  ;;  %v1276_v5 = vadd.f32 %v7521_v56, %v886_v1  ;;  %1483 = vst.msk [vmem:[#allocation2 + $0x100] sm:$0xff] %vm1450_vm4, %v1378_v3  ;;  %v1575_v41 = vld [vmem:[#allocation2 + $0xd0] sm:$0xff] }
 0x132   : > { %v4622_v2 = vld [vmem:[#allocation3 + $0x130] sm:$0xff]  ;;  %1647 = vst.msk [vmem:[#allocation3 + $0x1e0] sm:$0xff] %vm1450_vm4, %v1575_v41 }
 0x133   : > { %7032 = vmatprep.mubr.msk.f32.mxu0 %vm1450_vm4, %v4622_v2  ;;  %v6906_v6 = vpop.f32.mrb[36].mxu0  ;;  %v1380_v10 = vmax.f32 %v1276_v5, 0.0 }
 0x134   : > { %v4625_v4 = vld [vmem:[#allocation3 + $0x148] sm:$0xff]  ;;  %v1279_v8 = vadd.f32 %v6906_v6, %v7521_v56  ;;  %v896_v9 = vpop.f32.mrb[37].mxu0  ;;  %v4628_v5 = vld [vmem:[#allocation3 + $0x160] sm:$0xff] }
 0x135   : > { %4154 = vrot.lane.b32.xlu0 %v7673_v36, %s7224_s30  ;;  %2290 = vrot.lane.b32.xlu1 %v7659_v31, %s7223_s21  ;;  %v1381_v36 = vmax.f32 %v1277_v62, 0.0  ;;  %v1278_v11 = vadd.f32 %v7521_v56, %v896_v9  ;;  %1485 = vst.msk [vmem:[#allocation2 + $0x110] sm:$0xff] %vm1450_vm4, %v1380_v10 }
 0x136   : > { %7033 = vmatmul.mubr.msk.f32.gmra.mrb[116].mxu0 %vm1450_vm4, %v4625_v4  ;;  %v1383_v54 = vmax.f32 %v1279_v8, 0.0  ;;  %v7913_v34 = vld [vmem:[#allocation2 + $0xf2] sm:$0xff] }
 0x137   : > { %v6909_v16 = vpop.f32.mrb[38].mxu0  ;;  %1486 = vst.msk [vmem:[#allocation2 + $0x118] sm:$0xff] %vm1450_vm4, %v1381_v36  ;;  %v1382_v13 = vmax.f32 %v1278_v11, 0.0  ;;  %4529 = vst.msk [vmem:[#allocation3 + $0x1a8] sm:$0xff] %vm1450_vm4, %v7913_v34  ;;  %7035 = vmatprep.mubr.msk.f32.mxu0 %vm1450_vm4, %v4628_v5 }
 0x138   : > { %v1281_v17 = vadd.f32 %v6909_v16, %v7521_v56  ;;  %v906_v23 = vpop.f32.mrb[39].mxu0  ;;  %v7900_v24 = vld [vmem:[#allocation2 + $0xe2] sm:$0xff]  ;;  %1488 = vst.msk [vmem:[#allocation2 + $0x128] sm:$0xff] %vm1450_vm4, %v1383_v54  ;;  %v7911_v30 = vld [vmem:[#allocation2 + $0xea] sm:$0xff] }
 0x139   : > { %4156 = vrot.lane.b32.xlu0 %v7663_v33, %s7224_s30  ;;  %3724 = vrot.lane.b32.xlu1 %v7676_v37, %s7223_s21  ;;  %v1280_v20 = vadd.f32 %v7521_v56, %v906_v23  ;;  %4527 = vst.msk [vmem:[#allocation3 + $0x178] sm:$0xff] %vm1450_vm4, %v7900_v24  ;;  %1487 = vst.msk [vmem:[#allocation2 + $0x120] sm:$0xff] %vm1450_vm4, %v1382_v13  ;;  %v4458_v39 = vld [vmem:[#allocation2 + $0x102] sm:$0xff] }
 0x13a   : > { %v1385_v25 = vmax.f32 %v1281_v17, 0.0  ;;  %4528 = vst.msk [vmem:[#allocation3 + $0x190] sm:$0xff] %vm1450_vm4, %v7911_v30  ;;  %4530 = vst.msk [vmem:[#allocation3 + $0x1c0] sm:$0xff] %vm1450_vm4, %v4458_v39  ;;  %v1709_v16 = vld [vmem:[#allocation2 + $0x69] sm:$0xff] }
 0x13b   : > { %v6912_v33 = vpop.f32.mrb[40].mxu0  ;;  %v1384_v26 = vmax.f32 %v1280_v20, 0.0  ;;  %v7976_v39 = vld [vmem:[#allocation2 + $0xe8] sm:$0xff] }
 0x13c   : > { %v1283_v29 = vadd.f32 %v6912_v33, %v7521_v56  ;;  %v916_v21 = vpop.f32.mrb[41].mxu0  ;;  %1490 = vst.msk [vmem:[#allocation2 + $0x138] sm:$0xff] %vm1450_vm4, %v1385_v25  ;;  %v4459_v46 = vld [vmem:[#allocation2 + $0x10a] sm:$0xff]  ;;  %1649 = vst.msk [vmem:[#allocation3 + $0x210] sm:$0xff] %vm1450_vm4, %v7976_v39 }
 0x13d   : > { %3295 = vrot.lane.b32.xlu0 %v7659_v31, %s7222_s14  ;;  %2720 = vrot.lane.b32.xlu1 %v7676_v37, %s7224_s30  ;;  %v1282_v35 = vadd.f32 %v7521_v56, %v916_v21  ;;  %1489 = vst.msk [vmem:[#allocation2 + $0x130] sm:$0xff] %vm1450_vm4, %v1384_v26  ;;  %4531 = vst.msk [vmem:[#allocation3 + $0x1d8] sm:$0xff] %vm1450_vm4, %v4459_v46  ;;  %v3018_v41 = vld [vmem:[#allocation2 + $0xe9] sm:$0xff] }
 0x13e   : > { %v1387_v31 = vmax.f32 %v1283_v29, 0.0  ;;  %v4460_v47 = vld [vmem:[#allocation2 + $0x112] sm:$0xff]  ;;  %3090 = vst.msk [vmem:[#allocation3 + $0x1d0] sm:$0xff] %vm1450_vm4, %v3018_v41  ;;  %v3583_v41 = vld [vmem:[#allocation2 + $0x88] sm:$0xff] }
 0x13f   : > { %v1386_v37 = vmax.f32 %v1282_v35, 0.0  ;;  %v6915_v40 = vpop.f32.mrb[42].mxu0  ;;  %4532 = vst.msk [vmem:[#allocation3 + $0x1f0] sm:$0xff] %vm1450_vm4, %v4460_v47  ;;  %v7972_v35 = vld [vmem:[#allocation2 + $0xe0] sm:$0xff] }
 0x140   : > { %1492 = vst.msk [vmem:[#allocation2 + $0x148] sm:$0xff] %vm1450_vm4, %v1387_v31  ;;  %v1285_v44 = vadd.f32 %v6915_v40, %v7521_v56  ;;  %v926_v45 = vpop.f32.mrb[43].mxu0  ;;  %v4461_v53 = vld [vmem:[#allocation2 + $0x122] sm:$0xff]  ;;  %1648 = vst.msk [vmem:[#allocation3 + $0x1f8] sm:$0xff] %vm1450_vm4, %v7972_v35 }
 0x141   : > { %3297 = vrot.lane.b32.xlu0 %v7661_v32, %s7222_s14  ;;  %3728 = vrot.lane.b32.xlu1 %v3580_v38, %s7223_s21  ;;  %1491 = vst.msk [vmem:[#allocation2 + $0x140] sm:$0xff] %vm1450_vm4, %v1386_v37  ;;  %v1284_v50 = vadd.f32 %v7521_v56, %v926_v45  ;;  %4533 = vst.msk [vmem:[#allocation3 + $0x208] sm:$0xff] %vm1450_vm4, %v4461_v53  ;;  %v3017_v31 = vld [vmem:[#allocation2 + $0xe1] sm:$0xff] }
 0x142   : > { %v1389_v51 = vmax.f32 %v1285_v44, 0.0  ;;  %3089 = vst.msk [vmem:[#allocation3 + $0x1b8] sm:$0xff] %vm1450_vm4, %v3017_v31  ;;  %v4637_v31 = vld [vmem:[#allocation3 + $0x1a8] sm:$0xff] }
 0x143   : > { %v1388_v58 = vmax.f32 %v1284_v50, 0.0  ;;  %v6918_v57 = vpop.f32.mrb[44].mxu0 }
 0x144   : > { %1494 = vst.msk [vmem:[#allocation2 + $0x158] sm:$0xff] %vm1450_vm4, %v1389_v51  ;;  %v1287_v32 = vadd.f32 %v6918_v57, %v7521_v56  ;;  %v936_v59 = vpop.f32.mrb[45].mxu0  ;;  %v4462_v60 = vld [vmem:[#allocation2 + $0x12a] sm:$0xff]  ;;  %v4463_v61 = vld [vmem:[#allocation2 + $0x132] sm:$0xff] }
 0x145   : > { %2724 = vrot.lane.b32.xlu1 %v3580_v38, %s7224_s30  ;;  %4158 = vrot.lane.b32.xlu0 %v7694_v49, %s7224_s30  ;;  %1493 = vst.msk [vmem:[#allocation2 + $0x150] sm:$0xff] %vm1450_vm4, %v1388_v58  ;;  %v1286_v62 = vadd.f32 %v7521_v56, %v936_v59  ;;  %4534 = vst.msk [vmem:[#allocation3 + $0x220] sm:$0xff] %vm1450_vm4, %v4462_v60  ;;  %v1710_v58 = vld [vmem:[#allocation2 + $0x71] sm:$0xff] }
 0x146   : > { %4535 = vst.msk [vmem:[#allocation3 + $0x238] sm:$0xff] %vm1450_vm4, %v4463_v61  ;;  %v1391_v1 = vmax.f32 %v1287_v32, 0.0  ;;  %v4631_v59 = vld [vmem:[#allocation3 + $0x178] sm:$0xff]  ;;  %v4634_v61 = vld [vmem:[#allocation3 + $0x190] sm:$0xff] }
 0x147   : > { %v1390_v2 = vmax.f32 %v1286_v62, 0.0  ;;  %v6921_v3 = vpop.f32.mrb[46].mxu0  ;;  %7036 = vmatmul.mubr.msk.f32.gmra.mrb[118].mxu0 %vm1450_vm4, %v4631_v59 }
 0x148   : > { %v4464_v6 = vld [vmem:[#allocation2 + $0x142] sm:$0xff]  ;;  %1496 = vst.msk [vmem:[#allocation2 + $0x168] sm:$0xff] %vm1450_vm4, %v1391_v1  ;;  %v1289_v4 = vadd.f32 %v6921_v3, %v7521_v56  ;;  %v946_v36 = vpop.f32.mrb[47].mxu0  ;;  %7038 = vmatprep.mubr.msk.f32.mxu0 %vm1450_vm4, %v4634_v61 }
 0x149   : > { %3299 = vrot.lane.b32.xlu0 %v7692_v48, %s7222_s14  ;;  %1861 = vrot.lane.b32.xlu1 %v7694_v49, %s7222_s14  ;;  %4536 = vst.msk [vmem:[#allocation3 + $0x250] sm:$0xff] %vm1450_vm4, %v4464_v6  ;;  %1495 = vst.msk [vmem:[#allocation2 + $0x160] sm:$0xff] %vm1450_vm4, %v1390_v2  ;;  %v1288_v8 = vadd.f32 %v7521_v56, %v946_v36 }
 0x14a   : > { %v1393_v9 = vmax.f32 %v1289_v4, 0.0 }
 0x14b   : > { %v1392_v10 = vmax.f32 %v1288_v8, 0.0  ;;  %v6924_v11 = vpop.f32.mrb[48].mxu0  ;;  %7039 = vmatmul.mubr.msk.f32.gmra.mrb[120].mxu0 %vm1450_vm4, %v4637_v31 }
 0x14c   : > { %v4465_v54 = vld [vmem:[#allocation2 + $0x14a] sm:$0xff]  ;;  %v4466_v17 = vld [vmem:[#allocation2 + $0x152] sm:$0xff]  ;;  %1498 = vst.msk [vmem:[#allocation2 + $0x178] sm:$0xff] %vm1450_vm4, %v1393_v9  ;;  %v1291_v23 = vadd.f32 %v6924_v11, %v7521_v56  ;;  %v956_v13 = vpop.f32.mrb[49].mxu0 }
 0x14d   : > { %2294 = vrot.lane.b32.xlu1 %v7692_v48, %s7223_s21  ;;  %1863 = vrot.lane.b32.xlu0 %v1709_v16, %s7222_s14  ;;  %4537 = vst.msk [vmem:[#allocation3 + $0x268] sm:$0xff] %vm1450_vm4, %v4465_v54  ;;  %4538 = vst.msk [vmem:[#allocation3 + $0x280] sm:$0xff] %vm1450_vm4, %v4466_v17  ;;  %v1290_v49 = vadd.f32 %v7521_v56, %v956_v13  ;;  %v8015_v11 = vld [vmem:[#allocation2 + $0xf0] sm:$0xff] }
 0x14e   : > { %1497 = vst.msk [vmem:[#allocation2 + $0x170] sm:$0xff] %vm1450_vm4, %v1392_v10  ;;  %v1395_v20 = vmax.f32 %v1291_v23, 0.0  ;;  %1650 = vst.msk [vmem:[#allocation3 + $0x228] sm:$0xff] %vm1450_vm4, %v8015_v11  ;;  %v3019_v23 = vld [vmem:[#allocation2 + $0xf1] sm:$0xff] }
 0x14f   : > { %v1394_v25 = vmax.f32 %v1290_v49, 0.0  ;;  %v6927_v33 = vpop.f32.mrb[50].mxu0  ;;  %3091 = vst.msk [vmem:[#allocation3 + $0x1e8] sm:$0xff] %vm1450_vm4, %v3019_v23  ;;  %v1711_v49 = vld [vmem:[#allocation2 + $0x81] sm:$0xff] }
 0x150   : > { %v4467_v26 = vld [vmem:[#allocation2 + $0x162] sm:$0xff]  ;;  %1500 = vst.msk [vmem:[#allocation2 + $0x188] sm:$0xff] %vm1450_vm4, %v1395_v20  ;;  %v1293_v29 = vadd.f32 %v6927_v33, %v7521_v56  ;;  %v966_v21 = vpop.f32.mrb[51].mxu0 }
 0x151   : > { %3726 = vrot.lane.b32.xlu1 %v7704_v52, %s7223_s21  ;;  %2296 = vrot.lane.b32.xlu0 %v7720_v63, %s7223_s21  ;;  %4539 = vst.msk [vmem:[#allocation3 + $0x298] sm:$0xff] %vm1450_vm4, %v4467_v26  ;;  %1499 = vst.msk [vmem:[#allocation2 + $0x180] sm:$0xff] %vm1450_vm4, %v1394_v25  ;;  %v1292_v48 = vadd.f32 %v7521_v56, %v966_v21  ;;  %v7985_v56 = vld [vmem:[%s10086_s2] ss:$0 sm:$0xff] }
 0x152   : > { %v1397_v38 = vmax.f32 %v1293_v29, 0.0 }
 0x153   : > { %v1396_v37 = vmax.f32 %v1292_v48, 0.0  ;;  %v6930_v40 = vpop.f32.mrb[52].mxu0 }
 0x154   : > { %1502 = vst.msk [vmem:[#allocation2 + $0x198] sm:$0xff] %vm1450_vm4, %v1397_v38  ;;  %v1295_v7 = vadd.f32 %v7985_v56, %v6930_v40  ;;  %v976_v46 = vpop.f32.mrb[53].mxu0 }
 0x155   : > { %v4468_v44 = vld [vmem:[#allocation2 + $0x16a] sm:$0xff]  ;;  %v4469_v45 = vld [vmem:[#allocation2 + $0x172] sm:$0xff]  ;;  %2722 = vrot.lane.b32.xlu1 %v7704_v52, %s7224_s30  ;;  %4160 = vrot.lane.b32.xlu0 %v1709_v16, %s7224_s30  ;;  %1501 = vst.msk [vmem:[#allocation2 + $0x190] sm:$0xff] %vm1450_vm4, %v1396_v37  ;;  %v1294_v47 = vadd.f32 %v7985_v56, %v976_v46 }
 0x156   : > { %4540 = vst.msk [vmem:[#allocation3 + $0x2b0] sm:$0xff] %vm1450_vm4, %v4468_v44  ;;  %4541 = vst.msk [vmem:[#allocation3 + $0x2c8] sm:$0xff] %vm1450_vm4, %v4469_v45  ;;  %v1399_v50 = vmax.f32 %v1295_v7, 0.0  ;;  %v3581_v16 = vld [vmem:[#allocation2 + $0x70] sm:$0xff] }
 0x157   : > { %v1398_v51 = vmax.f32 %v1294_v47, 0.0  ;;  %v6933_v53 = vpop.f32.mrb[54].mxu0 }
 0x158   : > { %v4470_v57 = vld [vmem:[#allocation2 + $0x182] sm:$0xff]  ;;  %1504 = vst.msk [vmem:[#allocation2 + $0x1a8] sm:$0xff] %vm1450_vm4, %v1399_v50  ;;  %v1297_v32 = vadd.f32 %v7985_v56, %v6933_v53  ;;  %v986_v52 = vpop.f32.mrb[55].mxu0 }
 0x159   : > { %1865 = vrot.lane.b32.xlu1 %v1710_v58, %s7222_s14  ;;  %4162 = vrot.lane.b32.xlu0 %v1710_v58, %s7224_s30  ;;  %4542 = vst.msk [vmem:[#allocation3 + $0x2e0] sm:$0xff] %vm1450_vm4, %v4470_v57  ;;  %1503 = vst.msk [vmem:[#allocation2 + $0x1a0] sm:$0xff] %vm1450_vm4, %v1398_v51  ;;  %v1296_v60 = vadd.f32 %v7985_v56, %v986_v52 }
 0x15a   : > { %v1401_v62 = vmax.f32 %v1297_v32, 0.0 }
 0x15b   : > { %v1400_v1 = vmax.f32 %v1296_v60, 0.0  ;;  %v6936_v2 = vpop.f32.mrb[56].mxu0 }
 0x15c   : > { %v4471_v3 = vld [vmem:[#allocation2 + $0x18a] sm:$0xff]  ;;  %v4472_v5 = vld [vmem:[#allocation2 + $0x192] sm:$0xff]  ;;  %1506 = vst.msk [vmem:[#allocation2 + $0x1b8] sm:$0xff] %vm1450_vm4, %v1401_v62  ;;  %v1299_v6 = vadd.f32 %v7985_v56, %v6936_v2  ;;  %v996_v4 = vpop.f32.mrb[57].mxu0  ;;  %v8054_v2 = vld [vmem:[#allocation2 + $0x100] sm:$0xff] }
 0x15d   : > { %2298 = vrot.lane.b32.xlu1 %v7722_v0, %s7223_s21  ;;  %3301 = vrot.lane.b32.xlu0 %v7720_v63, %s7222_s14  ;;  %4543 = vst.msk [vmem:[#allocation3 + $0x2f8] sm:$0xff] %vm1450_vm4, %v4471_v3  ;;  %4544 = vst.msk [vmem:[#allocation3 + $0x310] sm:$0xff] %vm1450_vm4, %v4472_v5  ;;  %v1298_v36 = vadd.f32 %v7985_v56, %v996_v4  ;;  %v3582_v3 = vld [vmem:[#allocation2 + $0x80] sm:$0xff]  ;;  %v8061_v4 = vld [vmem:[#allocation2 + $0x108] sm:$0xff] }
 0x15e   : > { %1505 = vst.msk [vmem:[#allocation2 + $0x1b0] sm:$0xff] %vm1450_vm4, %v1400_v1  ;;  %v1403_v8 = vmax.f32 %v1299_v6, 0.0  ;;  %1651 = vst.msk [vmem:[#allocation3 + $0x240] sm:$0xff] %vm1450_vm4, %v8054_v2 }
 0x15f   : > { %v1402_v9 = vmax.f32 %v1298_v36, 0.0  ;;  %v6939_v10 = vpop.f32.mrb[58].mxu0  ;;  %1652 = vst.msk [vmem:[#allocation3 + $0x258] sm:$0xff] %vm1450_vm4, %v8061_v4 }
 0x160   : > { %v4473_v54 = vld [vmem:[#allocation2 + $0x1a2] sm:$0xff]  ;;  %1508 = vst.msk [vmem:[#allocation2 + $0x1c8] sm:$0xff] %vm1450_vm4, %v1403_v8  ;;  %v1301_v17 = vadd.f32 %v7985_v56, %v6939_v10  ;;  %v1006_v63 = vpop.f32.mrb[59].mxu0  ;;  %v8073_v10 = vld [vmem:[#allocation2 + $0x91] sm:$0xff] }
 0x161   : > { %3730 = vrot.lane.b32.xlu1 %v3581_v16, %s7223_s21  ;;  %3303 = vrot.lane.b32.xlu0 %v7722_v0, %s7222_s14  ;;  %4545 = vst.msk [vmem:[#allocation3 + $0x328] sm:$0xff] %vm1450_vm4, %v4473_v54  ;;  %1507 = vst.msk [vmem:[#allocation2 + $0x1c0] sm:$0xff] %vm1450_vm4, %v1402_v9  ;;  %v1300_v13 = vadd.f32 %v7985_v56, %v1006_v63  ;;  %v8071_v9 = vld [vmem:[#allocation2 + $0x109] sm:$0xff]  ;;  %v3020_v54 = vld [vmem:[#allocation2 + $0x101] sm:$0xff] }
 0x162   : > { %v1405_v20 = vmax.f32 %v1301_v17, 0.0  ;;  %3093 = vst.msk [vmem:[#allocation3 + $0x218] sm:$0xff] %vm1450_vm4, %v8071_v9  ;;  %3092 = vst.msk [vmem:[#allocation3 + $0x200] sm:$0xff] %vm1450_vm4, %v3020_v54  ;;  %v3584_v54 = vld [vmem:[#allocation2 + $0x90] sm:$0xff] }
 0x163   : > { %v1404_v25 = vmax.f32 %v1300_v13, 0.0  ;;  %v6942_v33 = vpop.f32.mrb[60].mxu0 }
 0x164   : > { %1510 = vst.msk [vmem:[#allocation2 + $0x1d8] sm:$0xff] %vm1450_vm4, %v1405_v20  ;;  %v1303_v21 = vadd.f32 %v7985_v56, %v6942_v33  ;;  %v1016_v48 = vpop.f32.mrb[61].mxu0 }
 0x165   : > { %v4474_v26 = vld [vmem:[#allocation2 + $0x1aa] sm:$0xff]  ;;  %v4475_v29 = vld [vmem:[#allocation2 + $0x1b2] sm:$0xff]  ;;  %2726 = vrot.lane.b32.xlu1 %v3581_v16, %s7224_s30  ;;  %1867 = vrot.lane.b32.xlu0 %v1711_v49, %s7222_s14  ;;  %1509 = vst.msk [vmem:[#allocation2 + $0x1d0] sm:$0xff] %vm1450_vm4, %v1404_v25  ;;  %v1302_v0 = vadd.f32 %v7985_v56, %v1016_v48 }
 0x166   : > { %4546 = vst.msk [vmem:[#allocation3 + $0x340] sm:$0xff] %vm1450_vm4, %v4474_v26  ;;  %4547 = vst.msk [vmem:[#allocation3 + $0x358] sm:$0xff] %vm1450_vm4, %v4475_v29  ;;  %v1407_v38 = vmax.f32 %v1303_v21, 0.0  ;;  %v4640_v26 = vld [vmem:[#allocation3 + $0x1c0] sm:$0xff]  ;;  %v8088_v29 = vld [vmem:[#allocation2 + $0x110] sm:$0xff] }
 0x167   : > { %v1406_v37 = vmax.f32 %v1302_v0, 0.0  ;;  %v6945_v40 = vpop.f32.mrb[62].mxu0  ;;  %7041 = vmatprep.mubr.msk.f32.mxu0 %vm1450_vm4, %v4640_v26  ;;  %v4643_v48 = vld [vmem:[#allocation3 + $0x1d8] sm:$0xff]  ;;  %1653 = vst.msk [vmem:[#allocation3 + $0x270] sm:$0xff] %vm1450_vm4, %v8088_v29  ;;  %v4649_v26 = vld [vmem:[#allocation3 + $0x208] sm:$0xff] }
 0x168   : > { %v4476_v44 = vld [vmem:[#allocation2 + $0x1c2] sm:$0xff]  ;;  %1512 = vst.msk [vmem:[#allocation2 + $0x1e8] sm:$0xff] %vm1450_vm4, %v1407_v38  ;;  %v1305_v45 = vadd.f32 %v7985_v56, %v6945_v40  ;;  %v1026_v7 = vpop.f32.mrb[63].mxu0  ;;  %v8095_v0 = vld [vmem:[#allocation2 + $0x111] sm:$0xff]  ;;  %7042 = vmatmul.mubr.msk.f32.gmra.mrb[122].mxu0 %vm1450_vm4, %v4643_v48 }
 0x169   : > { %3734 = vrot.lane.b32.xlu1 %v3583_v41, %s7223_s21  ;;  %2300 = vrot.lane.b32.xlu0 %v7744_v22, %s7223_s21  ;;  %4548 = vst.msk [vmem:[#allocation3 + $0x370] sm:$0xff] %vm1450_vm4, %v4476_v44  ;;  %1511 = vst.msk [vmem:[#allocation2 + $0x1e0] sm:$0xff] %vm1450_vm4, %v1406_v37  ;;  %v1304_v46 = vadd.f32 %v7985_v56, %v1026_v7  ;;  %v1712_v40 = vld [vmem:[#allocation2 + $0x89] sm:$0xff]  ;;  %v4652_v48 = vld [vmem:[#allocation3 + $0x220] sm:$0xff] }
 0x16a   : > { %v1409_v47 = vmax.f32 %v1305_v45, 0.0  ;;  %3094 = vst.msk [vmem:[#allocation3 + $0x230] sm:$0xff] %vm1450_vm4, %v8095_v0 }
 0x16b   : > { %v1844_v50 = vpop.permute.xlu0 %1843  ;;  %v1408_v51 = vmax.f32 %v1304_v46, 0.0  ;;  %v6948_v53 = vpop.f32.mrb[64].mxu0 }
 0x16c   : > { %2060 = vst.msk [vmem:[#allocation3] sm:$0xff] %vm2059_vm5, %v1844_v50  ;;  %v4477_v58 = vld [vmem:[#allocation2 + $0x1ca] sm:$0xff]  ;;  %v4478_v57 = vld [vmem:[#allocation2 + $0x1d2] sm:$0xff]  ;;  %v1307_v32 = vadd.f32 %v7985_v56, %v6948_v53  ;;  %v1036_v52 = vpop.f32.mrb[65].mxu0 }
 0x16d   : > { %1514 = vst.msk [vmem:[#allocation2 + $0x1f8] sm:$0xff] %vm1450_vm4, %v1409_v47  ;;  %2730 = vrot.lane.b32.xlu1 %v3583_v41, %s7224_s30  ;;  %4164 = vrot.lane.b32.xlu0 %v1711_v49, %s7224_s30  ;;  %4549 = vst.msk [vmem:[#allocation3 + $0x388] sm:$0xff] %vm1450_vm4, %v4477_v58  ;;  %v1306_v59 = vadd.f32 %v7985_v56, %v1036_v52 }
 0x16e   : > { %4550 = vst.msk [vmem:[#allocation3 + $0x3a0] sm:$0xff] %vm1450_vm4, %v4478_v57  ;;  %1513 = vst.msk [vmem:[#allocation2 + $0x1f0] sm:$0xff] %vm1450_vm4, %v1408_v51  ;;  %v1411_v60 = vmax.f32 %v1307_v32, 0.0  ;;  %v4646_v32 = vld [vmem:[#allocation3 + $0x1f0] sm:$0xff] }
 0x16f   : > { %v2277_v61 = vpop.permute.xlu0 %2276  ;;  %v1848_v62 = vpop.permute.xlu1 %1847  ;;  %v1410_v1 = vmax.f32 %v1306_v59, 0.0  ;;  %7044 = vmatprep.mubr.msk.f32.mxu0 %vm1450_vm4, %v4646_v32  ;;  %v8176_v32 = vld [vmem:[#allocation2 + $0x140] sm:$0xff] }
 0x170   : > { %2493 = vst.msk [vmem:[#allocation3] sm:$0xff] %vm2492_vm6, %v2277_v61  ;;  %v4479_v5 = vld [vmem:[#allocation2 + $0x1e2] sm:$0xff]  ;;  %v6951_v6 = vpop.f32.mrb[66].mxu0  ;;  %7045 = vmatmul.mubr.msk.f32.gmra.mrb[124].mxu0 %vm1450_vm4, %v4649_v26 }
 0x171   : > { %2062 = vst.msk [vmem:[#allocation3 + $0x30] sm:$0xff] %vm2059_vm5, %v1848_v62  ;;  %3732 = vrot.lane.b32.xlu1 %v3582_v3, %s7223_s21  ;;  %3305 = vrot.lane.b32.xlu0 %v7744_v22, %s7222_s14  ;;  %v1309_v36 = vadd.f32 %v7985_v56, %v6951_v6  ;;  %v1046_v8 = vpop.f32.mrb[67].mxu0 }
 0x172   : > { %1516 = vst.msk [vmem:[#allocation2 + $0x208] sm:$0xff] %vm1450_vm4, %v1411_v60  ;;  %4551 = vst.msk [vmem:[#allocation3 + $0x3b8] sm:$0xff] %vm1450_vm4, %v4479_v5  ;;  %v1308_v16 = vadd.f32 %v7985_v56, %v1046_v8  ;;  %v8130_v8 = vld [vmem:[#allocation2 + $0x121] sm:$0xff]  ;;  %7047 = vmatprep.mubr.msk.f32.mxu0 %vm1450_vm4, %v4652_v48 }
 0x173   : > { %1515 = vst.msk [vmem:[#allocation2 + $0x200] sm:$0xff] %vm1450_vm4, %v1410_v1  ;;  %v2279_v22 = vpop.permute.xlu1 %2278  ;;  %v1846_v17 = vpop.permute.xlu0 %1845  ;;  %v1413_v63 = vmax.f32 %v1309_v36, 0.0  ;;  %v8122_v1 = vld [vmem:[#allocation2 + $0x120] sm:$0xff]  ;;  %3095 = vst.msk [vmem:[#allocation3 + $0x248] sm:$0xff] %vm1450_vm4, %v8130_v8  ;;  %v4661_v48 = vld [vmem:[#allocation3 + $0x268] sm:$0xff] }
 0x174   : > { %2061 = vst.msk [vmem:[#allocation3 + $0x18] sm:$0xff] %vm2059_vm5, %v1846_v17  ;;  %v1412_v49 = vmax.f32 %v1308_v16, 0.0  ;;  %v6954_v20 = vpop.f32.mrb[68].mxu0  ;;  %v8132_v16 = vld [vmem:[#allocation2 + $0x129] sm:$0xff] }
 0x175   : > { %v4480_v23 = vld [vmem:[#allocation2 + $0x1ea] sm:$0xff]  ;;  %v4481_v13 = vld [vmem:[#allocation2 + $0x1f2] sm:$0xff]  ;;  %2494 = vst.msk [vmem:[#allocation3 + $0x18] sm:$0xff] %vm2492_vm6, %v2279_v22  ;;  %2728 = vrot.lane.b32.xlu1 %v3582_v3, %s7224_s30  ;;  %1871 = vrot.lane.b32.xlu0 %v8073_v10, %s7222_s14  ;;  %v1311_v25 = vadd.f32 %v7985_v56, %v6954_v20  ;;  %v1056_v33 = vpop.f32.mrb[69].mxu0 }
 0x176   : > { %4552 = vst.msk [vmem:[#allocation3 + $0x3d0] sm:$0xff] %vm1450_vm4, %v4480_v23  ;;  %4553 = vst.msk [vmem:[#allocation3 + $0x3e8] sm:$0xff] %vm1450_vm4, %v4481_v13  ;;  %v1310_v21 = vadd.f32 %v7985_v56, %v1056_v33  ;;  %v8124_v3 = vld [vmem:[#allocation2 + $0x128] sm:$0xff] }
 0x177   : > { %1518 = vst.msk [vmem:[#allocation2 + $0x218] sm:$0xff] %vm1450_vm4, %v1413_v63  ;;  %1517 = vst.msk [vmem:[#allocation2 + $0x210] sm:$0xff] %vm1450_vm4, %v1412_v49  ;;  %v2281_v38 = vpop.permute.xlu0 %2280  ;;  %v2713_v31 = vpop.permute.xlu1 %2712  ;;  %v1415_v37 = vmax.f32 %v1311_v25, 0.0 }
 0x178   : > { %2495 = vst.msk [vmem:[#allocation3 + $0x30] sm:$0xff] %vm2492_vm6, %v2281_v38  ;;  %v1414_v44 = vmax.f32 %v1310_v21, 0.0  ;;  %v6957_v45 = vpop.f32.mrb[70].mxu0  ;;  %v8151_v38 = vld [vmem:[#allocation2 + $0x130] sm:$0xff] }
 0x179   : > { %2928 = vst.msk [vmem:[#allocation3 + $0x18] sm:$0xff] %vm2926_vm7, %v2713_v31  ;;  %2304 = vrot.lane.b32.xlu0 %v7775_v43, %s7223_s21  ;;  %1869 = vrot.lane.b32.xlu1 %v1712_v40, %s7222_s14  ;;  %v1313_v7 = vadd.f32 %v7985_v56, %v6957_v45  ;;  %v1066_v46 = vpop.f32.mrb[71].mxu0  ;;  %v8153_v31 = vld [vmem:[#allocation2 + $0x131] sm:$0xff]  ;;  %v3586_v45 = vld [vmem:[#allocation2 + $0xa8] sm:$0xff] }
 0x17a   : > { %v4482_v41 = vld [vmem:[#allocation2 + $0x202] sm:$0xff]  ;;  %1520 = vst.msk [vmem:[#allocation2 + $0x228] sm:$0xff] %vm1450_vm4, %v1415_v37  ;;  %1519 = vst.msk [vmem:[#allocation2 + $0x220] sm:$0xff] %vm1450_vm4, %v1414_v44  ;;  %v1312_v47 = vadd.f32 %v7985_v56, %v1066_v46 }
 0x17b   : > { %4554 = vst.msk [vmem:[#allocation3 + $0x400] sm:$0xff] %vm1450_vm4, %v4482_v41  ;;  %v3288_v50 = vpop.permute.xlu0 %3287  ;;  %v1850_v51 = vpop.permute.xlu1 %1849  ;;  %v1417_v53 = vmax.f32 %v1313_v7, 0.0  ;;  %1654 = vst.msk [vmem:[#allocation3 + $0x288] sm:$0xff] %vm1450_vm4, %v8122_v1 }
 0x17c   : > { %3503 = vst.msk [vmem:[#allocation3 + $0x8] sm:$0xff] %vm2059_vm5, %v3288_v50  ;;  %2063 = vst.msk [vmem:[#allocation3 + $0x48] sm:$0xff] %vm2059_vm5, %v1850_v51  ;;  %v1416_v58 = vmax.f32 %v1312_v47, 0.0  ;;  %v6960_v57 = vpop.f32.mrb[72].mxu0 }
 0x17d   : > { %4166 = vrot.lane.b32.xlu0 %v1712_v40, %s7224_s30  ;;  %2302 = vrot.lane.b32.xlu1 %v7767_v42, %s7223_s21  ;;  %1522 = vst.msk [vmem:[#allocation2 + $0x238] sm:$0xff] %vm1450_vm4, %v1417_v53  ;;  %v1315_v60 = vadd.f32 %v7985_v56, %v6960_v57  ;;  %v1076_v61 = vpop.f32.mrb[73].mxu0  ;;  %1655 = vst.msk [vmem:[#allocation3 + $0x2a0] sm:$0xff] %vm1450_vm4, %v8124_v3 }
 0x17e   : > { %v4483_v52 = vld [vmem:[#allocation2 + $0x20a] sm:$0xff]  ;;  %v4484_v59 = vld [vmem:[#allocation2 + $0x212] sm:$0xff]  ;;  %1521 = vst.msk [vmem:[#allocation2 + $0x230] sm:$0xff] %vm1450_vm4, %v1416_v58  ;;  %v1314_v62 = vadd.f32 %v7985_v56, %v1076_v61  ;;  %3096 = vst.msk [vmem:[#allocation3 + $0x260] sm:$0xff] %vm1450_vm4, %v8132_v16 }
 0x17f   : > { %4555 = vst.msk [vmem:[#allocation3 + $0x418] sm:$0xff] %vm1450_vm4, %v4483_v52  ;;  %4556 = vst.msk [vmem:[#allocation3 + $0x430] sm:$0xff] %vm1450_vm4, %v4484_v59  ;;  %v2283_v5 = vpop.permute.xlu1 %2282  ;;  %v1852_v6 = vpop.permute.xlu0 %1851  ;;  %v1419_v36 = vmax.f32 %v1315_v60, 0.0  ;;  %v4655_v59 = vld [vmem:[#allocation3 + $0x238] sm:$0xff]  ;;  %v8185_v60 = vld [vmem:[#allocation2 + $0x141] sm:$0xff] }
 0x180   : > { %2496 = vst.msk [vmem:[#allocation3 + $0x48] sm:$0xff] %vm2492_vm6, %v2283_v5  ;;  %v1418_v22 = vmax.f32 %v1314_v62, 0.0  ;;  %v6963_v17 = vpop.f32.mrb[74].mxu0  ;;  %7048 = vmatmul.mubr.msk.f32.gmra.mrb[126].mxu0 %vm1450_vm4, %v4655_v59 }
 0x181   : > { %2064 = vst.msk [vmem:[#allocation3 + $0x60] sm:$0xff] %vm2059_vm5, %v1852_v6  ;;  %4168 = vrot.lane.b32.xlu0 %v8073_v10, %s7224_s30  ;;  %3736 = vrot.lane.b32.xlu1 %v3584_v54, %s7223_s21  ;;  %v4485_v63 = vld [vmem:[#allocation2 + $0x222] sm:$0xff]  ;;  %v1317_v23 = vadd.f32 %v7985_v56, %v6963_v17  ;;  %v1086_v13 = vpop.f32.mrb[75].mxu0  ;;  %v8196_v17 = vld [vmem:[#allocation2 + $0x150] sm:$0xff] }
 0x182   : > { %1524 = vst.msk [vmem:[#allocation2 + $0x248] sm:$0xff] %vm1450_vm4, %v1419_v36  ;;  %4557 = vst.msk [vmem:[#allocation3 + $0x448] sm:$0xff] %vm1450_vm4, %v4485_v63  ;;  %v1316_v49 = vadd.f32 %v7985_v56, %v1086_v13  ;;  %v8190_v6 = vld [vmem:[#allocation2 + $0x149] sm:$0xff]  ;;  %v4017_v36 = vld [vmem:[#allocation2 + $0xa1] sm:$0xff] }
 0x183   : > { %1523 = vst.msk [vmem:[#allocation2 + $0x240] sm:$0xff] %vm1450_vm4, %v1418_v22  ;;  %v2711_v20 = vpop.permute.xlu1 %2710  ;;  %v2285_v25 = vpop.permute.xlu0 %2284  ;;  %v1421_v33 = vmax.f32 %v1317_v23, 0.0  ;;  %1656 = vst.msk [vmem:[#allocation3 + $0x2b8] sm:$0xff] %vm1450_vm4, %v8151_v38 }
 0x184   : > { %2927 = vst.msk [vmem:[#allocation3] sm:$0xff] %vm2926_vm7, %v2711_v20  ;;  %v1420_v10 = vmax.f32 %v1316_v49, 0.0  ;;  %v6966_v21 = vpop.f32.mrb[76].mxu0  ;;  %v8206_v20 = vld [vmem:[#allocation2 + $0x151] sm:$0xff] }
 0x185   : > { %2497 = vst.msk [vmem:[#allocation3 + $0x60] sm:$0xff] %vm2492_vm6, %v2285_v25  ;;  %3307 = vrot.lane.b32.xlu0 %v7767_v42, %s7222_s14  ;;  %2732 = vrot.lane.b32.xlu1 %v3584_v54, %s7224_s30  ;;  %v4486_v37 = vld [vmem:[#allocation2 + $0x22a] sm:$0xff]  ;;  %v4487_v40 = vld [vmem:[#allocation2 + $0x232] sm:$0xff]  ;;  %v1319_v41 = vadd.f32 %v7985_v56, %v6966_v21  ;;  %v1096_v44 = vpop.f32.mrb[77].mxu0 }
 0x186   : > { %1526 = vst.msk [vmem:[#allocation2 + $0x258] sm:$0xff] %vm1450_vm4, %v1421_v33  ;;  %3097 = vst.msk [vmem:[#allocation3 + $0x278] sm:$0xff] %vm1450_vm4, %v8153_v31  ;;  %v1318_v42 = vadd.f32 %v7985_v56, %v1096_v44  ;;  %v4658_v33 = vld [vmem:[#allocation3 + $0x250] sm:$0xff] }
 0x187   : > { %4558 = vst.msk [vmem:[#allocation3 + $0x460] sm:$0xff] %vm1450_vm4, %v4486_v37  ;;  %4559 = vst.msk [vmem:[#allocation3 + $0x478] sm:$0xff] %vm1450_vm4, %v4487_v40  ;;  %v1854_v7 = vpop.permute.xlu1 %1853  ;;  %v3290_v46 = vpop.permute.xlu0 %3289  ;;  %v1423_v47 = vmax.f32 %v1319_v41, 0.0  ;;  %7050 = vmatprep.mubr.msk.f32.mxu0 %vm1450_vm4, %v4658_v33 }
 0x188   : > { %1525 = vst.msk [vmem:[#allocation2 + $0x250] sm:$0xff] %vm1450_vm4, %v1420_v10  ;;  %v1422_v50 = vmax.f32 %v1318_v42, 0.0  ;;  %v6969_v51 = vpop.f32.mrb[78].mxu0  ;;  %1657 = vst.msk [vmem:[#allocation3 + $0x2d0] sm:$0xff] %vm1450_vm4, %v8176_v32  ;;  %7051 = vmatmul.mubr.msk.f32.gmra.mrb[128].mxu0 %vm1450_vm4, %v4661_v48 }
 0x189   : > { %2065 = vst.msk [vmem:[#allocation3 + $0x78] sm:$0xff] %vm2059_vm5, %v1854_v7  ;;  %3504 = vst.msk [vmem:[#allocation3 + $0x20] sm:$0xff] %vm2059_vm5, %v3290_v46  ;;  %3309 = vrot.lane.b32.xlu0 %v7775_v43, %s7222_s14  ;;  %3740 = vrot.lane.b32.xlu1 %v3586_v45, %s7223_s21  ;;  %v1321_v58 = vadd.f32 %v7985_v56, %v6969_v51  ;;  %v1106_v57 = vpop.f32.mrb[79].mxu0  ;;  %v8183_v43 = vld [vmem:[#allocation2 + $0x148] sm:$0xff] }
 0x18a   : > { %v4488_v53 = vld [vmem:[#allocation2 + $0x242] sm:$0xff]  ;;  %1528 = vst.msk [vmem:[#allocation2 + $0x268] sm:$0xff] %vm1450_vm4, %v1423_v47  ;;  %1527 = vst.msk [vmem:[#allocation2 + $0x260] sm:$0xff] %vm1450_vm4, %v1422_v50  ;;  %v1320_v52 = vadd.f32 %v7985_v56, %v1106_v57 }
 0x18b   : > { %4560 = vst.msk [vmem:[#allocation3 + $0x490] sm:$0xff] %vm1450_vm4, %v4488_v53  ;;  %v2287_v61 = vpop.permute.xlu1 %2286  ;;  %v3292_v62 = vpop.permute.xlu0 %3291  ;;  %v1425_v5 = vmax.f32 %v1321_v58, 0.0  ;;  %1658 = vst.msk [vmem:[#allocation3 + $0x2e8] sm:$0xff] %vm1450_vm4, %v8183_v43  ;;  %v1715_v50 = vld [vmem:[#allocation2 + $0xa9] sm:$0xff]  ;;  %v4664_v58 = vld [vmem:[#allocation3 + $0x280] sm:$0xff] }
 0x18c   : > { %3098 = vst.msk [vmem:[#allocation3 + $0x290] sm:$0xff] %vm1450_vm4, %v8185_v60  ;;  %v1424_v54 = vmax.f32 %v1320_v52, 0.0  ;;  %v6972_v22 = vpop.f32.mrb[80].mxu0  ;;  %3099 = vst.msk [vmem:[#allocation3 + $0x2a8] sm:$0xff] %vm1450_vm4, %v8190_v6  ;;  %7053 = vmatprep.mubr.msk.f32.mxu0 %vm1450_vm4, %v4664_v58 }
 0x18d   : > { %2498 = vst.msk [vmem:[#allocation3 + $0x78] sm:$0xff] %vm2492_vm6, %v2287_v61  ;;  %2736 = vrot.lane.b32.xlu1 %v3586_v45, %s7224_s30  ;;  %4170 = vrot.lane.b32.xlu0 %v4017_v36, %s7224_s30  ;;  %v1323_v13 = vadd.f32 %v7985_v56, %v6972_v22  ;;  %v1116_v49 = vpop.f32.mrb[81].mxu0 }
 0x18e   : > { %3505 = vst.msk [vmem:[#allocation3 + $0x38] sm:$0xff] %vm2059_vm5, %v3292_v62  ;;  %v1322_v25 = vadd.f32 %v7985_v56, %v1116_v49 }
 0x18f   : > { %v4489_v63 = vld [vmem:[#allocation2 + $0x24a] sm:$0xff]  ;;  %v4490_v23 = vld [vmem:[#allocation2 + $0x252] sm:$0xff]  ;;  %1530 = vst.msk [vmem:[#allocation2 + $0x278] sm:$0xff] %vm1450_vm4, %v1425_v5  ;;  %1659 = vst.msk [vmem:[#allocation3 + $0x300] sm:$0xff] %vm1450_vm4, %v8196_v17  ;;  %v2715_v26 = vpop.permute.xlu1 %2714  ;;  %v1856_v10 = vpop.permute.xlu0 %1855  ;;  %v1427_v21 = vmax.f32 %v1323_v13, 0.0 }
 0x190   : > { %4561 = vst.msk [vmem:[#allocation3 + $0x4a8] sm:$0xff] %vm1450_vm4, %v4489_v63  ;;  %4562 = vst.msk [vmem:[#allocation3 + $0x4c0] sm:$0xff] %vm1450_vm4, %v4490_v23  ;;  %v1426_v37 = vmax.f32 %v1322_v25, 0.0  ;;  %v6975_v40 = vpop.f32.mrb[82].mxu0  ;;  %v8240_v5 = vld [vmem:[#allocation2 + $0x168] sm:$0xff]  ;;  %v3585_v13 = vld [vmem:[#allocation2 + $0xa0] sm:$0xff] }
 0x191   : > { %1529 = vst.msk [vmem:[#allocation2 + $0x270] sm:$0xff] %vm1450_vm4, %v1424_v54  ;;  %3100 = vst.msk [vmem:[#allocation3 + $0x2c0] sm:$0xff] %vm1450_vm4, %v8206_v20  ;;  %3311 = vrot.lane.b32.xlu0 %v7792_v55, %s7222_s14  ;;  %1873 = vrot.lane.b32.xlu1 %v4017_v36, %s7222_s14  ;;  %v4491_v41 = vld [vmem:[#allocation2 + $0x262] sm:$0xff]  ;;  %v1325_v44 = vadd.f32 %v7985_v56, %v6975_v40  ;;  %v1126_v45 = vpop.f32.mrb[83].mxu0 }
 0x192   : > { %2929 = vst.msk [vmem:[#allocation3 + $0x30] sm:$0xff] %vm2926_vm7, %v2715_v26  ;;  %v1324_v42 = vadd.f32 %v7985_v56, %v1126_v45  ;;  %v8246_v63 = vld [vmem:[#allocation2 + $0x161] sm:$0xff]  ;;  %v8248_v23 = vld [vmem:[#allocation2 + $0x169] sm:$0xff] }
 0x193   : > { %2066 = vst.msk [vmem:[#allocation3 + $0x90] sm:$0xff] %vm2059_vm5, %v1856_v10  ;;  %v3723_v7 = vpop.permute.xlu1 %3722  ;;  %v2289_v46 = vpop.permute.xlu0 %2288  ;;  %v1429_v47 = vmax.f32 %v1325_v44, 0.0 }
 0x194   : > { %1532 = vst.msk [vmem:[#allocation2 + $0x288] sm:$0xff] %vm1450_vm4, %v1427_v21  ;;  %4563 = vst.msk [vmem:[#allocation3 + $0x4d8] sm:$0xff] %vm1450_vm4, %v4491_v41  ;;  %v1428_v51 = vmax.f32 %v1324_v42, 0.0  ;;  %v6978_v53 = vpop.f32.mrb[84].mxu0  ;;  %v4667_v41 = vld [vmem:[#allocation3 + $0x298] sm:$0xff]  ;;  %v4670_v42 = vld [vmem:[#allocation3 + $0x2b0] sm:$0xff] }
 0x195   : > { %1531 = vst.msk [vmem:[#allocation2 + $0x280] sm:$0xff] %vm1450_vm4, %v1426_v37  ;;  %2306 = vrot.lane.b32.xlu1 %v7792_v55, %s7223_s21  ;;  %1875 = vrot.lane.b32.xlu0 %v1715_v50, %s7222_s14  ;;  %1534 = vst.msk [vmem:[#allocation2 + $0x298] sm:$0xff] %vm1450_vm4, %v1429_v47  ;;  %v1327_v59 = vadd.f32 %v7985_v56, %v6978_v53  ;;  %v1136_v61 = vpop.f32.mrb[85].mxu0  ;;  %v8238_v55 = vld [vmem:[#allocation2 + $0x160] sm:$0xff] }
 0x196   : > { %3937 = vst.msk [vmem:[#allocation3 + $0x20] sm:$0xff] %vm2492_vm6, %v3723_v7  ;;  %2499 = vst.msk [vmem:[#allocation3 + $0x90] sm:$0xff] %vm2492_vm6, %v2289_v46  ;;  %v1326_v62 = vadd.f32 %v7985_v56, %v1136_v61  ;;  %7054 = vmatmul.mubr.msk.f32.gmra.mrb[130].mxu0 %vm1450_vm4, %v4667_v41  ;;  %v8266_v7 = vld [vmem:[#allocation2 + $0x170] sm:$0xff] }
 0x197   : > { %1533 = vst.msk [vmem:[#allocation2 + $0x290] sm:$0xff] %vm1450_vm4, %v1428_v51  ;;  %v2719_v36 = vpop.permute.xlu1 %2718  ;;  %v4153_v54 = vpop.permute.xlu0 %4152  ;;  %v1431_v22 = vmax.f32 %v1327_v59, 0.0  ;;  %1660 = vst.msk [vmem:[#allocation3 + $0x318] sm:$0xff] %vm1450_vm4, %v8238_v55  ;;  %v8268_v46 = vld [vmem:[#allocation2 + $0x171] sm:$0xff]  ;;  %7056 = vmatprep.mubr.msk.f32.mxu0 %vm1450_vm4, %v4670_v42 }
 0x198   : > { %v4492_v57 = vld [vmem:[#allocation2 + $0x26a] sm:$0xff]  ;;  %v4493_v52 = vld [vmem:[#allocation2 + $0x272] sm:$0xff]  ;;  %1661 = vst.msk [vmem:[#allocation3 + $0x330] sm:$0xff] %vm1450_vm4, %v8240_v5  ;;  %v1430_v49 = vmax.f32 %v1326_v62, 0.0  ;;  %v6981_v25 = vpop.f32.mrb[86].mxu0  ;;  %3101 = vst.msk [vmem:[#allocation3 + $0x2d8] sm:$0xff] %vm1450_vm4, %v8246_v63 }
 0x199   : > { %4564 = vst.msk [vmem:[#allocation3 + $0x4f0] sm:$0xff] %vm1450_vm4, %v4492_v57  ;;  %4565 = vst.msk [vmem:[#allocation3 + $0x508] sm:$0xff] %vm1450_vm4, %v4493_v52  ;;  %3738 = vrot.lane.b32.xlu1 %v3585_v13, %s7223_s21  ;;  %2308 = vrot.lane.b32.xlu0 %v7817_v12, %s7223_s21  ;;  %v1329_v26 = vadd.f32 %v7985_v56, %v6981_v25  ;;  %v1146_v10 = vpop.f32.mrb[87].mxu0  ;;  %v1716_v61 = vld [vmem:[#allocation2 + $0xb1] sm:$0xff] }
 0x19a   : > { %2931 = vst.msk [vmem:[#allocation3 + $0x60] sm:$0xff] %vm2926_vm7, %v2719_v36  ;;  %v1328_v21 = vadd.f32 %v7985_v56, %v1146_v10  ;;  %v8299_v10 = vld [vmem:[#allocation2 + $0x181] sm:$0xff] }
 0x19b   : > { %3102 = vst.msk [vmem:[#allocation3 + $0x2f0] sm:$0xff] %vm1450_vm4, %v8248_v23  ;;  %1536 = vst.msk [vmem:[#allocation2 + $0x2a8] sm:$0xff] %vm1450_vm4, %v1431_v22  ;;  %v3721_v48 = vpop.permute.xlu1 %3720  ;;  %v3294_v37 = vpop.permute.xlu0 %3293  ;;  %v1433_v40 = vmax.f32 %v1329_v26, 0.0  ;;  %v8297_v26 = vld [vmem:[#allocation2 + $0x188] sm:$0xff] }
 0x19c   : > { %v4494_v33 = vld [vmem:[#allocation2 + $0x282] sm:$0xff]  ;;  %1535 = vst.msk [vmem:[#allocation2 + $0x2a0] sm:$0xff] %vm1450_vm4, %v1430_v49  ;;  %v1432_v44 = vmax.f32 %v1328_v21, 0.0  ;;  %v6984_v45 = vpop.f32.mrb[88].mxu0  ;;  %1662 = vst.msk [vmem:[#allocation3 + $0x348] sm:$0xff] %vm1450_vm4, %v8266_v7 }
 0x19d   : > { %4566 = vst.msk [vmem:[#allocation3 + $0x520] sm:$0xff] %vm1450_vm4, %v4494_v33  ;;  %2734 = vrot.lane.b32.xlu1 %v3585_v13, %s7224_s30  ;;  %4172 = vrot.lane.b32.xlu0 %v1715_v50, %s7224_s30  ;;  %1538 = vst.msk [vmem:[#allocation2 + $0x2b8] sm:$0xff] %vm1450_vm4, %v1433_v40  ;;  %v1331_v53 = vadd.f32 %v7985_v56, %v6984_v45  ;;  %v1156_v58 = vpop.f32.mrb[89].mxu0  ;;  %v8290_v49 = vld [vmem:[#allocation2 + $0x180] sm:$0xff]  ;;  %v4673_v33 = vld [vmem:[#allocation3 + $0x2c8] sm:$0xff] }
 0x19e   : > { %3936 = vst.msk [vmem:[#allocation3 + $0x8] sm:$0xff] %vm2492_vm6, %v3721_v48  ;;  %v4495_v47 = vld [vmem:[#allocation2 + $0x28a] sm:$0xff]  ;;  %v4496_v51 = vld [vmem:[#allocation2 + $0x292] sm:$0xff]  ;;  %v1330_v50 = vadd.f32 %v7985_v56, %v1156_v58  ;;  %7057 = vmatmul.mubr.msk.f32.gmra.mrb[132].mxu0 %vm1450_vm4, %v4673_v33 }
 0x19f   : > { %3506 = vst.msk [vmem:[#allocation3 + $0x50] sm:$0xff] %vm2059_vm5, %v3294_v37  ;;  %v2717_v57 = vpop.permute.xlu1 %2716  ;;  %v1860_v52 = vpop.permute.xlu0 %1859  ;;  %v1435_v59 = vmax.f32 %v1331_v53, 0.0  ;;  %v8304_v40 = vld [vmem:[#allocation2 + $0x189] sm:$0xff] }
 0x1a0   : > { %4368 = vst.msk [vmem:[#allocation3 + $0x8] sm:$0xff] %vm2926_vm7, %v4153_v54  ;;  %2930 = vst.msk [vmem:[#allocation3 + $0x48] sm:$0xff] %vm2926_vm7, %v2717_v57  ;;  %v1434_v62 = vmax.f32 %v1330_v50, 0.0  ;;  %v6987_v36 = vpop.f32.mrb[90].mxu0  ;;  %v8316_v50 = vld [vmem:[#allocation2 + $0x190] sm:$0xff] }
 0x1a1   : > { %3103 = vst.msk [vmem:[#allocation3 + $0x308] sm:$0xff] %vm1450_vm4, %v8268_v46  ;;  %4567 = vst.msk [vmem:[#allocation3 + $0x538] sm:$0xff] %vm1450_vm4, %v4495_v47  ;;  %1877 = vrot.lane.b32.xlu1 %v1716_v61, %s7222_s14  ;;  %4174 = vrot.lane.b32.xlu0 %v1716_v61, %s7224_s30  ;;  %v1333_v22 = vadd.f32 %v7985_v56, %v6987_v36  ;;  %v1166_v13 = vpop.f32.mrb[91].mxu0 }
 0x1a2   : > { %4568 = vst.msk [vmem:[#allocation3 + $0x550] sm:$0xff] %vm1450_vm4, %v4496_v51  ;;  %1537 = vst.msk [vmem:[#allocation2 + $0x2b0] sm:$0xff] %vm1450_vm4, %v1432_v44  ;;  %v1332_v25 = vadd.f32 %v7985_v56, %v1166_v13  ;;  %v4584_v44 = vld [vmem:[#allocation3] sm:$0xff] }
 0x1a3   : > { %2068 = vst.msk [vmem:[#allocation3 + $0xc0] sm:$0xff] %vm2059_vm5, %v1860_v52  ;;  %v4497_v54 = vld [vmem:[#allocation2 + $0x2a2] sm:$0xff]  ;;  %v2293_v21 = vpop.permute.xlu0 %2292  ;;  %v1858_v48 = vpop.permute.xlu1 %1857  ;;  %v1437_v37 = vmax.f32 %v1333_v22, 0.0 }
 0x1a4   : > { %1540 = vst.msk [vmem:[#allocation2 + $0x2c8] sm:$0xff] %vm1450_vm4, %v1435_v59  ;;  %4569 = vst.msk [vmem:[#allocation3 + $0x568] sm:$0xff] %vm1450_vm4, %v4497_v54  ;;  %v1436_v45 = vmax.f32 %v1332_v25, 0.0  ;;  %v6990_v42 = vpop.f32.mrb[92].mxu0  ;;  %v4676_v52 = vld [vmem:[#allocation3 + $0x2e0] sm:$0xff]  ;;  %v8326_v59 = vld [vmem:[#allocation2 + $0x191] sm:$0xff] }
 0x1a5   : > { %1539 = vst.msk [vmem:[#allocation2 + $0x2c0] sm:$0xff] %vm1450_vm4, %v1434_v62  ;;  %1663 = vst.msk [vmem:[#allocation3 + $0x360] sm:$0xff] %vm1450_vm4, %v8290_v49  ;;  %2310 = vrot.lane.b32.xlu1 %v7819_v15, %s7223_s21  ;;  %v1335_v53 = vadd.f32 %v7985_v56, %v6990_v42  ;;  %v1176_v58 = vpop.f32.mrb[93].mxu0  ;;  %3313 = vrot.lane.b32.xlu0 %v7817_v12, %s7222_s14  ;;  %v4679_v12 = vld [vmem:[#allocation3 + $0x2f8] sm:$0xff]  ;;  %v3587_v54 = vld [vmem:[#allocation2 + $0xb0] sm:$0xff] }
 0x1a6   : > { %1664 = vst.msk [vmem:[#allocation3 + $0x378] sm:$0xff] %vm1450_vm4, %v8297_v26  ;;  %3104 = vst.msk [vmem:[#allocation3 + $0x320] sm:$0xff] %vm1450_vm4, %v8299_v10  ;;  %v1334_v57 = vadd.f32 %v7985_v56, %v1176_v58  ;;  %7059 = vmatprep.mubr.msk.f32.mxu0 %vm1450_vm4, %v4676_v52  ;;  %v8361_v52 = vld [vmem:[#allocation2 + $0x1a8] sm:$0xff] }
 0x1a7   : > { %2501 = vst.msk [vmem:[#allocation3 + $0xc0] sm:$0xff] %vm2492_vm6, %v2293_v21  ;;  %v4585_v41 = vld [vmem:[#allocation3 + $0x8] sm:$0xff]  ;;  %v4155_v61 = vpop.permute.xlu0 %4154  ;;  %v2291_v62 = vpop.permute.xlu1 %2290  ;;  %v1439_v36 = vmax.f32 %v1335_v53, 0.0  ;;  %7060 = vmatmul.mubr.msk.f32.gmra.mrb[134].mxu0 %vm1450_vm4, %v4679_v12 }
 0x1a8   : > { %2067 = vst.msk [vmem:[#allocation3 + $0xa8] sm:$0xff] %vm2059_vm5, %v1858_v48  ;;  %5116 = vmatprep.mubr.f32.mxu1 %v4585_v41  ;;  %v1438_v22 = vmax.f32 %v1334_v57, 0.0  ;;  %v6993_v13 = vpop.f32.mrb[94].mxu0  ;;  %v8344_v41 = vld [vmem:[#allocation2 + $0xc1] sm:$0xff] }
 0x1a9   : > { %3105 = vst.msk [vmem:[#allocation3 + $0x338] sm:$0xff] %vm1450_vm4, %v8304_v40  ;;  %v4498_v47 = vld [vmem:[#allocation2 + $0x2aa] sm:$0xff]  ;;  %v4499_v51 = vld [vmem:[#allocation2 + $0x2b2] sm:$0xff]  ;;  %1542 = vst.msk [vmem:[#allocation2 + $0x2d8] sm:$0xff] %vm1450_vm4, %v1437_v37  ;;  %5117 = vmatmul.mubr.f32.vlgmr.msra.gmra.mrb[0].mxu1 %v4584_v44  ;;  %3742 = vrot.lane.b32.xlu1 %v3587_v54, %s7223_s21  ;;  %v1337_v33 = vadd.f32 %v7985_v56, %v6993_v13  ;;  %v1186_v21 = vpop.f32.mrb[95].mxu0 }
 0x1aa   : > { %4570 = vst.msk [vmem:[#allocation3 + $0x580] sm:$0xff] %vm1450_vm4, %v4498_v47  ;;  %4571 = vst.msk [vmem:[#allocation3 + $0x598] sm:$0xff] %vm1450_vm4, %v4499_v51  ;;  %7190 = vmatpush3.bf16.msra.mxu1 %v7428_v14  ;;  %3315 = vrot.lane.b32.xlu0 %v7819_v15, %s7222_s14  ;;  %v1336_v14 = vadd.f32 %v7985_v56, %v1186_v21  ;;  %v4682_v47 = vld [vmem:[#allocation3 + $0x310] sm:$0xff]  ;;  %v8359_v57 = vld [vmem:[#allocation2 + $0x1a0] sm:$0xff] }
 0x1ab   : > { %1541 = vst.msk [vmem:[#allocation2 + $0x2d0] sm:$0xff] %vm1450_vm4, %v1436_v45  ;;  %1665 = vst.msk [vmem:[#allocation3 + $0x390] sm:$0xff] %vm1450_vm4, %v8316_v50  ;;  %7189 = vmatprep.subr.bf16.mxu1 %v7442_v19  ;;  %v4157_v48 = vpop.permute.xlu0 %4156  ;;  %v3725_v37 = vpop.permute.xlu1 %3724  ;;  %v1441_v44 = vmax.f32 %v1337_v33, 0.0  ;;  %7062 = vmatprep.mubr.msk.f32.mxu0 %vm1450_vm4, %v4682_v47  ;;  %v4587_v13 = vld [vmem:[#allocation3 + $0x18] sm:$0xff] }
 0x1ac   : > { %3106 = vst.msk [vmem:[#allocation3 + $0x350] sm:$0xff] %vm1450_vm4, %v8326_v59  ;;  %v4500_v25 = vld [vmem:[#allocation2 + $0x2c2] sm:$0xff]  ;;  %1544 = vst.msk [vmem:[#allocation2 + $0x2e8] sm:$0xff] %vm1450_vm4, %v1439_v36  ;;  %v1440_v45 = vmax.f32 %v1336_v14, 0.0  ;;  %v6996_v42 = vpop.f32.mrb[96].mxu0 }
 0x1ad   : > { %4369 = vst.msk [vmem:[#allocation3 + $0x20] sm:$0xff] %vm2926_vm7, %v4155_v61  ;;  %2738 = vrot.lane.b32.xlu1 %v3587_v54, %s7224_s30  ;;  %v1339_v53 = vadd.f32 %v7985_v56, %v6996_v42  ;;  %v1196_v58 = vpop.f32.mrb[97].mxu0  ;;  %v8367_v54 = vld [vmem:[#allocation2 + $0x1a1] sm:$0xff] }
 0x1ae   : > { %2500 = vst.msk [vmem:[#allocation3 + $0xa8] sm:$0xff] %vm2492_vm6, %v2291_v62  ;;  %7191 = vmatpush3.bf16.msra.mxu1 %v7442_v19  ;;  %3938 = vst.msk [vmem:[#allocation3 + $0x38] sm:$0xff] %vm2492_vm6, %v3725_v37  ;;  %1879 = vrot.lane.b32.xlu0 %v8344_v41, %s7222_s14  ;;  %v1338_v19 = vadd.f32 %v7985_v56, %v1196_v58 }
 0x1af   : > { %4572 = vst.msk [vmem:[#allocation3 + $0x5b0] sm:$0xff] %vm1450_vm4, %v4500_v25  ;;  %1543 = vst.msk [vmem:[#allocation2 + $0x2e0] sm:$0xff] %vm1450_vm4, %v1438_v22  ;;  %v3296_v61 = vpop.permute.xlu0 %3295  ;;  %v2721_v62 = vpop.permute.xlu1 %2720  ;;  %v1443_v12 = vmax.f32 %v1339_v53, 0.0  ;;  %v8369_v22 = vld [vmem:[#allocation2 + $0x1a9] sm:$0xff] }
 0x1b0   : > { %4370 = vst.msk [vmem:[#allocation3 + $0x38] sm:$0xff] %vm2926_vm7, %v4157_v48  ;;  %2932 = vst.msk [vmem:[#allocation3 + $0x78] sm:$0xff] %vm2926_vm7, %v2721_v62  ;;  %v3589_v25 = vld [vmem:[#allocation2 + $0xc8] sm:$0xff]  ;;  %v1442_v33 = vmax.f32 %v1338_v19, 0.0  ;;  %v6999_v21 = vpop.f32.mrb[98].mxu0  ;;  %v8390_v62 = vld [vmem:[#allocation2 + $0x1b0] sm:$0xff] }
 0x1b1   : > { %1546 = vst.msk [vmem:[#allocation2 + $0x2f8] sm:$0xff] %vm1450_vm4, %v1441_v44  ;;  %1545 = vst.msk [vmem:[#allocation2 + $0x2f0] sm:$0xff] %vm1450_vm4, %v1440_v45  ;;  %3746 = vrot.lane.b32.xlu1 %v3589_v25, %s7223_s21  ;;  %v1341_v48 = vadd.f32 %v7985_v56, %v6999_v21  ;;  %v1206_v37 = vpop.f32.mrb[99].mxu0  ;;  %v7208_v44 = vld [vmem:[%s10086_s2] ss:$0 sm:$0xff]  ;;  %v4685_v53 = vld [vmem:[#allocation3 + $0x328] sm:$0xff] }
 0x1b2   : > { %v4501_v15 = vld [vmem:[#allocation2 + $0x2ca] sm:$0xff]  ;;  %v4502_v51 = vld [vmem:[#allocation2 + $0x2d2] sm:$0xff]  ;;  %1666 = vst.msk [vmem:[#allocation3 + $0x3a8] sm:$0xff] %vm1450_vm4, %v8359_v57  ;;  %1667 = vst.msk [vmem:[#allocation3 + $0x3c0] sm:$0xff] %vm1450_vm4, %v8361_v52  ;;  %2312 = vrot.lane.b32.xlu0 %v7844_v27, %s7223_s21  ;;  %v1340_v45 = vadd.f32 %v7208_v44, %v1206_v37  ;;  %7063 = vmatmul.mubr.msk.f32.gmra.mrb[136].mxu0 %vm1450_vm4, %v4685_v53 }
 0x1b3   : > { %4573 = vst.msk [vmem:[#allocation3 + $0x5c8] sm:$0xff] %vm1450_vm4, %v4501_v15  ;;  %4574 = vst.msk [vmem:[#allocation3 + $0x5e0] sm:$0xff] %vm1450_vm4, %v4502_v51  ;;  %v3298_v42 = vpop.permute.xlu0 %3297  ;;  %v3729_v47 = vpop.permute.xlu1 %3728  ;;  %v4590_v15 = vld [vmem:[#allocation3 + $0x30] sm:$0xff]  ;;  %v1445_v51 = vmax.f32 %v1341_v48, 0.0  ;;  %v8411_v53 = vld [vmem:[#allocation2 + $0x1c0] sm:$0xff] }
 0x1b4   : > { %v4588_v36 = vld [vmem:[#allocation3 + $0x20] sm:$0xff]  ;;  %3507 = vst.msk [vmem:[#allocation3 + $0x68] sm:$0xff] %vm2059_vm5, %v3296_v61  ;;  %3508 = vst.msk [vmem:[#allocation3 + $0x80] sm:$0xff] %vm2059_vm5, %v3298_v42  ;;  %v1444_v58 = vmax.f32 %v1340_v45, 0.0  ;;  %v7002_v19 = vpop.f32.mrb[100].mxu0  ;;  %v8396_v21 = vld [vmem:[#allocation2 + $0x1b1] sm:$0xff] }
 0x1b5   : > { %5121 = vmatprep.mubr.f32.mxu1 %v4588_v36  ;;  %3107 = vst.msk [vmem:[#allocation3 + $0x368] sm:$0xff] %vm1450_vm4, %v8367_v54  ;;  %3108 = vst.msk [vmem:[#allocation3 + $0x380] sm:$0xff] %vm1450_vm4, %v8369_v22  ;;  %v4688_v61 = vld [vmem:[#allocation3 + $0x340] sm:$0xff]  ;;  %2742 = vrot.lane.b32.xlu1 %v3589_v25, %s7224_s30 }
 0x1b6   : > { %5122 = vmatmul.mubr.f32.gmra.mrb[2].mxu1 %v4587_v13  ;;  %v4503_v14 = vld [vmem:[#allocation2 + $0x2e2] sm:$0xff]  ;;  %1548 = vst.msk [vmem:[#allocation2 + $0x308] sm:$0xff] %vm1450_vm4, %v1443_v12  ;;  %1547 = vst.msk [vmem:[#allocation2 + $0x300] sm:$0xff] %vm1450_vm4, %v1442_v33  ;;  %v1343_v13 = vadd.f32 %v7208_v44, %v7002_v19  ;;  %v1216_v33 = vpop.f32.mrb[101].mxu0  ;;  %4176 = vrot.lane.b32.xlu0 %v8344_v41, %s7224_s30 }
 0x1b7   : > { %4575 = vst.msk [vmem:[#allocation3 + $0x5f8] sm:$0xff] %vm1450_vm4, %v4503_v14  ;;  %v4591_v56 = vld [vmem:[#allocation3 + $0x38] sm:$0xff]  ;;  %1550 = vst.msk [vmem:[#allocation2 + $0x318] sm:$0xff] %vm1450_vm4, %v1445_v51  ;;  %v1342_v25 = vadd.f32 %v7208_v44, %v1216_v33  ;;  %v2725_v14 = vpop.permute.xlu1 %2724  ;;  %v8405_v48 = vpop.permute.xlu0 %4158  ;;  %7065 = vmatprep.mubr.msk.f32.mxu0 %vm1450_vm4, %v4688_v61  ;;  %v3588_v41 = vld [vmem:[#allocation2 + $0xc0] sm:$0xff] }
 0x1b8   : > { %3940 = vst.msk [vmem:[#allocation3 + $0x68] sm:$0xff] %vm2492_vm6, %v3729_v47  ;;  %5126 = vmatprep.mubr.f32.mxu1 %v4591_v56  ;;  %v4504_v36 = vld [vmem:[#allocation2 + $0x2ea] sm:$0xff]  ;;  %v4505_v12 = vld [vmem:[#allocation2 + $0x2f2] sm:$0xff]  ;;  %v1447_v37 = vmax.f32 %v1343_v13, 0.0  ;;  %v7005_v42 = vpop.f32.mrb[102].mxu0  ;;  %v8421_v61 = vld [vmem:[#allocation2 + $0x1c1] sm:$0xff] }
 0x1b9   : > { %1668 = vst.msk [vmem:[#allocation3 + $0x3d8] sm:$0xff] %vm1450_vm4, %v8390_v62  ;;  %4576 = vst.msk [vmem:[#allocation3 + $0x610] sm:$0xff] %vm1450_vm4, %v4504_v36  ;;  %v1446_v45 = vmax.f32 %v1342_v25, 0.0  ;;  %3744 = vrot.lane.b32.xlu1 %v3588_v41, %s7223_s21  ;;  %v1226_v51 = vpop.f32.mrb[103].mxu0  ;;  %v8419_v19 = vld [vmem:[#allocation2 + $0x1c8] sm:$0xff]  ;;  %v1719_v13 = vld [vmem:[#allocation2 + $0xd1] sm:$0xff] }
 0x1ba   : > { %5127 = vmatmul.mubr.f32.gmra.mrb[4].mxu1 %v4590_v15  ;;  %4577 = vst.msk [vmem:[#allocation3 + $0x628] sm:$0xff] %vm1450_vm4, %v4505_v12  ;;  %1549 = vst.msk [vmem:[#allocation2 + $0x310] sm:$0xff] %vm1450_vm4, %v1444_v58  ;;  %v1345_v15 = vadd.f32 %v7208_v44, %v7005_v42  ;;  %3317 = vrot.lane.b32.xlu0 %v7844_v27, %s7222_s14  ;;  %v1344_v56 = vadd.f32 %v7208_v44, %v1226_v51  ;;  %v4691_v58 = vld [vmem:[#allocation3 + $0x358] sm:$0xff]  ;;  %v8426_v27 = vld [vmem:[#allocation2 + $0x1c9] sm:$0xff] }
 0x1bb   : > { %3109 = vst.msk [vmem:[#allocation3 + $0x398] sm:$0xff] %vm1450_vm4, %v8396_v21  ;;  %1552 = vst.msk [vmem:[#allocation2 + $0x328] sm:$0xff] %vm1450_vm4, %v1447_v37  ;;  %v3300_v36 = vpop.permute.xlu0 %3299  ;;  %v1862_v12 = vpop.permute.xlu1 %1861  ;;  %7066 = vmatmul.mubr.msk.f32.gmra.mrb[138].mxu0 %vm1450_vm4, %v4691_v58  ;;  %v8432_v25 = vld [vmem:[#allocation2 + $0x1d0] sm:$0xff] }
 0x1bc   : > { %2934 = vst.msk [vmem:[#allocation3 + $0xa8] sm:$0xff] %vm2926_vm7, %v2725_v14  ;;  %10122 = vst [vmem:[#allocation6_spill] sm:$0xff] %v8419_v19  ;;  %v1449_v33 = vmax.f32 %v1345_v15, 0.0  ;;  %v1448_v44 = vmax.f32 %v1344_v56, 0.0  ;;  %v4694_v42 = vld [vmem:[#allocation3 + $0x370] sm:$0xff]  ;;  %v4697_v15 = vld [vmem:[#allocation3 + $0x388] sm:$0xff] }
 0x1bd   : > { %v4506_v47 = vld [vmem:[#allocation2 + $0x302] sm:$0xff]  ;;  %1551 = vst.msk [vmem:[#allocation2 + $0x320] sm:$0xff] %vm1450_vm4, %v1446_v45  ;;  %1669 = vst.msk [vmem:[#allocation3 + $0x3f0] sm:$0xff] %vm1450_vm4, %v8411_v53  ;;  %2740 = vrot.lane.b32.xlu1 %v3588_v41, %s7224_s30  ;;  %v8440_v45 = vld [vmem:[#allocation2 + $0x1d1] sm:$0xff]  ;;  %7068 = vmatprep.mubr.msk.f32.mxu0 %vm1450_vm4, %v4694_v42 }
 0x1be   : > { %4578 = vst.msk [vmem:[#allocation3 + $0x640] sm:$0xff] %vm1450_vm4, %v4506_v47  ;;  %1670 = vst.msk [vmem:[#allocation3 + $0x408] sm:$0xff] %vm1450_vm4, %v8419_v19  ;;  %1883 = vrot.lane.b32.xlu0 %v1719_v13, %s7222_s14  ;;  %v1718_v51 = vld [vmem:[#allocation2 + $0xc9] sm:$0xff] }
 0x1bf   : > { %10123 = vst [vmem:[#allocation7_spill] sm:$0xff] %v8426_v27  ;;  %3110 = vst.msk [vmem:[#allocation3 + $0x3b0] sm:$0xff] %vm1450_vm4, %v8421_v61  ;;  %v2295_v41 = vpop.permute.xlu1 %2294  ;;  %v1864_v47 = vpop.permute.xlu0 %1863  ;;  %7069 = vmatmul.mubr.msk.f32.gmra.mrb[140].mxu0 %vm1450_vm4, %v4697_v15  ;;  %v3590_v15 = vld [vmem:[#allocation2 + $0xd0] sm:$0xff] }
 0x1c0   : > { %3509 = vst.msk [vmem:[#allocation3 + $0x98] sm:$0xff] %vm2059_vm5, %v3300_v36  ;;  %2069 = vst.msk [vmem:[#allocation3 + $0xd8] sm:$0xff] %vm2059_vm5, %v1862_v12  ;;  %v4700_v12 = vld [vmem:[#allocation3 + $0x3a0] sm:$0xff] }
 0x1c1   : > { %10124 = vst [vmem:[#allocation8_spill] sm:$0xff] %v8432_v25  ;;  %3111 = vst.msk [vmem:[#allocation3 + $0x3c8] sm:$0xff] %vm1450_vm4, %v8426_v27  ;;  %v4507_v14 = vld [vmem:[#allocation2 + $0x30a] sm:$0xff]  ;;  %v4508_v37 = vld [vmem:[#allocation2 + $0x312] sm:$0xff]  ;;  %1881 = vrot.lane.b32.xlu1 %v1718_v51, %s7222_s14  ;;  %7071 = vmatprep.mubr.msk.f32.mxu0 %vm1450_vm4, %v4700_v12 }
 0x1c2   : > { %1554 = vst.msk [vmem:[#allocation2 + $0x338] sm:$0xff] %vm1450_vm4, %v1449_v33  ;;  %1671 = vst.msk [vmem:[#allocation3 + $0x420] sm:$0xff] %vm1450_vm4, %v8432_v25  ;;  %2316 = vrot.lane.b32.xlu0 %v7855_v18, %s7223_s21  ;;  %v4706_v12 = vld [vmem:[#allocation3 + $0x3d0] sm:$0xff]  ;;  %v1621_v25 = vld [vmem:[#allocation2 + $0x2c0] sm:$0xff] }
 0x1c3   : > { %10125 = vst [vmem:[#allocation9_spill] sm:$0xff] %v8440_v45  ;;  %4579 = vst.msk [vmem:[#allocation3 + $0x658] sm:$0xff] %vm1450_vm4, %v4507_v14  ;;  %v3727_v58 = vpop.permute.xlu1 %3726  ;;  %v2297_v36 = vpop.permute.xlu0 %2296  ;;  %v8466_v14 = vld [vmem:[#allocation2 + $0x1e0] sm:$0xff] }
 0x1c4   : > { %4580 = vst.msk [vmem:[#allocation3 + $0x670] sm:$0xff] %vm1450_vm4, %v4508_v37  ;;  %1553 = vst.msk [vmem:[#allocation2 + $0x330] sm:$0xff] %vm1450_vm4, %v1448_v44  ;;  %v4509_v56 = vld [vmem:[#allocation2 + $0x322] sm:$0xff] }
 0x1c5   : > { %3112 = vst.msk [vmem:[#allocation3 + $0x3e0] sm:$0xff] %vm1450_vm4, %v8440_v45  ;;  %4581 = vst.msk [vmem:[#allocation3 + $0x688] sm:$0xff] %vm1450_vm4, %v4509_v56  ;;  %2314 = vrot.lane.b32.xlu1 %v7853_v28, %s7223_s21  ;;  %v1601_v37 = vld [vmem:[#allocation2 + $0x1e8] sm:$0xff] }
 0x1c6   : > { %2502 = vst.msk [vmem:[#allocation3 + $0xd8] sm:$0xff] %vm2492_vm6, %v2295_v41  ;;  %3939 = vst.msk [vmem:[#allocation3 + $0x50] sm:$0xff] %vm2492_vm6, %v3727_v58  ;;  %4178 = vrot.lane.b32.xlu0 %v1718_v51, %s7224_s30  ;;  %v4703_v58 = vld [vmem:[#allocation3 + $0x3b8] sm:$0xff] }
 0x1c7   : > { %2070 = vst.msk [vmem:[#allocation3 + $0xf0] sm:$0xff] %vm2059_vm5, %v1864_v47  ;;  %10126 = vst [vmem:[#allocation10_spill] sm:$0xff] %v8466_v14  ;;  %v2723_v42 = vpop.permute.xlu1 %2722  ;;  %v4161_v41 = vpop.permute.xlu0 %4160  ;;  %v8473_v47 = vld [vmem:[#allocation2 + $0x1e9] sm:$0xff]  ;;  %7072 = vmatmul.mubr.msk.f32.gmra.mrb[142].mxu0 %vm1450_vm4, %v4703_v58  ;;  %v1603_v58 = vld [vmem:[#allocation2 + $0x200] sm:$0xff] }
 0x1c8   : > { %2503 = vst.msk [vmem:[#allocation3 + $0xf0] sm:$0xff] %vm2492_vm6, %v2297_v36  ;;  %10128 = vst [vmem:[#allocation12_spill] sm:$0xff] %v8473_v47  ;;  %7074 = vmatprep.mubr.msk.f32.mxu0 %vm1450_vm4, %v4706_v12  ;;  %v8501_v12 = vld [vmem:[#allocation2 + $0x201] sm:$0xff] }
 0x1c9   : > { %4371 = vst.msk [vmem:[#allocation3 + $0x50] sm:$0xff] %vm2926_vm7, %v8405_v48  ;;  %v8471_v48 = vld [vmem:[#allocation2 + $0x1e1] sm:$0xff]  ;;  %2933 = vst.msk [vmem:[#allocation3 + $0x90] sm:$0xff] %vm2926_vm7, %v2723_v42  ;;  %3748 = vrot.lane.b32.xlu1 %v3590_v15, %s7223_s21 }
 0x1ca   : > { %1672 = vst.msk [vmem:[#allocation3 + $0x438] sm:$0xff] %vm1450_vm4, %v8466_v14  ;;  %1673 = vst.msk [vmem:[#allocation3 + $0x450] sm:$0xff] %vm1450_vm4, %v1601_v37  ;;  %4180 = vrot.lane.b32.xlu0 %v1719_v13, %s7224_s30  ;;  %v8487_v37 = vld [vmem:[#allocation2 + $0x1f1] sm:$0xff]  ;;  %v3592_v13 = vld [vmem:[#allocation2 + $0xe8] sm:$0xff] }
 0x1cb   : > { %v4510_v33 = vld [vmem:[#allocation2 + $0x32a] sm:$0xff]  ;;  %v4511_v44 = vld [vmem:[#allocation2 + $0x332] sm:$0xff]  ;;  %10127 = vst [vmem:[#allocation11_spill] sm:$0xff] %v8471_v48  ;;  %4372 = vst.msk [vmem:[#allocation3 + $0x68] sm:$0xff] %vm2926_vm7, %v4161_v41  ;;  %v1866_v51 = vpop.permute.xlu1 %1865  ;;  %v4163_v56 = vpop.permute.xlu0 %4162 }
 0x1cc   : > { %4583 = vst.msk [vmem:[#allocation3 + $0x6b8] sm:$0xff] %vm1450_vm4, %v4511_v44  ;;  %4582 = vst.msk [vmem:[#allocation3 + $0x6a0] sm:$0xff] %vm1450_vm4, %v4510_v33  ;;  %v1602_v33 = vld [vmem:[#allocation2 + $0x1f0] sm:$0xff]  ;;  %v4593_v44 = vld [vmem:[#allocation3 + $0x48] sm:$0xff] }
 0x1cd   : > { %3113 = vst.msk [vmem:[#allocation3 + $0x3f8] sm:$0xff] %vm1450_vm4, %v8471_v48  ;;  %3114 = vst.msk [vmem:[#allocation3 + $0x410] sm:$0xff] %vm1450_vm4, %v8473_v47  ;;  %2744 = vrot.lane.b32.xlu1 %v3590_v15, %s7224_s30  ;;  %v4596_v15 = vld [vmem:[#allocation3 + $0x60] sm:$0xff]  ;;  %v4751_v14 = vld [vmem:[#allocation3 + $0x538] sm:$0xff] }
 0x1ce   : > { %2071 = vst.msk [vmem:[#allocation3 + $0x108] sm:$0xff] %vm2059_vm5, %v1866_v51  ;;  %10129 = vst [vmem:[#allocation13_spill] sm:$0xff] %v8487_v37  ;;  %3319 = vrot.lane.b32.xlu0 %v7853_v28, %s7222_s14  ;;  %v1604_v28 = vld [vmem:[#allocation2 + $0x208] sm:$0xff] }
 0x1cf   : > { %1674 = vst.msk [vmem:[#allocation3 + $0x468] sm:$0xff] %vm1450_vm4, %v1602_v33  ;;  %3115 = vst.msk [vmem:[#allocation3 + $0x428] sm:$0xff] %vm1450_vm4, %v8487_v37  ;;  %v2299_v42 = vpop.permute.xlu1 %2298  ;;  %v3302_v41 = vpop.permute.xlu0 %3301  ;;  %v1616_v37 = vld [vmem:[#allocation2 + $0x288] sm:$0xff] }
 0x1d0   : > { %v4594_v36 = vld [vmem:[#allocation3 + $0x50] sm:$0xff]  ;;  %2504 = vst.msk [vmem:[#allocation3 + $0x108] sm:$0xff] %vm2492_vm6, %v2299_v42  ;;  %10130 = vst [vmem:[#allocation14_spill] sm:$0xff] %v8501_v12  ;;  %v1729_v48 = vld [vmem:[#allocation2 + $0x141] sm:$0xff] }
 0x1d1   : > { %5131 = vmatprep.mubr.f32.mxu1 %v4594_v36  ;;  %3510 = vst.msk [vmem:[#allocation3 + $0xb0] sm:$0xff] %vm2059_vm5, %v3302_v41  ;;  %3752 = vrot.lane.b32.xlu1 %v3592_v13, %s7223_s21  ;;  %v4709_v36 = vld [vmem:[#allocation3 + $0x3e8] sm:$0xff]  ;;  %v1605_v13 = vld [vmem:[#allocation2 + $0x210] sm:$0xff] }
 0x1d2   : > { %5132 = vmatmul.mubr.f32.gmra.mrb[6].mxu1 %v4593_v44  ;;  %v4597_v51 = vld [vmem:[#allocation3 + $0x68] sm:$0xff]  ;;  %3321 = vrot.lane.b32.xlu0 %v7855_v18, %s7222_s14  ;;  %1675 = vst.msk [vmem:[#allocation3 + $0x480] sm:$0xff] %vm1450_vm4, %v1603_v58  ;;  %1676 = vst.msk [vmem:[#allocation3 + $0x498] sm:$0xff] %vm1450_vm4, %v1604_v28  ;;  %v8515_v41 = vld [vmem:[#allocation2 + $0x211] sm:$0xff] }
 0x1d3   : > { %5136 = vmatprep.mubr.f32.mxu1 %v4597_v51  ;;  %v3731_v33 = vpop.permute.xlu1 %3730  ;;  %v3304_v44 = vpop.permute.xlu0 %3303  ;;  %7075 = vmatmul.mubr.msk.f32.gmra.mrb[144].mxu0 %vm1450_vm4, %v4709_v36  ;;  %v8504_v42 = vld [vmem:[#allocation2 + $0x209] sm:$0xff]  ;;  %3116 = vst.msk [vmem:[#allocation3 + $0x440] sm:$0xff] %vm1450_vm4, %v8501_v12  ;;  %v4023_v18 = vld [vmem:[#allocation2 + $0xe1] sm:$0xff]  ;;  %1677 = vst.msk [vmem:[#allocation3 + $0x4b0] sm:$0xff] %vm1450_vm4, %v1605_v13 }
 0x1d4   : > { %10131 = vst [vmem:[#allocation15_spill] sm:$0xff] %v8504_v42  ;;  %3941 = vst.msk [vmem:[#allocation3 + $0x80] sm:$0xff] %vm2492_vm6, %v3731_v33  ;;  %v4712_v51 = vld [vmem:[#allocation3 + $0x400] sm:$0xff]  ;;  %v4715_v28 = vld [vmem:[#allocation3 + $0x418] sm:$0xff] }
 0x1d5   : > { %3511 = vst.msk [vmem:[#allocation3 + $0xc8] sm:$0xff] %vm2059_vm5, %v3304_v44  ;;  %1885 = vrot.lane.b32.xlu1 %v4023_v18, %s7222_s14  ;;  %10132 = vst [vmem:[#allocation16_spill] sm:$0xff] %v8515_v41  ;;  %7077 = vmatprep.mubr.msk.f32.mxu0 %vm1450_vm4, %v4712_v51  ;;  %v4718_v44 = vld [vmem:[#allocation3 + $0x430] sm:$0xff]  ;;  %v4599_v13 = vld [vmem:[#allocation3 + $0x78] sm:$0xff] }
 0x1d6   : > { %5137 = vmatmul.mubr.f32.gmra.mrb[8].mxu1 %v4596_v15  ;;  %3117 = vst.msk [vmem:[#allocation3 + $0x458] sm:$0xff] %vm1450_vm4, %v8504_v42  ;;  %4182 = vrot.lane.b32.xlu0 %v4023_v18, %s7224_s30  ;;  %3118 = vst.msk [vmem:[#allocation3 + $0x470] sm:$0xff] %vm1450_vm4, %v8515_v41  ;;  %v1721_v18 = vld [vmem:[#allocation2 + $0xe9] sm:$0xff]  ;;  %v1606_v51 = vld [vmem:[#allocation2 + $0x220] sm:$0xff] }
 0x1d7   : > { %4373 = vst.msk [vmem:[#allocation3 + $0x80] sm:$0xff] %vm2926_vm7, %v4163_v56  ;;  %v2727_v15 = vpop.permute.xlu1 %2726  ;;  %v1868_v58 = vpop.permute.xlu0 %1867  ;;  %7078 = vmatmul.mubr.msk.f32.gmra.mrb[146].mxu0 %vm1450_vm4, %v4715_v28  ;;  %v8536_v28 = vld [vmem:[#allocation2 + $0x221] sm:$0xff]  ;;  %v8615_v41 = vld [vmem:[#allocation2 + $0x269] sm:$0xff]  ;;  %v8636_v12 = vld [vmem:[#allocation2 + $0x271] sm:$0xff] }
 0x1d8   : > { %2935 = vst.msk [vmem:[#allocation3 + $0xc0] sm:$0xff] %vm2926_vm7, %v2727_v15  ;;  %v1607_v15 = vld [vmem:[#allocation2 + $0x228] sm:$0xff]  ;;  %7080 = vmatprep.mubr.msk.f32.mxu0 %vm1450_vm4, %v4718_v44  ;;  %10133 = vst [vmem:[#allocation17_spill] sm:$0xff] %v8536_v28 }
 0x1d9   : > { %2072 = vst.msk [vmem:[#allocation3 + $0x120] sm:$0xff] %vm2059_vm5, %v1868_v58  ;;  %2318 = vrot.lane.b32.xlu1 %v7900_v24, %s7223_s21  ;;  %v4721_v44 = vld [vmem:[#allocation3 + $0x448] sm:$0xff]  ;;  %10140 = vst [vmem:[#allocation24_spill] sm:$0xff] %v8615_v41 }
 0x1da   : > { %3323 = vrot.lane.b32.xlu0 %v7900_v24, %s7222_s14  ;;  %1678 = vst.msk [vmem:[#allocation3 + $0x4c8] sm:$0xff] %vm1450_vm4, %v1606_v51  ;;  %1679 = vst.msk [vmem:[#allocation3 + $0x4e0] sm:$0xff] %vm1450_vm4, %v1607_v15  ;;  %v4724_v51 = vld [vmem:[#allocation3 + $0x460] sm:$0xff]  ;;  %v1608_v15 = vld [vmem:[#allocation2 + $0x230] sm:$0xff] }
 0x1db   : > { %v3735_v56 = vpop.permute.xlu1 %3734  ;;  %v2301_v36 = vpop.permute.xlu0 %2300  ;;  %3119 = vst.msk [vmem:[#allocation3 + $0x488] sm:$0xff] %vm1450_vm4, %v8536_v28  ;;  %7081 = vmatmul.mubr.msk.f32.gmra.mrb[148].mxu0 %vm1450_vm4, %v4721_v44  ;;  %1680 = vst.msk [vmem:[#allocation3 + $0x4f8] sm:$0xff] %vm1450_vm4, %v1608_v15 }
 0x1dc   : > { %3943 = vst.msk [vmem:[#allocation3 + $0xb0] sm:$0xff] %vm2492_vm6, %v3735_v56  ;;  %2505 = vst.msk [vmem:[#allocation3 + $0x120] sm:$0xff] %vm2492_vm6, %v2301_v36  ;;  %v8539_v56 = vld [vmem:[#allocation2 + $0x229] sm:$0xff]  ;;  %7083 = vmatprep.mubr.msk.f32.mxu0 %vm1450_vm4, %v4724_v51  ;;  %v8572_v51 = vld [vmem:[#allocation2 + $0x241] sm:$0xff] }
 0x1dd   : > { %3750 = vrot.lane.b32.xlu1 %v7972_v35, %s7223_s21  ;;  %10134 = vst [vmem:[#allocation18_spill] sm:$0xff] %v8539_v56  ;;  %3120 = vst.msk [vmem:[#allocation3 + $0x4a0] sm:$0xff] %vm1450_vm4, %v8539_v56 }
 0x1de   : > { %v4600_v33 = vld [vmem:[#allocation3 + $0x80] sm:$0xff]  ;;  %1887 = vrot.lane.b32.xlu0 %v1721_v18, %s7222_s14  ;;  %10136 = vst [vmem:[#allocation20_spill] sm:$0xff] %v8572_v51  ;;  %3122 = vst.msk [vmem:[#allocation3 + $0x4d0] sm:$0xff] %vm1450_vm4, %v8572_v51 }
 0x1df   : > { %5141 = vmatprep.mubr.f32.mxu1 %v4600_v33  ;;  %v2731_v24 = vpop.permute.xlu1 %2730  ;;  %v4165_v58 = vpop.permute.xlu0 %4164  ;;  %3126 = vst.msk [vmem:[#allocation3 + $0x530] sm:$0xff] %vm1450_vm4, %v8615_v41  ;;  %v1614_v41 = vld [vmem:[#allocation2 + $0x270] sm:$0xff]  ;;  %10141 = vst [vmem:[#allocation25_spill] sm:$0xff] %v8636_v12 }
 0x1e0   : > { %5142 = vmatmul.mubr.f32.gmra.mrb[10].mxu1 %v4599_v13  ;;  %2937 = vst.msk [vmem:[#allocation3 + $0xf0] sm:$0xff] %vm2926_vm7, %v2731_v24  ;;  %v1722_v13 = vld [vmem:[#allocation2 + $0xf1] sm:$0xff] }
 0x1e1   : > { %2746 = vrot.lane.b32.xlu1 %v7972_v35, %s7224_s30  ;;  %1686 = vst.msk [vmem:[#allocation3 + $0x588] sm:$0xff] %vm1450_vm4, %v1614_v41  ;;  %3127 = vst.msk [vmem:[#allocation3 + $0x548] sm:$0xff] %vm1450_vm4, %v8636_v12  ;;  %v1727_v41 = vld [vmem:[#allocation2 + $0x129] sm:$0xff]  ;;  %v8651_v12 = vld [vmem:[#allocation2 + $0x281] sm:$0xff] }
 0x1e2   : > { %2320 = vrot.lane.b32.xlu0 %v7911_v30, %s7223_s21  ;;  %v8556_v30 = vld [vmem:[#allocation2 + $0x231] sm:$0xff]  ;;  %1688 = vst.msk [vmem:[#allocation3 + $0x5b8] sm:$0xff] %vm1450_vm4, %v1616_v37  ;;  %10142 = vst [vmem:[#allocation26_spill] sm:$0xff] %v8651_v12 }
 0x1e3   : > { %v3733_v36 = vpop.permute.xlu1 %3732  ;;  %v3306_v33 = vpop.permute.xlu0 %3305  ;;  %10135 = vst [vmem:[#allocation19_spill] sm:$0xff] %v8556_v30  ;;  %3121 = vst.msk [vmem:[#allocation3 + $0x4b8] sm:$0xff] %vm1450_vm4, %v8556_v30  ;;  %v8587_v30 = vld [vmem:[#allocation2 + $0x251] sm:$0xff] }
 0x1e4   : > { %3942 = vst.msk [vmem:[#allocation3 + $0x98] sm:$0xff] %vm2492_vm6, %v3733_v36  ;;  %v1609_v36 = vld [vmem:[#allocation2 + $0x240] sm:$0xff]  ;;  %10138 = vst [vmem:[#allocation22_spill] sm:$0xff] %v8587_v30  ;;  %v2160_v37 = vld [vmem:[#allocation2 + $0x12a] sm:$0xff] }
 0x1e5   : > { %3512 = vst.msk [vmem:[#allocation3 + $0xe0] sm:$0xff] %vm2059_vm5, %v3306_v33  ;;  %1889 = vrot.lane.b32.xlu1 %v1722_v13, %s7222_s14  ;;  %v1610_v33 = vld [vmem:[#allocation2 + $0x248] sm:$0xff] }
 0x1e6   : > { %4374 = vst.msk [vmem:[#allocation3 + $0x98] sm:$0xff] %vm2926_vm7, %v4165_v58  ;;  %4184 = vrot.lane.b32.xlu0 %v1721_v18, %s7224_s30  ;;  %v4727_v18 = vld [vmem:[#allocation3 + $0x478] sm:$0xff] }
 0x1e7   : > { %v2729_v35 = vpop.permute.xlu1 %2728  ;;  %v1872_v24 = vpop.permute.xlu0 %1871  ;;  %1681 = vst.msk [vmem:[#allocation3 + $0x510] sm:$0xff] %vm1450_vm4, %v1609_v36  ;;  %1682 = vst.msk [vmem:[#allocation3 + $0x528] sm:$0xff] %vm1450_vm4, %v1610_v33  ;;  %7084 = vmatmul.mubr.msk.f32.gmra.mrb[150].mxu0 %vm1450_vm4, %v4727_v18  ;;  %v4602_v36 = vld [vmem:[#allocation3 + $0x90] sm:$0xff] }
 0x1e8   : > { %2936 = vst.msk [vmem:[#allocation3 + $0xd8] sm:$0xff] %vm2926_vm7, %v2729_v35  ;;  %v1611_v18 = vld [vmem:[#allocation2 + $0x250] sm:$0xff] }
 0x1e9   : > { %2074 = vst.msk [vmem:[#allocation3 + $0x150] sm:$0xff] %vm2059_vm5, %v1872_v24  ;;  %2322 = vrot.lane.b32.xlu1 %v7913_v34, %s7223_s21  ;;  %v8565_v58 = vpop.f32.mrb[104].mxu0  ;;  %v1723_v24 = vld [vmem:[#allocation2 + $0x101] sm:$0xff]  ;;  %v8575_v34 = vld [vmem:[#allocation2 + $0x249] sm:$0xff] }
 0x1ea   : > { %4186 = vrot.lane.b32.xlu0 %v1722_v13, %s7224_s30  ;;  %v8568_v44 = vpop.f32.mrb[105].mxu0  ;;  %10137 = vst [vmem:[#allocation21_spill] sm:$0xff] %v8575_v34  ;;  %3123 = vst.msk [vmem:[#allocation3 + $0x4e8] sm:$0xff] %vm1450_vm4, %v8575_v34 }
 0x1eb   : > { %v2305_v15 = vpop.permute.xlu0 %2304  ;;  %v1870_v35 = vpop.permute.xlu1 %1869  ;;  %1683 = vst.msk [vmem:[#allocation3 + $0x540] sm:$0xff] %vm1450_vm4, %v1611_v18  ;;  %3124 = vst.msk [vmem:[#allocation3 + $0x500] sm:$0xff] %vm1450_vm4, %v8587_v30 }
 0x1ec   : > { %2507 = vst.msk [vmem:[#allocation3 + $0x150] sm:$0xff] %vm2492_vm6, %v2305_v15 }
 0x1ed   : > { %2073 = vst.msk [vmem:[#allocation3 + $0x138] sm:$0xff] %vm2059_vm5, %v1870_v35  ;;  %v4603_v13 = vld [vmem:[#allocation3 + $0x98] sm:$0xff]  ;;  %3754 = vrot.lane.b32.xlu1 %v8015_v11, %s7223_s21  ;;  %v8585_v33 = vpop.f32.mrb[106].mxu0  ;;  %v4730_v35 = vld [vmem:[#allocation3 + $0x490] sm:$0xff]  ;;  %v4733_v11 = vld [vmem:[#allocation3 + $0x4a8] sm:$0xff] }
 0x1ee   : > { %5146 = vmatprep.mubr.f32.mxu1 %v4603_v13  ;;  %1891 = vrot.lane.b32.xlu0 %v1723_v24, %s7222_s14  ;;  %v8590_v15 = vpop.f32.mrb[107].mxu0  ;;  %3128 = vst.msk [vmem:[#allocation3 + $0x560] sm:$0xff] %vm1450_vm4, %v8651_v12  ;;  %v4748_v12 = vld [vmem:[#allocation3 + $0x520] sm:$0xff]  ;;  %1693 = vst.msk [vmem:[#allocation3 + $0x630] sm:$0xff] %vm1450_vm4, %v1621_v25  ;;  %v1623_v25 = vld [vmem:[#allocation2 + $0x2d0] sm:$0xff] }
 0x1ef   : > { %5147 = vmatmul.mubr.f32.gmra.mrb[12].mxu1 %v4602_v36  ;;  %v4167_v13 = vpop.permute.xlu0 %4166  ;;  %v2303_v34 = vpop.permute.xlu1 %2302  ;;  %7086 = vmatprep.mubr.msk.f32.mxu0 %vm1450_vm4, %v4730_v35  ;;  %v2156_v36 = vld [vmem:[#allocation2 + $0x102] sm:$0xff]  ;;  %1695 = vst.msk [vmem:[#allocation3 + $0x660] sm:$0xff] %vm1450_vm4, %v1623_v25  ;;  %v2166_v25 = vld [vmem:[#allocation2 + $0x16a] sm:$0xff] }
 0x1f0   : > { %4375 = vst.msk [vmem:[#allocation3 + $0xb0] sm:$0xff] %vm2926_vm7, %v4167_v13  ;;  %7087 = vmatmul.mubr.msk.f32.gmra.mrb[152].mxu0 %vm1450_vm4, %v4733_v11  ;;  %v1724_v35 = vld [vmem:[#allocation2 + $0x109] sm:$0xff]  ;;  %v4736_v13 = vld [vmem:[#allocation3 + $0x4c0] sm:$0xff] }
 0x1f1   : > { %2506 = vst.msk [vmem:[#allocation3 + $0x138] sm:$0xff] %vm2492_vm6, %v2303_v34  ;;  %3756 = vrot.lane.b32.xlu1 %v8054_v2, %s7223_s21  ;;  %7089 = vmatprep.mubr.msk.f32.mxu0 %vm1450_vm4, %v4736_v13  ;;  %v1612_v2 = vld [vmem:[#allocation2 + $0x260] sm:$0xff]  ;;  %v1613_v34 = vld [vmem:[#allocation2 + $0x268] sm:$0xff] }
 0x1f2   : > { %2324 = vrot.lane.b32.xlu0 %v2156_v36, %s7223_s21  ;;  %v8602_v18 = vpop.f32.mrb[108].mxu0  ;;  %1684 = vst.msk [vmem:[#allocation3 + $0x558] sm:$0xff] %vm1450_vm4, %v1612_v2  ;;  %v8612_v11 = vld [vmem:[#allocation2 + $0x261] sm:$0xff]  ;;  %1685 = vst.msk [vmem:[#allocation3 + $0x570] sm:$0xff] %vm1450_vm4, %v1613_v34 }
 0x1f3   : > { %v4169_v30 = vpop.permute.xlu0 %4168  ;;  %v3737_v51 = vpop.permute.xlu1 %3736  ;;  %10139 = vst [vmem:[#allocation23_spill] sm:$0xff] %v8612_v11  ;;  %3125 = vst.msk [vmem:[#allocation3 + $0x518] sm:$0xff] %vm1450_vm4, %v8612_v11  ;;  %v1726_v2 = vld [vmem:[#allocation2 + $0x121] sm:$0xff] }
 0x1f4   : > { %3944 = vst.msk [vmem:[#allocation3 + $0xc8] sm:$0xff] %vm2492_vm6, %v3737_v51  ;;  %v8605_v56 = vpop.f32.mrb[109].mxu0 }
 0x1f5   : > { %4376 = vst.msk [vmem:[#allocation3 + $0xc8] sm:$0xff] %vm2926_vm7, %v4169_v30  ;;  %1893 = vrot.lane.b32.xlu1 %v1724_v35, %s7222_s14  ;;  %v4605_v30 = vld [vmem:[#allocation3 + $0xa8] sm:$0xff]  ;;  %v1725_v35 = vld [vmem:[#allocation2 + $0x111] sm:$0xff] }
 0x1f6   : > { %4188 = vrot.lane.b32.xlu0 %v1723_v24, %s7224_s30  ;;  %v2157_v24 = vld [vmem:[#allocation2 + $0x10a] sm:$0xff] }
 0x1f7   : > { %v3308_v36 = vpop.permute.xlu0 %3307  ;;  %v2733_v51 = vpop.permute.xlu1 %2732  ;;  %v4606_v28 = vld [vmem:[#allocation3 + $0xb0] sm:$0xff] }
 0x1f8   : > { %3513 = vst.msk [vmem:[#allocation3 + $0xf8] sm:$0xff] %vm2059_vm5, %v3308_v36  ;;  %5151 = vmatprep.mubr.f32.mxu1 %v4606_v28 }
 0x1f9   : > { %2938 = vst.msk [vmem:[#allocation3 + $0x108] sm:$0xff] %vm2926_vm7, %v2733_v51  ;;  %5152 = vmatmul.mubr.f32.gmra.mrb[14].mxu1 %v4605_v30  ;;  %2326 = vrot.lane.b32.xlu1 %v2157_v24, %s7223_s21  ;;  %v8624_v13 = vpop.f32.mrb[110].mxu0  ;;  %v4739_v51 = vld [vmem:[#allocation3 + $0x4d8] sm:$0xff]  ;;  %v4742_v30 = vld [vmem:[#allocation3 + $0x4f0] sm:$0xff] }
 0x1fa   : > { %1895 = vrot.lane.b32.xlu0 %v1725_v35, %s7222_s14  ;;  %v8627_v34 = vpop.f32.mrb[111].mxu0  ;;  %7090 = vmatmul.mubr.msk.f32.gmra.mrb[154].mxu0 %vm1450_vm4, %v4739_v51  ;;  %v2158_v24 = vld [vmem:[#allocation2 + $0x112] sm:$0xff]  ;;  %v4608_v35 = vld [vmem:[#allocation3 + $0xc0] sm:$0xff] }
 0x1fb   : > { %v3310_v36 = vpop.permute.xlu0 %3309  ;;  %v3741_v11 = vpop.permute.xlu1 %3740  ;;  %7092 = vmatprep.mubr.msk.f32.mxu0 %vm1450_vm4, %v4742_v30 }
 0x1fc   : > { %3514 = vst.msk [vmem:[#allocation3 + $0x110] sm:$0xff] %vm2059_vm5, %v3310_v36  ;;  %v4609_v28 = vld [vmem:[#allocation3 + $0xc8] sm:$0xff] }
 0x1fd   : > { %3946 = vst.msk [vmem:[#allocation3 + $0xf8] sm:$0xff] %vm2492_vm6, %v3741_v11  ;;  %5156 = vmatprep.mubr.f32.mxu1 %v4609_v28  ;;  %1897 = vrot.lane.b32.xlu1 %v1726_v2, %s7222_s14  ;;  %v8633_v42 = vpop.f32.mrb[112].mxu0  ;;  %v2159_v2 = vld [vmem:[#allocation2 + $0x122] sm:$0xff] }
 0x1fe   : > { %2328 = vrot.lane.b32.xlu0 %v2158_v24, %s7223_s21  ;;  %5157 = vmatmul.mubr.f32.gmra.mrb[16].mxu1 %v4608_v35  ;;  %v8639_v11 = vpop.f32.mrb[113].mxu0  ;;  %v1615_v28 = vld [vmem:[#allocation2 + $0x280] sm:$0xff]  ;;  %v4745_v35 = vld [vmem:[#allocation3 + $0x508] sm:$0xff] }
 0x1ff   : > { %v2737_v36 = vpop.permute.xlu1 %2736  ;;  %v4171_v51 = vpop.permute.xlu0 %4170  ;;  %1687 = vst.msk [vmem:[#allocation3 + $0x5a0] sm:$0xff] %vm1450_vm4, %v1615_v28  ;;  %7093 = vmatmul.mubr.msk.f32.gmra.mrb[156].mxu0 %vm1450_vm4, %v4745_v35  ;;  %v1617_v28 = vld [vmem:[#allocation2 + $0x290] sm:$0xff] }
 0x200   : > { %2940 = vst.msk [vmem:[#allocation3 + $0x138] sm:$0xff] %vm2926_vm7, %v2737_v36  ;;  %v8654_v36 = vld [vmem:[#allocation2 + $0x289] sm:$0xff]  ;;  %v8666_v35 = vld [vmem:[#allocation2 + $0x291] sm:$0xff]  ;;  %7095 = vmatprep.mubr.msk.f32.mxu0 %vm1450_vm4, %v4748_v12 }
 0x201   : > { %2330 = vrot.lane.b32.xlu1 %v2159_v2, %s7223_s21  ;;  %10143 = vst [vmem:[#allocation27_spill] sm:$0xff] %v8654_v36  ;;  %v1728_v2 = vld [vmem:[#allocation2 + $0x131] sm:$0xff]  ;;  %3129 = vst.msk [vmem:[#allocation3 + $0x578] sm:$0xff] %vm1450_vm4, %v8654_v36  ;;  %v1730_v12 = vld [vmem:[#allocation2 + $0x149] sm:$0xff] }
 0x202   : > { %1899 = vrot.lane.b32.xlu0 %v1727_v41, %s7222_s14  ;;  %v8647_v24 = vpop.f32.mrb[114].mxu0  ;;  %1689 = vst.msk [vmem:[#allocation3 + $0x5d0] sm:$0xff] %vm1450_vm4, %v1617_v28  ;;  %10144 = vst [vmem:[#allocation28_spill] sm:$0xff] %v8666_v35 }
 0x203   : > { %v3312_v30 = vpop.permute.xlu0 %3311  ;;  %v1874_v47 = vpop.permute.xlu1 %1873  ;;  %3130 = vst.msk [vmem:[#allocation3 + $0x590] sm:$0xff] %vm1450_vm4, %v8666_v35  ;;  %7096 = vmatmul.mubr.msk.f32.gmra.mrb[158].mxu0 %vm1450_vm4, %v4751_v14  ;;  %v1618_v14 = vld [vmem:[#allocation2 + $0x2a0] sm:$0xff] }
 0x204   : > { %3515 = vst.msk [vmem:[#allocation3 + $0x128] sm:$0xff] %vm2059_vm5, %v3312_v30  ;;  %2075 = vst.msk [vmem:[#allocation3 + $0x168] sm:$0xff] %vm2059_vm5, %v1874_v47  ;;  %v8660_v41 = vpop.f32.mrb[115].mxu0 }
 0x205   : > { %1901 = vrot.lane.b32.xlu1 %v1728_v2, %s7222_s14  ;;  %v2161_v2 = vld [vmem:[#allocation2 + $0x132] sm:$0xff]  ;;  %1690 = vst.msk [vmem:[#allocation3 + $0x5e8] sm:$0xff] %vm1450_vm4, %v1618_v14  ;;  %v1732_v14 = vld [vmem:[#allocation2 + $0x161] sm:$0xff] }
 0x206   : > { %2332 = vrot.lane.b32.xlu0 %v2160_v37, %s7223_s21 }
 0x207   : > { %v2307_v47 = vpop.permute.xlu1 %2306  ;;  %v1876_v30 = vpop.permute.xlu0 %1875 }
 0x208   : > { %2508 = vst.msk [vmem:[#allocation3 + $0x168] sm:$0xff] %vm2492_vm6, %v2307_v47  ;;  %v4754_v47 = vld [vmem:[#allocation3 + $0x550] sm:$0xff] }
 0x209   : > { %2076 = vst.msk [vmem:[#allocation3 + $0x180] sm:$0xff] %vm2059_vm5, %v1876_v30  ;;  %2334 = vrot.lane.b32.xlu1 %v2161_v2, %s7223_s21  ;;  %v8677_v28 = vpop.f32.mrb[116].mxu0  ;;  %v2162_v30 = vld [vmem:[#allocation2 + $0x142] sm:$0xff]  ;;  %7098 = vmatprep.mubr.msk.f32.mxu0 %vm1450_vm4, %v4754_v47  ;;  %v1731_v47 = vld [vmem:[#allocation2 + $0x151] sm:$0xff] }
 0x20a   : > { %1903 = vrot.lane.b32.xlu0 %v1729_v48, %s7222_s14  ;;  %v8681_v36 = vpop.f32.mrb[117].mxu0  ;;  %v1619_v48 = vld [vmem:[#allocation2 + $0x2a8] sm:$0xff] }
 0x20b   : > { %v3739_v37 = vpop.permute.xlu1 %3738  ;;  %v2309_v35 = vpop.permute.xlu0 %2308  ;;  %1691 = vst.msk [vmem:[#allocation3 + $0x600] sm:$0xff] %vm1450_vm4, %v1619_v48  ;;  %v8691_v2 = vld [vmem:[#allocation2 + $0x2a9] sm:$0xff] }
 0x20c   : > { %3945 = vst.msk [vmem:[#allocation3 + $0xe0] sm:$0xff] %vm2492_vm6, %v3739_v37  ;;  %2509 = vst.msk [vmem:[#allocation3 + $0x180] sm:$0xff] %vm2492_vm6, %v2309_v35  ;;  %v8689_v35 = vld [vmem:[#allocation2 + $0x2a1] sm:$0xff] }
 0x20d   : > { %4377 = vst.msk [vmem:[#allocation3 + $0xe0] sm:$0xff] %vm2926_vm7, %v4171_v51  ;;  %1905 = vrot.lane.b32.xlu1 %v1730_v12, %s7222_s14  ;;  %10145 = vst [vmem:[#allocation29_spill] sm:$0xff] %v8689_v35  ;;  %v2163_v51 = vld [vmem:[#allocation2 + $0x14a] sm:$0xff] }
 0x20e   : > { %2336 = vrot.lane.b32.xlu0 %v2162_v30, %s7223_s21  ;;  %10146 = vst [vmem:[#allocation30_spill] sm:$0xff] %v8691_v2  ;;  %3131 = vst.msk [vmem:[#allocation3 + $0x5a8] sm:$0xff] %vm1450_vm4, %v8689_v35  ;;  %v1620_v12 = vld [vmem:[#allocation2 + $0x2b0] sm:$0xff] }
 0x20f   : > { %v2735_v37 = vpop.permute.xlu1 %2734  ;;  %v4173_v45 = vpop.permute.xlu0 %4172  ;;  %3132 = vst.msk [vmem:[#allocation3 + $0x5c0] sm:$0xff] %vm1450_vm4, %v8691_v2  ;;  %1692 = vst.msk [vmem:[#allocation3 + $0x618] sm:$0xff] %vm1450_vm4, %v1620_v12  ;;  %v8701_v30 = vld [vmem:[#allocation2 + $0x2b1] sm:$0xff] }
 0x210   : > { %2939 = vst.msk [vmem:[#allocation3 + $0x120] sm:$0xff] %vm2926_vm7, %v2735_v37  ;;  %4378 = vst.msk [vmem:[#allocation3 + $0xf8] sm:$0xff] %vm2926_vm7, %v4173_v45  ;;  %v4757_v37 = vld [vmem:[#allocation3 + $0x568] sm:$0xff]  ;;  %v2164_v35 = vld [vmem:[#allocation2 + $0x152] sm:$0xff] }
 0x211   : > { %2338 = vrot.lane.b32.xlu1 %v2163_v51, %s7223_s21  ;;  %10147 = vst [vmem:[#allocation31_spill] sm:$0xff] %v8701_v30  ;;  %3133 = vst.msk [vmem:[#allocation3 + $0x5d8] sm:$0xff] %vm1450_vm4, %v8701_v30  ;;  %7099 = vmatmul.mubr.msk.f32.gmra.mrb[160].mxu0 %vm1450_vm4, %v4757_v37  ;;  %v4760_v51 = vld [vmem:[#allocation3 + $0x580] sm:$0xff]  ;;  %v4611_v12 = vld [vmem:[#allocation3 + $0xd8] sm:$0xff] }
 0x212   : > { %1907 = vrot.lane.b32.xlu0 %v1731_v47, %s7222_s14  ;;  %v1622_v47 = vld [vmem:[#allocation2 + $0x2c8] sm:$0xff]  ;;  %7101 = vmatprep.mubr.msk.f32.mxu0 %vm1450_vm4, %v4760_v51  ;;  %v4763_v37 = vld [vmem:[#allocation3 + $0x598] sm:$0xff]  ;;  %v4614_v51 = vld [vmem:[#allocation3 + $0xf0] sm:$0xff] }
 0x213   : > { %v1878_v48 = vpop.permute.xlu1 %1877  ;;  %v4175_v2 = vpop.permute.xlu0 %4174  ;;  %1694 = vst.msk [vmem:[#allocation3 + $0x648] sm:$0xff] %vm1450_vm4, %v1622_v47  ;;  %v8712_v30 = vld [vmem:[#allocation2 + $0x2c1] sm:$0xff]  ;;  %v8724_v47 = vld [vmem:[#allocation2 + $0x2d1] sm:$0xff] }
 0x214   : > { %2077 = vst.msk [vmem:[#allocation3 + $0x198] sm:$0xff] %vm2059_vm5, %v1878_v48  ;;  %v4612_v45 = vld [vmem:[#allocation3 + $0xe0] sm:$0xff]  ;;  %10148 = vst [vmem:[#allocation32_spill] sm:$0xff] %v8712_v30 }
 0x215   : > { %5161 = vmatprep.mubr.f32.mxu1 %v4612_v45  ;;  %1909 = vrot.lane.b32.xlu1 %v1732_v14, %s7222_s14  ;;  %3134 = vst.msk [vmem:[#allocation3 + $0x5f0] sm:$0xff] %vm1450_vm4, %v8712_v30  ;;  %v8719_v45 = vld [vmem:[#allocation2 + $0x2c9] sm:$0xff]  ;;  %10150 = vst [vmem:[#allocation34_spill] sm:$0xff] %v8724_v47 }
 0x216   : > { %2340 = vrot.lane.b32.xlu0 %v2164_v35, %s7223_s21  ;;  %5162 = vmatmul.mubr.f32.gmra.mrb[18].mxu1 %v4611_v12  ;;  %v2165_v35 = vld [vmem:[#allocation2 + $0x162] sm:$0xff]  ;;  %10149 = vst [vmem:[#allocation33_spill] sm:$0xff] %v8719_v45  ;;  %3135 = vst.msk [vmem:[#allocation3 + $0x608] sm:$0xff] %vm1450_vm4, %v8719_v45 }
 0x217   : > { %v2311_v48 = vpop.permute.xlu1 %2310  ;;  %v4615_v27 = vld [vmem:[#allocation3 + $0xf8] sm:$0xff]  ;;  %v3314_v14 = vpop.permute.xlu0 %3313  ;;  %7102 = vmatmul.mubr.msk.f32.gmra.mrb[162].mxu0 %vm1450_vm4, %v4763_v37  ;;  %v1733_v12 = vld [vmem:[#allocation2 + $0x169] sm:$0xff]  ;;  %3136 = vst.msk [vmem:[#allocation3 + $0x620] sm:$0xff] %vm1450_vm4, %v8724_v47  ;;  %v1624_v47 = vld [vmem:[#allocation2 + $0x2e0] sm:$0xff] }
 0x218   : > { %2510 = vst.msk [vmem:[#allocation3 + $0x198] sm:$0xff] %vm2492_vm6, %v2311_v48  ;;  %5166 = vmatprep.mubr.f32.mxu1 %v4615_v27  ;;  %v4766_v27 = vld [vmem:[#allocation3 + $0x5b0] sm:$0xff]  ;;  %v4769_v37 = vld [vmem:[#allocation3 + $0x5c8] sm:$0xff]  ;;  %v4772_v45 = vld [vmem:[#allocation3 + $0x5e0] sm:$0xff] }
 0x219   : > { %3516 = vst.msk [vmem:[#allocation3 + $0x140] sm:$0xff] %vm2059_vm5, %v3314_v14  ;;  %2342 = vrot.lane.b32.xlu1 %v2165_v35, %s7223_s21  ;;  %7104 = vmatprep.mubr.msk.f32.mxu0 %vm1450_vm4, %v4766_v27  ;;  %v1734_v35 = vld [vmem:[#allocation2 + $0x171] sm:$0xff] }
 0x21a   : > { %1911 = vrot.lane.b32.xlu0 %v1733_v12, %s7222_s14  ;;  %5167 = vmatmul.mubr.f32.gmra.mrb[20].mxu1 %v4614_v51  ;;  %v1735_v51 = vld [vmem:[#allocation2 + $0x181] sm:$0xff]  ;;  %1696 = vst.msk [vmem:[#allocation3 + $0x678] sm:$0xff] %vm1450_vm4, %v1624_v47 }
 0x21b   : > { %v3743_v48 = vpop.permute.xlu1 %3742  ;;  %7105 = vmatmul.mubr.msk.f32.gmra.mrb[164].mxu0 %vm1450_vm4, %v4769_v37  ;;  %v1625_v37 = vld [vmem:[#allocation2 + $0x2e8] sm:$0xff] }
 0x21c   : > { %3947 = vst.msk [vmem:[#allocation3 + $0x110] sm:$0xff] %vm2492_vm6, %v3743_v48  ;;  %v3316_v14 = vpop.permute.xlu0 %3315  ;;  %v2167_v48 = vld [vmem:[#allocation2 + $0x172] sm:$0xff]  ;;  %7107 = vmatprep.mubr.msk.f32.mxu0 %vm1450_vm4, %v4772_v45 }
 0x21d   : > { %4379 = vst.msk [vmem:[#allocation3 + $0x110] sm:$0xff] %vm2926_vm7, %v4175_v2  ;;  %1913 = vrot.lane.b32.xlu1 %v1734_v35, %s7222_s14  ;;  %v8744_v2 = vld [vmem:[#allocation2 + $0x2e1] sm:$0xff]  ;;  %v1626_v35 = vld [vmem:[#allocation2 + $0x2f0] sm:$0xff] }
 0x21e   : > { %3517 = vst.msk [vmem:[#allocation3 + $0x158] sm:$0xff] %vm2059_vm5, %v3316_v14  ;;  %2344 = vrot.lane.b32.xlu0 %v2166_v25, %s7223_s21  ;;  %10151 = vst [vmem:[#allocation35_spill] sm:$0xff] %v8744_v2  ;;  %v8746_v14 = vld [vmem:[#allocation2 + $0x2e9] sm:$0xff] }
 0x21f   : > { %v2739_v12 = vpop.permute.xlu1 %2738  ;;  %1697 = vst.msk [vmem:[#allocation3 + $0x690] sm:$0xff] %vm1450_vm4, %v1625_v37  ;;  %10152 = vst [vmem:[#allocation36_spill] sm:$0xff] %v8746_v14  ;;  %v4775_v37 = vld [vmem:[#allocation3 + $0x5f8] sm:$0xff] }
 0x220   : > { %2941 = vst.msk [vmem:[#allocation3 + $0x150] sm:$0xff] %vm2926_vm7, %v2739_v12  ;;  %v1880_v27 = vpop.permute.xlu0 %1879  ;;  %v1736_v12 = vld [vmem:[#allocation2 + $0x189] sm:$0xff]  ;;  %7108 = vmatmul.mubr.msk.f32.gmra.mrb[166].mxu0 %vm1450_vm4, %v4775_v37  ;;  %v2170_v37 = vld [vmem:[#allocation2 + $0x192] sm:$0xff] }
 0x221   : > { %2078 = vst.msk [vmem:[#allocation3 + $0x1b0] sm:$0xff] %vm2059_vm5, %v1880_v27  ;;  %2346 = vrot.lane.b32.xlu1 %v2167_v48, %s7223_s21  ;;  %v8755_v27 = vld [vmem:[#allocation2 + $0x2f1] sm:$0xff]  ;;  %v4617_v48 = vld [vmem:[#allocation3 + $0x108] sm:$0xff] }
 0x222   : > { %1915 = vrot.lane.b32.xlu0 %v1735_v51, %s7222_s14  ;;  %3137 = vst.msk [vmem:[#allocation3 + $0x638] sm:$0xff] %vm1450_vm4, %v8744_v2  ;;  %3138 = vst.msk [vmem:[#allocation3 + $0x650] sm:$0xff] %vm1450_vm4, %v8746_v14  ;;  %v2168_v51 = vld [vmem:[#allocation2 + $0x182] sm:$0xff] }
 0x223   : > { %v3747_v47 = vpop.permute.xlu1 %3746  ;;  %1698 = vst.msk [vmem:[#allocation3 + $0x6a8] sm:$0xff] %vm1450_vm4, %v1626_v35  ;;  %10153 = vst [vmem:[#allocation37_spill] sm:$0xff] %v8755_v27  ;;  %v4778_v35 = vld [vmem:[#allocation3 + $0x610] sm:$0xff]  ;;  %v4620_v2 = vld [vmem:[#allocation3 + $0x120] sm:$0xff] }
 0x224   : > { %3949 = vst.msk [vmem:[#allocation3 + $0x140] sm:$0xff] %vm2492_vm6, %v3747_v47  ;;  %v2313_v25 = vpop.permute.xlu0 %2312  ;;  %v4618_v45 = vld [vmem:[#allocation3 + $0x110] sm:$0xff]  ;;  %7110 = vmatprep.mubr.msk.f32.mxu0 %vm1450_vm4, %v4778_v35 }
 0x225   : > { %2511 = vst.msk [vmem:[#allocation3 + $0x1b0] sm:$0xff] %vm2492_vm6, %v2313_v25  ;;  %5171 = vmatprep.mubr.f32.mxu1 %v4618_v45  ;;  %1917 = vrot.lane.b32.xlu1 %v1736_v12, %s7222_s14  ;;  %v2169_v25 = vld [vmem:[#allocation2 + $0x18a] sm:$0xff]  ;;  %v1738_v12 = vld [vmem:[#allocation2 + $0x1a1] sm:$0xff] }
 0x226   : > { %3139 = vst.msk [vmem:[#allocation3 + $0x668] sm:$0xff] %vm1450_vm4, %v8755_v27  ;;  %2348 = vrot.lane.b32.xlu0 %v2168_v51, %s7223_s21  ;;  %5172 = vmatmul.mubr.f32.gmra.mrb[22].mxu1 %v4617_v48  ;;  %v1737_v45 = vld [vmem:[#allocation2 + $0x191] sm:$0xff]  ;;  %v4781_v27 = vld [vmem:[#allocation3 + $0x628] sm:$0xff] }
 0x227   : > { %v2743_v47 = vpop.permute.xlu1 %2742  ;;  %7111 = vmatmul.mubr.msk.f32.gmra.mrb[168].mxu0 %vm1450_vm4, %v4781_v27 }
 0x228   : > { %2943 = vst.msk [vmem:[#allocation3 + $0x180] sm:$0xff] %vm2926_vm7, %v2743_v47  ;;  %v4177_v14 = vpop.permute.xlu0 %4176  ;;  %v8772_v47 = vpop.f32.mrb[118].mxu0 }
 0x229   : > { %2350 = vrot.lane.b32.xlu1 %v2169_v25, %s7223_s21  ;;  %10154 = vst [vmem:[#allocation38_spill] sm:$0xff] %v8772_v47  ;;  %v8775_v35 = vpop.f32.mrb[119].mxu0 }
 0x22a   : > { %1919 = vrot.lane.b32.xlu0 %v1737_v45, %s7222_s14  ;;  %v2171_v45 = vld [vmem:[#allocation2 + $0x1a2] sm:$0xff] }
 0x22b   : > { %v3745_v51 = vpop.permute.xlu1 %3744 }
 0x22c   : > { %3948 = vst.msk [vmem:[#allocation3 + $0x128] sm:$0xff] %vm2492_vm6, %v3745_v51  ;;  %v3318_v48 = vpop.permute.xlu0 %3317 }
 0x22d   : > { %4380 = vst.msk [vmem:[#allocation3 + $0x128] sm:$0xff] %vm2926_vm7, %v4177_v14  ;;  %1921 = vrot.lane.b32.xlu1 %v1738_v12, %s7222_s14  ;;  %v1739_v14 = vld [vmem:[#allocation2 + $0x1a9] sm:$0xff] }
 0x22e   : > { %3518 = vst.msk [vmem:[#allocation3 + $0x170] sm:$0xff] %vm2059_vm5, %v3318_v48  ;;  %2352 = vrot.lane.b32.xlu0 %v2170_v37, %s7223_s21  ;;  %v1740_v37 = vld [vmem:[#allocation2 + $0x1b1] sm:$0xff] }
 0x22f   : > { %v2741_v25 = vpop.permute.xlu1 %2740 }
 0x230   : > { %2942 = vst.msk [vmem:[#allocation3 + $0x168] sm:$0xff] %vm2926_vm7, %v2741_v25  ;;  %v1884_v27 = vpop.permute.xlu0 %1883  ;;  %v2172_v25 = vld [vmem:[#allocation2 + $0x1aa] sm:$0xff] }
 0x231   : > { %2080 = vst.msk [vmem:[#allocation3 + $0x1e0] sm:$0xff] %vm2059_vm5, %v1884_v27  ;;  %2354 = vrot.lane.b32.xlu1 %v2171_v45, %s7223_s21  ;;  %v1741_v45 = vld [vmem:[#allocation2 + $0x1c1] sm:$0xff] }
 0x232   : > { %1923 = vrot.lane.b32.xlu0 %v1739_v14, %s7222_s14  ;;  %v2173_v14 = vld [vmem:[#allocation2 + $0x1b2] sm:$0xff] }
 0x233   : > { %v1882_v51 = vpop.permute.xlu1 %1881 }
 0x234   : > { %v2317_v12 = vpop.permute.xlu0 %2316  ;;  %2079 = vst.msk [vmem:[#allocation3 + $0x1c8] sm:$0xff] %vm2059_vm5, %v1882_v51  ;;  %v4621_v48 = vld [vmem:[#allocation3 + $0x128] sm:$0xff]  ;;  %v8789_v51 = vpop.f32.mrb[120].mxu0 }
 0x235   : > { %2513 = vst.msk [vmem:[#allocation3 + $0x1e0] sm:$0xff] %vm2492_vm6, %v2317_v12  ;;  %5176 = vmatprep.mubr.f32.mxu1 %v4621_v48  ;;  %1925 = vrot.lane.b32.xlu1 %v1740_v37, %s7222_s14  ;;  %10155 = vst [vmem:[#allocation39_spill] sm:$0xff] %v8789_v51  ;;  %v8791_v48 = vpop.f32.mrb[121].mxu0  ;;  %v4623_v51 = vld [vmem:[#allocation3 + $0x138] sm:$0xff] }
 0x236   : > { %2356 = vrot.lane.b32.xlu0 %v2172_v25, %s7223_s21  ;;  %5177 = vmatmul.mubr.f32.gmra.mrb[24].mxu1 %v4620_v2  ;;  %10156 = vst [vmem:[#allocation40_spill] sm:$0xff] %v8791_v48  ;;  %v1742_v2 = vld [vmem:[#allocation2 + $0x1c9] sm:$0xff]  ;;  %v1743_v48 = vld [vmem:[#allocation2 + $0x1d1] sm:$0xff] }
 0x237   : > { %v2315_v27 = vpop.permute.xlu1 %2314  ;;  %v2174_v25 = vld [vmem:[#allocation2 + $0x1c2] sm:$0xff] }
 0x238   : > { %v4179_v30 = vpop.permute.xlu0 %4178  ;;  %2512 = vst.msk [vmem:[#allocation3 + $0x1c8] sm:$0xff] %vm2492_vm6, %v2315_v27 }
 0x239   : > { %4381 = vst.msk [vmem:[#allocation3 + $0x140] sm:$0xff] %vm2926_vm7, %v4179_v30  ;;  %2358 = vrot.lane.b32.xlu1 %v2173_v14, %s7223_s21  ;;  %v2175_v14 = vld [vmem:[#allocation2 + $0x1ca] sm:$0xff] }
 0x23a   : > { %1927 = vrot.lane.b32.xlu0 %v1741_v45, %s7222_s14 }
 0x23b   : > { %v3749_v12 = vpop.permute.xlu1 %3748 }
 0x23c   : > { %v4181_v37 = vpop.permute.xlu0 %4180  ;;  %3950 = vst.msk [vmem:[#allocation3 + $0x158] sm:$0xff] %vm2492_vm6, %v3749_v12  ;;  %v1744_v12 = vld [vmem:[#allocation2 + $0x1e1] sm:$0xff] }
 0x23d   : > { %4382 = vst.msk [vmem:[#allocation3 + $0x158] sm:$0xff] %vm2926_vm7, %v4181_v37  ;;  %1929 = vrot.lane.b32.xlu1 %v1742_v2, %s7222_s14 }
 0x23e   : > { %2360 = vrot.lane.b32.xlu0 %v2174_v25, %s7223_s21 }
 0x23f   : > { %v2745_v30 = vpop.permute.xlu1 %2744 }
 0x240   : > { %v3320_v27 = vpop.permute.xlu0 %3319  ;;  %2944 = vst.msk [vmem:[#allocation3 + $0x198] sm:$0xff] %vm2926_vm7, %v2745_v30  ;;  %v4624_v45 = vld [vmem:[#allocation3 + $0x140] sm:$0xff]  ;;  %v2176_v30 = vld [vmem:[#allocation2 + $0x1d2] sm:$0xff] }
 0x241   : > { %3519 = vst.msk [vmem:[#allocation3 + $0x188] sm:$0xff] %vm2059_vm5, %v3320_v27  ;;  %5181 = vmatprep.mubr.f32.mxu1 %v4624_v45  ;;  %2362 = vrot.lane.b32.xlu1 %v2175_v14, %s7223_s21  ;;  %v4626_v27 = vld [vmem:[#allocation3 + $0x150] sm:$0xff] }
 0x242   : > { %5182 = vmatmul.mubr.f32.gmra.mrb[26].mxu1 %v4623_v51  ;;  %1931 = vrot.lane.b32.xlu0 %v1743_v48, %s7222_s14  ;;  %v2177_v48 = vld [vmem:[#allocation2 + $0x1e2] sm:$0xff] }
 0x243   : > { %v3753_v37 = vpop.permute.xlu1 %3752  ;;  %v1745_v14 = vld [vmem:[#allocation2 + $0x1e9] sm:$0xff] }
 0x244   : > { %v3322_v2 = vpop.permute.xlu0 %3321  ;;  %3952 = vst.msk [vmem:[#allocation3 + $0x188] sm:$0xff] %vm2492_vm6, %v3753_v37  ;;  %v4627_v25 = vld [vmem:[#allocation3 + $0x158] sm:$0xff]  ;;  %v8808_v37 = vpop.f32.mrb[122].mxu0 }
 0x245   : > { %3520 = vst.msk [vmem:[#allocation3 + $0x1a0] sm:$0xff] %vm2059_vm5, %v3322_v2  ;;  %5186 = vmatprep.mubr.f32.mxu1 %v4627_v25  ;;  %1933 = vrot.lane.b32.xlu1 %v1744_v12, %s7222_s14  ;;  %10157 = vst [vmem:[#allocation41_spill] sm:$0xff] %v8808_v37  ;;  %v8810_v25 = vpop.f32.mrb[123].mxu0  ;;  %v2179_v37 = vld [vmem:[#allocation2 + $0x1f2] sm:$0xff] }
 0x246   : > { %2364 = vrot.lane.b32.xlu0 %v2176_v30, %s7223_s21  ;;  %5187 = vmatmul.mubr.f32.gmra.mrb[28].mxu1 %v4626_v27  ;;  %10158 = vst [vmem:[#allocation42_spill] sm:$0xff] %v8810_v25  ;;  %v1746_v30 = vld [vmem:[#allocation2 + $0x1f1] sm:$0xff] }
 0x247   : > { %v1886_v45 = vpop.permute.xlu1 %1885  ;;  %v2178_v27 = vld [vmem:[#allocation2 + $0x1ea] sm:$0xff] }
 0x248   : > { %v4183_v51 = vpop.permute.xlu0 %4182  ;;  %2081 = vst.msk [vmem:[#allocation3 + $0x1f8] sm:$0xff] %vm2059_vm5, %v1886_v45 }
 0x249   : > { %2366 = vrot.lane.b32.xlu1 %v2177_v48, %s7223_s21  ;;  %v1747_v48 = vld [vmem:[#allocation2 + $0x201] sm:$0xff] }
 0x24a   : > { %1935 = vrot.lane.b32.xlu0 %v1745_v14, %s7222_s14 }
 0x24b   : > { %v2319_v2 = vpop.permute.xlu1 %2318 }
 0x24c   : > { %v3324_v12 = vpop.permute.xlu0 %3323  ;;  %2514 = vst.msk [vmem:[#allocation3 + $0x1f8] sm:$0xff] %vm2492_vm6, %v2319_v2 }
 0x24d   : > { %3521 = vst.msk [vmem:[#allocation3 + $0x1b8] sm:$0xff] %vm2059_vm5, %v3324_v12  ;;  %1937 = vrot.lane.b32.xlu1 %v1746_v30, %s7222_s14  ;;  %v1748_v30 = vld [vmem:[#allocation2 + $0x209] sm:$0xff] }
 0x24e   : > { %2368 = vrot.lane.b32.xlu0 %v2178_v27, %s7223_s21  ;;  %v2180_v27 = vld [vmem:[#allocation2 + $0x202] sm:$0xff] }
 0x24f   : > { %v3751_v45 = vpop.permute.xlu1 %3750 }
 0x250   : > { %3951 = vst.msk [vmem:[#allocation3 + $0x170] sm:$0xff] %vm2492_vm6, %v3751_v45  ;;  %v1888_v14 = vpop.permute.xlu0 %1887 }
 0x251   : > { %4383 = vst.msk [vmem:[#allocation3 + $0x170] sm:$0xff] %vm2926_vm7, %v4183_v51  ;;  %2370 = vrot.lane.b32.xlu1 %v2179_v37, %s7223_s21  ;;  %v8825_v51 = vpop.f32.mrb[124].mxu0 }
 0x252   : > { %2082 = vst.msk [vmem:[#allocation3 + $0x210] sm:$0xff] %vm2059_vm5, %v1888_v14  ;;  %1939 = vrot.lane.b32.xlu0 %v1747_v48, %s7222_s14  ;;  %10159 = vst [vmem:[#allocation43_spill] sm:$0xff] %v8825_v51  ;;  %v2181_v48 = vld [vmem:[#allocation2 + $0x20a] sm:$0xff]  ;;  %v8828_v25 = vpop.f32.mrb[125].mxu0  ;;  %v2182_v51 = vld [vmem:[#allocation2 + $0x212] sm:$0xff] }
 0x253   : > { %v2747_v2 = vpop.permute.xlu1 %2746  ;;  %10160 = vst [vmem:[#allocation44_spill] sm:$0xff] %v8828_v25  ;;  %v8836_v25 = vpop.f32.mrb[126].mxu0 }
 0x254   : > { %2945 = vst.msk [vmem:[#allocation3 + $0x1b0] sm:$0xff] %vm2926_vm7, %v2747_v2  ;;  %v2321_v12 = vpop.permute.xlu0 %2320  ;;  %v1749_v2 = vld [vmem:[#allocation2 + $0x211] sm:$0xff]  ;;  %10161 = vst [vmem:[#allocation45_spill] sm:$0xff] %v8836_v25 }
 0x255   : > { %2515 = vst.msk [vmem:[#allocation3 + $0x210] sm:$0xff] %vm2492_vm6, %v2321_v12  ;;  %1941 = vrot.lane.b32.xlu1 %v1748_v30, %s7222_s14  ;;  %v4629_v12 = vld [vmem:[#allocation3 + $0x168] sm:$0xff] }
 0x256   : > { %2372 = vrot.lane.b32.xlu0 %v2180_v27, %s7223_s21  ;;  %v1750_v30 = vld [vmem:[#allocation2 + $0x221] sm:$0xff] }
 0x257   : > { %v1890_v45 = vpop.permute.xlu1 %1889 }
 0x258   : > { %2083 = vst.msk [vmem:[#allocation3 + $0x228] sm:$0xff] %vm2059_vm5, %v1890_v45  ;;  %v4185_v37 = vpop.permute.xlu0 %4184  ;;  %v4630_v14 = vld [vmem:[#allocation3 + $0x170] sm:$0xff] }
 0x259   : > { %4384 = vst.msk [vmem:[#allocation3 + $0x188] sm:$0xff] %vm2926_vm7, %v4185_v37  ;;  %5191 = vmatprep.mubr.f32.mxu1 %v4630_v14  ;;  %2374 = vrot.lane.b32.xlu1 %v2181_v48, %s7223_s21  ;;  %v8838_v14 = vpop.f32.mrb[127].mxu0 }
 0x25a   : > { %1943 = vrot.lane.b32.xlu0 %v1749_v2, %s7222_s14  ;;  %5192 = vmatmul.mubr.f32.gmra.mrb[30].mxu1 %v4629_v12  ;;  %10162 = vst [vmem:[#allocation46_spill] sm:$0xff] %v8838_v14  ;;  %v2183_v12 = vld [vmem:[#allocation2 + $0x222] sm:$0xff]  ;;  %v1752_v14 = vld [vmem:[#allocation2 + $0x231] sm:$0xff] }
 0x25b   : > { %v2323_v27 = vpop.permute.xlu1 %2322  ;;  %v8845_v25 = vpop.f32.mrb[128].mxu0 }
 0x25c   : > { %2516 = vst.msk [vmem:[#allocation3 + $0x228] sm:$0xff] %vm2492_vm6, %v2323_v27  ;;  %v4187_v45 = vpop.permute.xlu0 %4186  ;;  %v4632_v27 = vld [vmem:[#allocation3 + $0x180] sm:$0xff]  ;;  %10163 = vst [vmem:[#allocation47_spill] sm:$0xff] %v8845_v25  ;;  %v8848_v19 = vpop.f32.mrb[129].mxu0 }
 0x25d   : > { %1945 = vrot.lane.b32.xlu1 %v1750_v30, %s7222_s14  ;;  %v1751_v30 = vld [vmem:[#allocation2 + $0x229] sm:$0xff]  ;;  %10164 = vst [vmem:[#allocation48_spill] sm:$0xff] %v8848_v19  ;;  %v1758_v19 = vld [vmem:[#allocation2 + $0x271] sm:$0xff] }
 0x25e   : > { %2376 = vrot.lane.b32.xlu0 %v2182_v51, %s7223_s21  ;;  %v2186_v25 = vld [vmem:[#allocation2 + $0x242] sm:$0xff] }
 0x25f   : > { %v3755_v37 = vpop.permute.xlu1 %3754 }
 0x260   : > { %3953 = vst.msk [vmem:[#allocation3 + $0x1a0] sm:$0xff] %vm2492_vm6, %v3755_v37  ;;  %v1892_v48 = vpop.permute.xlu0 %1891  ;;  %v4633_v2 = vld [vmem:[#allocation3 + $0x188] sm:$0xff] }
 0x261   : > { %4385 = vst.msk [vmem:[#allocation3 + $0x1a0] sm:$0xff] %vm2926_vm7, %v4187_v45  ;;  %5196 = vmatprep.mubr.f32.mxu1 %v4633_v2  ;;  %2378 = vrot.lane.b32.xlu1 %v2183_v12, %s7223_s21  ;;  %v2184_v45 = vld [vmem:[#allocation2 + $0x22a] sm:$0xff]  ;;  %v1753_v2 = vld [vmem:[#allocation2 + $0x241] sm:$0xff] }
 0x262   : > { %2084 = vst.msk [vmem:[#allocation3 + $0x240] sm:$0xff] %vm2059_vm5, %v1892_v48  ;;  %5197 = vmatmul.mubr.f32.gmra.mrb[32].mxu1 %v4632_v27  ;;  %1947 = vrot.lane.b32.xlu0 %v1751_v30, %s7222_s14  ;;  %v2185_v30 = vld [vmem:[#allocation2 + $0x232] sm:$0xff] }
 0x263   : > { %v3757_v51 = vpop.permute.xlu1 %3756 }
 0x264   : > { %3954 = vst.msk [vmem:[#allocation3 + $0x1b8] sm:$0xff] %vm2492_vm6, %v3757_v51  ;;  %v2325_v37 = vpop.permute.xlu0 %2324  ;;  %v4635_v51 = vld [vmem:[#allocation3 + $0x198] sm:$0xff] }
 0x265   : > { %2517 = vst.msk [vmem:[#allocation3 + $0x240] sm:$0xff] %vm2492_vm6, %v2325_v37  ;;  %1949 = vrot.lane.b32.xlu1 %v1752_v14, %s7222_s14 }
 0x266   : > { %2380 = vrot.lane.b32.xlu0 %v2184_v45, %s7223_s21  ;;  %v1754_v45 = vld [vmem:[#allocation2 + $0x249] sm:$0xff] }
 0x267   : > { %v1894_v48 = vpop.permute.xlu1 %1893 }
 0x268   : > { %v4189_v12 = vpop.permute.xlu0 %4188  ;;  %2085 = vst.msk [vmem:[#allocation3 + $0x258] sm:$0xff] %vm2059_vm5, %v1894_v48  ;;  %v4636_v27 = vld [vmem:[#allocation3 + $0x1a0] sm:$0xff] }
 0x269   : > { %4386 = vst.msk [vmem:[#allocation3 + $0x1b8] sm:$0xff] %vm2926_vm7, %v4189_v12  ;;  %5201 = vmatprep.mubr.f32.mxu1 %v4636_v27  ;;  %2382 = vrot.lane.b32.xlu1 %v2185_v30, %s7223_s21  ;;  %v8861_v12 = vpop.f32.mrb[130].mxu0  ;;  %v2187_v30 = vld [vmem:[#allocation2 + $0x24a] sm:$0xff] }
 0x26a   : > { %1951 = vrot.lane.b32.xlu0 %v1753_v2, %s7222_s14  ;;  %5202 = vmatmul.mubr.f32.gmra.mrb[34].mxu1 %v4635_v51  ;;  %10165 = vst [vmem:[#allocation49_spill] sm:$0xff] %v8861_v12  ;;  %v8864_v51 = vpop.f32.mrb[131].mxu0 }
 0x26b   : > { %v2327_v14 = vpop.permute.xlu1 %2326  ;;  %10166 = vst [vmem:[#allocation50_spill] sm:$0xff] %v8864_v51 }
 0x26c   : > { %v1896_v37 = vpop.permute.xlu0 %1895  ;;  %2518 = vst.msk [vmem:[#allocation3 + $0x258] sm:$0xff] %vm2492_vm6, %v2327_v14  ;;  %v4638_v14 = vld [vmem:[#allocation3 + $0x1b0] sm:$0xff] }
 0x26d   : > { %2086 = vst.msk [vmem:[#allocation3 + $0x270] sm:$0xff] %vm2059_vm5, %v1896_v37  ;;  %1953 = vrot.lane.b32.xlu1 %v1754_v45, %s7222_s14  ;;  %v1755_v37 = vld [vmem:[#allocation2 + $0x251] sm:$0xff] }
 0x26e   : > { %2384 = vrot.lane.b32.xlu0 %v2186_v25, %s7223_s21  ;;  %v1756_v25 = vld [vmem:[#allocation2 + $0x261] sm:$0xff] }
 0x26f   : > { %v1898_v48 = vpop.permute.xlu1 %1897 }
 0x270   : > { %v2329_v27 = vpop.permute.xlu0 %2328  ;;  %2087 = vst.msk [vmem:[#allocation3 + $0x288] sm:$0xff] %vm2059_vm5, %v1898_v48  ;;  %v4639_v2 = vld [vmem:[#allocation3 + $0x1b8] sm:$0xff] }
 0x271   : > { %2519 = vst.msk [vmem:[#allocation3 + $0x270] sm:$0xff] %vm2492_vm6, %v2329_v27  ;;  %5206 = vmatprep.mubr.f32.mxu1 %v4639_v2  ;;  %2386 = vrot.lane.b32.xlu1 %v2187_v30, %s7223_s21  ;;  %v2188_v48 = vld [vmem:[#allocation2 + $0x252] sm:$0xff]  ;;  %v8873_v27 = vpop.f32.mrb[132].mxu0 }
 0x272   : > { %5207 = vmatmul.mubr.f32.gmra.mrb[36].mxu1 %v4638_v14  ;;  %1955 = vrot.lane.b32.xlu0 %v1755_v37, %s7222_s14  ;;  %10167 = vst [vmem:[#allocation51_spill] sm:$0xff] %v8873_v27  ;;  %v8875_v51 = vpop.f32.mrb[133].mxu0  ;;  %v2189_v14 = vld [vmem:[#allocation2 + $0x262] sm:$0xff] }
 0x273   : > { %v2331_v45 = vpop.permute.xlu1 %2330  ;;  %10168 = vst [vmem:[#allocation52_spill] sm:$0xff] %v8875_v51 }
 0x274   : > { %2520 = vst.msk [vmem:[#allocation3 + $0x288] sm:$0xff] %vm2492_vm6, %v2331_v45  ;;  %v1900_v12 = vpop.permute.xlu0 %1899 }
 0x275   : > { %2088 = vst.msk [vmem:[#allocation3 + $0x2a0] sm:$0xff] %vm2059_vm5, %v1900_v12  ;;  %1957 = vrot.lane.b32.xlu1 %v1756_v25, %s7222_s14  ;;  %v8882_v12 = vld [vmem:[%s10088_s4] ss:$0 sm:$0xff]  ;;  %v1757_v25 = vld [vmem:[#allocation2 + $0x269] sm:$0xff] }
 0x276   : > { %2388 = vrot.lane.b32.xlu0 %v2188_v48, %s7223_s21 }
 0x277   : > { %v1902_v2 = vpop.permute.xlu1 %1901 }
 0x278   : > { %2089 = vst.msk [vmem:[#allocation3 + $0x2b8] sm:$0xff] %vm2059_vm5, %v1902_v2  ;;  %v2333_v30 = vpop.permute.xlu0 %2332 }
 0x279   : > { %2521 = vst.msk [vmem:[#allocation3 + $0x2a0] sm:$0xff] %vm2492_vm6, %v2333_v30  ;;  %2390 = vrot.lane.b32.xlu1 %v2189_v14, %s7223_s21 }
 0x27a   : > { %1959 = vrot.lane.b32.xlu0 %v1757_v25, %s7222_s14  ;;  %v8887_v2 = vpop.f32.mrb[134].mxu0  ;;  %v1759_v25 = vld [vmem:[#allocation2 + $0x281] sm:$0xff] }
 0x27b   : > { %v2335_v27 = vpop.permute.xlu1 %2334  ;;  %10169 = vst [vmem:[#allocation53_spill] sm:$0xff] %v8887_v2  ;;  %v8891_v47 = vpop.f32.mrb[135].mxu0  ;;  %v2192_v2 = vld [vmem:[#allocation2 + $0x282] sm:$0xff] }
 0x27c   : > { %v5118_v37 = vpop.f32.mrb[0].mxu1  ;;  %2522 = vst.msk [vmem:[#allocation3 + $0x2b8] sm:$0xff] %vm2492_vm6, %v2335_v27  ;;  %v1904_v30 = vpop.permute.xlu0 %1903  ;;  %10170 = vst [vmem:[#allocation54_spill] sm:$0xff] %v8891_v47  ;;  %v2191_v27 = vld [vmem:[#allocation2 + $0x272] sm:$0xff] }
 0x27d   : > { %v5544_v45 = vadd.f32 %v8568_v44, %v5118_v37  ;;  %v5120_v48 = vpop.f32.mrb[1].mxu1  ;;  %2090 = vst.msk [vmem:[#allocation3 + $0x2d0] sm:$0xff] %vm2059_vm5, %v1904_v30  ;;  %1961 = vrot.lane.b32.xlu1 %v1758_v19, %s7222_s14  ;;  %v2190_v44 = vld [vmem:[#allocation2 + $0x26a] sm:$0xff] }
 0x27e   : > { %2392 = vrot.lane.b32.xlu0 %v2190_v44, %s7223_s21  ;;  %v1760_v30 = vld [vmem:[#allocation2 + $0x289] sm:$0xff] }
 0x27f   : > { %v5909_v51 = vadd.f32 %v8882_v12, %v5544_v45  ;;  %v1906_v37 = vpop.permute.xlu1 %1905 }
 0x280   : > { %v2337_v45 = vpop.permute.xlu0 %2336  ;;  %2091 = vst.msk [vmem:[#allocation3 + $0x2e8] sm:$0xff] %vm2059_vm5, %v1906_v37 }
 0x281   : > { %v5981_v14 = vmax.f32 %v5909_v51, 0.0  ;;  %2523 = vst.msk [vmem:[#allocation3 + $0x2d0] sm:$0xff] %vm2492_vm6, %v2337_v45  ;;  %2394 = vrot.lane.b32.xlu1 %v2191_v27, %s7223_s21 }
 0x282   : > { %1963 = vrot.lane.b32.xlu0 %v1759_v25, %s7222_s14 }
 0x283   : > { %6054 = vst.msk [vmem:[#allocation4] sm:$0xff] %vm6053_vm8, %v5981_v14  ;;  %v2339_v48 = vpop.permute.xlu1 %2338 }
 0x284   : > { %v1908_v19 = vpop.permute.xlu0 %1907  ;;  %2524 = vst.msk [vmem:[#allocation3 + $0x2e8] sm:$0xff] %vm2492_vm6, %v2339_v48 }
 0x285   : > { %2092 = vst.msk [vmem:[#allocation3 + $0x300] sm:$0xff] %vm2059_vm5, %v1908_v19  ;;  %1965 = vrot.lane.b32.xlu1 %v1760_v30, %s7222_s14  ;;  %v8907_v25 = vpop.f32.mrb[136].mxu0  ;;  %v1761_v19 = vld [vmem:[#allocation2 + $0x291] sm:$0xff] }
 0x286   : > { %2396 = vrot.lane.b32.xlu0 %v2192_v2, %s7223_s21  ;;  %v8910_v48 = vpop.f32.mrb[137].mxu0 }
 0x287   : > { %v1910_v45 = vpop.permute.xlu1 %1909 }
 0x288   : > { %v2341_v27 = vpop.permute.xlu0 %2340  ;;  %2093 = vst.msk [vmem:[#allocation3 + $0x318] sm:$0xff] %vm2059_vm5, %v1910_v45  ;;  %v3162_v45 = vld [vmem:[#allocation2 + $0xea] sm:$0xff] }
 0x289   : > { %v5123_v51 = vpop.f32.mrb[2].mxu1  ;;  %2525 = vst.msk [vmem:[#allocation3 + $0x300] sm:$0xff] %vm2492_vm6, %v2341_v27  ;;  %3758 = vrot.lane.b32.xlu1 %v8061_v4, %s7223_s21 }
 0x28a   : > { %v5549_v44 = vadd.f32 %v8565_v58, %v5123_v51  ;;  %v5125_v14 = vpop.f32.mrb[3].mxu1  ;;  %1967 = vrot.lane.b32.xlu0 %v1761_v19, %s7222_s14 }
 0x28b   : > { %v2343_v30 = vpop.permute.xlu1 %2342 }
 0x28c   : > { %v5910_v37 = vadd.f32 %v8882_v12, %v5549_v44  ;;  %2526 = vst.msk [vmem:[#allocation3 + $0x318] sm:$0xff] %vm2492_vm6, %v2343_v30  ;;  %v1912_v14 = vpop.permute.xlu0 %1911 }
 0x28d   : > { %v5128_v58 = vpop.f32.mrb[4].mxu1  ;;  %2094 = vst.msk [vmem:[#allocation3 + $0x330] sm:$0xff] %vm2059_vm5, %v1912_v14 }
 0x28e   : > { %v5982_v47 = vmax.f32 %v5910_v37, 0.0  ;;  %v5554_v2 = vadd.f32 %v8590_v15, %v5128_v58  ;;  %v5130_v51 = vpop.f32.mrb[5].mxu1  ;;  %v2193_v37 = vld [vmem:[#allocation2 + $0x28a] sm:$0xff]  ;;  %3325 = vrot.lane.b32.xlu0 %v3162_v45, %s7222_s14  ;;  %v8923_v15 = vpop.f32.mrb[138].mxu0 }
 0x28f   : > { %2398 = vrot.lane.b32.xlu1 %v2193_v37, %s7223_s21  ;;  %v1914_v58 = vpop.permute.xlu1 %1913  ;;  %v8925_v19 = vpop.f32.mrb[139].mxu0  ;;  %v1763_v51 = vld [vmem:[#allocation2 + $0x2a9] sm:$0xff]  ;;  %v1764_v45 = vld [vmem:[#allocation2 + $0x2b1] sm:$0xff] }
 0x290   : > { %6055 = vst.msk [vmem:[#allocation4 + $0x8] sm:$0xff] %vm6053_vm8, %v5982_v47  ;;  %v5911_v44 = vadd.f32 %v8882_v12, %v5554_v2  ;;  %v2345_v47 = vpop.permute.xlu0 %2344  ;;  %v1762_v2 = vld [vmem:[#allocation2 + $0x2a1] sm:$0xff] }
 0x291   : > { %2095 = vst.msk [vmem:[#allocation3 + $0x348] sm:$0xff] %vm2059_vm5, %v1914_v58 }
 0x292   : > { %v5983_v27 = vmax.f32 %v5911_v44, 0.0  ;;  %2527 = vst.msk [vmem:[#allocation3 + $0x330] sm:$0xff] %vm2492_vm6, %v2345_v47  ;;  %1971 = vrot.lane.b32.xlu0 %v1763_v51, %s7222_s14  ;;  %v1765_v44 = vld [vmem:[#allocation2 + $0x2c1] sm:$0xff]  ;;  %v8932_v14 = vpop.f32.mrb[140].mxu0  ;;  %v1767_v47 = vld [vmem:[#allocation2 + $0x2d1] sm:$0xff]  ;;  %v1766_v51 = vld [vmem:[#allocation2 + $0x2c9] sm:$0xff] }
 0x293   : > { %1969 = vrot.lane.b32.xlu1 %v1762_v2, %s7222_s14  ;;  %v2347_v30 = vpop.permute.xlu1 %2346  ;;  %10171 = vst [vmem:[#allocation55_spill] sm:$0xff] %v8932_v14 }
 0x294   : > { %6056 = vst.msk [vmem:[#allocation4 + $0x10] sm:$0xff] %vm6053_vm8, %v5983_v27  ;;  %v1916_v37 = vpop.permute.xlu0 %1915  ;;  %v8935_v27 = vpop.f32.mrb[141].mxu0 }
 0x295   : > { %2528 = vst.msk [vmem:[#allocation3 + $0x348] sm:$0xff] %vm2492_vm6, %v2347_v30  ;;  %10172 = vst [vmem:[#allocation56_spill] sm:$0xff] %v8935_v27 }
 0x296   : > { %2096 = vst.msk [vmem:[#allocation3 + $0x360] sm:$0xff] %vm2059_vm5, %v1916_v37  ;;  %1975 = vrot.lane.b32.xlu0 %v1765_v44, %s7222_s14 }
 0x297   : > { %1973 = vrot.lane.b32.xlu1 %v1764_v45, %s7222_s14  ;;  %v1918_v58 = vpop.permute.xlu1 %1917 }
 0x298   : > { %v2349_v2 = vpop.permute.xlu0 %2348  ;;  %2097 = vst.msk [vmem:[#allocation3 + $0x378] sm:$0xff] %vm2059_vm5, %v1918_v58  ;;  %v1768_v58 = vld [vmem:[#allocation2 + $0x2e1] sm:$0xff] }
 0x299   : > { %2529 = vst.msk [vmem:[#allocation3 + $0x360] sm:$0xff] %vm2492_vm6, %v2349_v2 }
 0x29a   : > { %1979 = vrot.lane.b32.xlu0 %v1767_v47, %s7222_s14  ;;  %v8950_v37 = vpop.f32.mrb[142].mxu0 }
 0x29b   : > { %1977 = vrot.lane.b32.xlu1 %v1766_v51, %s7222_s14  ;;  %v2351_v30 = vpop.permute.xlu1 %2350  ;;  %10173 = vst [vmem:[#allocation57_spill] sm:$0xff] %v8950_v37  ;;  %v8953_v47 = vpop.f32.mrb[143].mxu0  ;;  %v1770_v37 = vld [vmem:[#allocation2 + $0x2f1] sm:$0xff] }
 0x29c   : > { %v1920_v14 = vpop.permute.xlu0 %1919  ;;  %2530 = vst.msk [vmem:[#allocation3 + $0x378] sm:$0xff] %vm2492_vm6, %v2351_v30  ;;  %10174 = vst [vmem:[#allocation58_spill] sm:$0xff] %v8953_v47 }
 0x29d   : > { %2098 = vst.msk [vmem:[#allocation3 + $0x390] sm:$0xff] %vm2059_vm5, %v1920_v14  ;;  %v1769_v14 = vld [vmem:[#allocation2 + $0x2e9] sm:$0xff] }
 0x29e   : > { %4190 = vrot.lane.b32.xlu0 %v8071_v9, %s7224_s30 }
 0x29f   : > { %2748 = vrot.lane.b32.xlu1 %v7976_v39, %s7224_s30  ;;  %v1922_v44 = vpop.permute.xlu1 %1921 }
 0x2a0   : > { %v2353_v45 = vpop.permute.xlu0 %2352  ;;  %2099 = vst.msk [vmem:[#allocation3 + $0x3a8] sm:$0xff] %vm2059_vm5, %v1922_v44 }
 0x2a1   : > { %2531 = vst.msk [vmem:[#allocation3 + $0x390] sm:$0xff] %vm2492_vm6, %v2353_v45  ;;  %v3163_v45 = vld [vmem:[#allocation2 + $0xf2] sm:$0xff] }
 0x2a2   : > { %1983 = vrot.lane.b32.xlu0 %v1769_v14, %s7222_s14 }
 0x2a3   : > { %1981 = vrot.lane.b32.xlu1 %v1768_v58, %s7222_s14  ;;  %v2355_v51 = vpop.permute.xlu1 %2354 }
 0x2a4   : > { %2532 = vst.msk [vmem:[#allocation3 + $0x3a8] sm:$0xff] %vm2492_vm6, %v2355_v51  ;;  %v1924_v44 = vpop.permute.xlu0 %1923 }
 0x2a5   : > { %v5133_v2 = vpop.f32.mrb[6].mxu1  ;;  %2100 = vst.msk [vmem:[#allocation3 + $0x3c0] sm:$0xff] %vm2059_vm5, %v1924_v44 }
 0x2a6   : > { %v5559_v39 = vadd.f32 %v8585_v33, %v5133_v2  ;;  %v5135_v9 = vpop.f32.mrb[7].mxu1  ;;  %3327 = vrot.lane.b32.xlu0 %v3163_v45, %s7222_s14  ;;  %v8965_v2 = vpop.f32.mrb[144].mxu0  ;;  %v3164_v45 = vld [vmem:[#allocation2 + $0x102] sm:$0xff] }
 0x2a7   : > { %1985 = vrot.lane.b32.xlu1 %v1770_v37, %s7222_s14  ;;  %v1926_v14 = vpop.permute.xlu1 %1925 }
 0x2a8   : > { %v5912_v30 = vadd.f32 %v8882_v12, %v5559_v39  ;;  %v8967_v39 = vpop.f32.mrb[145].mxu0  ;;  %2101 = vst.msk [vmem:[#allocation3 + $0x3d8] sm:$0xff] %vm2059_vm5, %v1926_v14  ;;  %v2357_v51 = vpop.permute.xlu0 %2356 }
 0x2a9   : > { %v5138_v47 = vpop.f32.mrb[8].mxu1  ;;  %2533 = vst.msk [vmem:[#allocation3 + $0x3c0] sm:$0xff] %vm2492_vm6, %v2357_v51 }
 0x2aa   : > { %v5984_v58 = vmax.f32 %v5912_v30, 0.0  ;;  %v5564_v27 = vadd.f32 %v8605_v56, %v5138_v47  ;;  %v5140_v33 = vpop.f32.mrb[9].mxu1  ;;  %4192 = vrot.lane.b32.xlu0 %v8095_v0, %s7224_s30  ;;  %v8977_v47 = vpop.f32.mrb[146].mxu0  ;;  %v2586_v30 = vld [vmem:[#allocation2 + $0xf0] sm:$0xff] }
 0x2ab   : > { %3760 = vrot.lane.b32.xlu1 %v8088_v29, %s7223_s21  ;;  %v2359_v37 = vpop.permute.xlu1 %2358  ;;  %v8981_v44 = vpop.f32.mrb[147].mxu0 }
 0x2ac   : > { %6057 = vst.msk [vmem:[#allocation4 + $0x18] sm:$0xff] %vm6053_vm8, %v5984_v58  ;;  %v5913_v9 = vadd.f32 %v8882_v12, %v5564_v27  ;;  %v1928_v27 = vpop.permute.xlu0 %1927  ;;  %v6126_v58 = vld [vmem:[#allocation4] sm:$0xff] }
 0x2ad   : > { %2534 = vst.msk [vmem:[#allocation3 + $0x3d8] sm:$0xff] %vm2492_vm6, %v2359_v37 }
 0x2ae   : > { %v5985_v56 = vmax.f32 %v5913_v9, 0.0  ;;  %2102 = vst.msk [vmem:[#allocation3 + $0x3f0] sm:$0xff] %vm2059_vm5, %v1928_v27  ;;  %3329 = vrot.lane.b32.xlu0 %v3164_v45, %s7222_s14  ;;  %v6127_v27 = vld [vmem:[#allocation4 + $0x8] sm:$0xff] }
 0x2af   : > { %2750 = vrot.lane.b32.xlu1 %v2586_v30, %s7224_s30  ;;  %v1930_v33 = vpop.permute.xlu1 %1929 }
 0x2b0   : > { %6058 = vst.msk [vmem:[#allocation4 + $0x20] sm:$0xff] %vm6053_vm8, %v5985_v56  ;;  %v2361_v9 = vpop.permute.xlu0 %2360 }
 0x2b1   : > { %2103 = vst.msk [vmem:[#allocation3 + $0x408] sm:$0xff] %vm2059_vm5, %v1930_v33 }
 0x2b2   : > { %2535 = vst.msk [vmem:[#allocation3 + $0x3f0] sm:$0xff] %vm2492_vm6, %v2361_v9  ;;  %4194 = vrot.lane.b32.xlu0 %v8130_v8, %s7224_s30  ;;  %v2587_v9 = vld [vmem:[#allocation2 + $0x100] sm:$0xff] }
 0x2b3   : > { %v6163_v0 = vld [vmem:[#allocation4 + $0x18] sm:$0xff]  ;;  %v5143_v51 = vpop.f32.mrb[10].mxu1  ;;  %3762 = vrot.lane.b32.xlu1 %v8122_v1, %s7223_s21  ;;  %v2363_v45 = vpop.permute.xlu1 %2362 }
 0x2b4   : > { %v6199_v14 = vmax.f32 %v6126_v58, %v6163_v0  ;;  %v5569_v56 = vadd.f32 %v8602_v18, %v5143_v51  ;;  %v5145_v37 = vpop.f32.mrb[11].mxu1  ;;  %v1932_v33 = vpop.permute.xlu0 %1931  ;;  %2536 = vst.msk [vmem:[#allocation3 + $0x408] sm:$0xff] %vm2492_vm6, %v2363_v45  ;;  %v3165_v18 = vld [vmem:[#allocation2 + $0x10a] sm:$0xff] }
 0x2b5   : > { %2104 = vst.msk [vmem:[#allocation3 + $0x420] sm:$0xff] %vm2059_vm5, %v1932_v33  ;;  %v9000_v51 = vpop.f32.mrb[148].mxu0 }
 0x2b6   : > { %6235 = vst.msk [vmem:[#allocation5] sm:$0xff] %vm6053_vm8, %v6199_v14  ;;  %v5914_v0 = vadd.f32 %v8882_v12, %v5569_v56  ;;  %3331 = vrot.lane.b32.xlu0 %v3165_v18, %s7222_s14  ;;  %v9004_v37 = vpop.f32.mrb[149].mxu0 }
 0x2b7   : > { %v6164_v30 = vld [vmem:[#allocation4 + $0x20] sm:$0xff]  ;;  %2752 = vrot.lane.b32.xlu1 %v2587_v9, %s7224_s30  ;;  %v1934_v14 = vpop.permute.xlu1 %1933  ;;  %v6128_v9 = vld [vmem:[#allocation4 + $0x10] sm:$0xff] }
 0x2b8   : > { %v6200_v58 = vmax.f32 %v6127_v27, %v6164_v30  ;;  %v5986_v8 = vmax.f32 %v5914_v0, 0.0  ;;  %v2365_v56 = vpop.permute.xlu0 %2364  ;;  %2105 = vst.msk [vmem:[#allocation3 + $0x438] sm:$0xff] %vm2059_vm5, %v1934_v14  ;;  %v3166_v0 = vld [vmem:[#allocation2 + $0x112] sm:$0xff] }
 0x2b9   : > { %2537 = vst.msk [vmem:[#allocation3 + $0x420] sm:$0xff] %vm2492_vm6, %v2365_v56 }
 0x2ba   : > { %6236 = vst.msk [vmem:[#allocation5 + $0x8] sm:$0xff] %vm6053_vm8, %v6200_v58  ;;  %6059 = vst.msk [vmem:[#allocation4 + $0x28] sm:$0xff] %vm6053_vm8, %v5986_v8  ;;  %4196 = vrot.lane.b32.xlu0 %v8132_v16, %s7224_s30  ;;  %v9022_v16 = vpop.f32.mrb[150].mxu0 }
 0x2bb   : > { %3764 = vrot.lane.b32.xlu1 %v8124_v3, %s7223_s21  ;;  %v2367_v27 = vpop.permute.xlu1 %2366  ;;  %v9024_v14 = vpop.f32.mrb[151].mxu0 }
 0x2bc   : > { %2538 = vst.msk [vmem:[#allocation3 + $0x438] sm:$0xff] %vm2492_vm6, %v2367_v27  ;;  %v1936_v30 = vpop.permute.xlu0 %1935 }
 0x2bd   : > { %2106 = vst.msk [vmem:[#allocation3 + $0x450] sm:$0xff] %vm2059_vm5, %v1936_v30 }
 0x2be   : > { %3333 = vrot.lane.b32.xlu0 %v3166_v0, %s7222_s14 }
 0x2bf   : > { %2754 = vrot.lane.b32.xlu1 %v8061_v4, %s7224_s30  ;;  %v1938_v8 = vpop.permute.xlu1 %1937 }
 0x2c0   : > { %2107 = vst.msk [vmem:[#allocation3 + $0x468] sm:$0xff] %vm2059_vm5, %v1938_v8  ;;  %v2369_v27 = vpop.permute.xlu0 %2368 }
 0x2c1   : > { %v6271_v45 = vld [vmem:[#allocation5] ss:$2 sm:$0xff]  ;;  %v6319_v58 = vld [vmem:[#allocation5 + $0x1] ss:$2 sm:$0xff]  ;;  %2539 = vst.msk [vmem:[#allocation3 + $0x450] sm:$0xff] %vm2492_vm6, %v2369_v27 }
 0x2c2   : > { %v6366_v33 = vmax.f32 %v6271_v45, %v6319_v58  ;;  %v6165_v18 = vld [vmem:[#allocation4 + $0x28] sm:$0xff]  ;;  %v5148_v4 = vpop.f32.mrb[12].mxu1  ;;  %4198 = vrot.lane.b32.xlu0 %v8153_v31, %s7224_s30 }
 0x2c3   : > { %v6201_v56 = vmax.f32 %v6128_v9, %v6165_v18  ;;  %3766 = vrot.lane.b32.xlu1 %v8151_v38, %s7223_s21  ;;  %v5574_v30 = vadd.f32 %v8627_v34, %v5148_v4  ;;  %v5150_v45 = vpop.f32.mrb[13].mxu1  ;;  %v2371_v58 = vpop.permute.xlu1 %2370  ;;  %v3167_v34 = vld [vmem:[#allocation2 + $0x122] sm:$0xff] }
 0x2c4   : > { %6390 = vst.msk [vmem:[%s9016_s7] sm:$0xff] %vm6053_vm8, %v6366_v33  ;;  %v9036_v0 = vpop.f32.mrb[152].mxu0  ;;  %v1940_v9 = vpop.permute.xlu0 %1939 }
 0x2c5   : > { %6237 = vst.msk [vmem:[#allocation5 + $0x10] sm:$0xff] %vm6053_vm8, %v6201_v56  ;;  %v5915_v33 = vadd.f32 %v8882_v12, %v5574_v30  ;;  %v9040_v18 = vpop.f32.mrb[153].mxu0 }
 0x2c6   : > { %2540 = vst.msk [vmem:[#allocation3 + $0x468] sm:$0xff] %vm2492_vm6, %v2371_v58  ;;  %3335 = vrot.lane.b32.xlu0 %v3167_v34, %s7222_s14  ;;  %v3168_v34 = vld [vmem:[#allocation2 + $0x12a] sm:$0xff] }
 0x2c7   : > { %2108 = vst.msk [vmem:[#allocation3 + $0x480] sm:$0xff] %vm2059_vm5, %v1940_v9  ;;  %2756 = vrot.lane.b32.xlu1 %v8088_v29, %s7224_s30  ;;  %v5987_v8 = vmax.f32 %v5915_v33, 0.0  ;;  %v1942_v31 = vpop.permute.xlu1 %1941 }
 0x2c8   : > { %v2373_v56 = vpop.permute.xlu0 %2372  ;;  %2109 = vst.msk [vmem:[#allocation3 + $0x498] sm:$0xff] %vm2059_vm5, %v1942_v31 }
 0x2c9   : > { %6060 = vst.msk [vmem:[#allocation4 + $0x30] sm:$0xff] %vm6053_vm8, %v5987_v8 }
 0x2ca   : > { %2541 = vst.msk [vmem:[#allocation3 + $0x480] sm:$0xff] %vm2492_vm6, %v2373_v56  ;;  %4200 = vrot.lane.b32.xlu0 %v8185_v60, %s7224_s30 }
 0x2cb   : > { %3768 = vrot.lane.b32.xlu1 %v8176_v32, %s7223_s21  ;;  %v2375_v30 = vpop.permute.xlu1 %2374 }
 0x2cc   : > { %v6273_v27 = vld [vmem:[#allocation5 + $0x10] ss:$2 sm:$0xf]  ;;  %v6321_v4 = vld [vmem:[#allocation5 + $0x11] ss:$2 sm:$0xf]  ;;  %v1944_v45 = vpop.permute.xlu0 %1943 }
 0x2cd   : > { %v6367_v29 = vmax.f32 %v6273_v27, %v6321_v4  ;;  %2542 = vst.msk [vmem:[#allocation3 + $0x498] sm:$0xff] %vm2492_vm6, %v2375_v30  ;;  %v5153_v58 = vpop.f32.mrb[14].mxu1  ;;  %v9062_v31 = vpop.f32.mrb[154].mxu0 }
 0x2ce   : > { %2110 = vst.msk [vmem:[#allocation3 + $0x4b0] sm:$0xff] %vm2059_vm5, %v1944_v45  ;;  %v5579_v33 = vadd.f32 %v8624_v13, %v5153_v58  ;;  %v5155_v9 = vpop.f32.mrb[15].mxu1  ;;  %3337 = vrot.lane.b32.xlu0 %v3168_v34, %s7222_s14  ;;  %v9065_v27 = vpop.f32.mrb[155].mxu0 }
 0x2cf   : > { %6392 = vst.msk [vmem:[%s9016_s7 + $0x8] sm:$0xf] %vm6391_vm9, %v6367_v29  ;;  %2758 = vrot.lane.b32.xlu1 %v8122_v1, %s7224_s30  ;;  %v1946_v8 = vpop.permute.xlu1 %1945 }
 0x2d0   : > { %v5916_v60 = vadd.f32 %v8882_v12, %v5579_v33  ;;  %v2377_v56 = vpop.permute.xlu0 %2376  ;;  %2111 = vst.msk [vmem:[#allocation3 + $0x4c8] sm:$0xff] %vm2059_vm5, %v1946_v8  ;;  %v3169_v33 = vld [vmem:[#allocation2 + $0x132] sm:$0xff] }
 0x2d1   : > { %2543 = vst.msk [vmem:[#allocation3 + $0x4b0] sm:$0xff] %vm2492_vm6, %v2377_v56  ;;  %v5158_v13 = vpop.f32.mrb[16].mxu1 }
 0x2d2   : > { %v5988_v4 = vmax.f32 %v5916_v60, 0.0  ;;  %v5584_v1 = vadd.f32 %v8639_v11, %v5158_v13  ;;  %4202 = vrot.lane.b32.xlu0 %v8190_v6, %s7224_s30  ;;  %v5160_v29 = vpop.f32.mrb[17].mxu1  ;;  %v9080_v11 = vpop.f32.mrb[156].mxu0  ;;  %v3170_v13 = vld [vmem:[#allocation2 + $0x142] sm:$0xff] }
 0x2d3   : > { %3770 = vrot.lane.b32.xlu1 %v8183_v43, %s7223_s21  ;;  %v2379_v30 = vpop.permute.xlu1 %2378  ;;  %v9082_v34 = vpop.f32.mrb[157].mxu0 }
 0x2d4   : > { %6061 = vst.msk [vmem:[#allocation4 + $0x38] sm:$0xff] %vm6053_vm8, %v5988_v4  ;;  %v5917_v45 = vadd.f32 %v8882_v12, %v5584_v1  ;;  %v1948_v58 = vpop.permute.xlu0 %1947 }
 0x2d5   : > { %2544 = vst.msk [vmem:[#allocation3 + $0x4c8] sm:$0xff] %vm2492_vm6, %v2379_v30 }
 0x2d6   : > { %2112 = vst.msk [vmem:[#allocation3 + $0x4e0] sm:$0xff] %vm2059_vm5, %v1948_v58  ;;  %v5989_v9 = vmax.f32 %v5917_v45, 0.0  ;;  %3339 = vrot.lane.b32.xlu0 %v3169_v33, %s7222_s14  ;;  %v9091_v8 = vpop.f32.mrb[158].mxu0 }
 0x2d7   : > { %2760 = vrot.lane.b32.xlu1 %v8124_v3, %s7224_s30  ;;  %v1950_v6 = vpop.permute.xlu1 %1949  ;;  %v9094_v4 = vpop.f32.mrb[159].mxu0 }
 0x2d8   : > { %6062 = vst.msk [vmem:[#allocation4 + $0x40] sm:$0xff] %vm6053_vm8, %v5989_v9  ;;  %v2381_v60 = vpop.permute.xlu0 %2380 }
 0x2d9   : > { %2113 = vst.msk [vmem:[#allocation3 + $0x4f8] sm:$0xff] %vm2059_vm5, %v1950_v6 }
 0x2da   : > { %2545 = vst.msk [vmem:[#allocation3 + $0x4e0] sm:$0xff] %vm2492_vm6, %v2381_v60  ;;  %4204 = vrot.lane.b32.xlu0 %v8206_v20, %s7224_s30 }
 0x2db   : > { %3772 = vrot.lane.b32.xlu1 %v8196_v17, %s7223_s21  ;;  %v2383_v3 = vpop.permute.xlu1 %2382 }
 0x2dc   : > { %2546 = vst.msk [vmem:[#allocation3 + $0x4f8] sm:$0xff] %vm2492_vm6, %v2383_v3  ;;  %v1952_v56 = vpop.permute.xlu0 %1951 }
 0x2dd   : > { %2114 = vst.msk [vmem:[#allocation3 + $0x510] sm:$0xff] %vm2059_vm5, %v1952_v56 }
 0x2de   : > { %3341 = vrot.lane.b32.xlu0 %v3170_v13, %s7222_s14 }
 0x2df   : > { %2762 = vrot.lane.b32.xlu1 %v8151_v38, %s7224_s30  ;;  %v1954_v1 = vpop.permute.xlu1 %1953  ;;  %v3171_v38 = vld [vmem:[#allocation2 + $0x14a] sm:$0xff] }
 0x2e0   : > { %v2385_v29 = vpop.permute.xlu0 %2384  ;;  %2115 = vst.msk [vmem:[#allocation3 + $0x528] sm:$0xff] %vm2059_vm5, %v1954_v1 }
 0x2e1   : > { %2547 = vst.msk [vmem:[#allocation3 + $0x510] sm:$0xff] %vm2492_vm6, %v2385_v29 }
 0x2e2   : > { %4206 = vrot.lane.b32.xlu0 %v8246_v63, %s7224_s30 }
 0x2e3   : > { %3774 = vrot.lane.b32.xlu1 %v8238_v55, %s7223_s21  ;;  %v2387_v20 = vpop.permute.xlu1 %2386 }
 0x2e4   : > { %v1956_v30 = vpop.permute.xlu0 %1955  ;;  %2548 = vst.msk [vmem:[#allocation3 + $0x528] sm:$0xff] %vm2492_vm6, %v2387_v20  ;;  %v9111_v58 = vpop.f32.mrb[160].mxu0 }
 0x2e5   : > { %2116 = vst.msk [vmem:[#allocation3 + $0x540] sm:$0xff] %vm2059_vm5, %v1956_v30  ;;  %v9114_v9 = vpop.f32.mrb[161].mxu0 }
 0x2e6   : > { %3343 = vrot.lane.b32.xlu0 %v3171_v38, %s7222_s14 }
 0x2e7   : > { %2764 = vrot.lane.b32.xlu1 %v8176_v32, %s7224_s30  ;;  %v1958_v45 = vpop.permute.xlu1 %1957 }
 0x2e8   : > { %v2389_v33 = vpop.permute.xlu0 %2388  ;;  %2117 = vst.msk [vmem:[#allocation3 + $0x558] sm:$0xff] %vm2059_vm5, %v1958_v45 }
 0x2e9   : > { %2549 = vst.msk [vmem:[#allocation3 + $0x540] sm:$0xff] %vm2492_vm6, %v2389_v33  ;;  %v5163_v63 = vpop.f32.mrb[18].mxu1 }
 0x2ea   : > { %v5589_v6 = vadd.f32 %v8633_v42, %v5163_v63  ;;  %4208 = vrot.lane.b32.xlu0 %v8248_v23, %s7224_s30  ;;  %v5165_v32 = vpop.f32.mrb[19].mxu1  ;;  %v9122_v3 = vpop.f32.mrb[162].mxu0  ;;  %v3172_v42 = vld [vmem:[#allocation2 + $0x152] sm:$0xff] }
 0x2eb   : > { %3776 = vrot.lane.b32.xlu1 %v8240_v5, %s7223_s21  ;;  %v2391_v60 = vpop.permute.xlu1 %2390  ;;  %v9126_v1 = vpop.f32.mrb[163].mxu0 }
 0x2ec   : > { %v5918_v56 = vadd.f32 %v8882_v12, %v5589_v6  ;;  %2550 = vst.msk [vmem:[#allocation3 + $0x558] sm:$0xff] %vm2492_vm6, %v2391_v60  ;;  %v1960_v13 = vpop.permute.xlu0 %1959  ;;  %v3173_v60 = vld [vmem:[#allocation2 + $0x162] sm:$0xff] }
 0x2ed   : > { %2118 = vst.msk [vmem:[#allocation3 + $0x570] sm:$0xff] %vm2059_vm5, %v1960_v13  ;;  %v5168_v29 = vpop.f32.mrb[20].mxu1 }
 0x2ee   : > { %v5990_v20 = vmax.f32 %v5918_v56, 0.0  ;;  %v5594_v23 = vadd.f32 %v8660_v41, %v5168_v29  ;;  %3345 = vrot.lane.b32.xlu0 %v3172_v42, %s7222_s14  ;;  %v5170_v30 = vpop.f32.mrb[21].mxu1  ;;  %v9133_v45 = vpop.f32.mrb[164].mxu0  ;;  %v6129_v56 = vld [vmem:[#allocation4 + $0x30] sm:$0xff] }
 0x2ef   : > { %2766 = vrot.lane.b32.xlu1 %v8183_v43, %s7224_s30  ;;  %v1962_v38 = vpop.permute.xlu1 %1961  ;;  %v9138_v6 = vpop.f32.mrb[165].mxu0 }
 0x2f0   : > { %6063 = vst.msk [vmem:[#allocation4 + $0x48] sm:$0xff] %vm6053_vm8, %v5990_v20  ;;  %v5919_v33 = vadd.f32 %v8882_v12, %v5594_v23  ;;  %v2393_v63 = vpop.permute.xlu0 %2392 }
 0x2f1   : > { %2119 = vst.msk [vmem:[#allocation3 + $0x588] sm:$0xff] %vm2059_vm5, %v1962_v38  ;;  %v6130_v38 = vld [vmem:[#allocation4 + $0x38] sm:$0xff] }
 0x2f2   : > { %2551 = vst.msk [vmem:[#allocation3 + $0x570] sm:$0xff] %vm2492_vm6, %v2393_v63  ;;  %v5991_v43 = vmax.f32 %v5919_v33, 0.0  ;;  %4210 = vrot.lane.b32.xlu0 %v8268_v46, %s7224_s30 }
 0x2f3   : > { %3778 = vrot.lane.b32.xlu1 %v8266_v7, %s7223_s21  ;;  %v2395_v41 = vpop.permute.xlu1 %2394  ;;  %v9159_v30 = vpop.f32.mrb[166].mxu0 }
 0x2f4   : > { %6064 = vst.msk [vmem:[#allocation4 + $0x50] sm:$0xff] %vm6053_vm8, %v5991_v43  ;;  %v1964_v32 = vpop.permute.xlu0 %1963  ;;  %v9161_v43 = vpop.f32.mrb[167].mxu0 }
 0x2f5   : > { %2552 = vst.msk [vmem:[#allocation3 + $0x588] sm:$0xff] %vm2492_vm6, %v2395_v41 }
 0x2f6   : > { %2120 = vst.msk [vmem:[#allocation3 + $0x5a0] sm:$0xff] %vm2059_vm5, %v1964_v32  ;;  %3347 = vrot.lane.b32.xlu0 %v3173_v60, %s7222_s14 }
 0x2f7   : > { %2768 = vrot.lane.b32.xlu1 %v8196_v17, %s7224_s30  ;;  %v6166_v13 = vld [vmem:[#allocation4 + $0x48] sm:$0xff]  ;;  %v1966_v29 = vpop.permute.xlu1 %1965 }
 0x2f8   : > { %v6202_v42 = vmax.f32 %v6129_v56, %v6166_v13  ;;  %v2397_v20 = vpop.permute.xlu0 %2396  ;;  %2121 = vst.msk [vmem:[#allocation3 + $0x5b8] sm:$0xff] %vm2059_vm5, %v1966_v29 }
 0x2f9   : > { %2553 = vst.msk [vmem:[#allocation3 + $0x5a0] sm:$0xff] %vm2492_vm6, %v2397_v20  ;;  %v5173_v46 = vpop.f32.mrb[22].mxu1 }
 0x2fa   : > { %6238 = vst.msk [vmem:[#allocation5 + $0x18] sm:$0xff] %vm6053_vm8, %v6202_v42  ;;  %v5599_v17 = vadd.f32 %v8647_v24, %v5173_v46  ;;  %4212 = vrot.lane.b32.xlu0 %v8299_v10, %s7224_s30  ;;  %v5175_v23 = vpop.f32.mrb[23].mxu1  ;;  %v3174_v24 = vld [vmem:[#allocation2 + $0x16a] sm:$0xff]  ;;  %v9169_v56 = vpop.f32.mrb[168].mxu0 }
 0x2fb   : > { %3780 = vrot.lane.b32.xlu1 %v8290_v49, %s7223_s21  ;;  %v6167_v33 = vld [vmem:[#allocation4 + $0x50] sm:$0xff]  ;;  %v3759_v63 = vpop.permute.xlu1 %3758  ;;  %v9171_v29 = vpop.f32.mrb[169].mxu0 }
 0x2fc   : > { %v6203_v41 = vmax.f32 %v6130_v38, %v6167_v33  ;;  %v5920_v32 = vadd.f32 %v8882_v12, %v5599_v17  ;;  %v1968_v60 = vpop.permute.xlu0 %1967  ;;  %v3175_v23 = vld [vmem:[#allocation2 + $0x172] sm:$0xff]  ;;  %v6131_v33 = vld [vmem:[#allocation4 + $0x40] sm:$0xff] }
 0x2fd   : > { %2122 = vst.msk [vmem:[#allocation3 + $0x5d0] sm:$0xff] %vm2059_vm5, %v1968_v60 }
 0x2fe   : > { %6239 = vst.msk [vmem:[#allocation5 + $0x20] sm:$0xff] %vm6053_vm8, %v6203_v41  ;;  %v5992_v10 = vmax.f32 %v5920_v32, 0.0  ;;  %3349 = vrot.lane.b32.xlu0 %v3174_v24, %s7222_s14 }
 0x2ff   : > { %2770 = vrot.lane.b32.xlu1 %v8238_v55, %s7224_s30 }
 0x300   : > { %6065 = vst.msk [vmem:[#allocation4 + $0x58] sm:$0xff] %vm6053_vm8, %v5992_v10  ;;  %v3326_v42 = vpop.permute.xlu0 %3325 }
 0x301   : > { %v2399_v13 = vpop.permute.xlu1 %2398  ;;  %3522 = vst.msk [vmem:[#allocation3 + $0x1d0] sm:$0xff] %vm2059_vm5, %v3326_v42 }
 0x302   : > { %2554 = vst.msk [vmem:[#allocation3 + $0x5b8] sm:$0xff] %vm2492_vm6, %v2399_v13  ;;  %3955 = vst.msk [vmem:[#allocation3 + $0x1d0] sm:$0xff] %vm2492_vm6, %v3759_v63  ;;  %4214 = vrot.lane.b32.xlu0 %v8304_v40, %s7224_s30 }
 0x303   : > { %3782 = vrot.lane.b32.xlu1 %v8297_v26, %s7223_s21 }
 0x304   : > { %v1972_v20 = vpop.permute.xlu0 %1971 }
 0x305   : > { %v1970_v55 = vpop.permute.xlu1 %1969  ;;  %v6275_v46 = vld [vmem:[#allocation5 + $0x18] ss:$2 sm:$0xff]  ;;  %v6323_v17 = vld [vmem:[#allocation5 + $0x19] ss:$2 sm:$0xff]  ;;  %2124 = vst.msk [vmem:[#allocation3 + $0x600] sm:$0xff] %vm2059_vm5, %v1972_v20 }
 0x306   : > { %2123 = vst.msk [vmem:[#allocation3 + $0x5e8] sm:$0xff] %vm2059_vm5, %v1970_v55  ;;  %v6368_v38 = vmax.f32 %v6275_v46, %v6323_v17  ;;  %3351 = vrot.lane.b32.xlu0 %v3175_v23, %s7222_s14  ;;  %v3176_v55 = vld [vmem:[#allocation2 + $0x182] sm:$0xff] }
 0x307   : > { %2772 = vrot.lane.b32.xlu1 %v8240_v5, %s7224_s30  ;;  %v6168_v63 = vld [vmem:[#allocation4 + $0x58] sm:$0xff] }
 0x308   : > { %6393 = vst.msk [vmem:[%s9016_s7 + $0x10] sm:$0xff] %vm6053_vm8, %v6368_v38  ;;  %v6204_v40 = vmax.f32 %v6131_v33, %v6168_v63  ;;  %v1976_v32 = vpop.permute.xlu0 %1975  ;;  %v3177_v63 = vld [vmem:[#allocation2 + $0x18a] sm:$0xff] }
 0x309   : > { %v1974_v41 = vpop.permute.xlu1 %1973  ;;  %2126 = vst.msk [vmem:[#allocation3 + $0x630] sm:$0xff] %vm2059_vm5, %v1976_v32  ;;  %v5178_v60 = vpop.f32.mrb[24].mxu1 }
 0x30a   : > { %2125 = vst.msk [vmem:[#allocation3 + $0x618] sm:$0xff] %vm2059_vm5, %v1974_v41  ;;  %v5604_v5 = vadd.f32 %v8681_v36, %v5178_v60  ;;  %4216 = vrot.lane.b32.xlu0 %v8326_v59, %s7224_s30  ;;  %v5180_v24 = vpop.f32.mrb[25].mxu1 }
 0x30b   : > { %3784 = vrot.lane.b32.xlu1 %v8316_v50, %s7223_s21  ;;  %6240 = vst.msk [vmem:[#allocation5 + $0x28] sm:$0xff] %vm6053_vm8, %v6204_v40 }
 0x30c   : > { %v5921_v13 = vadd.f32 %v8882_v12, %v5604_v5  ;;  %v1980_v42 = vpop.permute.xlu0 %1979 }
 0x30d   : > { %v1978_v10 = vpop.permute.xlu1 %1977  ;;  %2128 = vst.msk [vmem:[#allocation3 + $0x660] sm:$0xff] %vm2059_vm5, %v1980_v42 }
 0x30e   : > { %2127 = vst.msk [vmem:[#allocation3 + $0x648] sm:$0xff] %vm2059_vm5, %v1978_v10  ;;  %v5993_v20 = vmax.f32 %v5921_v13, 0.0  ;;  %3353 = vrot.lane.b32.xlu0 %v3176_v55, %s7222_s14 }
 0x30f   : > { %2774 = vrot.lane.b32.xlu1 %v8266_v7, %s7224_s30 }
 0x310   : > { %6066 = vst.msk [vmem:[#allocation4 + $0x60] sm:$0xff] %vm6053_vm8, %v5993_v20  ;;  %v4191_v59 = vpop.permute.xlu0 %4190 }
 0x311   : > { %v2749_v36 = vpop.permute.xlu1 %2748  ;;  %4387 = vst.msk [vmem:[#allocation3 + $0x1d0] sm:$0xff] %vm2926_vm7, %v4191_v59 }
 0x312   : > { %2946 = vst.msk [vmem:[#allocation3 + $0x1c8] sm:$0xff] %vm2926_vm7, %v2749_v36  ;;  %v6277_v46 = vld [vmem:[#allocation5 + $0x28] ss:$2 sm:$0xf]  ;;  %4218 = vrot.lane.b32.xlu0 %v8367_v54, %s7224_s30 }
 0x313   : > { %v6325_v17 = vld [vmem:[#allocation5 + $0x29] ss:$2 sm:$0xf]  ;;  %3786 = vrot.lane.b32.xlu1 %v8359_v57, %s7223_s21 }
 0x314   : > { %v6369_v23 = vmax.f32 %v6277_v46, %v6325_v17  ;;  %v1984_v38 = vpop.permute.xlu0 %1983  ;;  %v3179_v46 = vld [vmem:[#allocation2 + $0x1a2] sm:$0xff] }
 0x315   : > { %v1982_v7 = vpop.permute.xlu1 %1981  ;;  %2130 = vst.msk [vmem:[#allocation3 + $0x690] sm:$0xff] %vm2059_vm5, %v1984_v38  ;;  %v5183_v33 = vpop.f32.mrb[26].mxu1 }
 0x316   : > { %6394 = vst.msk [vmem:[%s9016_s7 + $0x18] sm:$0xf] %vm6391_vm9, %v6369_v23  ;;  %v5609_v41 = vadd.f32 %v8677_v28, %v5183_v33  ;;  %v5185_v57 = vpop.f32.mrb[27].mxu1  ;;  %3355 = vrot.lane.b32.xlu0 %v3177_v63, %s7222_s14  ;;  %v3180_v63 = vld [vmem:[#allocation2 + $0x1aa] sm:$0xff] }
 0x317   : > { %2129 = vst.msk [vmem:[#allocation3 + $0x678] sm:$0xff] %vm2059_vm5, %v1982_v7  ;;  %2776 = vrot.lane.b32.xlu1 %v8290_v49, %s7224_s30  ;;  %v2602_v7 = vld [vmem:[#allocation2 + $0x1a0] sm:$0xff] }
 0x318   : > { %v5922_v32 = vadd.f32 %v8882_v12, %v5609_v41  ;;  %v3328_v60 = vpop.permute.xlu0 %3327  ;;  %v4642_v5 = vld [vmem:[#allocation3 + $0x1d0] sm:$0xff]  ;;  %v10175_v41 = vld [vmem:[#allocation38_spill] sm:$0xff] }
 0x319   : > { %v1986_v40 = vpop.permute.xlu1 %1985  ;;  %v4641_v54 = vld [vmem:[#allocation3 + $0x1c8] sm:$0xff]  ;;  %3523 = vst.msk [vmem:[#allocation3 + $0x1e8] sm:$0xff] %vm2059_vm5, %v3328_v60  ;;  %5211 = vmatprep.mubr.f32.mxu1 %v4642_v5  ;;  %v5188_v24 = vpop.f32.mrb[28].mxu1  ;;  %v10176_v60 = vld [vmem:[#allocation6_spill] sm:$0xff] }
 0x31a   : > { %2131 = vst.msk [vmem:[#allocation3 + $0x6a8] sm:$0xff] %vm2059_vm5, %v1986_v40  ;;  %v5994_v49 = vmax.f32 %v5922_v32, 0.0  ;;  %v5614_v28 = vadd.f32 %v8775_v35, %v5188_v24  ;;  %5212 = vmatmul.mubr.f32.gmra.mrb[38].mxu1 %v4641_v54  ;;  %4220 = vrot.lane.b32.xlu0 %v8369_v22, %s7224_s30  ;;  %v5190_v10 = vpop.f32.mrb[29].mxu1  ;;  %v10177_v24 = vld [vmem:[#allocation7_spill] sm:$0xff] }
 0x31b   : > { %3788 = vrot.lane.b32.xlu1 %v8361_v52, %s7223_s21  ;;  %v3178_v52 = vld [vmem:[#allocation2 + $0x192] sm:$0xff] }
 0x31c   : > { %6067 = vst.msk [vmem:[#allocation4 + $0x68] sm:$0xff] %vm6053_vm8, %v5994_v49  ;;  %v5923_v42 = vadd.f32 %v8882_v12, %v5614_v28  ;;  %v4193_v55 = vpop.permute.xlu0 %4192 }
 0x31d   : > { %v3761_v13 = vpop.permute.xlu1 %3760 }
 0x31e   : > { %3956 = vst.msk [vmem:[#allocation3 + $0x1e8] sm:$0xff] %vm2492_vm6, %v3761_v13  ;;  %v5995_v35 = vmax.f32 %v5923_v42, 0.0  ;;  %3357 = vrot.lane.b32.xlu0 %v3178_v52, %s7222_s14  ;;  %v3181_v42 = vld [vmem:[#allocation2 + $0x1b2] sm:$0xff] }
 0x31f   : > { %4388 = vst.msk [vmem:[#allocation3 + $0x1e8] sm:$0xff] %vm2926_vm7, %v4193_v55  ;;  %2778 = vrot.lane.b32.xlu1 %v8297_v26, %s7224_s30  ;;  %v10178_v55 = vld [vmem:[#allocation40_spill] sm:$0xff] }
 0x320   : > { %6068 = vst.msk [vmem:[#allocation4 + $0x70] sm:$0xff] %vm6053_vm8, %v5995_v35  ;;  %v3330_v22 = vpop.permute.xlu0 %3329 }
 0x321   : > { %v2751_v20 = vpop.permute.xlu1 %2750  ;;  %3524 = vst.msk [vmem:[#allocation3 + $0x200] sm:$0xff] %vm2059_vm5, %v3330_v22 }
 0x322   : > { %2947 = vst.msk [vmem:[#allocation3 + $0x1e0] sm:$0xff] %vm2926_vm7, %v2751_v20  ;;  %4222 = vrot.lane.b32.xlu0 %v8396_v21, %s7224_s30 }
 0x323   : > { %3790 = vrot.lane.b32.xlu1 %v8390_v62, %s7223_s21 }
 0x324   : > { %v4195_v26 = vpop.permute.xlu0 %4194 }
 0x325   : > { %v3763_v36 = vpop.permute.xlu1 %3762 }
 0x326   : > { %3957 = vst.msk [vmem:[#allocation3 + $0x200] sm:$0xff] %vm2492_vm6, %v3763_v36  ;;  %v4645_v59 = vld [vmem:[#allocation3 + $0x1e8] sm:$0xff]  ;;  %3359 = vrot.lane.b32.xlu0 %v3179_v46, %s7222_s14  ;;  %v9271_v36 = vld [vmem:[%s10088_s4] ss:$0 sm:$0xff]  ;;  %v10179_v46 = vld [vmem:[#allocation8_spill] sm:$0xff] }
 0x327   : > { %4389 = vst.msk [vmem:[#allocation3 + $0x200] sm:$0xff] %vm2926_vm7, %v4195_v26  ;;  %2780 = vrot.lane.b32.xlu1 %v8316_v50, %s7224_s30  ;;  %5216 = vmatprep.mubr.f32.mxu1 %v4645_v59 }
 0x328   : > { %v3332_v62 = vpop.permute.xlu0 %3331 }
 0x329   : > { %v2753_v17 = vpop.permute.xlu1 %2752  ;;  %v4644_v23 = vld [vmem:[#allocation3 + $0x1e0] sm:$0xff]  ;;  %3525 = vst.msk [vmem:[#allocation3 + $0x218] sm:$0xff] %vm2059_vm5, %v3332_v62 }
 0x32a   : > { %2948 = vst.msk [vmem:[#allocation3 + $0x1f8] sm:$0xff] %vm2926_vm7, %v2753_v17  ;;  %5217 = vmatmul.mubr.f32.gmra.mrb[40].mxu1 %v4644_v23  ;;  %4224 = vrot.lane.b32.xlu0 %v8421_v61, %s7224_s30  ;;  %v10180_v23 = vld [vmem:[#allocation9_spill] sm:$0xff]  ;;  %v6132_v62 = vld [vmem:[#allocation4 + $0x60] sm:$0xff] }
 0x32b   : > { %3792 = vrot.lane.b32.xlu1 %v8411_v53, %s7223_s21 }
 0x32c   : > { %v4197_v50 = vpop.permute.xlu0 %4196 }
 0x32d   : > { %v3765_v21 = vpop.permute.xlu1 %3764  ;;  %v5193_v33 = vpop.f32.mrb[30].mxu1 }
 0x32e   : > { %3958 = vst.msk [vmem:[#allocation3 + $0x218] sm:$0xff] %vm2492_vm6, %v3765_v21  ;;  %v4648_v38 = vld [vmem:[#allocation3 + $0x200] sm:$0xff]  ;;  %v5619_v57 = vadd.f32 %v10175_v41, %v5193_v33  ;;  %3361 = vrot.lane.b32.xlu0 %v3180_v63, %s7222_s14  ;;  %v5195_v53 = vpop.f32.mrb[31].mxu1  ;;  %v2604_v33 = vld [vmem:[#allocation2 + $0x1b0] sm:$0xff] }
 0x32f   : > { %4390 = vst.msk [vmem:[#allocation3 + $0x218] sm:$0xff] %vm2926_vm7, %v4197_v50  ;;  %2782 = vrot.lane.b32.xlu1 %v2602_v7, %s7224_s30  ;;  %5221 = vmatprep.mubr.f32.mxu1 %v4648_v38  ;;  %v10181_v53 = vld [vmem:[#allocation39_spill] sm:$0xff] }
 0x330   : > { %v5924_v54 = vadd.f32 %v8882_v12, %v5619_v57  ;;  %v3334_v32 = vpop.permute.xlu0 %3333  ;;  %v2603_v12 = vld [vmem:[#allocation2 + $0x1a8] sm:$0xff] }
 0x331   : > { %v2755_v40 = vpop.permute.xlu1 %2754  ;;  %v4647_v61 = vld [vmem:[#allocation3 + $0x1f8] sm:$0xff]  ;;  %3526 = vst.msk [vmem:[#allocation3 + $0x230] sm:$0xff] %vm2059_vm5, %v3334_v32  ;;  %v3182_v57 = vld [vmem:[#allocation2 + $0x1c2] sm:$0xff] }
 0x332   : > { %2949 = vst.msk [vmem:[#allocation3 + $0x210] sm:$0xff] %vm2926_vm7, %v2755_v40  ;;  %5222 = vmatmul.mubr.f32.gmra.mrb[42].mxu1 %v4647_v61  ;;  %v5996_v5 = vmax.f32 %v5924_v54, 0.0  ;;  %4226 = vrot.lane.b32.xlu0 %v10177_v24, %s7224_s30  ;;  %v10182_v24 = vld [vmem:[#allocation10_spill] sm:$0xff] }
 0x333   : > { %3794 = vrot.lane.b32.xlu1 %v10176_v60, %s7223_s21 }
 0x334   : > { %6069 = vst.msk [vmem:[#allocation4 + $0x78] sm:$0xff] %vm6053_vm8, %v5996_v5  ;;  %v4199_v28 = vpop.permute.xlu0 %4198 }
 0x335   : > { %v3767_v49 = vpop.permute.xlu1 %3766  ;;  %v5198_v13 = vpop.f32.mrb[32].mxu1 }
 0x336   : > { %3959 = vst.msk [vmem:[#allocation3 + $0x230] sm:$0xff] %vm2492_vm6, %v3767_v49  ;;  %v4651_v10 = vld [vmem:[#allocation3 + $0x218] sm:$0xff]  ;;  %v5624_v52 = vadd.f32 %v10178_v55, %v5198_v13  ;;  %v5200_v35 = vpop.f32.mrb[33].mxu1  ;;  %3363 = vrot.lane.b32.xlu0 %v3181_v42, %s7222_s14 }
 0x337   : > { %4391 = vst.msk [vmem:[#allocation3 + $0x230] sm:$0xff] %vm2926_vm7, %v4199_v28  ;;  %2784 = vrot.lane.b32.xlu1 %v2603_v12, %s7224_s30  ;;  %5226 = vmatprep.mubr.f32.mxu1 %v4651_v10  ;;  %v10183_v28 = vld [vmem:[#allocation11_spill] sm:$0xff] }
 0x338   : > { %v5925_v26 = vadd.f32 %v9271_v36, %v5624_v52  ;;  %v3336_v59 = vpop.permute.xlu0 %3335  ;;  %v6133_v12 = vld [vmem:[#allocation4 + $0x68] sm:$0xff]  ;;  %v2605_v52 = vld [vmem:[#allocation2 + $0x1c0] sm:$0xff] }
 0x339   : > { %v2757_v20 = vpop.permute.xlu1 %2756  ;;  %v4650_v22 = vld [vmem:[#allocation3 + $0x210] sm:$0xff]  ;;  %3527 = vst.msk [vmem:[#allocation3 + $0x248] sm:$0xff] %vm2059_vm5, %v3336_v59 }
 0x33a   : > { %2950 = vst.msk [vmem:[#allocation3 + $0x228] sm:$0xff] %vm2926_vm7, %v2757_v20  ;;  %5227 = vmatmul.mubr.f32.gmra.mrb[44].mxu1 %v4650_v22  ;;  %v5997_v17 = vmax.f32 %v5925_v26, 0.0  ;;  %4228 = vrot.lane.b32.xlu0 %v10180_v23, %s7224_s30  ;;  %v3183_v22 = vld [vmem:[#allocation2 + $0x1ca] sm:$0xff]  ;;  %v10184_v26 = vld [vmem:[#allocation42_spill] sm:$0xff] }
 0x33b   : > { %3796 = vrot.lane.b32.xlu1 %v10179_v46, %s7223_s21  ;;  %v6169_v21 = vld [vmem:[#allocation4 + $0x78] sm:$0xff] }
 0x33c   : > { %v6205_v7 = vmax.f32 %v6132_v62, %v6169_v21  ;;  %6070 = vst.msk [vmem:[#allocation4 + $0x80] sm:$0xff] %vm6053_vm8, %v5997_v17  ;;  %v4201_v38 = vpop.permute.xlu0 %4200 }
 0x33d   : > { %v3769_v50 = vpop.permute.xlu1 %3768  ;;  %v5203_v41 = vpop.f32.mrb[34].mxu1 }
 0x33e   : > { %3960 = vst.msk [vmem:[#allocation3 + $0x248] sm:$0xff] %vm2492_vm6, %v3769_v50  ;;  %v4654_v63 = vld [vmem:[#allocation3 + $0x230] sm:$0xff]  ;;  %v5629_v40 = vadd.f32 %v10181_v53, %v5203_v41  ;;  %3365 = vrot.lane.b32.xlu0 %v3182_v57, %s7222_s14  ;;  %v5205_v61 = vpop.f32.mrb[35].mxu1  ;;  %v9303_v50 = vld [vmem:[#allocation2 + $0x1e8] sm:$0xff] }
 0x33f   : > { %4392 = vst.msk [vmem:[#allocation3 + $0x248] sm:$0xff] %vm2926_vm7, %v4201_v38  ;;  %2786 = vrot.lane.b32.xlu1 %v2604_v33, %s7224_s30  ;;  %5231 = vmatprep.mubr.f32.mxu1 %v4654_v63  ;;  %v10185_v38 = vld [vmem:[#allocation12_spill] sm:$0xff] }
 0x340   : > { %6241 = vst.msk [vmem:[#allocation5 + $0x30] sm:$0xff] %vm6053_vm8, %v6205_v7  ;;  %v5926_v60 = vadd.f32 %v9271_v36, %v5629_v40  ;;  %v3338_v5 = vpop.permute.xlu0 %3337  ;;  %v6134_v33 = vld [vmem:[#allocation4 + $0x70] sm:$0xff]  ;;  %v2606_v40 = vld [vmem:[#allocation2 + $0x1c8] sm:$0xff] }
 0x341   : > { %v2759_v54 = vpop.permute.xlu1 %2758  ;;  %v4653_v32 = vld [vmem:[#allocation3 + $0x228] sm:$0xff]  ;;  %3528 = vst.msk [vmem:[#allocation3 + $0x260] sm:$0xff] %vm2059_vm5, %v3338_v5 }
 0x342   : > { %2951 = vst.msk [vmem:[#allocation3 + $0x240] sm:$0xff] %vm2926_vm7, %v2759_v54  ;;  %5232 = vmatmul.mubr.f32.gmra.mrb[46].mxu1 %v4653_v32  ;;  %v5998_v49 = vmax.f32 %v5926_v60, 0.0  ;;  %4230 = vrot.lane.b32.xlu0 %v10183_v28, %s7224_s30  ;;  %v3184_v60 = vld [vmem:[#allocation2 + $0x1d2] sm:$0xff] }
 0x343   : > { %3798 = vrot.lane.b32.xlu1 %v10182_v24, %s7223_s21  ;;  %v6170_v10 = vld [vmem:[#allocation4 + $0x80] sm:$0xff] }
 0x344   : > { %v6206_v42 = vmax.f32 %v6133_v12, %v6170_v10  ;;  %6071 = vst.msk [vmem:[#allocation4 + $0x88] sm:$0xff] %vm6053_vm8, %v5998_v49  ;;  %v4203_v55 = vpop.permute.xlu0 %4202  ;;  %v9319_v12 = vld [vmem:[#allocation2 + $0x1f0] sm:$0xff]  ;;  %v10186_v10 = vld [vmem:[#allocation13_spill] sm:$0xff] }
 0x345   : > { %v3771_v13 = vpop.permute.xlu1 %3770  ;;  %v5208_v20 = vpop.f32.mrb[36].mxu1 }
 0x346   : > { %3961 = vst.msk [vmem:[#allocation3 + $0x260] sm:$0xff] %vm2492_vm6, %v3771_v13  ;;  %v4657_v35 = vld [vmem:[#allocation3 + $0x248] sm:$0xff]  ;;  %v5634_v59 = vadd.f32 %v10184_v26, %v5208_v20  ;;  %v5210_v46 = vpop.f32.mrb[37].mxu1  ;;  %3367 = vrot.lane.b32.xlu0 %v3183_v22, %s7222_s14 }
 0x347   : > { %4393 = vst.msk [vmem:[#allocation3 + $0x260] sm:$0xff] %vm2926_vm7, %v4203_v55  ;;  %2788 = vrot.lane.b32.xlu1 %v2605_v52, %s7224_s30  ;;  %5236 = vmatprep.mubr.f32.mxu1 %v4657_v35  ;;  %v2607_v55 = vld [vmem:[#allocation2 + $0x1d0] sm:$0xff]  ;;  %v3185_v52 = vld [vmem:[#allocation2 + $0x1e2] sm:$0xff] }
 0x348   : > { %6242 = vst.msk [vmem:[#allocation5 + $0x38] sm:$0xff] %vm6053_vm8, %v6206_v42  ;;  %v5927_v62 = vadd.f32 %v9271_v36, %v5634_v59  ;;  %v3340_v21 = vpop.permute.xlu0 %3339 }
 0x349   : > { %v2761_v17 = vpop.permute.xlu1 %2760  ;;  %v4656_v23 = vld [vmem:[#allocation3 + $0x240] sm:$0xff]  ;;  %3529 = vst.msk [vmem:[#allocation3 + $0x278] sm:$0xff] %vm2059_vm5, %v3340_v21 }
 0x34a   : > { %2952 = vst.msk [vmem:[#allocation3 + $0x258] sm:$0xff] %vm2926_vm7, %v2761_v17  ;;  %5237 = vmatmul.mubr.f32.gmra.mrb[48].mxu1 %v4656_v23  ;;  %v5999_v7 = vmax.f32 %v5927_v62, 0.0  ;;  %4232 = vrot.lane.b32.xlu0 %v10185_v38, %s7224_s30  ;;  %v9333_v23 = vld [vmem:[#allocation2 + $0x200] sm:$0xff] }
 0x34b   : > { %3800 = vrot.lane.b32.xlu1 %v9303_v50, %s7223_s21  ;;  %v6171_v63 = vld [vmem:[#allocation4 + $0x88] sm:$0xff]  ;;  %v10187_v62 = vld [vmem:[#allocation14_spill] sm:$0xff] }
 0x34c   : > { %v6207_v57 = vmax.f32 %v6134_v33, %v6171_v63  ;;  %6072 = vst.msk [vmem:[#allocation4 + $0x90] sm:$0xff] %vm6053_vm8, %v5999_v7  ;;  %v4205_v53 = vpop.permute.xlu0 %4204  ;;  %v2608_v38 = vld [vmem:[#allocation2 + $0x1e0] sm:$0xff]  ;;  %v3186_v63 = vld [vmem:[#allocation2 + $0x1ea] sm:$0xff] }
 0x34d   : > { %v3773_v41 = vpop.permute.xlu1 %3772 }
 0x34e   : > { %3962 = vst.msk [vmem:[#allocation3 + $0x278] sm:$0xff] %vm2492_vm6, %v3773_v41  ;;  %v4660_v61 = vld [vmem:[#allocation3 + $0x260] sm:$0xff]  ;;  %3369 = vrot.lane.b32.xlu0 %v3184_v60, %s7222_s14 }
 0x34f   : > { %v6279_v54 = vld [vmem:[#allocation5 + $0x30] ss:$2 sm:$0xff]  ;;  %v6327_v32 = vld [vmem:[#allocation5 + $0x31] ss:$2 sm:$0xff]  ;;  %4394 = vst.msk [vmem:[#allocation3 + $0x278] sm:$0xff] %vm2926_vm7, %v4205_v53  ;;  %2790 = vrot.lane.b32.xlu1 %v2606_v40, %s7224_s30  ;;  %5241 = vmatprep.mubr.f32.mxu1 %v4660_v61  ;;  %v9345_v40 = vld [vmem:[#allocation2 + $0x208] sm:$0xff] }
 0x350   : > { %v6370_v5 = vmax.f32 %v6279_v54, %v6327_v32  ;;  %6243 = vst.msk [vmem:[#allocation5 + $0x40] sm:$0xff] %vm6053_vm8, %v6207_v57  ;;  %v3342_v28 = vpop.permute.xlu0 %3341  ;;  %v10188_v61 = vld [vmem:[#allocation15_spill] sm:$0xff] }
 0x351   : > { %v2763_v24 = vpop.permute.xlu1 %2762  ;;  %v4659_v49 = vld [vmem:[#allocation3 + $0x258] sm:$0xff]  ;;  %3530 = vst.msk [vmem:[#allocation3 + $0x290] sm:$0xff] %vm2059_vm5, %v3342_v28 }
 0x352   : > { %6395 = vst.msk [vmem:[%s9016_s7 + $0x20] sm:$0xff] %vm6053_vm8, %v6370_v5  ;;  %5242 = vmatmul.mubr.f32.gmra.mrb[50].mxu1 %v4659_v49  ;;  %4234 = vrot.lane.b32.xlu0 %v10186_v10, %s7224_s30  ;;  %v3187_v5 = vld [vmem:[#allocation2 + $0x1f2] sm:$0xff] }
 0x353   : > { %2953 = vst.msk [vmem:[#allocation3 + $0x270] sm:$0xff] %vm2926_vm7, %v2763_v24  ;;  %3802 = vrot.lane.b32.xlu1 %v9319_v12, %s7223_s21  ;;  %v9358_v10 = vld [vmem:[#allocation2 + $0x210] sm:$0xff] }
 0x354   : > { %v4207_v42 = vpop.permute.xlu0 %4206 }
 0x355   : > { %v3775_v13 = vpop.permute.xlu1 %3774 }
 0x356   : > { %3963 = vst.msk [vmem:[#allocation3 + $0x290] sm:$0xff] %vm2492_vm6, %v3775_v13  ;;  %v4663_v35 = vld [vmem:[#allocation3 + $0x278] sm:$0xff]  ;;  %3371 = vrot.lane.b32.xlu0 %v3185_v52, %s7222_s14  ;;  %v10189_v13 = vld [vmem:[#allocation16_spill] sm:$0xff]  ;;  %v3188_v52 = vld [vmem:[#allocation2 + $0x202] sm:$0xff] }
 0x357   : > { %v6281_v20 = vld [vmem:[#allocation5 + $0x40] ss:$2 sm:$0xf]  ;;  %v6329_v22 = vld [vmem:[#allocation5 + $0x41] ss:$2 sm:$0xf]  ;;  %2792 = vrot.lane.b32.xlu1 %v2607_v55, %s7224_s30  ;;  %5246 = vmatprep.mubr.f32.mxu1 %v4663_v35 }
 0x358   : > { %4395 = vst.msk [vmem:[#allocation3 + $0x290] sm:$0xff] %vm2926_vm7, %v4207_v42  ;;  %v6371_v26 = vmax.f32 %v6281_v20, %v6329_v22  ;;  %v3344_v17 = vpop.permute.xlu0 %3343 }
 0x359   : > { %v2765_v59 = vpop.permute.xlu1 %2764  ;;  %3531 = vst.msk [vmem:[#allocation3 + $0x2a8] sm:$0xff] %vm2059_vm5, %v3344_v17 }
 0x35a   : > { %v4662_v46 = vld [vmem:[#allocation3 + $0x270] sm:$0xff]  ;;  %6396 = vst.msk [vmem:[%s9016_s7 + $0x28] sm:$0xf] %vm6391_vm9, %v6371_v26  ;;  %4236 = vrot.lane.b32.xlu0 %v10187_v62, %s7224_s30  ;;  %v9371_v26 = vld [vmem:[#allocation2 + $0x220] sm:$0xff] }
 0x35b   : > { %2954 = vst.msk [vmem:[#allocation3 + $0x288] sm:$0xff] %vm2926_vm7, %v2765_v59  ;;  %5247 = vmatmul.mubr.f32.gmra.mrb[52].mxu1 %v4662_v46  ;;  %3804 = vrot.lane.b32.xlu1 %v9333_v23, %s7223_s21  ;;  %v10190_v59 = vld [vmem:[#allocation17_spill] sm:$0xff]  ;;  %v3189_v62 = vld [vmem:[#allocation2 + $0x20a] sm:$0xff] }
 0x35c   : > { %v4209_v7 = vpop.permute.xlu0 %4208 }
 0x35d   : > { %v3777_v21 = vpop.permute.xlu1 %3776 }
 0x35e   : > { %3964 = vst.msk [vmem:[#allocation3 + $0x2a8] sm:$0xff] %vm2492_vm6, %v3777_v21  ;;  %3373 = vrot.lane.b32.xlu0 %v3186_v63, %s7222_s14  ;;  %v10191_v63 = vld [vmem:[#allocation18_spill] sm:$0xff] }
 0x35f   : > { %v4666_v33 = vld [vmem:[#allocation3 + $0x290] sm:$0xff]  ;;  %4396 = vst.msk [vmem:[#allocation3 + $0x2a8] sm:$0xff] %vm2926_vm7, %v4209_v7  ;;  %2794 = vrot.lane.b32.xlu1 %v2608_v38, %s7224_s30 }
 0x360   : > { %5251 = vmatprep.mubr.f32.mxu1 %v4666_v33  ;;  %v3346_v53 = vpop.permute.xlu0 %3345  ;;  %v9384_v33 = vld [vmem:[#allocation2 + $0x228] sm:$0xff] }
 0x361   : > { %v2767_v41 = vpop.permute.xlu1 %2766  ;;  %3532 = vst.msk [vmem:[#allocation3 + $0x2c0] sm:$0xff] %vm2059_vm5, %v3346_v53  ;;  %v3190_v53 = vld [vmem:[#allocation2 + $0x212] sm:$0xff] }
 0x362   : > { %v4665_v57 = vld [vmem:[#allocation3 + $0x288] sm:$0xff]  ;;  %2955 = vst.msk [vmem:[#allocation3 + $0x2a0] sm:$0xff] %vm2926_vm7, %v2767_v41  ;;  %4238 = vrot.lane.b32.xlu0 %v10188_v61, %s7224_s30 }
 0x363   : > { %5252 = vmatmul.mubr.f32.gmra.mrb[54].mxu1 %v4665_v57  ;;  %3806 = vrot.lane.b32.xlu1 %v9345_v40, %s7223_s21 }
 0x364   : > { %v4211_v32 = vpop.permute.xlu0 %4210 }
 0x365   : > { %v3779_v54 = vpop.permute.xlu1 %3778 }
 0x366   : > { %3965 = vst.msk [vmem:[#allocation3 + $0x2c0] sm:$0xff] %vm2492_vm6, %v3779_v54  ;;  %v4669_v60 = vld [vmem:[#allocation3 + $0x2a8] sm:$0xff]  ;;  %3375 = vrot.lane.b32.xlu0 %v3187_v5, %s7222_s14 }
 0x367   : > { %4397 = vst.msk [vmem:[#allocation3 + $0x2c0] sm:$0xff] %vm2926_vm7, %v4211_v32  ;;  %2796 = vrot.lane.b32.xlu1 %v9303_v50, %s7224_s30  ;;  %5256 = vmatprep.mubr.f32.mxu1 %v4669_v60  ;;  %v9397_v60 = vld [vmem:[#allocation2 + $0x230] sm:$0xff]  ;;  %v10192_v5 = vld [vmem:[#allocation19_spill] sm:$0xff] }
 0x368   : > { %v3348_v28 = vpop.permute.xlu0 %3347 }
 0x369   : > { %v2769_v24 = vpop.permute.xlu1 %2768  ;;  %v4668_v49 = vld [vmem:[#allocation3 + $0x2a0] sm:$0xff]  ;;  %3533 = vst.msk [vmem:[#allocation3 + $0x2d8] sm:$0xff] %vm2059_vm5, %v3348_v28 }
 0x36a   : > { %2956 = vst.msk [vmem:[#allocation3 + $0x2b8] sm:$0xff] %vm2926_vm7, %v2769_v24  ;;  %5257 = vmatmul.mubr.f32.gmra.mrb[56].mxu1 %v4668_v49  ;;  %4240 = vrot.lane.b32.xlu0 %v10189_v13, %s7224_s30  ;;  %v3191_v28 = vld [vmem:[#allocation2 + $0x222] sm:$0xff] }
 0x36b   : > { %3808 = vrot.lane.b32.xlu1 %v9358_v10, %s7223_s21 }
 0x36c   : > { %v4213_v42 = vpop.permute.xlu0 %4212 }
 0x36d   : > { %v3781_v50 = vpop.permute.xlu1 %3780 }
 0x36e   : > { %3966 = vst.msk [vmem:[#allocation3 + $0x2d8] sm:$0xff] %vm2492_vm6, %v3781_v50  ;;  %v4672_v55 = vld [vmem:[#allocation3 + $0x2c0] sm:$0xff]  ;;  %3377 = vrot.lane.b32.xlu0 %v3188_v52, %s7222_s14  ;;  %v10193_v52 = vld [vmem:[#allocation20_spill] sm:$0xff] }
 0x36f   : > { %4398 = vst.msk [vmem:[#allocation3 + $0x2d8] sm:$0xff] %vm2926_vm7, %v4213_v42  ;;  %2798 = vrot.lane.b32.xlu1 %v9319_v12, %s7224_s30  ;;  %5261 = vmatprep.mubr.f32.mxu1 %v4672_v55  ;;  %v9410_v55 = vld [vmem:[#allocation2 + $0x240] sm:$0xff] }
 0x370   : > { %v3350_v22 = vpop.permute.xlu0 %3349 }
 0x371   : > { %v2771_v35 = vpop.permute.xlu1 %2770  ;;  %v4671_v20 = vld [vmem:[#allocation3 + $0x2b8] sm:$0xff]  ;;  %3534 = vst.msk [vmem:[#allocation3 + $0x2f0] sm:$0xff] %vm2059_vm5, %v3350_v22  ;;  %v3192_v22 = vld [vmem:[#allocation2 + $0x22a] sm:$0xff] }
 0x372   : > { %2957 = vst.msk [vmem:[#allocation3 + $0x2d0] sm:$0xff] %vm2926_vm7, %v2771_v35  ;;  %5262 = vmatmul.mubr.f32.gmra.mrb[58].mxu1 %v4671_v20  ;;  %4242 = vrot.lane.b32.xlu0 %v10190_v59, %s7224_s30 }
 0x373   : > { %3810 = vrot.lane.b32.xlu1 %v9371_v26, %s7223_s21 }
 0x374   : > { %v4215_v46 = vpop.permute.xlu0 %4214 }
 0x375   : > { %v3783_v12 = vpop.permute.xlu1 %3782 }
 0x376   : > { %3967 = vst.msk [vmem:[#allocation3 + $0x2f0] sm:$0xff] %vm2492_vm6, %v3783_v12  ;;  %v4675_v17 = vld [vmem:[#allocation3 + $0x2d8] sm:$0xff]  ;;  %3379 = vrot.lane.b32.xlu0 %v3189_v62, %s7222_s14 }
 0x377   : > { %4399 = vst.msk [vmem:[#allocation3 + $0x2f0] sm:$0xff] %vm2926_vm7, %v4215_v46  ;;  %2800 = vrot.lane.b32.xlu1 %v9333_v23, %s7224_s30  ;;  %5266 = vmatprep.mubr.f32.mxu1 %v4675_v17  ;;  %v9423_v17 = vld [vmem:[#allocation2 + $0x248] sm:$0xff]  ;;  %v10194_v62 = vld [vmem:[#allocation21_spill] sm:$0xff] }
 0x378   : > { %v3352_v38 = vpop.permute.xlu0 %3351 }
 0x379   : > { %v2773_v21 = vpop.permute.xlu1 %2772  ;;  %v4674_v7 = vld [vmem:[#allocation3 + $0x2d0] sm:$0xff]  ;;  %3535 = vst.msk [vmem:[#allocation3 + $0x308] sm:$0xff] %vm2059_vm5, %v3352_v38 }
 0x37a   : > { %2958 = vst.msk [vmem:[#allocation3 + $0x2e8] sm:$0xff] %vm2926_vm7, %v2773_v21  ;;  %5267 = vmatmul.mubr.f32.gmra.mrb[60].mxu1 %v4674_v7  ;;  %4244 = vrot.lane.b32.xlu0 %v10191_v63, %s7224_s30  ;;  %v3193_v38 = vld [vmem:[#allocation2 + $0x232] sm:$0xff] }
 0x37b   : > { %3812 = vrot.lane.b32.xlu1 %v9384_v33, %s7223_s21 }
 0x37c   : > { %v4217_v41 = vpop.permute.xlu0 %4216 }
 0x37d   : > { %v3785_v23 = vpop.permute.xlu1 %3784 }
 0x37e   : > { %3968 = vst.msk [vmem:[#allocation3 + $0x308] sm:$0xff] %vm2492_vm6, %v3785_v23  ;;  %v4678_v57 = vld [vmem:[#allocation3 + $0x2f0] sm:$0xff]  ;;  %3381 = vrot.lane.b32.xlu0 %v3190_v53, %s7222_s14  ;;  %v10195_v53 = vld [vmem:[#allocation22_spill] sm:$0xff] }
 0x37f   : > { %4400 = vst.msk [vmem:[#allocation3 + $0x308] sm:$0xff] %vm2926_vm7, %v4217_v41  ;;  %2802 = vrot.lane.b32.xlu1 %v9345_v40, %s7224_s30  ;;  %5271 = vmatprep.mubr.f32.mxu1 %v4678_v57  ;;  %v9436_v57 = vld [vmem:[#allocation2 + $0x250] sm:$0xff] }
 0x380   : > { %v3354_v32 = vpop.permute.xlu0 %3353 }
 0x381   : > { %v2775_v61 = vpop.permute.xlu1 %2774  ;;  %v4677_v54 = vld [vmem:[#allocation3 + $0x2e8] sm:$0xff]  ;;  %3536 = vst.msk [vmem:[#allocation3 + $0x320] sm:$0xff] %vm2059_vm5, %v3354_v32 }
 0x382   : > { %2959 = vst.msk [vmem:[#allocation3 + $0x300] sm:$0xff] %vm2926_vm7, %v2775_v61  ;;  %5272 = vmatmul.mubr.f32.gmra.mrb[62].mxu1 %v4677_v54  ;;  %4246 = vrot.lane.b32.xlu0 %v10192_v5, %s7224_s30  ;;  %v3194_v32 = vld [vmem:[#allocation2 + $0x242] sm:$0xff] }
 0x383   : > { %3814 = vrot.lane.b32.xlu1 %v9397_v60, %s7223_s21 }
 0x384   : > { %v4219_v24 = vpop.permute.xlu0 %4218 }
 0x385   : > { %v3787_v40 = vpop.permute.xlu1 %3786 }
 0x386   : > { %3969 = vst.msk [vmem:[#allocation3 + $0x320] sm:$0xff] %vm2492_vm6, %v3787_v40  ;;  %v4681_v49 = vld [vmem:[#allocation3 + $0x308] sm:$0xff]  ;;  %3383 = vrot.lane.b32.xlu0 %v3191_v28, %s7222_s14 }
 0x387   : > { %4401 = vst.msk [vmem:[#allocation3 + $0x320] sm:$0xff] %vm2926_vm7, %v4219_v24  ;;  %2804 = vrot.lane.b32.xlu1 %v9358_v10, %s7224_s30  ;;  %5276 = vmatprep.mubr.f32.mxu1 %v4681_v49  ;;  %v9449_v49 = vld [vmem:[#allocation2 + $0x260] sm:$0xff] }
 0x388   : > { %v3356_v42 = vpop.permute.xlu0 %3355  ;;  %v9451_v28 = vld [vmem:[#allocation2 + $0x301] sm:$0xff] }
 0x389   : > { %v2777_v13 = vpop.permute.xlu1 %2776  ;;  %v4680_v50 = vld [vmem:[#allocation3 + $0x300] sm:$0xff]  ;;  %3537 = vst.msk [vmem:[#allocation3 + $0x338] sm:$0xff] %vm2059_vm5, %v3356_v42 }
 0x38a   : > { %2960 = vst.msk [vmem:[#allocation3 + $0x318] sm:$0xff] %vm2926_vm7, %v2777_v13  ;;  %5277 = vmatmul.mubr.f32.gmra.mrb[64].mxu1 %v4680_v50  ;;  %4248 = vrot.lane.b32.xlu0 %v10193_v52, %s7224_s30  ;;  %v10196_v13 = vld [vmem:[#allocation23_spill] sm:$0xff] }
 0x38b   : > { %3816 = vrot.lane.b32.xlu1 %v9410_v55, %s7223_s21  ;;  %3140 = vst.msk [vmem:[#allocation3 + $0x680] sm:$0xff] %vm1450_vm4, %v9451_v28 }
 0x38c   : > { %v4221_v35 = vpop.permute.xlu0 %4220 }
 0x38d   : > { %v3789_v10 = vpop.permute.xlu1 %3788 }
 0x38e   : > { %3970 = vst.msk [vmem:[#allocation3 + $0x338] sm:$0xff] %vm2492_vm6, %v3789_v10  ;;  %v4684_v20 = vld [vmem:[#allocation3 + $0x320] sm:$0xff]  ;;  %3385 = vrot.lane.b32.xlu0 %v3192_v22, %s7222_s14  ;;  %v3195_v10 = vld [vmem:[#allocation2 + $0x24a] sm:$0xff] }
 0x38f   : > { %4402 = vst.msk [vmem:[#allocation3 + $0x338] sm:$0xff] %vm2926_vm7, %v4221_v35  ;;  %2806 = vrot.lane.b32.xlu1 %v9371_v26, %s7224_s30  ;;  %5281 = vmatprep.mubr.f32.mxu1 %v4684_v20  ;;  %v4784_v35 = vld [vmem:[#allocation3 + $0x640] sm:$0xff] }
 0x390   : > { %v3358_v46 = vpop.permute.xlu0 %3357  ;;  %7113 = vmatprep.mubr.msk.f32.mxu0 %vm1450_vm4, %v4784_v35  ;;  %v3198_v35 = vld [vmem:[#allocation2 + $0x26a] sm:$0xff] }
 0x391   : > { %v2779_v59 = vpop.permute.xlu1 %2778  ;;  %v4683_v12 = vld [vmem:[#allocation3 + $0x318] sm:$0xff]  ;;  %3538 = vst.msk [vmem:[#allocation3 + $0x350] sm:$0xff] %vm2059_vm5, %v3358_v46  ;;  %v9471_v46 = vld [vmem:[#allocation2 + $0x268] sm:$0xff] }
 0x392   : > { %2961 = vst.msk [vmem:[#allocation3 + $0x330] sm:$0xff] %vm2926_vm7, %v2779_v59  ;;  %5282 = vmatmul.mubr.f32.gmra.mrb[66].mxu1 %v4683_v12  ;;  %4250 = vrot.lane.b32.xlu0 %v10194_v62, %s7224_s30  ;;  %v4787_v59 = vld [vmem:[#allocation3 + $0x658] sm:$0xff] }
 0x393   : > { %3818 = vrot.lane.b32.xlu1 %v9423_v17, %s7223_s21  ;;  %7114 = vmatmul.mubr.msk.f32.gmra.mrb[170].mxu0 %vm1450_vm4, %v4787_v59 }
 0x394   : > { %v4223_v21 = vpop.permute.xlu0 %4222 }
 0x395   : > { %v3791_v26 = vpop.permute.xlu1 %3790 }
 0x396   : > { %3971 = vst.msk [vmem:[#allocation3 + $0x350] sm:$0xff] %vm2492_vm6, %v3791_v26  ;;  %v4687_v7 = vld [vmem:[#allocation3 + $0x338] sm:$0xff]  ;;  %3387 = vrot.lane.b32.xlu0 %v3193_v38, %s7222_s14 }
 0x397   : > { %4403 = vst.msk [vmem:[#allocation3 + $0x350] sm:$0xff] %vm2926_vm7, %v4223_v21  ;;  %2808 = vrot.lane.b32.xlu1 %v9384_v33, %s7224_s30  ;;  %5286 = vmatprep.mubr.f32.mxu1 %v4687_v7  ;;  %v3196_v7 = vld [vmem:[#allocation2 + $0x252] sm:$0xff] }
 0x398   : > { %v3360_v41 = vpop.permute.xlu0 %3359 }
 0x399   : > { %v2781_v63 = vpop.permute.xlu1 %2780  ;;  %v4686_v23 = vld [vmem:[#allocation3 + $0x330] sm:$0xff]  ;;  %3539 = vst.msk [vmem:[#allocation3 + $0x368] sm:$0xff] %vm2059_vm5, %v3360_v41 }
 0x39a   : > { %2962 = vst.msk [vmem:[#allocation3 + $0x348] sm:$0xff] %vm2926_vm7, %v2781_v63  ;;  %5287 = vmatmul.mubr.f32.gmra.mrb[68].mxu1 %v4686_v23  ;;  %4252 = vrot.lane.b32.xlu0 %v10195_v53, %s7224_s30  ;;  %v9484_v23 = vld [vmem:[#allocation2 + $0x311] sm:$0xff] }
 0x39b   : > { %3820 = vrot.lane.b32.xlu1 %v9436_v57, %s7223_s21  ;;  %v9487_v53 = vld [vmem:[#allocation2 + $0x270] sm:$0xff]  ;;  %3142 = vst.msk [vmem:[#allocation3 + $0x6b0] sm:$0xff] %vm1450_vm4, %v9484_v23 }
 0x39c   : > { %v4225_v61 = vpop.permute.xlu0 %4224 }
 0x39d   : > { %v3793_v33 = vpop.permute.xlu1 %3792 }
 0x39e   : > { %3972 = vst.msk [vmem:[#allocation3 + $0x368] sm:$0xff] %vm2492_vm6, %v3793_v33  ;;  %v4690_v54 = vld [vmem:[#allocation3 + $0x350] sm:$0xff]  ;;  %3389 = vrot.lane.b32.xlu0 %v3194_v32, %s7222_s14  ;;  %v3197_v32 = vld [vmem:[#allocation2 + $0x262] sm:$0xff] }
 0x39f   : > { %4404 = vst.msk [vmem:[#allocation3 + $0x368] sm:$0xff] %vm2926_vm7, %v4225_v61  ;;  %2810 = vrot.lane.b32.xlu1 %v9397_v60, %s7224_s30  ;;  %5291 = vmatprep.mubr.f32.mxu1 %v4690_v54  ;;  %v9456_v60 = vld [vmem:[#allocation2 + $0x309] sm:$0xff] }
 0x3a0   : > { %v3362_v24 = vpop.permute.xlu0 %3361  ;;  %3141 = vst.msk [vmem:[#allocation3 + $0x698] sm:$0xff] %vm1450_vm4, %v9456_v60 }
 0x3a1   : > { %v2783_v5 = vpop.permute.xlu1 %2782  ;;  %v4689_v40 = vld [vmem:[#allocation3 + $0x348] sm:$0xff]  ;;  %3540 = vst.msk [vmem:[#allocation3 + $0x380] sm:$0xff] %vm2059_vm5, %v3362_v24  ;;  %v4790_v24 = vld [vmem:[#allocation3 + $0x670] sm:$0xff] }
 0x3a2   : > { %2963 = vst.msk [vmem:[#allocation3 + $0x360] sm:$0xff] %vm2926_vm7, %v2783_v5  ;;  %5292 = vmatmul.mubr.f32.gmra.mrb[70].mxu1 %v4689_v40  ;;  %4254 = vrot.lane.b32.xlu0 %v10196_v13, %s7224_s30 }
 0x3a3   : > { %3822 = vrot.lane.b32.xlu1 %v9449_v49, %s7223_s21  ;;  %7116 = vmatprep.mubr.msk.f32.mxu0 %vm1450_vm4, %v4790_v24 }
 0x3a4   : > { %v4227_v42 = vpop.permute.xlu0 %4226 }
 0x3a5   : > { %v3795_v50 = vpop.permute.xlu1 %3794 }
 0x3a6   : > { %3973 = vst.msk [vmem:[#allocation3 + $0x380] sm:$0xff] %vm2492_vm6, %v3795_v50  ;;  %v4693_v52 = vld [vmem:[#allocation3 + $0x368] sm:$0xff]  ;;  %3391 = vrot.lane.b32.xlu0 %v3195_v10, %s7222_s14  ;;  %v9502_v50 = vld [vmem:[#allocation2 + $0x280] sm:$0xff] }
 0x3a7   : > { %4405 = vst.msk [vmem:[#allocation3 + $0x380] sm:$0xff] %vm2926_vm7, %v4227_v42  ;;  %2812 = vrot.lane.b32.xlu1 %v9410_v55, %s7224_s30  ;;  %5296 = vmatprep.mubr.f32.mxu1 %v4693_v52  ;;  %v10197_v55 = vld [vmem:[#allocation24_spill] sm:$0xff] }
 0x3a8   : > { %v3364_v12 = vpop.permute.xlu0 %3363 }
 0x3a9   : > { %v2785_v20 = vpop.permute.xlu1 %2784  ;;  %v4692_v22 = vld [vmem:[#allocation3 + $0x360] sm:$0xff]  ;;  %3541 = vst.msk [vmem:[#allocation3 + $0x398] sm:$0xff] %vm2059_vm5, %v3364_v12  ;;  %v9516_v12 = vld [vmem:[#allocation2 + $0x288] sm:$0xff] }
 0x3aa   : > { %2964 = vst.msk [vmem:[#allocation3 + $0x378] sm:$0xff] %vm2926_vm7, %v2785_v20  ;;  %5297 = vmatmul.mubr.f32.gmra.mrb[72].mxu1 %v4692_v22  ;;  %4256 = vrot.lane.b32.xlu0 %v10197_v55, %s7224_s30  ;;  %v10200_v55 = vld [vmem:[#allocation27_spill] sm:$0xff] }
 0x3ab   : > { %3824 = vrot.lane.b32.xlu1 %v9471_v46, %s7223_s21 }
 0x3ac   : > { %v4229_v26 = vpop.permute.xlu0 %4228 }
 0x3ad   : > { %v3797_v62 = vpop.permute.xlu1 %3796 }
 0x3ae   : > { %3974 = vst.msk [vmem:[#allocation3 + $0x398] sm:$0xff] %vm2492_vm6, %v3797_v62  ;;  %v4696_v21 = vld [vmem:[#allocation3 + $0x380] sm:$0xff]  ;;  %3393 = vrot.lane.b32.xlu0 %v3196_v7, %s7222_s14  ;;  %v4793_v7 = vld [vmem:[#allocation3 + $0x688] sm:$0xff] }
 0x3af   : > { %4406 = vst.msk [vmem:[#allocation3 + $0x398] sm:$0xff] %vm2926_vm7, %v4229_v26  ;;  %2814 = vrot.lane.b32.xlu1 %v9423_v17, %s7224_s30  ;;  %5301 = vmatprep.mubr.f32.mxu1 %v4696_v21  ;;  %v10198_v17 = vld [vmem:[#allocation25_spill] sm:$0xff] }
 0x3b0   : > { %v3366_v41 = vpop.permute.xlu0 %3365  ;;  %v3199_v21 = vld [vmem:[#allocation2 + $0x272] sm:$0xff]  ;;  %7117 = vmatmul.mubr.msk.f32.gmra.mrb[172].mxu0 %vm1450_vm4, %v4793_v7 }
 0x3b1   : > { %v2787_v38 = vpop.permute.xlu1 %2786  ;;  %v4695_v63 = vld [vmem:[#allocation3 + $0x378] sm:$0xff]  ;;  %3542 = vst.msk [vmem:[#allocation3 + $0x3b0] sm:$0xff] %vm2059_vm5, %v3366_v41 }
 0x3b2   : > { %2965 = vst.msk [vmem:[#allocation3 + $0x390] sm:$0xff] %vm2926_vm7, %v2787_v38  ;;  %5302 = vmatmul.mubr.f32.gmra.mrb[74].mxu1 %v4695_v63  ;;  %4258 = vrot.lane.b32.xlu0 %v10198_v17, %s7224_s30  ;;  %v9530_v17 = vld [vmem:[#allocation2 + $0x290] sm:$0xff] }
 0x3b3   : > { %3826 = vrot.lane.b32.xlu1 %v9487_v53, %s7223_s21 }
 0x3b4   : > { %v4231_v61 = vpop.permute.xlu0 %4230 }
 0x3b5   : > { %v3799_v33 = vpop.permute.xlu1 %3798 }
 0x3b6   : > { %3975 = vst.msk [vmem:[#allocation3 + $0x3b0] sm:$0xff] %vm2492_vm6, %v3799_v33  ;;  %v4699_v54 = vld [vmem:[#allocation3 + $0x398] sm:$0xff]  ;;  %3395 = vrot.lane.b32.xlu0 %v3197_v32, %s7222_s14  ;;  %v3200_v32 = vld [vmem:[#allocation2 + $0x282] sm:$0xff] }
 0x3b7   : > { %4407 = vst.msk [vmem:[#allocation3 + $0x3b0] sm:$0xff] %vm2926_vm7, %v4231_v61  ;;  %2816 = vrot.lane.b32.xlu1 %v9436_v57, %s7224_s30  ;;  %5306 = vmatprep.mubr.f32.mxu1 %v4699_v54  ;;  %v10199_v57 = vld [vmem:[#allocation26_spill] sm:$0xff] }
 0x3b8   : > { %v3368_v13 = vpop.permute.xlu0 %3367 }
 0x3b9   : > { %v2789_v5 = vpop.permute.xlu1 %2788  ;;  %v4698_v40 = vld [vmem:[#allocation3 + $0x390] sm:$0xff]  ;;  %3543 = vst.msk [vmem:[#allocation3 + $0x3c8] sm:$0xff] %vm2059_vm5, %v3368_v13  ;;  %v9543_v13 = vld [vmem:[#allocation2 + $0x2a0] sm:$0xff] }
 0x3ba   : > { %2966 = vst.msk [vmem:[#allocation3 + $0x3a8] sm:$0xff] %vm2926_vm7, %v2789_v5  ;;  %5307 = vmatmul.mubr.f32.gmra.mrb[76].mxu1 %v4698_v40  ;;  %4260 = vrot.lane.b32.xlu0 %v10199_v57, %s7224_s30  ;;  %v10202_v57 = vld [vmem:[#allocation29_spill] sm:$0xff] }
 0x3bb   : > { %3828 = vrot.lane.b32.xlu1 %v9502_v50, %s7223_s21 }
 0x3bc   : > { %v4233_v52 = vpop.permute.xlu0 %4232 }
 0x3bd   : > { %v3801_v42 = vpop.permute.xlu1 %3800 }
 0x3be   : > { %3976 = vst.msk [vmem:[#allocation3 + $0x3c8] sm:$0xff] %vm2492_vm6, %v3801_v42  ;;  %v4702_v10 = vld [vmem:[#allocation3 + $0x3b0] sm:$0xff]  ;;  %3397 = vrot.lane.b32.xlu0 %v3198_v35, %s7222_s14 }
 0x3bf   : > { %4408 = vst.msk [vmem:[#allocation3 + $0x3c8] sm:$0xff] %vm2926_vm7, %v4233_v52  ;;  %2818 = vrot.lane.b32.xlu1 %v9449_v49, %s7224_s30  ;;  %5311 = vmatprep.mubr.f32.mxu1 %v4702_v10  ;;  %v3201_v10 = vld [vmem:[#allocation2 + $0x28a] sm:$0xff] }
 0x3c0   : > { %v3370_v59 = vpop.permute.xlu0 %3369 }
 0x3c1   : > { %v2791_v20 = vpop.permute.xlu1 %2790  ;;  %v4701_v22 = vld [vmem:[#allocation3 + $0x3a8] sm:$0xff]  ;;  %3544 = vst.msk [vmem:[#allocation3 + $0x3e0] sm:$0xff] %vm2059_vm5, %v3370_v59 }
 0x3c2   : > { %2967 = vst.msk [vmem:[#allocation3 + $0x3c0] sm:$0xff] %vm2926_vm7, %v2791_v20  ;;  %5312 = vmatmul.mubr.f32.gmra.mrb[78].mxu1 %v4701_v22  ;;  %4262 = vrot.lane.b32.xlu0 %v10200_v55, %s7224_s30  ;;  %v9556_v59 = vld [vmem:[#allocation2 + $0x2a8] sm:$0xff]  ;;  %v10203_v55 = vld [vmem:[#allocation30_spill] sm:$0xff] }
 0x3c3   : > { %3830 = vrot.lane.b32.xlu1 %v9516_v12, %s7223_s21 }
 0x3c4   : > { %v4235_v62 = vpop.permute.xlu0 %4234 }
 0x3c5   : > { %v3803_v49 = vpop.permute.xlu1 %3802 }
 0x3c6   : > { %3977 = vst.msk [vmem:[#allocation3 + $0x3e0] sm:$0xff] %vm2492_vm6, %v3803_v49  ;;  %v4705_v26 = vld [vmem:[#allocation3 + $0x3c8] sm:$0xff]  ;;  %3399 = vrot.lane.b32.xlu0 %v3199_v21, %s7222_s14 }
 0x3c7   : > { %4409 = vst.msk [vmem:[#allocation3 + $0x3e0] sm:$0xff] %vm2926_vm7, %v4235_v62  ;;  %2820 = vrot.lane.b32.xlu1 %v9471_v46, %s7224_s30  ;;  %5316 = vmatprep.mubr.f32.mxu1 %v4705_v26  ;;  %v10201_v46 = vld [vmem:[#allocation28_spill] sm:$0xff] }
 0x3c8   : > { %v3372_v41 = vpop.permute.xlu0 %3371  ;;  %v9567_v26 = vld [vmem:[#allocation2 + $0x292] sm:$0xff] }
 0x3c9   : > { %v2793_v38 = vpop.permute.xlu1 %2792  ;;  %v4704_v63 = vld [vmem:[#allocation3 + $0x3c0] sm:$0xff]  ;;  %3545 = vst.msk [vmem:[#allocation3 + $0x3f8] sm:$0xff] %vm2059_vm5, %v3372_v41 }
 0x3ca   : > { %2968 = vst.msk [vmem:[#allocation3 + $0x3d8] sm:$0xff] %vm2926_vm7, %v2793_v38  ;;  %5317 = vmatmul.mubr.f32.gmra.mrb[80].mxu1 %v4704_v63  ;;  %4264 = vrot.lane.b32.xlu0 %v10201_v46, %s7224_s30  ;;  %v9572_v63 = vld [vmem:[#allocation2 + $0x2b0] sm:$0xff] }
 0x3cb   : > { %3832 = vrot.lane.b32.xlu1 %v9530_v17, %s7223_s21 }
 0x3cc   : > { %v4237_v61 = vpop.permute.xlu0 %4236 }
 0x3cd   : > { %v3805_v33 = vpop.permute.xlu1 %3804 }
 0x3ce   : > { %3978 = vst.msk [vmem:[#allocation3 + $0x3f8] sm:$0xff] %vm2492_vm6, %v3805_v33  ;;  %v4708_v54 = vld [vmem:[#allocation3 + $0x3e0] sm:$0xff]  ;;  %3401 = vrot.lane.b32.xlu0 %v3200_v32, %s7222_s14 }
 0x3cf   : > { %4410 = vst.msk [vmem:[#allocation3 + $0x3f8] sm:$0xff] %vm2926_vm7, %v4237_v61  ;;  %2822 = vrot.lane.b32.xlu1 %v9487_v53, %s7224_s30  ;;  %5321 = vmatprep.mubr.f32.mxu1 %v4708_v54  ;;  %v9583_v61 = vld [vmem:[#allocation2 + $0x2a2] sm:$0xff] }
 0x3d0   : > { %v3374_v24 = vpop.permute.xlu0 %3373 }
 0x3d1   : > { %v2795_v5 = vpop.permute.xlu1 %2794  ;;  %v4707_v40 = vld [vmem:[#allocation3 + $0x3d8] sm:$0xff]  ;;  %3546 = vst.msk [vmem:[#allocation3 + $0x410] sm:$0xff] %vm2059_vm5, %v3374_v24 }
 0x3d2   : > { %2969 = vst.msk [vmem:[#allocation3 + $0x3f0] sm:$0xff] %vm2926_vm7, %v2795_v5  ;;  %5322 = vmatmul.mubr.f32.gmra.mrb[82].mxu1 %v4707_v40  ;;  %4266 = vrot.lane.b32.xlu0 %v10202_v57, %s7224_s30  ;;  %v9588_v40 = vld [vmem:[#allocation2 + $0x2c0] sm:$0xff] }
 0x3d3   : > { %3834 = vrot.lane.b32.xlu1 %v9543_v13, %s7223_s21 }
 0x3d4   : > { %v4239_v42 = vpop.permute.xlu0 %4238 }
 0x3d5   : > { %v3807_v53 = vpop.permute.xlu1 %3806 }
 0x3d6   : > { %3979 = vst.msk [vmem:[#allocation3 + $0x410] sm:$0xff] %vm2492_vm6, %v3807_v53  ;;  %v4711_v52 = vld [vmem:[#allocation3 + $0x3f8] sm:$0xff]  ;;  %3403 = vrot.lane.b32.xlu0 %v3201_v10, %s7222_s14 }
 0x3d7   : > { %4411 = vst.msk [vmem:[#allocation3 + $0x410] sm:$0xff] %vm2926_vm7, %v4239_v42  ;;  %2824 = vrot.lane.b32.xlu1 %v9502_v50, %s7224_s30  ;;  %5326 = vmatprep.mubr.f32.mxu1 %v4711_v52  ;;  %v9599_v52 = vld [vmem:[#allocation2 + $0x2aa] sm:$0xff]  ;;  %v10206_v10 = vld [vmem:[#allocation41_spill] sm:$0xff] }
 0x3d8   : > { %v3376_v22 = vpop.permute.xlu0 %3375 }
 0x3d9   : > { %v2797_v35 = vpop.permute.xlu1 %2796  ;;  %v4710_v20 = vld [vmem:[#allocation3 + $0x3f0] sm:$0xff]  ;;  %3547 = vst.msk [vmem:[#allocation3 + $0x428] sm:$0xff] %vm2059_vm5, %v3376_v22 }
 0x3da   : > { %2970 = vst.msk [vmem:[#allocation3 + $0x408] sm:$0xff] %vm2926_vm7, %v2797_v35  ;;  %5327 = vmatmul.mubr.f32.gmra.mrb[84].mxu1 %v4710_v20  ;;  %4268 = vrot.lane.b32.xlu0 %v10203_v55, %s7224_s30 }
 0x3db   : > { %3836 = vrot.lane.b32.xlu1 %v9556_v59, %s7223_s21 }
 0x3dc   : > { %v4241_v49 = vpop.permute.xlu0 %4240 }
 0x3dd   : > { %v3809_v50 = vpop.permute.xlu1 %3808 }
 0x3de   : > { %3980 = vst.msk [vmem:[#allocation3 + $0x428] sm:$0xff] %vm2492_vm6, %v3809_v50  ;;  %v4714_v62 = vld [vmem:[#allocation3 + $0x410] sm:$0xff]  ;;  %3405 = vrot.lane.b32.xlu0 %v9567_v26, %s7222_s14 }
 0x3df   : > { %4412 = vst.msk [vmem:[#allocation3 + $0x428] sm:$0xff] %vm2926_vm7, %v4241_v49  ;;  %2826 = vrot.lane.b32.xlu1 %v9516_v12, %s7224_s30  ;;  %5331 = vmatprep.mubr.f32.mxu1 %v4714_v62  ;;  %v10204_v12 = vld [vmem:[#allocation31_spill] sm:$0xff] }
 0x3e0   : > { %v3378_v38 = vpop.permute.xlu0 %3377  ;;  %v9606_v62 = vld [vmem:[#allocation2 + $0x2c8] sm:$0xff] }
 0x3e1   : > { %v2799_v21 = vpop.permute.xlu1 %2798  ;;  %v4713_v7 = vld [vmem:[#allocation3 + $0x408] sm:$0xff]  ;;  %3548 = vst.msk [vmem:[#allocation3 + $0x440] sm:$0xff] %vm2059_vm5, %v3378_v38 }
 0x3e2   : > { %2971 = vst.msk [vmem:[#allocation3 + $0x420] sm:$0xff] %vm2926_vm7, %v2799_v21  ;;  %5332 = vmatmul.mubr.f32.gmra.mrb[86].mxu1 %v4713_v7  ;;  %4270 = vrot.lane.b32.xlu0 %v10204_v12, %s7224_s30  ;;  %v10207_v21 = vld [vmem:[#allocation33_spill] sm:$0xff] }
 0x3e3   : > { %3838 = vrot.lane.b32.xlu1 %v9572_v63, %s7223_s21 }
 0x3e4   : > { %v4243_v46 = vpop.permute.xlu0 %4242 }
 0x3e5   : > { %v3811_v41 = vpop.permute.xlu1 %3810 }
 0x3e6   : > { %3981 = vst.msk [vmem:[#allocation3 + $0x440] sm:$0xff] %vm2492_vm6, %v3811_v41  ;;  %v4717_v33 = vld [vmem:[#allocation3 + $0x428] sm:$0xff]  ;;  %3407 = vrot.lane.b32.xlu0 %v9583_v61, %s7222_s14  ;;  %v9618_v41 = vld [vmem:[#allocation2 + $0x2b2] sm:$0xff] }
 0x3e7   : > { %4413 = vst.msk [vmem:[#allocation3 + $0x440] sm:$0xff] %vm2926_vm7, %v4243_v46  ;;  %2828 = vrot.lane.b32.xlu1 %v9530_v17, %s7224_s30  ;;  %5336 = vmatprep.mubr.f32.mxu1 %v4717_v33  ;;  %v10205_v17 = vld [vmem:[#allocation32_spill] sm:$0xff] }
 0x3e8   : > { %v3380_v5 = vpop.permute.xlu0 %3379 }
 0x3e9   : > { %v2801_v54 = vpop.permute.xlu1 %2800  ;;  %v4716_v32 = vld [vmem:[#allocation3 + $0x420] sm:$0xff]  ;;  %3549 = vst.msk [vmem:[#allocation3 + $0x458] sm:$0xff] %vm2059_vm5, %v3380_v5 }
 0x3ea   : > { %2972 = vst.msk [vmem:[#allocation3 + $0x438] sm:$0xff] %vm2926_vm7, %v2801_v54  ;;  %5337 = vmatmul.mubr.f32.gmra.mrb[88].mxu1 %v4716_v32  ;;  %4272 = vrot.lane.b32.xlu0 %v10205_v17, %s7224_s30  ;;  %v9623_v32 = vld [vmem:[#allocation2 + $0x2d0] sm:$0xff] }
 0x3eb   : > { %3840 = vrot.lane.b32.xlu1 %v9588_v40, %s7223_s21  ;;  %v10208_v17 = vld [vmem:[#allocation44_spill] sm:$0xff] }
 0x3ec   : > { %v4245_v57 = vpop.permute.xlu0 %4244 }
 0x3ed   : > { %v3813_v24 = vpop.permute.xlu1 %3812  ;;  %v5213_v42 = vpop.f32.mrb[38].mxu1 }
 0x3ee   : > { %3982 = vst.msk [vmem:[#allocation3 + $0x458] sm:$0xff] %vm2492_vm6, %v3813_v24  ;;  %v4720_v53 = vld [vmem:[#allocation3 + $0x440] sm:$0xff]  ;;  %v5639_v35 = vadd.f32 %v10206_v10, %v5213_v42  ;;  %v5215_v20 = vpop.f32.mrb[39].mxu1  ;;  %3409 = vrot.lane.b32.xlu0 %v9599_v52, %s7222_s14 }
 0x3ef   : > { %4414 = vst.msk [vmem:[#allocation3 + $0x458] sm:$0xff] %vm2926_vm7, %v4245_v57  ;;  %2830 = vrot.lane.b32.xlu1 %v9543_v13, %s7224_s30  ;;  %5341 = vmatprep.mubr.f32.mxu1 %v4720_v53  ;;  %v10209_v10 = vld [vmem:[#allocation34_spill] sm:$0xff] }
 0x3f0   : > { %v5928_v50 = vadd.f32 %v9271_v36, %v5639_v35  ;;  %v3382_v49 = vpop.permute.xlu0 %3381 }
 0x3f1   : > { %v2803_v22 = vpop.permute.xlu1 %2802  ;;  %v4719_v55 = vld [vmem:[#allocation3 + $0x438] sm:$0xff]  ;;  %3550 = vst.msk [vmem:[#allocation3 + $0x470] sm:$0xff] %vm2059_vm5, %v3382_v49  ;;  %v9644_v49 = vld [vmem:[#allocation2 + $0x2e0] sm:$0xff] }
 0x3f2   : > { %2973 = vst.msk [vmem:[#allocation3 + $0x450] sm:$0xff] %vm2926_vm7, %v2803_v22  ;;  %5342 = vmatmul.mubr.f32.gmra.mrb[90].mxu1 %v4719_v55  ;;  %v6000_v13 = vmax.f32 %v5928_v50, 0.0  ;;  %4274 = vrot.lane.b32.xlu0 %v10207_v21, %s7224_s30  ;;  %v9639_v50 = vld [vmem:[#allocation2 + $0x2c2] sm:$0xff] }
 0x3f3   : > { %3842 = vrot.lane.b32.xlu1 %v9606_v62, %s7223_s21 }
 0x3f4   : > { %6073 = vst.msk [vmem:[#allocation4 + $0x98] sm:$0xff] %vm6053_vm8, %v6000_v13  ;;  %v4247_v38 = vpop.permute.xlu0 %4246  ;;  %v10210_v13 = vld [vmem:[#allocation43_spill] sm:$0xff] }
 0x3f5   : > { %v3815_v7 = vpop.permute.xlu1 %3814 }
 0x3f6   : > { %3983 = vst.msk [vmem:[#allocation3 + $0x470] sm:$0xff] %vm2492_vm6, %v3815_v7  ;;  %v4723_v12 = vld [vmem:[#allocation3 + $0x458] sm:$0xff]  ;;  %3411 = vrot.lane.b32.xlu0 %v9618_v41, %s7222_s14 }
 0x3f7   : > { %4415 = vst.msk [vmem:[#allocation3 + $0x470] sm:$0xff] %vm2926_vm7, %v4247_v38  ;;  %2832 = vrot.lane.b32.xlu1 %v9556_v59, %s7224_s30  ;;  %5346 = vmatprep.mubr.f32.mxu1 %v4723_v12 }
 0x3f8   : > { %v3384_v54 = vpop.permute.xlu0 %3383 }
 0x3f9   : > { %v2805_v46 = vpop.permute.xlu1 %2804  ;;  %v4722_v33 = vld [vmem:[#allocation3 + $0x450] sm:$0xff]  ;;  %3551 = vst.msk [vmem:[#allocation3 + $0x488] sm:$0xff] %vm2059_vm5, %v3384_v54  ;;  %v10211_v54 = vld [vmem:[#allocation35_spill] sm:$0xff] }
 0x3fa   : > { %2974 = vst.msk [vmem:[#allocation3 + $0x468] sm:$0xff] %vm2926_vm7, %v2805_v46  ;;  %5347 = vmatmul.mubr.f32.gmra.mrb[92].mxu1 %v4722_v33  ;;  %2400 = vrot.lane.b32.xlu0 %v9567_v26, %s7223_s21  ;;  %v9657_v46 = vld [vmem:[%s10088_s4] ss:$0 sm:$0xff] }
 0x3fb   : > { %3844 = vrot.lane.b32.xlu1 %v9623_v32, %s7223_s21 }
 0x3fc   : > { %v4249_v57 = vpop.permute.xlu0 %4248 }
 0x3fd   : > { %v3817_v59 = vpop.permute.xlu1 %3816  ;;  %v5218_v5 = vpop.f32.mrb[40].mxu1 }
 0x3fe   : > { %3984 = vst.msk [vmem:[#allocation3 + $0x488] sm:$0xff] %vm2492_vm6, %v3817_v59  ;;  %v5644_v24 = vadd.f32 %v10208_v17, %v5218_v5  ;;  %v5220_v53 = vpop.f32.mrb[41].mxu1  ;;  %v4726_v42 = vld [vmem:[#allocation3 + $0x470] sm:$0xff]  ;;  %2834 = vrot.lane.b32.xlu0 %v9572_v63, %s7224_s30 }
 0x3ff   : > { %4416 = vst.msk [vmem:[#allocation3 + $0x488] sm:$0xff] %vm2926_vm7, %v4249_v57  ;;  %4276 = vrot.lane.b32.xlu1 %v10209_v10, %s7224_s30  ;;  %5351 = vmatprep.mubr.f32.mxu1 %v4726_v42  ;;  %v10212_v42 = vld [vmem:[#allocation46_spill] sm:$0xff] }
 0x400   : > { %v5929_v35 = vadd.f32 %v9271_v36, %v5644_v24  ;;  %v3386_v55 = vpop.permute.xlu0 %3385 }
 0x401   : > { %v2807_v26 = vpop.permute.xlu1 %2806  ;;  %v4725_v20 = vld [vmem:[#allocation3 + $0x468] sm:$0xff]  ;;  %3552 = vst.msk [vmem:[#allocation3 + $0x4a0] sm:$0xff] %vm2059_vm5, %v3386_v55 }
 0x402   : > { %v6001_v22 = vmax.f32 %v5929_v35, 0.0  ;;  %2975 = vst.msk [vmem:[#allocation3 + $0x480] sm:$0xff] %vm2926_vm7, %v2807_v26  ;;  %5352 = vmatmul.mubr.f32.gmra.mrb[94].mxu1 %v4725_v20  ;;  %3846 = vrot.lane.b32.xlu0 %v9644_v49, %s7223_s21  ;;  %v9673_v20 = vld [vmem:[#allocation2 + $0x2e8] sm:$0xff] }
 0x403   : > { %3413 = vrot.lane.b32.xlu1 %v9639_v50, %s7222_s14 }
 0x404   : > { %6074 = vst.msk [vmem:[#allocation4 + $0xa0] sm:$0xff] %vm6053_vm8, %v6001_v22  ;;  %v4251_v7 = vpop.permute.xlu0 %4250 }
 0x405   : > { %v3819_v36 = vpop.permute.xlu1 %3818  ;;  %v5223_v63 = vpop.f32.mrb[42].mxu1 }
 0x406   : > { %3985 = vst.msk [vmem:[#allocation3 + $0x4a0] sm:$0xff] %vm2492_vm6, %v3819_v36  ;;  %v5649_v21 = vadd.f32 %v10210_v13, %v5223_v63  ;;  %v5225_v38 = vpop.f32.mrb[43].mxu1  ;;  %v4729_v12 = vld [vmem:[#allocation3 + $0x488] sm:$0xff]  ;;  %4278 = vrot.lane.b32.xlu0 %v10211_v54, %s7224_s30  ;;  %v10214_v54 = vld [vmem:[#allocation45_spill] sm:$0xff] }
 0x407   : > { %4417 = vst.msk [vmem:[#allocation3 + $0x4a0] sm:$0xff] %vm2926_vm7, %v4251_v7  ;;  %2402 = vrot.lane.b32.xlu1 %v9583_v61, %s7223_s21  ;;  %5356 = vmatprep.mubr.f32.mxu1 %v4729_v12  ;;  %v9666_v61 = vld [vmem:[#allocation2 + $0x2ca] sm:$0xff] }
 0x408   : > { %v5930_v33 = vadd.f32 %v9657_v46, %v5649_v21  ;;  %v3388_v24 = vpop.permute.xlu0 %3387  ;;  %v6135_v21 = vld [vmem:[#allocation4 + $0x90] sm:$0xff] }
 0x409   : > { %v2809_v59 = vpop.permute.xlu1 %2808  ;;  %v4728_v5 = vld [vmem:[#allocation3 + $0x480] sm:$0xff]  ;;  %3553 = vst.msk [vmem:[#allocation3 + $0x4b8] sm:$0xff] %vm2059_vm5, %v3388_v24  ;;  %v10213_v38 = vld [vmem:[#allocation36_spill] sm:$0xff] }
 0x40a   : > { %v6002_v17 = vmax.f32 %v5930_v33, 0.0  ;;  %2976 = vst.msk [vmem:[#allocation3 + $0x498] sm:$0xff] %vm2926_vm7, %v2809_v59  ;;  %5357 = vmatmul.mubr.f32.gmra.mrb[96].mxu1 %v4728_v5  ;;  %3415 = vrot.lane.b32.xlu0 %v9666_v61, %s7222_s14  ;;  %v9691_v24 = vld [vmem:[#allocation2 + $0x2d2] sm:$0xff] }
 0x40b   : > { %2836 = vrot.lane.b32.xlu1 %v9588_v40, %s7224_s30 }
 0x40c   : > { %6075 = vst.msk [vmem:[#allocation4 + $0xa8] sm:$0xff] %vm6053_vm8, %v6002_v17  ;;  %v4253_v35 = vpop.permute.xlu0 %4252 }
 0x40d   : > { %v3821_v57 = vpop.permute.xlu1 %3820  ;;  %v5228_v53 = vpop.f32.mrb[44].mxu1 }
 0x40e   : > { %3986 = vst.msk [vmem:[#allocation3 + $0x4b8] sm:$0xff] %vm2492_vm6, %v3821_v57  ;;  %v5654_v10 = vadd.f32 %v10212_v42, %v5228_v53  ;;  %v5230_v26 = vpop.f32.mrb[45].mxu1  ;;  %v4732_v22 = vld [vmem:[#allocation3 + $0x4a0] sm:$0xff]  ;;  %2404 = vrot.lane.b32.xlu0 %v9599_v52, %s7223_s21  ;;  %v9696_v53 = vld [vmem:[#allocation2 + $0x2f0] sm:$0xff] }
 0x40f   : > { %4418 = vst.msk [vmem:[#allocation3 + $0x4b8] sm:$0xff] %vm2926_vm7, %v4253_v35  ;;  %3848 = vrot.lane.b32.xlu1 %v9673_v20, %s7223_s21  ;;  %5361 = vmatprep.mubr.f32.mxu1 %v4732_v22  ;;  %v6136_v22 = vld [vmem:[#allocation4 + $0x98] sm:$0xff] }
 0x410   : > { %v5931_v40 = vadd.f32 %v9657_v46, %v5654_v10  ;;  %v3390_v13 = vpop.permute.xlu0 %3389 }
 0x411   : > { %v2811_v55 = vpop.permute.xlu1 %2810  ;;  %v4731_v36 = vld [vmem:[#allocation3 + $0x498] sm:$0xff]  ;;  %3554 = vst.msk [vmem:[#allocation3 + $0x4d0] sm:$0xff] %vm2059_vm5, %v3390_v13 }
 0x412   : > { %v6003_v63 = vmax.f32 %v5931_v40, 0.0  ;;  %2977 = vst.msk [vmem:[#allocation3 + $0x4b0] sm:$0xff] %vm2926_vm7, %v2811_v55  ;;  %5362 = vmatmul.mubr.f32.gmra.mrb[98].mxu1 %v4731_v36  ;;  %2838 = vrot.lane.b32.xlu0 %v9606_v62, %s7224_s30  ;;  %v10215_v36 = vld [vmem:[#allocation37_spill] sm:$0xff] }
 0x413   : > { %v6172_v7 = vld [vmem:[#allocation4 + $0xa8] sm:$0xff]  ;;  %4280 = vrot.lane.b32.xlu1 %v10213_v38, %s7224_s30 }
 0x414   : > { %v6208_v12 = vmax.f32 %v6135_v21, %v6172_v7  ;;  %6076 = vst.msk [vmem:[#allocation4 + $0xb0] sm:$0xff] %vm6053_vm8, %v6003_v63  ;;  %v4255_v5 = vpop.permute.xlu0 %4254  ;;  %v10216_v21 = vld [vmem:[#allocation48_spill] sm:$0xff] }
 0x415   : > { %v3823_v52 = vpop.permute.xlu1 %3822  ;;  %v5233_v33 = vpop.f32.mrb[46].mxu1 }
 0x416   : > { %6244 = vst.msk [vmem:[#allocation5 + $0x48] sm:$0xff] %vm6053_vm8, %v6208_v12  ;;  %v5659_v59 = vadd.f32 %v10214_v54, %v5233_v33  ;;  %v5235_v17 = vpop.f32.mrb[47].mxu1  ;;  %v4735_v57 = vld [vmem:[#allocation3 + $0x4b8] sm:$0xff]  ;;  %3850 = vrot.lane.b32.xlu0 %v9696_v53, %s7223_s21  ;;  %v9719_v54 = vld [vmem:[#allocation2 + $0x300] sm:$0xff] }
 0x417   : > { %3987 = vst.msk [vmem:[#allocation3 + $0x4d0] sm:$0xff] %vm2492_vm6, %v3823_v52  ;;  %3417 = vrot.lane.b32.xlu1 %v9691_v24, %s7222_s14  ;;  %5366 = vmatprep.mubr.f32.mxu1 %v4735_v57 }
 0x418   : > { %4419 = vst.msk [vmem:[#allocation3 + $0x4d0] sm:$0xff] %vm2926_vm7, %v4255_v5  ;;  %v5932_v62 = vadd.f32 %v9657_v46, %v5659_v59  ;;  %v3392_v26 = vpop.permute.xlu0 %3391 }
 0x419   : > { %v2813_v42 = vpop.permute.xlu1 %2812  ;;  %v4734_v10 = vld [vmem:[#allocation3 + $0x4b0] sm:$0xff]  ;;  %3555 = vst.msk [vmem:[#allocation3 + $0x4e8] sm:$0xff] %vm2059_vm5, %v3392_v26 }
 0x41a   : > { %v6004_v35 = vmax.f32 %v5932_v62, 0.0  ;;  %2978 = vst.msk [vmem:[#allocation3 + $0x4c8] sm:$0xff] %vm2926_vm7, %v2813_v42  ;;  %5367 = vmatmul.mubr.f32.gmra.mrb[100].mxu1 %v4734_v10  ;;  %4282 = vrot.lane.b32.xlu0 %v10215_v36, %s7224_s30  ;;  %v6137_v62 = vld [vmem:[#allocation4 + $0xa0] sm:$0xff] }
 0x41b   : > { %v6173_v40 = vld [vmem:[#allocation4 + $0xb0] sm:$0xff]  ;;  %2406 = vrot.lane.b32.xlu1 %v9618_v41, %s7223_s21  ;;  %v9714_v41 = vld [vmem:[#allocation2 + $0x2e2] sm:$0xff] }
 0x41c   : > { %v6209_v55 = vmax.f32 %v6136_v22, %v6173_v40  ;;  %6077 = vst.msk [vmem:[#allocation4 + $0xb8] sm:$0xff] %vm6053_vm8, %v6004_v35  ;;  %v4257_v38 = vpop.permute.xlu0 %4256 }
 0x41d   : > { %v3825_v63 = vpop.permute.xlu1 %3824  ;;  %v5238_v13 = vpop.f32.mrb[48].mxu1 }
 0x41e   : > { %6245 = vst.msk [vmem:[#allocation5 + $0x50] sm:$0xff] %vm6053_vm8, %v6209_v55  ;;  %v5664_v7 = vadd.f32 %v10216_v21, %v5238_v13  ;;  %v5240_v12 = vpop.f32.mrb[49].mxu1  ;;  %3419 = vrot.lane.b32.xlu0 %v9714_v41, %s7222_s14  ;;  %v10217_v55 = vld [vmem:[#allocation47_spill] sm:$0xff] }
 0x41f   : > { %3988 = vst.msk [vmem:[#allocation3 + $0x4e8] sm:$0xff] %vm2492_vm6, %v3825_v63  ;;  %v4738_v52 = vld [vmem:[#allocation3 + $0x4d0] sm:$0xff]  ;;  %2840 = vrot.lane.b32.xlu1 %v9623_v32, %s7224_s30 }
 0x420   : > { %4420 = vst.msk [vmem:[#allocation3 + $0x4e8] sm:$0xff] %vm2926_vm7, %v4257_v38  ;;  %5371 = vmatprep.mubr.f32.mxu1 %v4738_v52  ;;  %v5933_v33 = vadd.f32 %v9657_v46, %v5664_v7  ;;  %v3394_v57 = vpop.permute.xlu0 %3393 }
 0x421   : > { %v2815_v59 = vpop.permute.xlu1 %2814  ;;  %v4737_v5 = vld [vmem:[#allocation3 + $0x4c8] sm:$0xff]  ;;  %3556 = vst.msk [vmem:[#allocation3 + $0x500] sm:$0xff] %vm2059_vm5, %v3394_v57 }
 0x422   : > { %v6005_v17 = vmax.f32 %v5933_v33, 0.0  ;;  %2979 = vst.msk [vmem:[#allocation3 + $0x4e0] sm:$0xff] %vm2926_vm7, %v2815_v59  ;;  %5372 = vmatmul.mubr.f32.gmra.mrb[102].mxu1 %v4737_v5  ;;  %2408 = vrot.lane.b32.xlu0 %v9639_v50, %s7223_s21  ;;  %v9740_v33 = vld [vmem:[#allocation2 + $0x2ea] sm:$0xff] }
 0x423   : > { %v6174_v42 = vld [vmem:[#allocation4 + $0xb8] sm:$0xff]  ;;  %3852 = vrot.lane.b32.xlu1 %v9719_v54, %s7223_s21  ;;  %v9743_v59 = vld [vmem:[#allocation2 + $0x308] sm:$0xff] }
 0x424   : > { %v6210_v32 = vmax.f32 %v6137_v62, %v6174_v42  ;;  %6078 = vst.msk [vmem:[#allocation4 + $0xc0] sm:$0xff] %vm6053_vm8, %v6005_v17  ;;  %v4259_v63 = vpop.permute.xlu0 %4258 }
 0x425   : > { %v6283_v10 = vld [vmem:[#allocation5 + $0x48] ss:$2 sm:$0xff]  ;;  %v6331_v35 = vld [vmem:[#allocation5 + $0x49] ss:$2 sm:$0xff]  ;;  %v3827_v26 = vpop.permute.xlu1 %3826  ;;  %v5243_v22 = vpop.f32.mrb[50].mxu1 }
 0x426   : > { %v6372_v40 = vmax.f32 %v6283_v10, %v6331_v35  ;;  %6246 = vst.msk [vmem:[#allocation5 + $0x58] sm:$0xff] %vm6053_vm8, %v6210_v32  ;;  %v5669_v36 = vadd.f32 %v10217_v55, %v5243_v22  ;;  %v5245_v13 = vpop.f32.mrb[51].mxu1  ;;  %2842 = vrot.lane.b32.xlu0 %v9644_v49, %s7224_s30  ;;  %v10218_v32 = vld [vmem:[#allocation50_spill] sm:$0xff] }
 0x427   : > { %3989 = vst.msk [vmem:[#allocation3 + $0x500] sm:$0xff] %vm2492_vm6, %v3827_v26  ;;  %v4741_v21 = vld [vmem:[#allocation3 + $0x4e8] sm:$0xff]  ;;  %4284 = vrot.lane.b32.xlu1 %v9451_v28, %s7224_s30  ;;  %v10219_v13 = vld [vmem:[#allocation49_spill] sm:$0xff] }
 0x428   : > { %4421 = vst.msk [vmem:[#allocation3 + $0x500] sm:$0xff] %vm2926_vm7, %v4259_v63  ;;  %5376 = vmatprep.mubr.f32.mxu1 %v4741_v21  ;;  %v5934_v50 = vadd.f32 %v9657_v46, %v5669_v36  ;;  %v3396_v52 = vpop.permute.xlu0 %3395 }
 0x429   : > { %6397 = vst.msk [vmem:[%s9016_s7 + $0x30] sm:$0xff] %vm6053_vm8, %v6372_v40  ;;  %v2817_v7 = vpop.permute.xlu1 %2816  ;;  %v4740_v38 = vld [vmem:[#allocation3 + $0x4e0] sm:$0xff] }
 0x42a   : > { %v6006_v12 = vmax.f32 %v5934_v50, 0.0  ;;  %2980 = vst.msk [vmem:[#allocation3 + $0x4f8] sm:$0xff] %vm2926_vm7, %v2817_v7  ;;  %5377 = vmatmul.mubr.f32.gmra.mrb[104].mxu1 %v4740_v38  ;;  %3854 = vrot.lane.b32.xlu0 %v9743_v59, %s7223_s21 }
 0x42b   : > { %3557 = vst.msk [vmem:[#allocation3 + $0x518] sm:$0xff] %vm2059_vm5, %v3396_v52  ;;  %3421 = vrot.lane.b32.xlu1 %v9740_v33, %s7222_s14 }
 0x42c   : > { %6079 = vst.msk [vmem:[#allocation4 + $0xc8] sm:$0xff] %vm6053_vm8, %v6006_v12  ;;  %v4261_v62 = vpop.permute.xlu0 %4260  ;;  %v9771_v12 = vld [vmem:[#allocation2 + $0x310] sm:$0xff] }
 0x42d   : > { %v6285_v28 = vld [vmem:[#allocation5 + $0x58] ss:$2 sm:$0xf]  ;;  %v6333_v49 = vld [vmem:[#allocation5 + $0x59] ss:$2 sm:$0xf]  ;;  %v3829_v5 = vpop.permute.xlu1 %3828 }
 0x42e   : > { %v6373_v17 = vmax.f32 %v6285_v28, %v6333_v49  ;;  %3990 = vst.msk [vmem:[#allocation3 + $0x518] sm:$0xff] %vm2492_vm6, %v3829_v5  ;;  %v5248_v57 = vpop.f32.mrb[52].mxu1  ;;  %4286 = vrot.lane.b32.xlu0 %v9456_v60, %s7224_s30 }
 0x42f   : > { %v4744_v42 = vld [vmem:[#allocation3 + $0x500] sm:$0xff]  ;;  %v5674_v10 = vadd.f32 %v10218_v32, %v5248_v57  ;;  %4422 = vst.msk [vmem:[#allocation3 + $0x518] sm:$0xff] %vm2926_vm7, %v4261_v62  ;;  %v5250_v35 = vpop.f32.mrb[53].mxu1  ;;  %2410 = vrot.lane.b32.xlu1 %v9666_v61, %s7223_s21  ;;  %v9764_v61 = vld [vmem:[#allocation2 + $0x2f2] sm:$0xff] }
 0x430   : > { %5381 = vmatprep.mubr.f32.mxu1 %v4744_v42  ;;  %6398 = vst.msk [vmem:[%s9016_s7 + $0x38] sm:$0xf] %vm6391_vm9, %v6373_v17  ;;  %v3398_v55 = vpop.permute.xlu0 %3397  ;;  %v10220_v62 = vld [vmem:[#allocation52_spill] sm:$0xff] }
 0x431   : > { %v5935_v26 = vadd.f32 %v9657_v46, %v5674_v10  ;;  %v2819_v22 = vpop.permute.xlu1 %2818  ;;  %v4743_v40 = vld [vmem:[#allocation3 + $0x4f8] sm:$0xff]  ;;  %3558 = vst.msk [vmem:[#allocation3 + $0x530] sm:$0xff] %vm2059_vm5, %v3398_v55 }
 0x432   : > { %2981 = vst.msk [vmem:[#allocation3 + $0x510] sm:$0xff] %vm2926_vm7, %v2819_v22  ;;  %5382 = vmatmul.mubr.f32.gmra.mrb[106].mxu1 %v4743_v40  ;;  %3423 = vrot.lane.b32.xlu0 %v9764_v61, %s7222_s14 }
 0x433   : > { %v6007_v36 = vmax.f32 %v5935_v26, 0.0  ;;  %2844 = vrot.lane.b32.xlu1 %v9673_v20, %s7224_s30  ;;  %v3212_v26 = vld [vmem:[#allocation2 + $0x302] sm:$0xff] }
 0x434   : > { %v4263_v50 = vpop.permute.xlu0 %4262 }
 0x435   : > { %6080 = vst.msk [vmem:[#allocation4 + $0xd0] sm:$0xff] %vm6053_vm8, %v6007_v36  ;;  %v3831_v60 = vpop.permute.xlu1 %3830  ;;  %v6138_v36 = vld [vmem:[#allocation4 + $0xc0] sm:$0xff] }
 0x436   : > { %v5253_v63 = vpop.f32.mrb[54].mxu1  ;;  %3991 = vst.msk [vmem:[#allocation3 + $0x530] sm:$0xff] %vm2492_vm6, %v3831_v60  ;;  %v4747_v38 = vld [vmem:[#allocation3 + $0x518] sm:$0xff]  ;;  %2412 = vrot.lane.b32.xlu0 %v9691_v24, %s7223_s21  ;;  %v3645_v24 = vld [vmem:[#allocation2 + $0x320] sm:$0xff] }
 0x437   : > { %v5679_v21 = vadd.f32 %v10219_v13, %v5253_v63  ;;  %v5255_v7 = vpop.f32.mrb[55].mxu1  ;;  %4423 = vst.msk [vmem:[#allocation3 + $0x530] sm:$0xff] %vm2926_vm7, %v4263_v50  ;;  %5386 = vmatprep.mubr.f32.mxu1 %v4747_v38  ;;  %3856 = vrot.lane.b32.xlu1 %v9771_v12, %s7223_s21  ;;  %v4077_v63 = vld [vmem:[#allocation2 + $0x321] sm:$0xff] }
 0x438   : > { %v3400_v5 = vpop.permute.xlu0 %3399  ;;  %v10221_v7 = vld [vmem:[#allocation51_spill] sm:$0xff] }
 0x439   : > { %v5936_v20 = vadd.f32 %v9657_v46, %v5679_v21  ;;  %v2821_v52 = vpop.permute.xlu1 %2820  ;;  %v4746_v28 = vld [vmem:[#allocation3 + $0x510] sm:$0xff]  ;;  %3559 = vst.msk [vmem:[#allocation3 + $0x548] sm:$0xff] %vm2059_vm5, %v3400_v5 }
 0x43a   : > { %2982 = vst.msk [vmem:[#allocation3 + $0x528] sm:$0xff] %vm2926_vm7, %v2821_v52  ;;  %5387 = vmatmul.mubr.f32.gmra.mrb[108].mxu1 %v4746_v28  ;;  %2846 = vrot.lane.b32.xlu0 %v9696_v53, %s7224_s30 }
 0x43b   : > { %v6008_v49 = vmax.f32 %v5936_v20, 0.0  ;;  %4288 = vrot.lane.b32.xlu1 %v9484_v23, %s7224_s30 }
 0x43c   : > { %v4265_v32 = vpop.permute.xlu0 %4264 }
 0x43d   : > { %6081 = vst.msk [vmem:[#allocation4 + $0xd8] sm:$0xff] %vm6053_vm8, %v6008_v49  ;;  %v3833_v17 = vpop.permute.xlu1 %3832  ;;  %v5258_v57 = vpop.f32.mrb[56].mxu1 }
 0x43e   : > { %3992 = vst.msk [vmem:[#allocation3 + $0x548] sm:$0xff] %vm2492_vm6, %v3833_v17  ;;  %v5684_v42 = vadd.f32 %v10220_v62, %v5258_v57  ;;  %v5260_v10 = vpop.f32.mrb[57].mxu1  ;;  %v4750_v35 = vld [vmem:[#allocation3 + $0x530] sm:$0xff]  ;;  %3858 = vrot.lane.b32.xlu0 %v3645_v24, %s7223_s21  ;;  %v3646_v62 = vld [vmem:[#allocation2 + $0x328] sm:$0xff] }
 0x43f   : > { %4424 = vst.msk [vmem:[#allocation3 + $0x548] sm:$0xff] %vm2926_vm7, %v4265_v32  ;;  %5391 = vmatprep.mubr.f32.mxu1 %v4750_v35  ;;  %3425 = vrot.lane.b32.xlu1 %v3212_v26, %s7222_s14  ;;  %v10222_v26 = vld [vmem:[#allocation54_spill] sm:$0xff] }
 0x440   : > { %v5937_v23 = vadd.f32 %v9657_v46, %v5684_v42  ;;  %v3402_v55 = vpop.permute.xlu0 %3401  ;;  %v6139_v42 = vld [vmem:[#allocation4 + $0xc8] sm:$0xff] }
 0x441   : > { %v2823_v53 = vpop.permute.xlu1 %2822  ;;  %v4749_v22 = vld [vmem:[#allocation3 + $0x528] sm:$0xff]  ;;  %3560 = vst.msk [vmem:[#allocation3 + $0x560] sm:$0xff] %vm2059_vm5, %v3402_v55 }
 0x442   : > { %v6009_v40 = vmax.f32 %v5937_v23, 0.0  ;;  %2983 = vst.msk [vmem:[#allocation3 + $0x540] sm:$0xff] %vm2926_vm7, %v2823_v53  ;;  %5392 = vmatmul.mubr.f32.gmra.mrb[110].mxu1 %v4749_v22  ;;  %4290 = vrot.lane.b32.xlu0 %v4077_v63, %s7224_s30  ;;  %v4078_v55 = vld [vmem:[#allocation2 + $0x329] sm:$0xff] }
 0x443   : > { %2414 = vrot.lane.b32.xlu1 %v9714_v41, %s7223_s21  ;;  %v3213_v41 = vld [vmem:[#allocation2 + $0x30a] sm:$0xff] }
 0x444   : > { %v6175_v60 = vld [vmem:[#allocation4 + $0xd8] sm:$0xff]  ;;  %6082 = vst.msk [vmem:[#allocation4 + $0xe0] sm:$0xff] %vm6053_vm8, %v6009_v40  ;;  %v4267_v20 = vpop.permute.xlu0 %4266 }
 0x445   : > { %v6211_v13 = vmax.f32 %v6138_v36, %v6175_v60  ;;  %v3835_v21 = vpop.permute.xlu1 %3834  ;;  %v5263_v50 = vpop.f32.mrb[58].mxu1 }
 0x446   : > { %3993 = vst.msk [vmem:[#allocation3 + $0x560] sm:$0xff] %vm2492_vm6, %v3835_v21  ;;  %v5689_v38 = vadd.f32 %v10221_v7, %v5263_v50  ;;  %v5265_v52 = vpop.f32.mrb[59].mxu1  ;;  %v4753_v28 = vld [vmem:[#allocation3 + $0x548] sm:$0xff]  ;;  %3427 = vrot.lane.b32.xlu0 %v3213_v41, %s7222_s14  ;;  %v3214_v21 = vld [vmem:[#allocation2 + $0x312] sm:$0xff] }
 0x447   : > { %6247 = vst.msk [vmem:[#allocation5 + $0x60] sm:$0xff] %vm6053_vm8, %v6211_v13  ;;  %5396 = vmatprep.mubr.f32.mxu1 %v4753_v28  ;;  %2848 = vrot.lane.b32.xlu1 %v9719_v54, %s7224_s30  ;;  %v6140_v50 = vld [vmem:[#allocation4 + $0xd0] sm:$0xff] }
 0x448   : > { %4425 = vst.msk [vmem:[#allocation3 + $0x560] sm:$0xff] %vm2926_vm7, %v4267_v20  ;;  %v5938_v49 = vadd.f32 %v9657_v46, %v5689_v38  ;;  %v3404_v24 = vpop.permute.xlu0 %3403  ;;  %v3647_v38 = vld [vmem:[#allocation2 + $0x330] sm:$0xff] }
 0x449   : > { %v2825_v5 = vpop.permute.xlu1 %2824  ;;  %v4752_v17 = vld [vmem:[#allocation3 + $0x540] sm:$0xff]  ;;  %3561 = vst.msk [vmem:[#allocation3 + $0x578] sm:$0xff] %vm2059_vm5, %v3404_v24 }
 0x44a   : > { %v6010_v57 = vmax.f32 %v5938_v49, 0.0  ;;  %2984 = vst.msk [vmem:[#allocation3 + $0x558] sm:$0xff] %vm2926_vm7, %v2825_v5  ;;  %5397 = vmatmul.mubr.f32.gmra.mrb[112].mxu1 %v4752_v17  ;;  %2416 = vrot.lane.b32.xlu0 %v9740_v33, %s7223_s21  ;;  %v10223_v5 = vld [vmem:[#allocation53_spill] sm:$0xff] }
 0x44b   : > { %v6176_v32 = vld [vmem:[#allocation4 + $0xe0] sm:$0xff]  ;;  %3860 = vrot.lane.b32.xlu1 %v3646_v62, %s7223_s21 }
 0x44c   : > { %v6212_v54 = vmax.f32 %v6139_v42, %v6176_v32  ;;  %6083 = vst.msk [vmem:[#allocation4 + $0xe8] sm:$0xff] %vm6053_vm8, %v6010_v57  ;;  %v4269_v53 = vpop.permute.xlu0 %4268  ;;  %v4079_v42 = vld [vmem:[#allocation2 + $0x331] sm:$0xff] }
 0x44d   : > { %v3837_v10 = vpop.permute.xlu1 %3836  ;;  %v5268_v35 = vpop.f32.mrb[60].mxu1 }
 0x44e   : > { %6248 = vst.msk [vmem:[#allocation5 + $0x68] sm:$0xff] %vm6053_vm8, %v6212_v54  ;;  %v5694_v23 = vadd.f32 %v10222_v26, %v5268_v35  ;;  %v5270_v22 = vpop.f32.mrb[61].mxu1  ;;  %2850 = vrot.lane.b32.xlu0 %v9743_v59, %s7224_s30 }
 0x44f   : > { %3994 = vst.msk [vmem:[#allocation3 + $0x578] sm:$0xff] %vm2492_vm6, %v3837_v10  ;;  %v4756_v40 = vld [vmem:[#allocation3 + $0x560] sm:$0xff]  ;;  %4292 = vrot.lane.b32.xlu1 %v4078_v55, %s7224_s30 }
 0x450   : > { %4426 = vst.msk [vmem:[#allocation3 + $0x578] sm:$0xff] %vm2926_vm7, %v4269_v53  ;;  %5401 = vmatprep.mubr.f32.mxu1 %v4756_v40  ;;  %v5939_v36 = vadd.f32 %v9657_v46, %v5694_v23  ;;  %v3406_v13 = vpop.permute.xlu0 %3405 }
 0x451   : > { %v2827_v33 = vpop.permute.xlu1 %2826  ;;  %v4755_v60 = vld [vmem:[#allocation3 + $0x558] sm:$0xff]  ;;  %3562 = vst.msk [vmem:[#allocation3 + $0x590] sm:$0xff] %vm2059_vm5, %v3406_v13 }
 0x452   : > { %v6011_v63 = vmax.f32 %v5939_v36, 0.0  ;;  %2985 = vst.msk [vmem:[#allocation3 + $0x570] sm:$0xff] %vm2926_vm7, %v2827_v33  ;;  %5402 = vmatmul.mubr.f32.gmra.mrb[114].mxu1 %v4755_v60  ;;  %3862 = vrot.lane.b32.xlu0 %v3647_v38, %s7223_s21 }
 0x453   : > { %v6177_v7 = vld [vmem:[#allocation4 + $0xe8] sm:$0xff]  ;;  %3429 = vrot.lane.b32.xlu1 %v3214_v21, %s7222_s14 }
 0x454   : > { %v6213_v20 = vmax.f32 %v6140_v50, %v6177_v7  ;;  %6084 = vst.msk [vmem:[#allocation4 + $0xf0] sm:$0xff] %vm6053_vm8, %v6011_v63  ;;  %v4271_v57 = vpop.permute.xlu0 %4270 }
 0x455   : > { %v6287_v59 = vld [vmem:[#allocation5 + $0x60] ss:$2 sm:$0xff]  ;;  %v6335_v52 = vld [vmem:[#allocation5 + $0x61] ss:$2 sm:$0xff]  ;;  %v3839_v28 = vpop.permute.xlu1 %3838  ;;  %v5273_v41 = vpop.f32.mrb[62].mxu1 }
 0x456   : > { %v6374_v49 = vmax.f32 %v6287_v59, %v6335_v52  ;;  %6249 = vst.msk [vmem:[#allocation5 + $0x70] sm:$0xff] %vm6053_vm8, %v6213_v20  ;;  %v5699_v17 = vadd.f32 %v10223_v5, %v5273_v41  ;;  %v5275_v24 = vpop.f32.mrb[63].mxu1  ;;  %4294 = vrot.lane.b32.xlu0 %v4079_v42, %s7224_s30 }
 0x457   : > { %3995 = vst.msk [vmem:[#allocation3 + $0x590] sm:$0xff] %vm2492_vm6, %v3839_v28  ;;  %v4759_v62 = vld [vmem:[#allocation3 + $0x578] sm:$0xff]  ;;  %2418 = vrot.lane.b32.xlu1 %v9764_v61, %s7223_s21 }
 0x458   : > { %4427 = vst.msk [vmem:[#allocation3 + $0x590] sm:$0xff] %vm2926_vm7, %v4271_v57  ;;  %5406 = vmatprep.mubr.f32.mxu1 %v4759_v62  ;;  %v5940_v32 = vadd.f32 %v9657_v46, %v5699_v17  ;;  %v3408_v26 = vpop.permute.xlu0 %3407 }
 0x459   : > { %6399 = vst.msk [vmem:[%s9016_s7 + $0x40] sm:$0xff] %vm6053_vm8, %v6374_v49  ;;  %v2829_v54 = vpop.permute.xlu1 %2828  ;;  %v4758_v10 = vld [vmem:[#allocation3 + $0x570] sm:$0xff] }
 0x45a   : > { %v6012_v35 = vmax.f32 %v5940_v32, 0.0  ;;  %2986 = vst.msk [vmem:[#allocation3 + $0x588] sm:$0xff] %vm2926_vm7, %v2829_v54  ;;  %5407 = vmatmul.mubr.f32.gmra.mrb[116].mxu1 %v4758_v10 }
 0x45b   : > { %3563 = vst.msk [vmem:[#allocation3 + $0x5a8] sm:$0xff] %vm2059_vm5, %v3408_v26  ;;  %2852 = vrot.lane.b32.xlu1 %v9771_v12, %s7224_s30 }
 0x45c   : > { %6085 = vst.msk [vmem:[#allocation4 + $0xf8] sm:$0xff] %vm6053_vm8, %v6012_v35  ;;  %v4273_v55 = vpop.permute.xlu0 %4272 }
 0x45d   : > { %v6289_v61 = vld [vmem:[#allocation5 + $0x70] ss:$2 sm:$0xf]  ;;  %v6337_v23 = vld [vmem:[#allocation5 + $0x71] ss:$2 sm:$0xf]  ;;  %v3841_v53 = vpop.permute.xlu1 %3840 }
 0x45e   : > { %v6375_v22 = vmax.f32 %v6289_v61, %v6337_v23  ;;  %3996 = vst.msk [vmem:[#allocation3 + $0x5a8] sm:$0xff] %vm2492_vm6, %v3841_v53  ;;  %v5278_v40 = vpop.f32.mrb[64].mxu1  ;;  %v6141_v23 = vld [vmem:[#allocation4 + $0xf0] sm:$0xff] }
 0x45f   : > { %v4762_v36 = vld [vmem:[#allocation3 + $0x590] sm:$0xff]  ;;  %v5704_v33 = vadd.f32 %v8910_v48, %v5278_v40  ;;  %4428 = vst.msk [vmem:[#allocation3 + $0x5a8] sm:$0xff] %vm2926_vm7, %v4273_v55  ;;  %v5280_v60 = vpop.f32.mrb[65].mxu1 }
 0x460   : > { %5411 = vmatprep.mubr.f32.mxu1 %v4762_v36  ;;  %6400 = vst.msk [vmem:[%s9016_s7 + $0x48] sm:$0xf] %vm6391_vm9, %v6375_v22  ;;  %v3410_v21 = vpop.permute.xlu0 %3409 }
 0x461   : > { %v5941_v12 = vadd.f32 %v9657_v46, %v5704_v33  ;;  %v2831_v63 = vpop.permute.xlu1 %2830  ;;  %v4761_v13 = vld [vmem:[#allocation3 + $0x588] sm:$0xff]  ;;  %3564 = vst.msk [vmem:[#allocation3 + $0x5c0] sm:$0xff] %vm2059_vm5, %v3410_v21 }
 0x462   : > { %2987 = vst.msk [vmem:[#allocation3 + $0x5a0] sm:$0xff] %vm2926_vm7, %v2831_v63  ;;  %5412 = vmatmul.mubr.f32.gmra.mrb[118].mxu1 %v4761_v13 }
 0x463   : > { %v6013_v50 = vmax.f32 %v5941_v12, 0.0 }
 0x464   : > { %v4275_v20 = vpop.permute.xlu0 %4274 }
 0x465   : > { %6086 = vst.msk [vmem:[#allocation4 + $0x100] sm:$0xff] %vm6053_vm8, %v6013_v50  ;;  %v3843_v48 = vpop.permute.xlu1 %3842  ;;  %v5283_v7 = vpop.f32.mrb[66].mxu1 }
 0x466   : > { %3997 = vst.msk [vmem:[#allocation3 + $0x5c0] sm:$0xff] %vm2492_vm6, %v3843_v48  ;;  %v5709_v38 = vadd.f32 %v8907_v25, %v5283_v7  ;;  %v5285_v59 = vpop.f32.mrb[67].mxu1  ;;  %v4765_v52 = vld [vmem:[#allocation3 + $0x5a8] sm:$0xff]  ;;  %v6142_v48 = vld [vmem:[#allocation4 + $0xf8] sm:$0xff] }
 0x467   : > { %4429 = vst.msk [vmem:[#allocation3 + $0x5c0] sm:$0xff] %vm2926_vm7, %v4275_v20  ;;  %5416 = vmatprep.mubr.f32.mxu1 %v4765_v52  ;;  %v10224_v59 = vld [vmem:[#allocation56_spill] sm:$0xff] }
 0x468   : > { %v5942_v28 = vadd.f32 %v9657_v46, %v5709_v38  ;;  %v3412_v17 = vpop.permute.xlu0 %3411 }
 0x469   : > { %v2833_v41 = vpop.permute.xlu1 %2832  ;;  %v4764_v49 = vld [vmem:[#allocation3 + $0x5a0] sm:$0xff]  ;;  %3565 = vst.msk [vmem:[#allocation3 + $0x5d8] sm:$0xff] %vm2059_vm5, %v3412_v17 }
 0x46a   : > { %v6014_v5 = vmax.f32 %v5942_v28, 0.0  ;;  %2988 = vst.msk [vmem:[#allocation3 + $0x5b8] sm:$0xff] %vm2926_vm7, %v2833_v41  ;;  %5417 = vmatmul.mubr.f32.gmra.mrb[120].mxu1 %v4764_v49  ;;  %v9875_v49 = vpop.f32.mrb[170].mxu0 }
 0x46b   : > { %v9878_v17 = vpop.f32.mrb[171].mxu0 }
 0x46c   : > { %6087 = vst.msk [vmem:[#allocation4 + $0x108] sm:$0xff] %vm6053_vm8, %v6014_v5  ;;  %v2401_v62 = vpop.permute.xlu0 %2400 }
 0x46d   : > { %v3845_v25 = vpop.permute.xlu1 %3844  ;;  %v5288_v57 = vpop.f32.mrb[68].mxu1  ;;  %2555 = vst.msk [vmem:[#allocation3 + $0x5d0] sm:$0xff] %vm2492_vm6, %v2401_v62 }
 0x46e   : > { %3998 = vst.msk [vmem:[#allocation3 + $0x5d8] sm:$0xff] %vm2492_vm6, %v3845_v25  ;;  %v5714_v24 = vadd.f32 %v8925_v19, %v5288_v57  ;;  %v5290_v42 = vpop.f32.mrb[69].mxu1  ;;  %v4768_v32 = vld [vmem:[#allocation3 + $0x5c0] sm:$0xff] }
 0x46f   : > { %5421 = vmatprep.mubr.f32.mxu1 %v4768_v32  ;;  %v6143_v42 = vld [vmem:[#allocation4 + $0x100] sm:$0xff] }
 0x470   : > { %v5943_v54 = vadd.f32 %v9657_v46, %v5714_v24  ;;  %v2835_v61 = vpop.permute.xlu0 %2834 }
 0x471   : > { %v4277_v10 = vpop.permute.xlu1 %4276  ;;  %v4767_v35 = vld [vmem:[#allocation3 + $0x5b8] sm:$0xff]  ;;  %2989 = vst.msk [vmem:[#allocation3 + $0x5d0] sm:$0xff] %vm2926_vm7, %v2835_v61 }
 0x472   : > { %v6015_v26 = vmax.f32 %v5943_v54, 0.0  ;;  %4430 = vst.msk [vmem:[#allocation3 + $0x5d8] sm:$0xff] %vm2926_vm7, %v4277_v10  ;;  %5422 = vmatmul.mubr.f32.gmra.mrb[122].mxu1 %v4767_v35 }
 0x473   : > { %v6178_v53 = vld [vmem:[#allocation4 + $0x108] sm:$0xff] }
 0x474   : > { %v6214_v19 = vmax.f32 %v6141_v23, %v6178_v53  ;;  %6088 = vst.msk [vmem:[#allocation4 + $0x110] sm:$0xff] %vm6053_vm8, %v6015_v26  ;;  %v3847_v36 = vpop.permute.xlu0 %3846 }
 0x475   : > { %v3414_v22 = vpop.permute.xlu1 %3413  ;;  %v5293_v40 = vpop.f32.mrb[70].mxu1 }
 0x476   : > { %6250 = vst.msk [vmem:[#allocation5 + $0x78] sm:$0xff] %vm6053_vm8, %v6214_v19  ;;  %v5719_v55 = vadd.f32 %v8923_v15, %v5293_v40  ;;  %v5295_v33 = vpop.f32.mrb[71].mxu1  ;;  %v10225_v19 = vld [vmem:[#allocation55_spill] sm:$0xff] }
 0x477   : > { %3566 = vst.msk [vmem:[#allocation3 + $0x5f0] sm:$0xff] %vm2059_vm5, %v3414_v22 }
 0x478   : > { %3999 = vst.msk [vmem:[#allocation3 + $0x5f0] sm:$0xff] %vm2492_vm6, %v3847_v36  ;;  %v5944_v60 = vadd.f32 %v9657_v46, %v5719_v55  ;;  %v4279_v21 = vpop.permute.xlu0 %4278  ;;  %v4770_v50 = vld [vmem:[#allocation3 + $0x5d0] sm:$0xff] }
 0x479   : > { %v2403_v12 = vpop.permute.xlu1 %2402  ;;  %v4771_v63 = vld [vmem:[#allocation3 + $0x5d8] sm:$0xff]  ;;  %4431 = vst.msk [vmem:[#allocation3 + $0x5f0] sm:$0xff] %vm2926_vm7, %v4279_v21 }
 0x47a   : > { %v6016_v13 = vmax.f32 %v5944_v60, 0.0  ;;  %2556 = vst.msk [vmem:[#allocation3 + $0x5e8] sm:$0xff] %vm2492_vm6, %v2403_v12  ;;  %5426 = vmatprep.mubr.f32.mxu1 %v4771_v63 }
 0x47b   : > { %v6179_v7 = vld [vmem:[#allocation4 + $0x110] sm:$0xff]  ;;  %5427 = vmatmul.mubr.f32.gmra.mrb[124].mxu1 %v4770_v50 }
 0x47c   : > { %v6215_v15 = vmax.f32 %v6142_v48, %v6179_v7  ;;  %6089 = vst.msk [vmem:[#allocation4 + $0x118] sm:$0xff] %vm6053_vm8, %v6016_v13  ;;  %v3416_v28 = vpop.permute.xlu0 %3415 }
 0x47d   : > { %v2837_v38 = vpop.permute.xlu1 %2836  ;;  %v5298_v20 = vpop.f32.mrb[72].mxu1  ;;  %3567 = vst.msk [vmem:[#allocation3 + $0x608] sm:$0xff] %vm2059_vm5, %v3416_v28 }
 0x47e   : > { %6251 = vst.msk [vmem:[#allocation5 + $0x80] sm:$0xff] %vm6053_vm8, %v6215_v15  ;;  %v5724_v52 = vadd.f32 %v10224_v59, %v5298_v20  ;;  %v5300_v41 = vpop.f32.mrb[73].mxu1  ;;  %v10226_v20 = vld [vmem:[#allocation58_spill] sm:$0xff] }
 0x47f   : > { %2990 = vst.msk [vmem:[#allocation3 + $0x5e8] sm:$0xff] %vm2926_vm7, %v2837_v38 }
 0x480   : > { %v5945_v5 = vadd.f32 %v9657_v46, %v5724_v52  ;;  %v2405_v24 = vpop.permute.xlu0 %2404  ;;  %v4774_v62 = vld [vmem:[#allocation3 + $0x5f0] sm:$0xff] }
 0x481   : > { %v3849_v25 = vpop.permute.xlu1 %3848  ;;  %2557 = vst.msk [vmem:[#allocation3 + $0x600] sm:$0xff] %vm2492_vm6, %v2405_v24  ;;  %5431 = vmatprep.mubr.f32.mxu1 %v4774_v62  ;;  %v10227_v62 = vld [vmem:[#allocation57_spill] sm:$0xff] }
 0x482   : > { %v6017_v57 = vmax.f32 %v5945_v5, 0.0  ;;  %4000 = vst.msk [vmem:[#allocation3 + $0x608] sm:$0xff] %vm2492_vm6, %v3849_v25 }
 0x483   : > { %v6180_v32 = vld [vmem:[#allocation4 + $0x118] sm:$0xff] }
 0x484   : > { %v6216_v54 = vmax.f32 %v6143_v42, %v6180_v32  ;;  %6090 = vst.msk [vmem:[#allocation4 + $0x120] sm:$0xff] %vm6053_vm8, %v6017_v57  ;;  %v2839_v40 = vpop.permute.xlu0 %2838 }
 0x485   : > { %v6291_v10 = vld [vmem:[#allocation5 + $0x78] ss:$2 sm:$0xff]  ;;  %v6339_v35 = vld [vmem:[#allocation5 + $0x79] ss:$2 sm:$0xff]  ;;  %v4281_v26 = vpop.permute.xlu1 %4280  ;;  %v5303_v61 = vpop.f32.mrb[74].mxu1  ;;  %2991 = vst.msk [vmem:[#allocation3 + $0x600] sm:$0xff] %vm2926_vm7, %v2839_v40 }
 0x486   : > { %v4773_v23 = vld [vmem:[#allocation3 + $0x5e8] sm:$0xff]  ;;  %v6376_v53 = vmax.f32 %v6291_v10, %v6339_v35  ;;  %6252 = vst.msk [vmem:[#allocation5 + $0x88] sm:$0xff] %vm6053_vm8, %v6216_v54  ;;  %v5729_v22 = vadd.f32 %v10225_v19, %v5303_v61  ;;  %v5305_v55 = vpop.f32.mrb[75].mxu1  ;;  %v9909_v19 = vpop.f32.mrb[172].mxu0 }
 0x487   : > { %4432 = vst.msk [vmem:[#allocation3 + $0x608] sm:$0xff] %vm2926_vm7, %v4281_v26  ;;  %5432 = vmatmul.mubr.f32.gmra.mrb[126].mxu1 %v4773_v23 }
 0x488   : > { %6401 = vst.msk [vmem:[%s9016_s7 + $0x50] sm:$0xff] %vm6053_vm8, %v6376_v53  ;;  %v5946_v36 = vadd.f32 %v9657_v46, %v5729_v22  ;;  %v3851_v12 = vpop.permute.xlu0 %3850 }
 0x489   : > { %v3418_v33 = vpop.permute.xlu1 %3417 }
 0x48a   : > { %v6018_v60 = vmax.f32 %v5946_v36, 0.0  ;;  %3568 = vst.msk [vmem:[#allocation3 + $0x620] sm:$0xff] %vm2059_vm5, %v3418_v33 }
 0x48b   : > { %4001 = vst.msk [vmem:[#allocation3 + $0x620] sm:$0xff] %vm2492_vm6, %v3851_v12 }
 0x48c   : > { %6091 = vst.msk [vmem:[#allocation4 + $0x128] sm:$0xff] %vm6053_vm8, %v6018_v60  ;;  %v4283_v7 = vpop.permute.xlu0 %4282  ;;  %v4776_v38 = vld [vmem:[#allocation3 + $0x600] sm:$0xff]  ;;  %v9914_v60 = vpop.f32.mrb[173].mxu0 }
 0x48d   : > { %v6293_v63 = vld [vmem:[#allocation5 + $0x88] ss:$2 sm:$0xf]  ;;  %v6341_v13 = vld [vmem:[#allocation5 + $0x89] ss:$2 sm:$0xf]  ;;  %v2407_v21 = vpop.permute.xlu1 %2406 }
 0x48e   : > { %v6377_v50 = vmax.f32 %v6293_v63, %v6341_v13  ;;  %2558 = vst.msk [vmem:[#allocation3 + $0x618] sm:$0xff] %vm2492_vm6, %v2407_v21  ;;  %v5308_v48 = vpop.f32.mrb[76].mxu1  ;;  %v4777_v15 = vld [vmem:[#allocation3 + $0x608] sm:$0xff] }
 0x48f   : > { %v5734_v59 = vadd.f32 %v10226_v20, %v5308_v48  ;;  %4433 = vst.msk [vmem:[#allocation3 + $0x620] sm:$0xff] %vm2926_vm7, %v4283_v7  ;;  %v5310_v52 = vpop.f32.mrb[77].mxu1  ;;  %5436 = vmatprep.mubr.f32.mxu1 %v4777_v15  ;;  %v6144_v7 = vld [vmem:[#allocation4 + $0x120] sm:$0xff] }
 0x490   : > { %6402 = vst.msk [vmem:[%s9016_s7 + $0x58] sm:$0xf] %vm6391_vm9, %v6377_v50  ;;  %5437 = vmatmul.mubr.f32.gmra.mrb[128].mxu1 %v4776_v38  ;;  %v3420_v5 = vpop.permute.xlu0 %3419 }
 0x491   : > { %v5947_v28 = vadd.f32 %v9657_v46, %v5734_v59  ;;  %v2841_v41 = vpop.permute.xlu1 %2840  ;;  %3569 = vst.msk [vmem:[#allocation3 + $0x638] sm:$0xff] %vm2059_vm5, %v3420_v5 }
 0x492   : > { %2992 = vst.msk [vmem:[#allocation3 + $0x618] sm:$0xff] %vm2926_vm7, %v2841_v41 }
 0x493   : > { %v6019_v25 = vmax.f32 %v5947_v28, 0.0 }
 0x494   : > { %v2409_v32 = vpop.permute.xlu0 %2408 }
 0x495   : > { %6092 = vst.msk [vmem:[#allocation4 + $0x130] sm:$0xff] %vm6053_vm8, %v6019_v25  ;;  %v5313_v57 = vpop.f32.mrb[78].mxu1  ;;  %v3853_v24 = vpop.permute.xlu1 %3852 }
 0x496   : > { %v5739_v42 = vadd.f32 %v10227_v62, %v5313_v57  ;;  %4002 = vst.msk [vmem:[#allocation3 + $0x638] sm:$0xff] %vm2492_vm6, %v3853_v24  ;;  %v5315_v54 = vpop.f32.mrb[79].mxu1  ;;  %v4780_v10 = vld [vmem:[#allocation3 + $0x620] sm:$0xff]  ;;  %2559 = vst.msk [vmem:[#allocation3 + $0x630] sm:$0xff] %vm2492_vm6, %v2409_v32  ;;  %v6145_v62 = vld [vmem:[#allocation4 + $0x128] sm:$0xff] }
 0x497   : > { %5441 = vmatprep.mubr.f32.mxu1 %v4780_v10 }
 0x498   : > { %v5948_v35 = vadd.f32 %v9657_v46, %v5739_v42  ;;  %v2843_v53 = vpop.permute.xlu0 %2842 }
 0x499   : > { %v4285_v26 = vpop.permute.xlu1 %4284  ;;  %v4779_v61 = vld [vmem:[#allocation3 + $0x618] sm:$0xff]  ;;  %2993 = vst.msk [vmem:[#allocation3 + $0x630] sm:$0xff] %vm2926_vm7, %v2843_v53 }
 0x49a   : > { %v6020_v23 = vmax.f32 %v5948_v35, 0.0  ;;  %4434 = vst.msk [vmem:[#allocation3 + $0x638] sm:$0xff] %vm2926_vm7, %v4285_v26  ;;  %5442 = vmatmul.mubr.f32.gmra.mrb[130].mxu1 %v4779_v61 }
 0x49c   : > { %6093 = vst.msk [vmem:[#allocation4 + $0x138] sm:$0xff] %vm6053_vm8, %v6020_v23  ;;  %v3855_v36 = vpop.permute.xlu0 %3854 }
 0x49d   : > { %v5318_v22 = vpop.f32.mrb[80].mxu1  ;;  %v3422_v40 = vpop.permute.xlu1 %3421 }
 0x49e   : > { %v5744_v55 = vadd.f32 %v8967_v39, %v5318_v22  ;;  %3570 = vst.msk [vmem:[#allocation3 + $0x650] sm:$0xff] %vm2059_vm5, %v3422_v40  ;;  %v5320_v33 = vpop.f32.mrb[81].mxu1 }
 0x49f   : > { %4003 = vst.msk [vmem:[#allocation3 + $0x650] sm:$0xff] %vm2492_vm6, %v3855_v36 }
 0x4a0   : > { %v5949_v12 = vadd.f32 %v9657_v46, %v5744_v55  ;;  %v4287_v50 = vpop.permute.xlu0 %4286  ;;  %v4782_v48 = vld [vmem:[#allocation3 + $0x630] sm:$0xff] }
 0x4a1   : > { %v2411_v63 = vpop.permute.xlu1 %2410  ;;  %v4783_v13 = vld [vmem:[#allocation3 + $0x638] sm:$0xff]  ;;  %4435 = vst.msk [vmem:[#allocation3 + $0x650] sm:$0xff] %vm2926_vm7, %v4287_v50  ;;  %v6146_v55 = vld [vmem:[#allocation4 + $0x130] sm:$0xff] }
 0x4a2   : > { %v6021_v21 = vmax.f32 %v5949_v12, 0.0  ;;  %2560 = vst.msk [vmem:[#allocation3 + $0x648] sm:$0xff] %vm2492_vm6, %v2411_v63  ;;  %5446 = vmatprep.mubr.f32.mxu1 %v4783_v13 }
 0x4a3   : > { %v6181_v39 = vld [vmem:[#allocation4 + $0x138] sm:$0xff]  ;;  %5447 = vmatmul.mubr.f32.gmra.mrb[132].mxu1 %v4782_v48 }
 0x4a4   : > { %v6217_v15 = vmax.f32 %v6144_v7, %v6181_v39  ;;  %6094 = vst.msk [vmem:[#allocation4 + $0x140] sm:$0xff] %vm6053_vm8, %v6021_v21  ;;  %v3424_v52 = vpop.permute.xlu0 %3423 }
 0x4a5   : > { %v5323_v38 = vpop.f32.mrb[82].mxu1  ;;  %v2845_v20 = vpop.permute.xlu1 %2844  ;;  %3571 = vst.msk [vmem:[#allocation3 + $0x668] sm:$0xff] %vm2059_vm5, %v3424_v52 }
 0x4a6   : > { %6253 = vst.msk [vmem:[#allocation5 + $0x90] sm:$0xff] %vm6053_vm8, %v6217_v15  ;;  %v5749_v59 = vadd.f32 %v8965_v2, %v5323_v38  ;;  %v5325_v28 = vpop.f32.mrb[83].mxu1  ;;  %v9945_v15 = vld [vmem:[%s10088_s4] ss:$0 sm:$0xff] }
 0x4a7   : > { %2994 = vst.msk [vmem:[#allocation3 + $0x648] sm:$0xff] %vm2926_vm7, %v2845_v20 }
 0x4a8   : > { %v5950_v41 = vadd.f32 %v9657_v46, %v5749_v59  ;;  %v2413_v57 = vpop.permute.xlu0 %2412  ;;  %v4786_v24 = vld [vmem:[#allocation3 + $0x650] sm:$0xff] }
 0x4a9   : > { %v3857_v5 = vpop.permute.xlu1 %3856  ;;  %2561 = vst.msk [vmem:[#allocation3 + $0x660] sm:$0xff] %vm2492_vm6, %v2413_v57  ;;  %5451 = vmatprep.mubr.f32.mxu1 %v4786_v24 }
 0x4aa   : > { %v6022_v25 = vmax.f32 %v5950_v41, 0.0  ;;  %4004 = vst.msk [vmem:[#allocation3 + $0x668] sm:$0xff] %vm2492_vm6, %v3857_v5 }
 0x4ab   : > { %v6182_v42 = vld [vmem:[#allocation4 + $0x140] sm:$0xff] }
 0x4ac   : > { %v6218_v2 = vmax.f32 %v6145_v62, %v6182_v42  ;;  %6095 = vst.msk [vmem:[#allocation4 + $0x148] sm:$0xff] %vm6053_vm8, %v6022_v25  ;;  %v2847_v26 = vpop.permute.xlu0 %2846 }
 0x4ad   : > { %v5328_v32 = vpop.f32.mrb[84].mxu1  ;;  %v4289_v54 = vpop.permute.xlu1 %4288  ;;  %2995 = vst.msk [vmem:[#allocation3 + $0x660] sm:$0xff] %vm2926_vm7, %v2847_v26 }
 0x4ae   : > { %v4785_v10 = vld [vmem:[#allocation3 + $0x648] sm:$0xff]  ;;  %6254 = vst.msk [vmem:[#allocation5 + $0x98] sm:$0xff] %vm6053_vm8, %v6218_v2  ;;  %v5754_v35 = vadd.f32 %v8981_v44, %v5328_v32  ;;  %v5330_v61 = vpop.f32.mrb[85].mxu1 }
 0x4af   : > { %4436 = vst.msk [vmem:[#allocation3 + $0x668] sm:$0xff] %vm2926_vm7, %v4289_v54  ;;  %5452 = vmatmul.mubr.f32.gmra.mrb[134].mxu1 %v4785_v10 }
 0x4b0   : > { %v5951_v23 = vadd.f32 %v9657_v46, %v5754_v35  ;;  %v3859_v40 = vpop.permute.xlu0 %3858 }
 0x4b1   : > { %v3426_v53 = vpop.permute.xlu1 %3425 }
 0x4b2   : > { %v6023_v22 = vmax.f32 %v5951_v23, 0.0  ;;  %3572 = vst.msk [vmem:[#allocation3 + $0x680] sm:$0xff] %vm2059_vm5, %v3426_v53 }
 0x4b3   : > { %v6183_v36 = vld [vmem:[#allocation4 + $0x148] sm:$0xff]  ;;  %4005 = vst.msk [vmem:[#allocation3 + $0x680] sm:$0xff] %vm2492_vm6, %v3859_v40 }
 0x4b4   : > { %v6219_v33 = vmax.f32 %v6146_v55, %v6183_v36  ;;  %6096 = vst.msk [vmem:[#allocation4 + $0x150] sm:$0xff] %vm6053_vm8, %v6023_v22  ;;  %v4291_v48 = vpop.permute.xlu0 %4290  ;;  %v4788_v39 = vld [vmem:[#allocation3 + $0x660] sm:$0xff] }
 0x4b5   : > { %v6295_v44 = vld [vmem:[#allocation5 + $0x90] ss:$2 sm:$0xff]  ;;  %v6343_v12 = vld [vmem:[#allocation5 + $0x91] ss:$2 sm:$0xff]  ;;  %v5333_v63 = vpop.f32.mrb[86].mxu1  ;;  %v2415_v13 = vpop.permute.xlu1 %2414  ;;  %4437 = vst.msk [vmem:[#allocation3 + $0x680] sm:$0xff] %vm2926_vm7, %v4291_v48 }
 0x4b6   : > { %v4789_v21 = vld [vmem:[#allocation3 + $0x668] sm:$0xff]  ;;  %v6378_v50 = vmax.f32 %v6295_v44, %v6343_v12  ;;  %6255 = vst.msk [vmem:[#allocation5 + $0xa0] sm:$0xff] %vm6053_vm8, %v6219_v33  ;;  %v5759_v46 = vadd.f32 %v8977_v47, %v5333_v63  ;;  %v5335_v7 = vpop.f32.mrb[87].mxu1 }
 0x4b7   : > { %2562 = vst.msk [vmem:[#allocation3 + $0x678] sm:$0xff] %vm2492_vm6, %v2415_v13  ;;  %5456 = vmatprep.mubr.f32.mxu1 %v4789_v21 }
 0x4b8   : > { %5457 = vmatmul.mubr.f32.gmra.mrb[136].mxu1 %v4788_v39  ;;  %6403 = vst.msk [vmem:[%s9016_s7 + $0x60] sm:$0xff] %vm6053_vm8, %v6378_v50  ;;  %v5952_v38 = vadd.f32 %v9945_v15, %v5759_v46  ;;  %v3428_v59 = vpop.permute.xlu0 %3427 }
 0x4b9   : > { %v2849_v20 = vpop.permute.xlu1 %2848  ;;  %3573 = vst.msk [vmem:[#allocation3 + $0x698] sm:$0xff] %vm2059_vm5, %v3428_v59  ;;  %v4796_v59 = vld [vmem:[#allocation3 + $0x6a0] sm:$0xff] }
 0x4ba   : > { %v6024_v47 = vmax.f32 %v5952_v38, 0.0  ;;  %2996 = vst.msk [vmem:[#allocation3 + $0x678] sm:$0xff] %vm2926_vm7, %v2849_v20 }
 0x4bb   : > { %v6147_v48 = vld [vmem:[#allocation4 + $0x150] sm:$0xff] }
 0x4bc   : > { %6097 = vst.msk [vmem:[#allocation4 + $0x158] sm:$0xff] %vm6053_vm8, %v6024_v47  ;;  %v2417_v57 = vpop.permute.xlu0 %2416  ;;  %v4792_v24 = vld [vmem:[#allocation3 + $0x680] sm:$0xff] }
 0x4bd   : > { %v6297_v52 = vld [vmem:[#allocation5 + $0xa0] ss:$2 sm:$0xf]  ;;  %v6345_v28 = vld [vmem:[#allocation5 + $0xa1] ss:$2 sm:$0xf]  ;;  %v3861_v41 = vpop.permute.xlu1 %3860  ;;  %5461 = vmatprep.mubr.f32.mxu1 %v4792_v24 }
 0x4be   : > { %v6379_v5 = vmax.f32 %v6297_v52, %v6345_v28  ;;  %v5338_v25 = vpop.f32.mrb[88].mxu1  ;;  %4006 = vst.msk [vmem:[#allocation3 + $0x698] sm:$0xff] %vm2492_vm6, %v3861_v41  ;;  %2563 = vst.msk [vmem:[#allocation3 + $0x690] sm:$0xff] %vm2492_vm6, %v2417_v57  ;;  %v4799_v28 = vld [vmem:[#allocation3 + $0x6b8] sm:$0xff] }
 0x4bf   : > { %v5764_v62 = vadd.f32 %v9004_v37, %v5338_v25  ;;  %v5340_v42 = vpop.f32.mrb[89].mxu1 }
 0x4c0   : > { %6404 = vst.msk [vmem:[%s9016_s7 + $0x68] sm:$0xf] %vm6391_vm9, %v6379_v5  ;;  %v2851_v10 = vpop.permute.xlu0 %2850 }
 0x4c1   : > { %v5953_v2 = vadd.f32 %v9945_v15, %v5764_v62  ;;  %v4293_v32 = vpop.permute.xlu1 %4292  ;;  %v4791_v54 = vld [vmem:[#allocation3 + $0x678] sm:$0xff]  ;;  %2997 = vst.msk [vmem:[#allocation3 + $0x690] sm:$0xff] %vm2926_vm7, %v2851_v10 }
 0x4c2   : > { %4438 = vst.msk [vmem:[#allocation3 + $0x698] sm:$0xff] %vm2926_vm7, %v4293_v32  ;;  %5462 = vmatmul.mubr.f32.gmra.mrb[138].mxu1 %v4791_v54 }
 0x4c3   : > { %v6025_v35 = vmax.f32 %v5953_v2, 0.0  ;;  %v6148_v5 = vld [vmem:[#allocation4 + $0x158] sm:$0xff] }
 0x4c4   : > { %v3863_v23 = vpop.permute.xlu0 %3862 }
 0x4c5   : > { %6098 = vst.msk [vmem:[#allocation4 + $0x160] sm:$0xff] %vm6053_vm8, %v6025_v35  ;;  %v5343_v37 = vpop.f32.mrb[90].mxu1  ;;  %v3430_v26 = vpop.permute.xlu1 %3429 }
 0x4c6   : > { %v5769_v61 = vadd.f32 %v9000_v51, %v5343_v37  ;;  %3574 = vst.msk [vmem:[#allocation3 + $0x6b0] sm:$0xff] %vm2059_vm5, %v3430_v26  ;;  %v5345_v53 = vpop.f32.mrb[91].mxu1 }
 0x4c7   : > { %4007 = vst.msk [vmem:[#allocation3 + $0x6b0] sm:$0xff] %vm2492_vm6, %v3863_v23 }
 0x4c8   : > { %v5954_v22 = vadd.f32 %v9945_v15, %v5769_v61  ;;  %v4295_v33 = vpop.permute.xlu0 %4294  ;;  %v4794_v44 = vld [vmem:[#allocation3 + $0x690] sm:$0xff] }
 0x4c9   : > { %v2419_v40 = vpop.permute.xlu1 %2418  ;;  %v4795_v55 = vld [vmem:[#allocation3 + $0x698] sm:$0xff]  ;;  %4439 = vst.msk [vmem:[#allocation3 + $0x6b0] sm:$0xff] %vm2926_vm7, %v4295_v33 }
 0x4ca   : > { %v6026_v36 = vmax.f32 %v5954_v22, 0.0  ;;  %2564 = vst.msk [vmem:[#allocation3 + $0x6a8] sm:$0xff] %vm2492_vm6, %v2419_v40  ;;  %5466 = vmatprep.mubr.f32.mxu1 %v4795_v55 }
 0x4cb   : > { %5467 = vmatmul.mubr.f32.gmra.mrb[140].mxu1 %v4794_v44 }
 0x4cc   : > { %6099 = vst.msk [vmem:[#allocation4 + $0x168] sm:$0xff] %vm6053_vm8, %v6026_v36  ;;  %v6149_v32 = vld [vmem:[#allocation4 + $0x160] sm:$0xff] }
 0x4cd   : > { %v5348_v51 = vpop.f32.mrb[92].mxu1  ;;  %v2853_v12 = vpop.permute.xlu1 %2852 }
 0x4ce   : > { %v5774_v63 = vadd.f32 %v9024_v14, %v5348_v51  ;;  %2998 = vst.msk [vmem:[#allocation3 + $0x6a8] sm:$0xff] %vm2926_vm7, %v2853_v12  ;;  %v5350_v13 = vpop.f32.mrb[93].mxu1 }
 0x4d0   : > { %v5955_v21 = vadd.f32 %v9945_v15, %v5774_v63  ;;  %v4798_v46 = vld [vmem:[#allocation3 + $0x6b0] sm:$0xff] }
 0x4d1   : > { %5471 = vmatprep.mubr.f32.mxu1 %v4798_v46 }
 0x4d2   : > { %v6027_v50 = vmax.f32 %v5955_v21, 0.0 }
 0x4d3   : > { %v6184_v7 = vld [vmem:[#allocation4 + $0x168] sm:$0xff] }
 0x4d4   : > { %v6220_v39 = vmax.f32 %v6147_v48, %v6184_v7  ;;  %6100 = vst.msk [vmem:[#allocation4 + $0x170] sm:$0xff] %vm6053_vm8, %v6027_v50 }
 0x4d5   : > { %v5353_v38 = vpop.f32.mrb[94].mxu1  ;;  %v4797_v20 = vld [vmem:[#allocation3 + $0x6a8] sm:$0xff] }
 0x4d6   : > { %6256 = vst.msk [vmem:[#allocation5 + $0xa8] sm:$0xff] %vm6053_vm8, %v6220_v39  ;;  %v5779_v47 = vadd.f32 %v9022_v16, %v5353_v38  ;;  %v5355_v14 = vpop.f32.mrb[95].mxu1  ;;  %5472 = vmatmul.mubr.f32.gmra.mrb[142].mxu1 %v4797_v20 }
 0x4d7   : > { %7119 = vmatprep.mubr.msk.f32.mxu1 %vm1450_vm4, %v4796_v59 }
 0x4d8   : > { %v5956_v52 = vadd.f32 %v9945_v15, %v5779_v47 }
 0x4da   : > { %v6028_v41 = vmax.f32 %v5956_v52, 0.0  ;;  %7120 = vmatmul.mubr.msk.f32.vlgmr.msra.gmra.mrb[144].mxu1 %vm1450_vm4, %v4799_v28 }
 0x4db   : > { %v6185_v25 = vld [vmem:[#allocation4 + $0x170] sm:$0xff] }
 0x4dc   : > { %v6221_v57 = vmax.f32 %v6148_v5, %v6185_v25  ;;  %6101 = vst.msk [vmem:[#allocation4 + $0x178] sm:$0xff] %vm6053_vm8, %v6028_v41 }
 0x4dd   : > { %v5358_v24 = vpop.f32.mrb[96].mxu1 }
 0x4de   : > { %6257 = vst.msk [vmem:[#allocation5 + $0xb0] sm:$0xff] %vm6053_vm8, %v6221_v57  ;;  %v5784_v16 = vadd.f32 %v9040_v18, %v5358_v24  ;;  %v5360_v62 = vpop.f32.mrb[97].mxu1 }
 0x4e0   : > { %v5957_v42 = vadd.f32 %v9945_v15, %v5784_v16 }
 0x4e2   : > { %v6029_v2 = vmax.f32 %v5957_v42, 0.0 }
 0x4e3   : > { %v6186_v54 = vld [vmem:[#allocation4 + $0x178] sm:$0xff] }
 0x4e4   : > { %v6222_v10 = vmax.f32 %v6149_v32, %v6186_v54  ;;  %6102 = vst.msk [vmem:[#allocation4 + $0x180] sm:$0xff] %vm6053_vm8, %v6029_v2 }
 0x4e5   : > { %v6299_v35 = vld [vmem:[#allocation5 + $0xa8] ss:$2 sm:$0xff]  ;;  %v6347_v37 = vld [vmem:[#allocation5 + $0xa9] ss:$2 sm:$0xff]  ;;  %v5363_v26 = vpop.f32.mrb[98].mxu1 }
 0x4e6   : > { %v6380_v61 = vmax.f32 %v6299_v35, %v6347_v37  ;;  %6258 = vst.msk [vmem:[#allocation5 + $0xb8] sm:$0xff] %vm6053_vm8, %v6222_v10  ;;  %v5789_v23 = vadd.f32 %v9036_v0, %v5363_v26  ;;  %v5365_v53 = vpop.f32.mrb[99].mxu1 }
 0x4e8   : > { %6405 = vst.msk [vmem:[%s9016_s7 + $0x70] sm:$0xff] %vm6053_vm8, %v6380_v61  ;;  %v5958_v18 = vadd.f32 %v9945_v15, %v5789_v23 }
 0x4ea   : > { %v6030_v22 = vmax.f32 %v5958_v18, 0.0 }
 0x4eb   : > { %v6150_v20 = vld [vmem:[#allocation4 + $0x180] sm:$0xff] }
 0x4ec   : > { %6103 = vst.msk [vmem:[#allocation4 + $0x188] sm:$0xff] %vm6053_vm8, %v6030_v22 }
 0x4ed   : > { %v6301_v40 = vld [vmem:[#allocation5 + $0xb8] ss:$2 sm:$0xf]  ;;  %v6349_v55 = vld [vmem:[#allocation5 + $0xb9] ss:$2 sm:$0xf] }
 0x4ee   : > { %v6381_v36 = vmax.f32 %v6301_v40, %v6349_v55  ;;  %v5368_v33 = vpop.f32.mrb[100].mxu1 }
 0x4ef   : > { %v5794_v44 = vadd.f32 %v9065_v27, %v5368_v33  ;;  %v5370_v51 = vpop.f32.mrb[101].mxu1 }
 0x4f0   : > { %6406 = vst.msk [vmem:[%s9016_s7 + $0x78] sm:$0xf] %vm6391_vm9, %v6381_v36 }
 0x4f1   : > { %v5959_v12 = vadd.f32 %v9945_v15, %v5794_v44 }
 0x4f3   : > { %v6031_v0 = vmax.f32 %v5959_v12, 0.0  ;;  %v6151_v5 = vld [vmem:[#allocation4 + $0x188] sm:$0xff] }
 0x4f5   : > { %6104 = vst.msk [vmem:[#allocation4 + $0x190] sm:$0xff] %vm6053_vm8, %v6031_v0  ;;  %v5373_v63 = vpop.f32.mrb[102].mxu1 }
 0x4f6   : > { %v5799_v13 = vadd.f32 %v9062_v31, %v5373_v63  ;;  %v5375_v21 = vpop.f32.mrb[103].mxu1 }
 0x4f8   : > { %v5960_v50 = vadd.f32 %v9945_v15, %v5799_v13 }
 0x4fa   : > { %v6032_v46 = vmax.f32 %v5960_v50, 0.0 }
 0x4fc   : > { %6105 = vst.msk [vmem:[#allocation4 + $0x198] sm:$0xff] %vm6053_vm8, %v6032_v46 }
 0x4fd   : > { %v5378_v48 = vpop.f32.mrb[104].mxu1 }
 0x4fe   : > { %v5804_v27 = vadd.f32 %v9082_v34, %v5378_v48  ;;  %v5380_v7 = vpop.f32.mrb[105].mxu1 }
 0x500   : > { %v5961_v39 = vadd.f32 %v9945_v15, %v5804_v27 }
 0x502   : > { %v6033_v38 = vmax.f32 %v5961_v39, 0.0 }
 0x503   : > { %v6187_v47 = vld [vmem:[#allocation4 + $0x198] sm:$0xff] }
 0x504   : > { %v6223_v14 = vmax.f32 %v6150_v20, %v6187_v47  ;;  %6106 = vst.msk [vmem:[#allocation4 + $0x1a0] sm:$0xff] %vm6053_vm8, %v6033_v38 }
 0x505   : > { %v5383_v59 = vpop.f32.mrb[106].mxu1 }
 0x506   : > { %6259 = vst.msk [vmem:[#allocation5 + $0xc0] sm:$0xff] %vm6053_vm8, %v6223_v14  ;;  %v5809_v31 = vadd.f32 %v9080_v11, %v5383_v59  ;;  %v5385_v52 = vpop.f32.mrb[107].mxu1  ;;  %v6152_v11 = vld [vmem:[#allocation4 + $0x190] sm:$0xff] }
 0x508   : > { %v5962_v28 = vadd.f32 %v9945_v15, %v5809_v31 }
 0x50a   : > { %v6034_v41 = vmax.f32 %v5962_v28, 0.0 }
 0x50b   : > { %v6188_v34 = vld [vmem:[#allocation4 + $0x1a0] sm:$0xff] }
 0x50c   : > { %v6224_v25 = vmax.f32 %v6151_v5, %v6188_v34  ;;  %6107 = vst.msk [vmem:[#allocation4 + $0x1a8] sm:$0xff] %vm6053_vm8, %v6034_v41 }
 0x50d   : > { %v5388_v57 = vpop.f32.mrb[108].mxu1 }
 0x50e   : > { %6260 = vst.msk [vmem:[#allocation5 + $0xc8] sm:$0xff] %vm6053_vm8, %v6224_v25  ;;  %v5814_v24 = vadd.f32 %v9094_v4, %v5388_v57  ;;  %v5390_v16 = vpop.f32.mrb[109].mxu1 }
 0x510   : > { %v5963_v62 = vadd.f32 %v9945_v15, %v5814_v24 }
 0x512   : > { %v6035_v42 = vmax.f32 %v5963_v62, 0.0 }
 0x513   : > { %v6189_v2 = vld [vmem:[#allocation4 + $0x1a8] sm:$0xff] }
 0x514   : > { %v6225_v32 = vmax.f32 %v6152_v11, %v6189_v2  ;;  %6108 = vst.msk [vmem:[#allocation4 + $0x1b0] sm:$0xff] %vm6053_vm8, %v6035_v42 }
 0x515   : > { %v6303_v54 = vld [vmem:[#allocation5 + $0xc0] ss:$2 sm:$0xff]  ;;  %v6351_v10 = vld [vmem:[#allocation5 + $0xc1] ss:$2 sm:$0xff]  ;;  %v5393_v35 = vpop.f32.mrb[110].mxu1 }
 0x516   : > { %v6382_v37 = vmax.f32 %v6303_v54, %v6351_v10  ;;  %6261 = vst.msk [vmem:[#allocation5 + $0xd0] sm:$0xff] %vm6053_vm8, %v6225_v32  ;;  %v5819_v26 = vadd.f32 %v9091_v8, %v5393_v35  ;;  %v5395_v61 = vpop.f32.mrb[111].mxu1 }
 0x518   : > { %6407 = vst.msk [vmem:[%s9016_s7 + $0x80] sm:$0xff] %vm6053_vm8, %v6382_v37  ;;  %v5964_v4 = vadd.f32 %v9945_v15, %v5819_v26 }
 0x51a   : > { %v6036_v23 = vmax.f32 %v5964_v4, 0.0 }
 0x51b   : > { %v6153_v48 = vld [vmem:[#allocation4 + $0x1b0] sm:$0xff] }
 0x51c   : > { %6109 = vst.msk [vmem:[#allocation4 + $0x1b8] sm:$0xff] %vm6053_vm8, %v6036_v23 }
 0x51d   : > { %v6305_v53 = vld [vmem:[#allocation5 + $0xd0] ss:$2 sm:$0xf]  ;;  %v6353_v18 = vld [vmem:[#allocation5 + $0xd1] ss:$2 sm:$0xf] }
 0x51e   : > { %v6383_v22 = vmax.f32 %v6305_v53, %v6353_v18  ;;  %v5398_v40 = vpop.f32.mrb[112].mxu1 }
 0x51f   : > { %v5824_v55 = vadd.f32 %v9114_v9, %v5398_v40  ;;  %v5400_v36 = vpop.f32.mrb[113].mxu1 }
 0x520   : > { %6408 = vst.msk [vmem:[%s9016_s7 + $0x88] sm:$0xf] %vm6391_vm9, %v6383_v22 }
 0x521   : > { %v5965_v33 = vadd.f32 %v9945_v15, %v5824_v55 }
 0x523   : > { %v6037_v8 = vmax.f32 %v5965_v33, 0.0  ;;  %v6154_v14 = vld [vmem:[#allocation4 + $0x1b8] sm:$0xff] }
 0x525   : > { %6110 = vst.msk [vmem:[#allocation4 + $0x1c0] sm:$0xff] %vm6053_vm8, %v6037_v8  ;;  %v5403_v44 = vpop.f32.mrb[114].mxu1 }
 0x526   : > { %v5829_v51 = vadd.f32 %v9111_v58, %v5403_v44  ;;  %v5405_v12 = vpop.f32.mrb[115].mxu1 }
 0x528   : > { %v5966_v0 = vadd.f32 %v9945_v15, %v5829_v51 }
 0x52a   : > { %v6038_v63 = vmax.f32 %v5966_v0, 0.0 }
 0x52c   : > { %6111 = vst.msk [vmem:[#allocation4 + $0x1c8] sm:$0xff] %vm6053_vm8, %v6038_v63 }
 0x52d   : > { %v5408_v13 = vpop.f32.mrb[116].mxu1 }
 0x52e   : > { %v5834_v9 = vadd.f32 %v9126_v1, %v5408_v13  ;;  %v5410_v21 = vpop.f32.mrb[117].mxu1 }
 0x530   : > { %v5967_v50 = vadd.f32 %v9945_v15, %v5834_v9 }
 0x532   : > { %v6039_v46 = vmax.f32 %v5967_v50, 0.0 }
 0x533   : > { %v6190_v27 = vld [vmem:[#allocation4 + $0x1c8] sm:$0xff] }
 0x534   : > { %v6226_v7 = vmax.f32 %v6153_v48, %v6190_v27  ;;  %6112 = vst.msk [vmem:[#allocation4 + $0x1d0] sm:$0xff] %vm6053_vm8, %v6039_v46 }
 0x535   : > { %v5413_v39 = vpop.f32.mrb[118].mxu1 }
 0x536   : > { %6262 = vst.msk [vmem:[#allocation5 + $0xd8] sm:$0xff] %vm6053_vm8, %v6226_v7  ;;  %v5839_v58 = vadd.f32 %v9122_v3, %v5413_v39  ;;  %v5415_v38 = vpop.f32.mrb[119].mxu1  ;;  %v6155_v3 = vld [vmem:[#allocation4 + $0x1c0] sm:$0xff] }
 0x538   : > { %v5968_v20 = vadd.f32 %v9945_v15, %v5839_v58 }
 0x53a   : > { %v6040_v47 = vmax.f32 %v5968_v20, 0.0 }
 0x53b   : > { %v6191_v1 = vld [vmem:[#allocation4 + $0x1d0] sm:$0xff] }
 0x53c   : > { %v6227_v59 = vmax.f32 %v6154_v14, %v6191_v1  ;;  %6113 = vst.msk [vmem:[#allocation4 + $0x1d8] sm:$0xff] %vm6053_vm8, %v6040_v47 }
 0x53d   : > { %v5418_v31 = vpop.f32.mrb[120].mxu1 }
 0x53e   : > { %6263 = vst.msk [vmem:[#allocation5 + $0xe0] sm:$0xff] %vm6053_vm8, %v6227_v59  ;;  %v5844_v52 = vadd.f32 %v9138_v6, %v5418_v31  ;;  %v5420_v28 = vpop.f32.mrb[121].mxu1 }
 0x540   : > { %v5969_v41 = vadd.f32 %v9945_v15, %v5844_v52 }
 0x542   : > { %v6041_v5 = vmax.f32 %v5969_v41, 0.0 }
 0x543   : > { %v6192_v34 = vld [vmem:[#allocation4 + $0x1d8] sm:$0xff] }
 0x544   : > { %v6228_v25 = vmax.f32 %v6155_v3, %v6192_v34  ;;  %6114 = vst.msk [vmem:[#allocation4 + $0x1e0] sm:$0xff] %vm6053_vm8, %v6041_v5 }
 0x545   : > { %v6307_v57 = vld [vmem:[#allocation5 + $0xd8] ss:$2 sm:$0xff]  ;;  %v6355_v24 = vld [vmem:[#allocation5 + $0xd9] ss:$2 sm:$0xff]  ;;  %v5423_v16 = vpop.f32.mrb[122].mxu1 }
 0x546   : > { %v6384_v62 = vmax.f32 %v6307_v57, %v6355_v24  ;;  %6264 = vst.msk [vmem:[#allocation5 + $0xe8] sm:$0xff] %vm6053_vm8, %v6228_v25  ;;  %v5849_v42 = vadd.f32 %v9133_v45, %v5423_v16  ;;  %v5425_v11 = vpop.f32.mrb[123].mxu1 }
 0x548   : > { %6409 = vst.msk [vmem:[%s9016_s7 + $0x90] sm:$0xff] %vm6053_vm8, %v6384_v62  ;;  %v5970_v6 = vadd.f32 %v9945_v15, %v5849_v42 }
 0x54a   : > { %v6042_v2 = vmax.f32 %v5970_v6, 0.0 }
 0x54b   : > { %v6156_v33 = vld [vmem:[#allocation4 + $0x1e0] sm:$0xff] }
 0x54c   : > { %6115 = vst.msk [vmem:[#allocation4 + $0x1e8] sm:$0xff] %vm6053_vm8, %v6042_v2 }
 0x54d   : > { %v6309_v32 = vld [vmem:[#allocation5 + $0xe8] ss:$2 sm:$0xf]  ;;  %v6357_v54 = vld [vmem:[#allocation5 + $0xe9] ss:$2 sm:$0xf] }
 0x54e   : > { %v6385_v10 = vmax.f32 %v6309_v32, %v6357_v54  ;;  %v5428_v35 = vpop.f32.mrb[124].mxu1 }
 0x54f   : > { %v5854_v37 = vadd.f32 %v9161_v43, %v5428_v35  ;;  %v5430_v26 = vpop.f32.mrb[125].mxu1 }
 0x550   : > { %6410 = vst.msk [vmem:[%s9016_s7 + $0x98] sm:$0xf] %vm6391_vm9, %v6385_v10 }
 0x551   : > { %v5971_v61 = vadd.f32 %v9945_v15, %v5854_v37 }
 0x553   : > { %v6043_v45 = vmax.f32 %v5971_v61, 0.0  ;;  %v6157_v13 = vld [vmem:[#allocation4 + $0x1e8] sm:$0xff] }
 0x555   : > { %6116 = vst.msk [vmem:[#allocation4 + $0x1f0] sm:$0xff] %vm6053_vm8, %v6043_v45 }
 0x55a   : > { %v5433_v4 = vpop.f32.mrb[126].mxu1 }
 0x55b   : > { %v5859_v23 = vadd.f32 %v9159_v30, %v5433_v4  ;;  %v5435_v53 = vpop.f32.mrb[127].mxu1 }
 0x55c   : > { %v6158_v7 = vld [vmem:[#allocation4 + $0x1f0] sm:$0xff] }
 0x55d   : > { %v5972_v18 = vadd.f32 %v9945_v15, %v5859_v23 }
 0x55f   : > { %v6044_v22 = vmax.f32 %v5972_v18, 0.0 }
 0x561   : > { %6117 = vst.msk [vmem:[#allocation4 + $0x1f8] sm:$0xff] %vm6053_vm8, %v6044_v22 }
 0x563   : > { %v5438_v40 = vpop.f32.mrb[128].mxu1 }
 0x564   : > { %v5864_v43 = vadd.f32 %v9171_v29, %v5438_v40  ;;  %v5440_v55 = vpop.f32.mrb[129].mxu1 }
 0x566   : > { %v5973_v36 = vadd.f32 %v9945_v15, %v5864_v43 }
 0x568   : > { %v6193_v8 = vld [vmem:[#allocation4 + $0x1f8] sm:$0xff]  ;;  %v6045_v51 = vmax.f32 %v5973_v36, 0.0 }
 0x569   : > { %v6229_v44 = vmax.f32 %v6156_v33, %v6193_v8 }
 0x56a   : > { %6118 = vst.msk [vmem:[#allocation4 + $0x200] sm:$0xff] %vm6053_vm8, %v6045_v51 }
 0x56b   : > { %6265 = vst.msk [vmem:[#allocation5 + $0xf0] sm:$0xff] %vm6053_vm8, %v6229_v44 }
 0x56d   : > { %v5443_v30 = vpop.f32.mrb[130].mxu1 }
 0x56e   : > { %v5869_v12 = vadd.f32 %v9169_v56, %v5443_v30  ;;  %v5445_v0 = vpop.f32.mrb[131].mxu1 }
 0x570   : > { %v5974_v63 = vadd.f32 %v9945_v15, %v5869_v12 }
 0x571   : > { %v6194_v9 = vld [vmem:[#allocation4 + $0x200] sm:$0xff] }
 0x572   : > { %v6230_v29 = vmax.f32 %v6157_v13, %v6194_v9  ;;  %v6046_v21 = vmax.f32 %v5974_v63, 0.0 }
 0x574   : > { %6266 = vst.msk [vmem:[#allocation5 + $0xf8] sm:$0xff] %vm6053_vm8, %v6230_v29  ;;  %6119 = vst.msk [vmem:[#allocation4 + $0x208] sm:$0xff] %vm6053_vm8, %v6046_v21 }
 0x576   : > { %v5448_v50 = vpop.f32.mrb[132].mxu1 }
 0x577   : > { %v5874_v46 = vadd.f32 %v9878_v17, %v5448_v50  ;;  %v5450_v48 = vpop.f32.mrb[133].mxu1 }
 0x579   : > { %v5975_v27 = vadd.f32 %v9945_v15, %v5874_v46 }
 0x57b   : > { %v6311_v56 = vld [vmem:[#allocation5 + $0xf0] ss:$2 sm:$0xff]  ;;  %v6359_v39 = vld [vmem:[#allocation5 + $0xf1] ss:$2 sm:$0xff]  ;;  %v6195_v58 = vld [vmem:[#allocation4 + $0x208] sm:$0xff]  ;;  %v6047_v38 = vmax.f32 %v5975_v27, 0.0 }
 0x57c   : > { %v6386_v20 = vmax.f32 %v6311_v56, %v6359_v39  ;;  %v6231_v47 = vmax.f32 %v6158_v7, %v6195_v58 }
 0x57d   : > { %6120 = vst.msk [vmem:[#allocation4 + $0x210] sm:$0xff] %vm6053_vm8, %v6047_v38 }
 0x57e   : > { %6411 = vst.msk [vmem:[%s9016_s7 + $0xa0] sm:$0xff] %vm6053_vm8, %v6386_v20  ;;  %6267 = vst.msk [vmem:[#allocation5 + $0x100] sm:$0xff] %vm6053_vm8, %v6231_v47 }
 0x582   : > { %v5453_v14 = vpop.f32.mrb[134].mxu1 }
 0x583   : > { %v5879_v17 = vadd.f32 %v9875_v49, %v5453_v14  ;;  %v5455_v1 = vpop.f32.mrb[135].mxu1 }
 0x584   : > { %v6159_v2 = vld [vmem:[#allocation4 + $0x210] sm:$0xff] }
 0x585   : > { %v5976_v59 = vadd.f32 %v9945_v15, %v5879_v17  ;;  %v6313_v31 = vld [vmem:[#allocation5 + $0x100] ss:$2 sm:$0xf]  ;;  %v6361_v52 = vld [vmem:[#allocation5 + $0x101] ss:$2 sm:$0xf] }
 0x586   : > { %v6387_v28 = vmax.f32 %v6313_v31, %v6361_v52 }
 0x587   : > { %v6048_v41 = vmax.f32 %v5976_v59, 0.0 }
 0x588   : > { %6412 = vst.msk [vmem:[%s9016_s7 + $0xa8] sm:$0xf] %vm6391_vm9, %v6387_v28 }
 0x589   : > { %6121 = vst.msk [vmem:[#allocation4 + $0x218] sm:$0xff] %vm6053_vm8, %v6048_v41 }
 0x58b   : > { %v5458_v5 = vpop.f32.mrb[136].mxu1 }
 0x58c   : > { %v5884_v3 = vadd.f32 %v9914_v60, %v5458_v5  ;;  %v5460_v34 = vpop.f32.mrb[137].mxu1 }
 0x58e   : > { %v5977_v25 = vadd.f32 %v9945_v15, %v5884_v3 }
 0x590   : > { %v6049_v57 = vmax.f32 %v5977_v25, 0.0  ;;  %v6160_v22 = vld [vmem:[#allocation4 + $0x218] sm:$0xff] }
 0x592   : > { %6122 = vst.msk [vmem:[#allocation4 + $0x220] sm:$0xff] %vm6053_vm8, %v6049_v57 }
 0x595   : > { %v5463_v49 = vpop.f32.mrb[138].mxu1 }
 0x596   : > { %v5889_v24 = vadd.f32 %v9909_v19, %v5463_v49  ;;  %v5465_v16 = vpop.f32.mrb[139].mxu1 }
 0x598   : > { %v5978_v62 = vadd.f32 %v9945_v15, %v5889_v24 }
 0x599   : > { %v6161_v53 = vld [vmem:[#allocation4 + $0x220] sm:$0xff] }
 0x59a   : > { %v6050_v42 = vmax.f32 %v5978_v62, 0.0 }
 0x59c   : > { %6123 = vst.msk [vmem:[#allocation4 + $0x228] sm:$0xff] %vm6053_vm8, %v6050_v42 }
 0x59e   : > { %v5468_v11 = vpop.f32.mrb[140].mxu1 }
 0x59f   : > { %v5470_v6 = vpop.f32.mrb[141].mxu1 }
 0x5a3   : > { %v6196_v32 = vld [vmem:[#allocation4 + $0x228] sm:$0xff] }
 0x5a4   : > { %v6232_v60 = vmax.f32 %v6159_v2, %v6196_v32 }
 0x5a6   : > { %6268 = vst.msk [vmem:[#allocation5 + $0x108] sm:$0xff] %vm6053_vm8, %v6232_v60 }
 0x5a9   : > { %v5473_v54 = vpop.f32.mrb[142].mxu1 }
 0x5aa   : > { %v5475_v10 = vpop.f32.mrb[143].mxu1 }
 0x5ad   : > { %v7121_v35 = vpop.f32.mrb[144].mxu1 }
 0x5ae   : > { %v5899_v37 = vadd.f32 %v7121_v35, %v5473_v54  ;;  %v5893_v26 = vpop.f32.mrb[145].mxu1 }
 0x5af   : > { %v5894_v61 = vadd.f32 %v5893_v26, %v5468_v11 }
 0x5b0   : > { %v5980_v19 = vadd.f32 %v9945_v15, %v5899_v37 }
 0x5b1   : > { %v5979_v45 = vadd.f32 %v9945_v15, %v5894_v61 }
 0x5b2   : > { %v6052_v4 = vmax.f32 %v5980_v19, 0.0 }
 0x5b3   : > { %v6051_v23 = vmax.f32 %v5979_v45, 0.0 }
 0x5b4   : > { %6125 = vst.msk [vmem:[#allocation4 + $0x238] sm:$0xff] %vm6053_vm8, %v6052_v4 }
 0x5b5   : > { %6124 = vst.msk [vmem:[#allocation4 + $0x230] sm:$0xff] %vm6053_vm8, %v6051_v23 }
 0x5bb   : > { %v6198_v18 = vld [vmem:[#allocation4 + $0x238] sm:$0xff] }
 0x5bc   : > { %v6234_v40 = vmax.f32 %v6161_v53, %v6198_v18  ;;  %v6197_v43 = vld [vmem:[#allocation4 + $0x230] sm:$0xff] }
 0x5bd   : > { %v6233_v55 = vmax.f32 %v6160_v22, %v6197_v43 }
 0x5be   : > { %6270 = vst.msk [vmem:[#allocation5 + $0x118] sm:$0xff] %vm6053_vm8, %v6234_v40 }
 0x5bf   : > { %6269 = vst.msk [vmem:[#allocation5 + $0x110] sm:$0xff] %vm6053_vm8, %v6233_v55 }
 0x5c5   : > { %v6317_v36 = vld [vmem:[#allocation5 + $0x118] ss:$2 sm:$0xf]  ;;  %v6365_v15 = vld [vmem:[#allocation5 + $0x119] ss:$2 sm:$0xf] }
 0x5c6   : > { %v6389_v33 = vmax.f32 %v6317_v36, %v6365_v15  ;;  %v6315_v8 = vld [vmem:[#allocation5 + $0x108] ss:$2 sm:$0xff]  ;;  %v6363_v44 = vld [vmem:[#allocation5 + $0x109] ss:$2 sm:$0xff] }
 0x5c7   : > { %v6388_v51 = vmax.f32 %v6315_v8, %v6363_v44 }
 0x5c8   : > { %6414 = vst.msk [vmem:[%s9016_s7 + $0xb8] sm:$0xf] %vm6391_vm9, %v6389_v33 }
 0x5c9   : > { %6413 = vst.msk [vmem:[%s9016_s7 + $0xb0] sm:$0xff] %vm6053_vm8, %v6388_v51 }
 0x5ca PF: > { %s15_s18 = sadd.s32 1, %s7218_s18  }
 0x5cb   : > { %p12_p4 = scmp.ge.s32.totalorder %s15_s18, 4  }
 0x5cd   :  { %14 = sbr.rel (!%p12_p4) target bundleno = 1 (0x1), region = 120 }

</bundles_post_ra>
